<compile_context>
chip_gen: v7x
topology: tpu7x:2x2x1
jax: 0.10.0
libtpu: 0.0.40
codegen_flags: <defaults>
</compile_context>

<pallas_src>
import math

import numpy as np
import jax
import jax.numpy as jnp
from jax import lax
from jax.experimental import pallas as pl
from jax.experimental.pallas import tpu as pltpu


NODE_N = 66
BN_EPS = 1e-5
N_BRANCH = 7

# ----------------------------------------------------------------------------
# Index sets (exactly as in the PyTorch __init__).
# ----------------------------------------------------------------------------
_left = np.array([0, 1, 2, 3, 8, 9, 10, 11, 12, 13, 14, 15, 16])
LEFTDIM = np.concatenate((_left * 3, _left * 3 + 1, _left * 3 + 2))
_right = np.array([4, 5, 6, 7, 8, 9, 10, 11, 17, 18, 19, 20, 21])
RIGHTDIM = np.concatenate((_right * 3, _right * 3 + 1, _right * 3 + 2))
_V1 = np.array([0, 1, 2, 3, 8, 9, 10])
_V2 = np.array([11, 12, 13, 14, 15, 16])
_V3 = np.array([4, 5, 6, 7, 8, 9, 10])
_V4 = np.array([11, 17, 18, 19, 20, 21])
V1DIM = np.concatenate((_V1 * 3, _V1 * 3 + 1, _V1 * 3 + 2))
V2DIM = np.concatenate((_V2 * 3, _V2 * 3 + 1, _V2 * 3 + 2))
V3DIM = np.concatenate((_V3 * 3, _V3 * 3 + 1, _V3 * 3 + 2))
V4DIM = np.concatenate((_V4 * 3, _V4 * 3 + 1, _V4 * 3 + 2))

# branch order: full, left, right, v1, v2, v3, v4
BRANCH_IDX = [None, LEFTDIM, RIGHTDIM, V1DIM, V2DIM, V3DIM, V4DIM]
N_REAL = [66, 39, 39, 21, 18, 21, 18]


def _pad8(n):
    return ((n + 7) // 8) * 8


N_PAD = [_pad8(n) for n in N_REAL]                                  # [72,40,40,24,24,24,24]
OFFS = [int(v) for v in np.concatenate(([0], np.cumsum(N_PAD)[:-1]))]
NP_TOT = int(sum(N_PAD))                                            # 248
NODE_PAD = N_PAD[0]                                                 # 72


# ----------------------------------------------------------------------------
# In-kernel helpers.
# ----------------------------------------------------------------------------
def _dot(a, b):
    return jnp.dot(a, b, preferred_element_type=jnp.float32)


def _full_spec(shape):
    nd = len(shape)
    return pl.BlockSpec(shape, lambda i, _nd=nd: (0,) * _nd)


# ----------------------------------------------------------------------------
# The single fused kernel.
#   inputs : xf (72, B*fin) folded input, then all pre-folded weights
#   outputs: y (72, B*fin), yl (40, B*fin), yr (40, B*fin)   (padded rows sliced off outside)
#   scratch: (248, B*h) reassembly buffer for the per-branch W matmuls
# ----------------------------------------------------------------------------
def _make_kernel(num_stage):
    offs, npad = OFFS, N_PAD

    def kernel(*refs):
        it = iter(refs)
        xf_ref = next(it)
        A1, W1, S1, T1 = [next(it) for _ in range(4)]
        stages = [[next(it) for _ in range(8)] for _ in range(num_stage)]
        SELL, W7L, A7L, B7L = [next(it) for _ in range(4)]
        SELR, W7R, A7R, B7R = [next(it) for _ in range(4)]
        SCLR, SCV, W7A, W7B, W7C, A7, B7 = [next(it) for _ in range(7)]
        y_out, yl_out, yr_out = [next(it) for _ in range(3)]
        zs = next(it)                                    # (248, B*h) VMEM scratch

        def seg_w(t, w_ref):
            # per-branch feature transform on the node-stacked activation (8-aligned slices)
            for i in range(N_BRANCH):
                o, n = offs[i], npad[i]
                zs[o:o + n, :] = _dot(t[o:o + n], w_ref[i])
            return zs[...]

        def gc_bn_tanh(y_in, att_ref, w_ref, s_ref, t_ref):
            # GraphConvolution (+bias) + eval-BatchNorm + tanh; bias/BN folded to scale/shift.
            t = _dot(att_ref[...], y_in)                 # single block-diagonal att matmul
            return jnp.tanh(seg_w(t, w_ref) * s_ref[...] + t_ref[...])

        x = xf_ref[...]                                  # (72, B*fin)

        # gc1 + BN1 + tanh across all 7 branches at once
        y = gc_bn_tanh(x, A1, W1, S1, T1)                # (248, B*h)

        # residual GC_Blocks
        for (aA, wA, sA, tA, aB, wB, sB, tB) in stages:
            u = gc_bn_tanh(y, aA, wA, sA, tA)
            u = gc_bn_tanh(u, aB, wB, sB, tB)
            y = y + u

        # encoder stack slices (all sublane-aligned, contiguous)
        y_full = y[0:offs[1]]                            # (72,  B*h)  full branch
        y_l = y[offs[1]:offs[2]]                         # (40,  B*h)  left branch
        y_r = y[offs[2]:offs[3]]                         # (40,  B*h)  right branch
        y_lr = y[offs[1]:offs[3]]                        # (80,  B*h)  [left ; right]
        y_v = y[offs[3]:]                                # (96,  B*h)  [v1 ; v2 ; v3 ; v4]

        # gc7l / gc7r decoders + residual (x selection folded into one-hot SEL matmuls)
        yl_out[...] = _dot(A7L[...], _dot(y_l, W7L[...])) + B7L[...] + _dot(SELL[...], x)
        yr_out[...] = _dot(A7R[...], _dot(y_r, W7R[...])) + B7R[...] + _dot(SELR[...], x)

        # final gc7 on cat([yV, ytotal, y], -1): last-writer-wins one-hot scatters merged
        # along K and fused with the pre-split gc7 weight (no zero "base" terms, no concat).
        support = (_dot(SCV[...], _dot(y_v, W7A[...]))
                   + _dot(SCLR[...], _dot(y_lr, W7B[...]))
                   + _dot(y_full, W7C[...]))             # (72, B*fin)
        y_out[...] = _dot(A7[...], support) + B7[...] + x

    return kernel


# ----------------------------------------------------------------------------
# Raw parameter construction (matches the module __init__ shapes, eval-mode BN stats).
# ----------------------------------------------------------------------------
def init_gc(key, fin, fout, n):
    k1, k2, k3 = jax.random.split(key, 3)
    stdv = 1.0 / math.sqrt(fout)
    return {"w": jax.random.uniform(k1, (fin, fout), jnp.float32, -stdv, stdv),
            "att": jax.random.uniform(k2, (n, n), jnp.float32, -stdv, stdv),
            "b": jax.random.uniform(k3, (fout,), jnp.float32, -stdv, stdv)}


def init_bn(key, n, f):
    k1, k2, k3, k4 = jax.random.split(key, 4)
    gamma = (1.0 + 0.1 * jax.random.normal(k1, (n, f))).astype(jnp.float32)
    beta = (0.1 * jax.random.normal(k2, (n, f))).astype(jnp.float32)
    mean = (0.1 * jax.random.normal(k3, (n, f))).astype(jnp.float32)
    var = (0.9 + 0.1 * jnp.abs(jax.random.normal(k4, (n, f)))).astype(jnp.float32)
    return (gamma, beta, mean, var)


def init_gc_block(key, f, n):
    k1, k2, k3, k4 = jax.random.split(key, 4)
    g1, g2 = init_gc(k1, f, f, n), init_gc(k2, f, f, n)
    return {"w1": g1["w"], "att1": g1["att"], "b1": g1["b"], "bn1": init_bn(k3, n, f),
            "w2": g2["w"], "att2": g2["att"], "b2": g2["b"], "bn2": init_bn(k4, n, f)}


def init_subnet_gcn(key, input_feature, hidden_feature, num_stage=1):
    keys = iter(jax.random.split(key, 64))
    nk = lambda: next(keys)
    p = {}
    p["gc1"] = init_gc(nk(), input_feature, hidden_feature, 66)
    p["gc1l"] = init_gc(nk(), input_feature, hidden_feature, 39)
    p["gc1r"] = init_gc(nk(), input_feature, hidden_feature, 39)
    p["gc1v1"] = init_gc(nk(), input_feature, hidden_feature, 21)
    p["gc1v2"] = init_gc(nk(), input_feature, hidden_feature, 18)
    p["gc1v3"] = init_gc(nk(), input_feature, hidden_feature, 21)
    p["gc1v4"] = init_gc(nk(), input_feature, hidden_feature, 18)
    p["gc7"] = init_gc(nk(), 3 * hidden_feature, input_feature, 66)
    p["gc7l"] = init_gc(nk(), hidden_feature, input_feature, 39)
    p["gc7r"] = init_gc(nk(), hidden_feature, input_feature, 39)
    p["bn1"] = init_bn(nk(), 66, hidden_feature)
    p["bn1l"] = init_bn(nk(), 39, hidden_feature)
    p["bn1r"] = init_bn(nk(), 39, hidden_feature)
    p["bn1v1"] = init_bn(nk(), 21, hidden_feature)
    p["bn1v2"] = init_bn(nk(), 18, hidden_feature)
    p["bn1v3"] = init_bn(nk(), 21, hidden_feature)
    p["bn1v4"] = init_bn(nk(), 18, hidden_feature)
    p["gcbs"] = [init_gc_block(nk(), hidden_feature, 66) for _ in range(num_stage)]
    p["gcbsl"] = [init_gc_block(nk(), hidden_feature, 39) for _ in range(num_stage)]
    p["gcbsr"] = [init_gc_block(nk(), hidden_feature, 39) for _ in range(num_stage)]
    p["gcbv1"] = [init_gc_block(nk(), hidden_feature, 21) for _ in range(num_stage)]
    p["gcbv2"] = [init_gc_block(nk(), hidden_feature, 18) for _ in range(num_stage)]
    p["gcbv3"] = [init_gc_block(nk(), hidden_feature, 21) for _ in range(num_stage)]
    p["gcbv4"] = [init_gc_block(nk(), hidden_feature, 18) for _ in range(num_stage)]
    return p


# ----------------------------------------------------------------------------
# Parameter preparation: node-stack the 7 branches (8-aligned), build block-diag att,
# fold BN+bias to scale/shift, fold joint selections / scatter-backs into one-hot matmuls,
# pre-split gc7's W, and kron/tile-expand everything for the batch-on-lanes folding.
# ----------------------------------------------------------------------------
def prepare_params(raw, batch):
    num_stage = len(raw["gcbs"])
    fin = int(raw["gc1"]["w"].shape[0])
    h = int(raw["gc1"]["w"].shape[1])
    B = int(batch)
    bf, bh = B * fin, B * h

    branch_keys = [
        ("gc1", "bn1", "gcbs"), ("gc1l", "bn1l", "gcbsl"), ("gc1r", "bn1r", "gcbsr"),
        ("gc1v1", "bn1v1", "gcbv1"), ("gc1v2", "bn1v2", "gcbv2"),
        ("gc1v3", "bn1v3", "gcbv3"), ("gc1v4", "bn1v4", "gcbv4"),
    ]

    def npf(a):
        return np.asarray(a, np.float32)

    def kron_b(w):                       # batch-on-lanes fold: block-diag(W, ..., W)
        return np.kron(np.eye(B, dtype=np.float32), npf(w))

    def fold_bn(bn, bias):               # eval-BN + layer bias -> scale/shift
        gamma, beta, mean, var = [npf(a) for a in bn]
        scale = gamma / np.sqrt(var + BN_EPS)
        shift = beta + (npf(bias)[None, :] - mean) * scale
        return scale, shift

    # --- gc1 (+BN1) across all branches, joint selection folded into att ---
    A1 = np.zeros((NP_TOT, NODE_PAD), np.float32)
    W1 = np.zeros((N_BRANCH, bf, bh), np.float32)
    S1 = np.zeros((NP_TOT, bh), np.float32)
    T1 = np.zeros((NP_TOT, bh), np.float32)
    for bi, (gk, bk, _) in enumerate(branch_keys):
        g = raw[gk]
        n, off = N_REAL[bi], OFFS[bi]
        att = npf(g["att"])
        idx = BRANCH_IDX[bi]
        if idx is None:
            A1[off:off + n, :NODE_N] = att
        else:
            A1[off:off + n, np.asarray(idx)] = att       # att @ one-hot joint selector
        W1[bi] = kron_b(g["w"])
        sc, sh = fold_bn(raw[bk], g["b"])
        S1[off:off + n] = np.tile(sc, (1, B))
        T1[off:off + n] = np.tile(sh, (1, B))
    arrays = [A1, W1, S1, T1]

    # --- GC_Blocks: block-diagonal att per layer, per-branch W, folded BN ---
    for s in range(num_stage):
        for half in (1, 2):
            ATT = np.zeros((NP_TOT, NP_TOT), np.float32)
            Wst = np.zeros((N_BRANCH, bh, bh), np.float32)
            Ssc = np.zeros((NP_TOT, bh), np.float32)
            Ssh = np.zeros((NP_TOT, bh), np.float32)
            for bi, (_, _, blkk) in enumerate(branch_keys):
                blk = raw[blkk][s]
                n, off = N_REAL[bi], OFFS[bi]
                ATT[off:off + n, off:off + n] = npf(blk[f"att{half}"])
                Wst[bi] = kron_b(blk[f"w{half}"])
                sc, sh = fold_bn(blk[f"bn{half}"], blk[f"b{half}"])
                Ssc[off:off + n] = np.tile(sc, (1, B))
                Ssh[off:off + n] = np.tile(sh, (1, B))
            arrays += [ATT, Wst, Ssc, Ssh]

    # --- gc7l / gc7r decoders (x-residual selection folded into one-hot SEL) ---
    def dec(gkey, idx, npd):
        g = raw[gkey]
        n = len(idx)
        SEL = np.zeros((npd, NODE_PAD), np.float32)
        SEL[np.arange(n), np.asarray(idx)] = 1.0
        A7x = np.zeros((npd, npd), np.float32)
        A7x[:n, :n] = npf(g["att"])
        B7x = np.tile(npf(g["b"])[None, :], (1, B))
        return [SEL, kron_b(g["w"]), A7x, B7x]

    arrays += dec("gc7l", LEFTDIM, N_PAD[1])
    arrays += dec("gc7r", RIGHTDIM, N_PAD[2])

    # --- final gc7: merged last-writer-wins scatter selectors + pre-split W7 ---
    def build_scat(idx_lists, blk_pads):
        src = np.full(NODE_N, -1, np.int64)
        pos = np.zeros(NODE_N, np.int64)
        for li, idx in enumerate(idx_lists):
            for k, i in enumerate(np.asarray(idx)):
                src[i] = li
                pos[i] = k
        assert (src >= 0).all()          # every row overwritten -> no zero "base" term needed
        col_off = np.concatenate(([0], np.cumsum(blk_pads)[:-1]))
        S = np.zeros((NODE_PAD, int(np.sum(blk_pads))), np.float32)
        for i in range(NODE_N):
            S[i, int(col_off[src[i]] + pos[i])] = 1.0
        return S

    SCLR = build_scat([LEFTDIM, RIGHTDIM], [N_PAD[1], N_PAD[2]])
    SCV = build_scat([V1DIM, V2DIM, V3DIM, V4DIM], N_PAD[3:7])
    w7 = npf(raw["gc7"]["w"])                                        # (3h, fin)
    A7 = np.zeros((NODE_PAD, NODE_PAD), np.float32)
    A7[:NODE_N, :NODE_N] = npf(raw["gc7"]["att"])
    B7 = np.tile(npf(raw["gc7"]["b"])[None, :], (1, B))
    arrays += [SCLR, SCV, kron_b(w7[:h]), kron_b(w7[h:2 * h]), kron_b(w7[2 * h:]), A7, B7]

    return {"arrays": [jnp.asarray(a) for a in arrays],
            "num_stage": num_stage, "batch": B, "fin": fin, "h": h}


# ----------------------------------------------------------------------------
# Forward pass (eval mode: dropout is identity).
# ----------------------------------------------------------------------------
def subnet_gcn_forward(params, x, residual=True):
    if not residual:
        # TODO(synk): residual=False path (returns raw concatenated encoder features) not fused.
        raise NotImplementedError("only the residual=True forward path is implemented")
    B, fin, h = params["batch"], params["fin"], params["h"]
    assert x.shape == (B, NODE_N, fin)
    bf, bh = B * fin, B * h

    # fold batch onto the lane axis: (B, 66, fin) -> (72, B*fin), columns = [batch0 | batch1 ...]
    xf = jnp.transpose(x, (1, 0, 2)).reshape(NODE_N, bf)
    xf = jnp.pad(xf, ((0, NODE_PAD - NODE_N), (0, 0)))

    arrays = params["arrays"]
    out_shape = (jax.ShapeDtypeStruct((NODE_PAD, bf), jnp.float32),
                 jax.ShapeDtypeStruct((N_PAD[1], bf), jnp.float32),
                 jax.ShapeDtypeStruct((N_PAD[2], bf), jnp.float32))

    fn = pl.pallas_call(
        _make_kernel(params["num_stage"]),
        out_shape=out_shape,
        grid=(1,),
        in_specs=[_full_spec(xf.shape)] + [_full_spec(a.shape) for a in arrays],
        out_specs=tuple(_full_spec(s.shape) for s in out_shape),
        scratch_shapes=[pltpu.VMEM((NP_TOT, bh), jnp.float32)],
        compiler_params=pltpu.CompilerParams(dimension_semantics=("arbitrary",)),
    )
    yf, ylf, yrf = fn(xf, *arrays)

    def unfold(f, n):                    # (n_pad, B*fin) -> (B, n, fin)
        return jnp.transpose(f[:n].reshape(n, B, fin), (1, 0, 2))

    return unfold(yf, NODE_N), unfold(ylf, 39), unfold(yrf, 39)


# ----------------------------------------------------------------------------
# Pure-JAX reference of the torch forward (for in-script validation).
# ----------------------------------------------------------------------------
def reference_forward(raw, x, num_stage, residual=True):
    HI = lax.Precision.HIGHEST

    def gc(xb, p):
        xw = jnp.einsum("bnf,fg->bng", xb, p["w"], precision=HI)
        return jnp.einsum("nm,bmg->bng", p["att"], xw, precision=HI) + p["b"]

    def bn_act(y, bn):
        gamma, beta, mean, var = bn
        return jnp.tanh((y - mean) / jnp.sqrt(var + BN_EPS) * gamma + beta)

    def block(y, blk):
        t = bn_act(gc(y, {"w": blk["w1"], "att": blk["att1"], "b": blk["b1"]}), blk["bn1"])
        t = bn_act(gc(t, {"w": blk["w2"], "att": blk["att2"], "b": blk["b2"]}), blk["bn2"])
        return y + t

    def branch(xb, gk, bk, lk):
        y = bn_act(gc(xb, raw[gk]), raw[bk])
        for i in range(num_stage):
            y = block(y, raw[lk][i])
        return y

    xl, xr = x[:, LEFTDIM, :], x[:, RIGHTDIM, :]
    y = branch(x, "gc1", "bn1", "gcbs")
    yl = branch(xl, "gc1l", "bn1l", "gcbsl")
    yr = branch(xr, "gc1r", "bn1r", "gcbsr")
    yv1 = branch(x[:, V1DIM, :], "gc1v1", "bn1v1", "gcbv1")
    yv2 = branch(x[:, V2DIM, :], "gc1v2", "bn1v2", "gcbv2")
    yv3 = branch(x[:, V3DIM, :], "gc1v3", "bn1v3", "gcbv3")
    yv4 = branch(x[:, V4DIM, :], "gc1v4", "bn1v4", "gcbv4")

    ytotal = y.at[:, LEFTDIM, :].set(yl).at[:, RIGHTDIM, :].set(yr)
    yV = (y.at[:, V1DIM, :].set(yv1).at[:, V2DIM, :].set(yv2)
          .at[:, V3DIM, :].set(yv3).at[:, V4DIM, :].set(yv4))
    ycat = jnp.concatenate([yV, ytotal, y], axis=2)
    if residual:
        return gc(ycat, raw["gc7"]) + x, gc(yl, raw["gc7l"]) + xl, gc(yr, raw["gc7r"]) + xr
    return ycat, yl, yr


# ----------------------------------------------------------------------------
# Main
# ----------------------------------------------------------------------------
if __name__ == "__main__":
    batch = 2
    input_feature = 16       # dct_n
    hidden_feature = 32
    num_stage = 1
    node_n = NODE_N          # 66, fixed by the module's index sets

    key = jax.random.PRNGKey(0)
    k_param, k_x = jax.random.split(key)
    raw = init_subnet_gcn(k_param, input_feature, hidden_feature, num_stage)
    params = prepare_params(raw, batch=batch)
    x = jax.random.normal(k_x, (batch, node_n, input_feature), dtype=jnp.float32)

    fwd = jax.jit(lambda xx: subnet_gcn_forward(params, xx, residual=True))
    y, yl, yr = fwd(x)
    jax.block_until_ready((y, yl, yr))

    assert y.shape == (batch, 66, input_feature)
    assert yl.shape == (batch, 39, input_feature)
    assert yr.shape == (batch, 39, input_feature)

    # Validate against the pure-JAX reference (loose tolerance: matmul re-association /
    # MXU precision-order differences only).
    ry, ryl, ryr = reference_forward(raw, x, num_stage, residual=True)
    err = max(float(jnp.max(jnp.abs(y - ry))),
              float(jnp.max(jnp.abs(yl - ryl))),
              float(jnp.max(jnp.abs(yr - ryr))))
    assert err < 5e-2, f"mismatch vs reference: max abs err {err}"

    print("KERNEL_OK")
</pallas_src>

<mosaic_0001>
module attributes {stable_mosaic.version = 11 : i64} {
  func.func @kernel(%arg0: i32, %arg1: memref<72x32xf32, #tpu.memory_space<vmem>>, %arg2: memref<248x72xf32, #tpu.memory_space<vmem>>, %arg3: memref<7x32x64xf32, #tpu.memory_space<vmem>>, %arg4: memref<248x64xf32, #tpu.memory_space<vmem>>, %arg5: memref<248x64xf32, #tpu.memory_space<vmem>>, %arg6: memref<248x248xf32, #tpu.memory_space<vmem>>, %arg7: memref<7x64x64xf32, #tpu.memory_space<vmem>>, %arg8: memref<248x64xf32, #tpu.memory_space<vmem>>, %arg9: memref<248x64xf32, #tpu.memory_space<vmem>>, %arg10: memref<248x248xf32, #tpu.memory_space<vmem>>, %arg11: memref<7x64x64xf32, #tpu.memory_space<vmem>>, %arg12: memref<248x64xf32, #tpu.memory_space<vmem>>, %arg13: memref<248x64xf32, #tpu.memory_space<vmem>>, %arg14: memref<40x72xf32, #tpu.memory_space<vmem>>, %arg15: memref<64x32xf32, #tpu.memory_space<vmem>>, %arg16: memref<40x40xf32, #tpu.memory_space<vmem>>, %arg17: memref<1x32xf32, #tpu.memory_space<vmem>>, %arg18: memref<40x72xf32, #tpu.memory_space<vmem>>, %arg19: memref<64x32xf32, #tpu.memory_space<vmem>>, %arg20: memref<40x40xf32, #tpu.memory_space<vmem>>, %arg21: memref<1x32xf32, #tpu.memory_space<vmem>>, %arg22: memref<72x80xf32, #tpu.memory_space<vmem>>, %arg23: memref<72x96xf32, #tpu.memory_space<vmem>>, %arg24: memref<64x32xf32, #tpu.memory_space<vmem>>, %arg25: memref<64x32xf32, #tpu.memory_space<vmem>>, %arg26: memref<64x32xf32, #tpu.memory_space<vmem>>, %arg27: memref<72x72xf32, #tpu.memory_space<vmem>>, %arg28: memref<1x32xf32, #tpu.memory_space<vmem>>, %arg29: memref<72x32xf32, #tpu.memory_space<vmem>>, %arg30: memref<40x32xf32, #tpu.memory_space<vmem>>, %arg31: memref<40x32xf32, #tpu.memory_space<vmem>>, %arg32: memref<248x64xf32, #tpu.memory_space<vmem>>) attributes {dimension_semantics = [#tpu.dimension_semantics<arbitrary>], iteration_bounds = array<i64: 1>, scalar_prefetch = 0 : i64, scratch_operands = 1 : i64, tpu.core_type = #tpu.core_type<tc>, window_params = [{pipeline_mode = #tpu.pipeline_mode<synchronous>, transform_indices = @transform_0, window_bounds = array<i64: 72, 32>}, {pipeline_mode = #tpu.pipeline_mode<synchronous>, transform_indices = @transform_1, window_bounds = array<i64: 248, 72>}, {pipeline_mode = #tpu.pipeline_mode<synchronous>, transform_indices = @transform_2, window_bounds = array<i64: 7, 32, 64>}, {pipeline_mode = #tpu.pipeline_mode<synchronous>, transform_indices = @transform_3, window_bounds = array<i64: 248, 64>}, {pipeline_mode = #tpu.pipeline_mode<synchronous>, transform_indices = @transform_4, window_bounds = array<i64: 248, 64>}, {pipeline_mode = #tpu.pipeline_mode<synchronous>, transform_indices = @transform_5, window_bounds = array<i64: 248, 248>}, {pipeline_mode = #tpu.pipeline_mode<synchronous>, transform_indices = @transform_6, window_bounds = array<i64: 7, 64, 64>}, {pipeline_mode = #tpu.pipeline_mode<synchronous>, transform_indices = @transform_7, window_bounds = array<i64: 248, 64>}, {pipeline_mode = #tpu.pipeline_mode<synchronous>, transform_indices = @transform_8, window_bounds = array<i64: 248, 64>}, {pipeline_mode = #tpu.pipeline_mode<synchronous>, transform_indices = @transform_9, window_bounds = array<i64: 248, 248>}, {pipeline_mode = #tpu.pipeline_mode<synchronous>, transform_indices = @transform_10, window_bounds = array<i64: 7, 64, 64>}, {pipeline_mode = #tpu.pipeline_mode<synchronous>, transform_indices = @transform_11, window_bounds = array<i64: 248, 64>}, {pipeline_mode = #tpu.pipeline_mode<synchronous>, transform_indices = @transform_12, window_bounds = array<i64: 248, 64>}, {pipeline_mode = #tpu.pipeline_mode<synchronous>, transform_indices = @transform_13, window_bounds = array<i64: 40, 72>}, {pipeline_mode = #tpu.pipeline_mode<synchronous>, transform_indices = @transform_14, window_bounds = array<i64: 64, 32>}, {pipeline_mode = #tpu.pipeline_mode<synchronous>, transform_indices = @transform_15, window_bounds = array<i64: 40, 40>}, {pipeline_mode = #tpu.pipeline_mode<synchronous>, transform_indices = @transform_16, window_bounds = array<i64: 1, 32>}, {pipeline_mode = #tpu.pipeline_mode<synchronous>, transform_indices = @transform_17, window_bounds = array<i64: 40, 72>}, {pipeline_mode = #tpu.pipeline_mode<synchronous>, transform_indices = @transform_18, window_bounds = array<i64: 64, 32>}, {pipeline_mode = #tpu.pipeline_mode<synchronous>, transform_indices = @transform_19, window_bounds = array<i64: 40, 40>}, {pipeline_mode = #tpu.pipeline_mode<synchronous>, transform_indices = @transform_20, window_bounds = array<i64: 1, 32>}, {pipeline_mode = #tpu.pipeline_mode<synchronous>, transform_indices = @transform_21, window_bounds = array<i64: 72, 80>}, {pipeline_mode = #tpu.pipeline_mode<synchronous>, transform_indices = @transform_22, window_bounds = array<i64: 72, 96>}, {pipeline_mode = #tpu.pipeline_mode<synchronous>, transform_indices = @transform_23, window_bounds = array<i64: 64, 32>}, {pipeline_mode = #tpu.pipeline_mode<synchronous>, transform_indices = @transform_24, window_bounds = array<i64: 64, 32>}, {pipeline_mode = #tpu.pipeline_mode<synchronous>, transform_indices = @transform_25, window_bounds = array<i64: 64, 32>}, {pipeline_mode = #tpu.pipeline_mode<synchronous>, transform_indices = @transform_26, window_bounds = array<i64: 72, 72>}, {pipeline_mode = #tpu.pipeline_mode<synchronous>, transform_indices = @transform_27, window_bounds = array<i64: 1, 32>}, {pipeline_mode = #tpu.pipeline_mode<synchronous>, transform_indices = @transform_28, window_bounds = array<i64: 72, 32>}, {pipeline_mode = #tpu.pipeline_mode<synchronous>, transform_indices = @transform_29, window_bounds = array<i64: 40, 32>}, {pipeline_mode = #tpu.pipeline_mode<synchronous>, transform_indices = @transform_30, window_bounds = array<i64: 40, 32>}]} {
    %c0 = arith.constant 0 : index
    %c0_0 = arith.constant 0 : index
    %0 = vector.load %arg1[%c0, %c0_0] : memref<72x32xf32, #tpu.memory_space<vmem>>, vector<72x32xf32>
    %c0_1 = arith.constant 0 : index
    %c0_2 = arith.constant 0 : index
    %1 = vector.load %arg2[%c0_1, %c0_2] : memref<248x72xf32, #tpu.memory_space<vmem>>, vector<248x72xf32>
    %cst = arith.constant dense<0.000000e+00> : vector<248x32xf32>
    %2 = tpu.matmul %1, %0, %cst {dimension_numbers = #tpu.dot_dimension_numbers<[1], [0], [0], [1], [0, 0, 1, 1], [], []>} : vector<248x72xf32>, vector<72x32xf32>, vector<248x32xf32> -> vector<248x32xf32>
    %3 = vector.extract_strided_slice %2 {offsets = [0, 0], sizes = [72, 32], strides = [1, 1]} : vector<248x32xf32> to vector<72x32xf32>
    %c0_3 = arith.constant 0 : index
    %c0_4 = arith.constant 0 : index
    %c0_5 = arith.constant 0 : index
    %4 = vector.load %arg3[%c0_3, %c0_4, %c0_5] : memref<7x32x64xf32, #tpu.memory_space<vmem>>, vector<1x32x64xf32>
    %5 = vector.shape_cast %4 : vector<1x32x64xf32> to vector<32x64xf32>
    %cst_6 = arith.constant dense<0.000000e+00> : vector<72x64xf32>
    %6 = tpu.matmul %3, %5, %cst_6 {dimension_numbers = #tpu.dot_dimension_numbers<[1], [0], [0], [1], [0, 0, 1, 1], [], []>} : vector<72x32xf32>, vector<32x64xf32>, vector<72x64xf32> -> vector<72x64xf32>
    %c0_7 = arith.constant 0 : index
    %c0_8 = arith.constant 0 : index
    %7 = vector.load %arg32[%c0_7, %c0_8] : memref<248x64xf32, #tpu.memory_space<vmem>>, vector<72x64xf32>
    tpu.vector_store %arg32[%c0_7, %c0_8], %6 {strides = array<i32>} : memref<248x64xf32, #tpu.memory_space<vmem>>, vector<72x64xf32>,
    %8 = vector.extract_strided_slice %2 {offsets = [72, 0], sizes = [40, 32], strides = [1, 1]} : vector<248x32xf32> to vector<40x32xf32>
    %c1 = arith.constant 1 : index
    %c0_9 = arith.constant 0 : index
    %c0_10 = arith.constant 0 : index
    %9 = vector.load %arg3[%c1, %c0_9, %c0_10] : memref<7x32x64xf32, #tpu.memory_space<vmem>>, vector<1x32x64xf32>
    %10 = vector.shape_cast %9 : vector<1x32x64xf32> to vector<32x64xf32>
    %cst_11 = arith.constant dense<0.000000e+00> : vector<40x64xf32>
    %11 = tpu.matmul %8, %10, %cst_11 {dimension_numbers = #tpu.dot_dimension_numbers<[1], [0], [0], [1], [0, 0, 1, 1], [], []>} : vector<40x32xf32>, vector<32x64xf32>, vector<40x64xf32> -> vector<40x64xf32>
    %c72 = arith.constant 72 : index
    %c0_12 = arith.constant 0 : index
    %12 = vector.load %arg32[%c72, %c0_12] : memref<248x64xf32, #tpu.memory_space<vmem>>, vector<40x64xf32>
    tpu.vector_store %arg32[%c72, %c0_12], %11 {strides = array<i32>} : memref<248x64xf32, #tpu.memory_space<vmem>>, vector<40x64xf32>,
    %13 = vector.extract_strided_slice %2 {offsets = [112, 0], sizes = [40, 32], strides = [1, 1]} : vector<248x32xf32> to vector<40x32xf32>
    %c2 = arith.constant 2 : index
    %c0_13 = arith.constant 0 : index
    %c0_14 = arith.constant 0 : index
    %14 = vector.load %arg3[%c2, %c0_13, %c0_14] : memref<7x32x64xf32, #tpu.memory_space<vmem>>, vector<1x32x64xf32>
    %15 = vector.shape_cast %14 : vector<1x32x64xf32> to vector<32x64xf32>
    %cst_15 = arith.constant dense<0.000000e+00> : vector<40x64xf32>
    %16 = tpu.matmul %13, %15, %cst_15 {dimension_numbers = #tpu.dot_dimension_numbers<[1], [0], [0], [1], [0, 0, 1, 1], [], []>} : vector<40x32xf32>, vector<32x64xf32>, vector<40x64xf32> -> vector<40x64xf32>
    %c112 = arith.constant 112 : index
    %c0_16 = arith.constant 0 : index
    %17 = vector.load %arg32[%c112, %c0_16] : memref<248x64xf32, #tpu.memory_space<vmem>>, vector<40x64xf32>
    tpu.vector_store %arg32[%c112, %c0_16], %16 {strides = array<i32>} : memref<248x64xf32, #tpu.memory_space<vmem>>, vector<40x64xf32>,
    %18 = vector.extract_strided_slice %2 {offsets = [152, 0], sizes = [24, 32], strides = [1, 1]} : vector<248x32xf32> to vector<24x32xf32>
    %c3 = arith.constant 3 : index
    %c0_17 = arith.constant 0 : index
    %c0_18 = arith.constant 0 : index
    %19 = vector.load %arg3[%c3, %c0_17, %c0_18] : memref<7x32x64xf32, #tpu.memory_space<vmem>>, vector<1x32x64xf32>
    %20 = vector.shape_cast %19 : vector<1x32x64xf32> to vector<32x64xf32>
    %cst_19 = arith.constant dense<0.000000e+00> : vector<24x64xf32>
    %21 = tpu.matmul %18, %20, %cst_19 {dimension_numbers = #tpu.dot_dimension_numbers<[1], [0], [0], [1], [0, 0, 1, 1], [], []>} : vector<24x32xf32>, vector<32x64xf32>, vector<24x64xf32> -> vector<24x64xf32>
    %c152 = arith.constant 152 : index
    %c0_20 = arith.constant 0 : index
    %22 = vector.load %arg32[%c152, %c0_20] : memref<248x64xf32, #tpu.memory_space<vmem>>, vector<24x64xf32>
    tpu.vector_store %arg32[%c152, %c0_20], %21 {strides = array<i32>} : memref<248x64xf32, #tpu.memory_space<vmem>>, vector<24x64xf32>,
    %23 = vector.extract_strided_slice %2 {offsets = [176, 0], sizes = [24, 32], strides = [1, 1]} : vector<248x32xf32> to vector<24x32xf32>
    %c4 = arith.constant 4 : index
    %c0_21 = arith.constant 0 : index
    %c0_22 = arith.constant 0 : index
    %24 = vector.load %arg3[%c4, %c0_21, %c0_22] : memref<7x32x64xf32, #tpu.memory_space<vmem>>, vector<1x32x64xf32>
    %25 = vector.shape_cast %24 : vector<1x32x64xf32> to vector<32x64xf32>
    %cst_23 = arith.constant dense<0.000000e+00> : vector<24x64xf32>
    %26 = tpu.matmul %23, %25, %cst_23 {dimension_numbers = #tpu.dot_dimension_numbers<[1], [0], [0], [1], [0, 0, 1, 1], [], []>} : vector<24x32xf32>, vector<32x64xf32>, vector<24x64xf32> -> vector<24x64xf32>
    %c176 = arith.constant 176 : index
    %c0_24 = arith.constant 0 : index
    %27 = vector.load %arg32[%c176, %c0_24] : memref<248x64xf32, #tpu.memory_space<vmem>>, vector<24x64xf32>
    tpu.vector_store %arg32[%c176, %c0_24], %26 {strides = array<i32>} : memref<248x64xf32, #tpu.memory_space<vmem>>, vector<24x64xf32>,
    %28 = vector.extract_strided_slice %2 {offsets = [200, 0], sizes = [24, 32], strides = [1, 1]} : vector<248x32xf32> to vector<24x32xf32>
    %c5 = arith.constant 5 : index
    %c0_25 = arith.constant 0 : index
    %c0_26 = arith.constant 0 : index
    %29 = vector.load %arg3[%c5, %c0_25, %c0_26] : memref<7x32x64xf32, #tpu.memory_space<vmem>>, vector<1x32x64xf32>
    %30 = vector.shape_cast %29 : vector<1x32x64xf32> to vector<32x64xf32>
    %cst_27 = arith.constant dense<0.000000e+00> : vector<24x64xf32>
    %31 = tpu.matmul %28, %30, %cst_27 {dimension_numbers = #tpu.dot_dimension_numbers<[1], [0], [0], [1], [0, 0, 1, 1], [], []>} : vector<24x32xf32>, vector<32x64xf32>, vector<24x64xf32> -> vector<24x64xf32>
    %c200 = arith.constant 200 : index
    %c0_28 = arith.constant 0 : index
    %32 = vector.load %arg32[%c200, %c0_28] : memref<248x64xf32, #tpu.memory_space<vmem>>, vector<24x64xf32>
    tpu.vector_store %arg32[%c200, %c0_28], %31 {strides = array<i32>} : memref<248x64xf32, #tpu.memory_space<vmem>>, vector<24x64xf32>,
    %33 = vector.extract_strided_slice %2 {offsets = [224, 0], sizes = [24, 32], strides = [1, 1]} : vector<248x32xf32> to vector<24x32xf32>
    %c6 = arith.constant 6 : index
    %c0_29 = arith.constant 0 : index
    %c0_30 = arith.constant 0 : index
    %34 = vector.load %arg3[%c6, %c0_29, %c0_30] : memref<7x32x64xf32, #tpu.memory_space<vmem>>, vector<1x32x64xf32>
    %35 = vector.shape_cast %34 : vector<1x32x64xf32> to vector<32x64xf32>
    %cst_31 = arith.constant dense<0.000000e+00> : vector<24x64xf32>
    %36 = tpu.matmul %33, %35, %cst_31 {dimension_numbers = #tpu.dot_dimension_numbers<[1], [0], [0], [1], [0, 0, 1, 1], [], []>} : vector<24x32xf32>, vector<32x64xf32>, vector<24x64xf32> -> vector<24x64xf32>
    %c224 = arith.constant 224 : index
    %c0_32 = arith.constant 0 : index
    %37 = vector.load %arg32[%c224, %c0_32] : memref<248x64xf32, #tpu.memory_space<vmem>>, vector<24x64xf32>
    tpu.vector_store %arg32[%c224, %c0_32], %36 {strides = array<i32>} : memref<248x64xf32, #tpu.memory_space<vmem>>, vector<24x64xf32>,
    %c0_33 = arith.constant 0 : index
    %c0_34 = arith.constant 0 : index
    %38 = vector.load %arg32[%c0_33, %c0_34] : memref<248x64xf32, #tpu.memory_space<vmem>>, vector<248x64xf32>
    %c0_35 = arith.constant 0 : index
    %c0_36 = arith.constant 0 : index
    %39 = vector.load %arg4[%c0_35, %c0_36] : memref<248x64xf32, #tpu.memory_space<vmem>>, vector<248x64xf32>
    %40 = arith.mulf %38, %39 : vector<248x64xf32>
    %c0_37 = arith.constant 0 : index
    %c0_38 = arith.constant 0 : index
    %41 = vector.load %arg5[%c0_37, %c0_38] : memref<248x64xf32, #tpu.memory_space<vmem>>, vector<248x64xf32>
    %42 = arith.addf %40, %41 : vector<248x64xf32>
    %43 = math.tanh %42 : vector<248x64xf32>
    %c0_39 = arith.constant 0 : index
    %c0_40 = arith.constant 0 : index
    %44 = vector.load %arg6[%c0_39, %c0_40] : memref<248x248xf32, #tpu.memory_space<vmem>>, vector<248x248xf32>
    %cst_41 = arith.constant dense<0.000000e+00> : vector<248x64xf32>
    %45 = tpu.matmul %44, %43, %cst_41 {dimension_numbers = #tpu.dot_dimension_numbers<[1], [0], [0], [1], [0, 0, 1, 1], [], []>} : vector<248x248xf32>, vector<248x64xf32>, vector<248x64xf32> -> vector<248x64xf32>
    %46 = vector.extract_strided_slice %45 {offsets = [0, 0], sizes = [72, 64], strides = [1, 1]} : vector<248x64xf32> to vector<72x64xf32>
    %c0_42 = arith.constant 0 : index
    %c0_43 = arith.constant 0 : index
    %c0_44 = arith.constant 0 : index
    %47 = vector.load %arg7[%c0_42, %c0_43, %c0_44] : memref<7x64x64xf32, #tpu.memory_space<vmem>>, vector<1x64x64xf32>
    %48 = vector.shape_cast %47 : vector<1x64x64xf32> to vector<64x64xf32>
    %cst_45 = arith.constant dense<0.000000e+00> : vector<72x64xf32>
    %49 = tpu.matmul %46, %48, %cst_45 {dimension_numbers = #tpu.dot_dimension_numbers<[1], [0], [0], [1], [0, 0, 1, 1], [], []>} : vector<72x64xf32>, vector<64x64xf32>, vector<72x64xf32> -> vector<72x64xf32>
    %c0_46 = arith.constant 0 : index
    %c0_47 = arith.constant 0 : index
    %50 = vector.load %arg32[%c0_46, %c0_47] : memref<248x64xf32, #tpu.memory_space<vmem>>, vector<72x64xf32>
    tpu.vector_store %arg32[%c0_46, %c0_47], %49 {strides = array<i32>} : memref<248x64xf32, #tpu.memory_space<vmem>>, vector<72x64xf32>,
    %51 = vector.extract_strided_slice %45 {offsets = [72, 0], sizes = [40, 64], strides = [1, 1]} : vector<248x64xf32> to vector<40x64xf32>
    %c1_48 = arith.constant 1 : index
    %c0_49 = arith.constant 0 : index
    %c0_50 = arith.constant 0 : index
    %52 = vector.load %arg7[%c1_48, %c0_49, %c0_50] : memref<7x64x64xf32, #tpu.memory_space<vmem>>, vector<1x64x64xf32>
    %53 = vector.shape_cast %52 : vector<1x64x64xf32> to vector<64x64xf32>
    %cst_51 = arith.constant dense<0.000000e+00> : vector<40x64xf32>
    %54 = tpu.matmul %51, %53, %cst_51 {dimension_numbers = #tpu.dot_dimension_numbers<[1], [0], [0], [1], [0, 0, 1, 1], [], []>} : vector<40x64xf32>, vector<64x64xf32>, vector<40x64xf32> -> vector<40x64xf32>
    %c72_52 = arith.constant 72 : index
    %c0_53 = arith.constant 0 : index
    %55 = vector.load %arg32[%c72_52, %c0_53] : memref<248x64xf32, #tpu.memory_space<vmem>>, vector<40x64xf32>
    tpu.vector_store %arg32[%c72_52, %c0_53], %54 {strides = array<i32>} : memref<248x64xf32, #tpu.memory_space<vmem>>, vector<40x64xf32>,
    %56 = vector.extract_strided_slice %45 {offsets = [112, 0], sizes = [40, 64], strides = [1, 1]} : vector<248x64xf32> to vector<40x64xf32>
    %c2_54 = arith.constant 2 : index
    %c0_55 = arith.constant 0 : index
    %c0_56 = arith.constant 0 : index
    %57 = vector.load %arg7[%c2_54, %c0_55, %c0_56] : memref<7x64x64xf32, #tpu.memory_space<vmem>>, vector<1x64x64xf32>
    %58 = vector.shape_cast %57 : vector<1x64x64xf32> to vector<64x64xf32>
    %cst_57 = arith.constant dense<0.000000e+00> : vector<40x64xf32>
    %59 = tpu.matmul %56, %58, %cst_57 {dimension_numbers = #tpu.dot_dimension_numbers<[1], [0], [0], [1], [0, 0, 1, 1], [], []>} : vector<40x64xf32>, vector<64x64xf32>, vector<40x64xf32> -> vector<40x64xf32>
    %c112_58 = arith.constant 112 : index
    %c0_59 = arith.constant 0 : index
    %60 = vector.load %arg32[%c112_58, %c0_59] : memref<248x64xf32, #tpu.memory_space<vmem>>, vector<40x64xf32>
    tpu.vector_store %arg32[%c112_58, %c0_59], %59 {strides = array<i32>} : memref<248x64xf32, #tpu.memory_space<vmem>>, vector<40x64xf32>,
    %61 = vector.extract_strided_slice %45 {offsets = [152, 0], sizes = [24, 64], strides = [1, 1]} : vector<248x64xf32> to vector<24x64xf32>
    %c3_60 = arith.constant 3 : index
    %c0_61 = arith.constant 0 : index
    %c0_62 = arith.constant 0 : index
    %62 = vector.load %arg7[%c3_60, %c0_61, %c0_62] : memref<7x64x64xf32, #tpu.memory_space<vmem>>, vector<1x64x64xf32>
    %63 = vector.shape_cast %62 : vector<1x64x64xf32> to vector<64x64xf32>
    %cst_63 = arith.constant dense<0.000000e+00> : vector<24x64xf32>
    %64 = tpu.matmul %61, %63, %cst_63 {dimension_numbers = #tpu.dot_dimension_numbers<[1], [0], [0], [1], [0, 0, 1, 1], [], []>} : vector<24x64xf32>, vector<64x64xf32>, vector<24x64xf32> -> vector<24x64xf32>
    %c152_64 = arith.constant 152 : index
    %c0_65 = arith.constant 0 : index
    %65 = vector.load %arg32[%c152_64, %c0_65] : memref<248x64xf32, #tpu.memory_space<vmem>>, vector<24x64xf32>
    tpu.vector_store %arg32[%c152_64, %c0_65], %64 {strides = array<i32>} : memref<248x64xf32, #tpu.memory_space<vmem>>, vector<24x64xf32>,
    %66 = vector.extract_strided_slice %45 {offsets = [176, 0], sizes = [24, 64], strides = [1, 1]} : vector<248x64xf32> to vector<24x64xf32>
    %c4_66 = arith.constant 4 : index
    %c0_67 = arith.constant 0 : index
    %c0_68 = arith.constant 0 : index
    %67 = vector.load %arg7[%c4_66, %c0_67, %c0_68] : memref<7x64x64xf32, #tpu.memory_space<vmem>>, vector<1x64x64xf32>
    %68 = vector.shape_cast %67 : vector<1x64x64xf32> to vector<64x64xf32>
    %cst_69 = arith.constant dense<0.000000e+00> : vector<24x64xf32>
    %69 = tpu.matmul %66, %68, %cst_69 {dimension_numbers = #tpu.dot_dimension_numbers<[1], [0], [0], [1], [0, 0, 1, 1], [], []>} : vector<24x64xf32>, vector<64x64xf32>, vector<24x64xf32> -> vector<24x64xf32>
    %c176_70 = arith.constant 176 : index
    %c0_71 = arith.constant 0 : index
    %70 = vector.load %arg32[%c176_70, %c0_71] : memref<248x64xf32, #tpu.memory_space<vmem>>, vector<24x64xf32>
    tpu.vector_store %arg32[%c176_70, %c0_71], %69 {strides = array<i32>} : memref<248x64xf32, #tpu.memory_space<vmem>>, vector<24x64xf32>,
    %71 = vector.extract_strided_slice %45 {offsets = [200, 0], sizes = [24, 64], strides = [1, 1]} : vector<248x64xf32> to vector<24x64xf32>
    %c5_72 = arith.constant 5 : index
    %c0_73 = arith.constant 0 : index
    %c0_74 = arith.constant 0 : index
    %72 = vector.load %arg7[%c5_72, %c0_73, %c0_74] : memref<7x64x64xf32, #tpu.memory_space<vmem>>, vector<1x64x64xf32>
    %73 = vector.shape_cast %72 : vector<1x64x64xf32> to vector<64x64xf32>
    %cst_75 = arith.constant dense<0.000000e+00> : vector<24x64xf32>
    %74 = tpu.matmul %71, %73, %cst_75 {dimension_numbers = #tpu.dot_dimension_numbers<[1], [0], [0], [1], [0, 0, 1, 1], [], []>} : vector<24x64xf32>, vector<64x64xf32>, vector<24x64xf32> -> vector<24x64xf32>
    %c200_76 = arith.constant 200 : index
    %c0_77 = arith.constant 0 : index
    %75 = vector.load %arg32[%c200_76, %c0_77] : memref<248x64xf32, #tpu.memory_space<vmem>>, vector<24x64xf32>
    tpu.vector_store %arg32[%c200_76, %c0_77], %74 {strides = array<i32>} : memref<248x64xf32, #tpu.memory_space<vmem>>, vector<24x64xf32>,
    %76 = vector.extract_strided_slice %45 {offsets = [224, 0], sizes = [24, 64], strides = [1, 1]} : vector<248x64xf32> to vector<24x64xf32>
    %c6_78 = arith.constant 6 : index
    %c0_79 = arith.constant 0 : index
    %c0_80 = arith.constant 0 : index
    %77 = vector.load %arg7[%c6_78, %c0_79, %c0_80] : memref<7x64x64xf32, #tpu.memory_space<vmem>>, vector<1x64x64xf32>
    %78 = vector.shape_cast %77 : vector<1x64x64xf32> to vector<64x64xf32>
    %cst_81 = arith.constant dense<0.000000e+00> : vector<24x64xf32>
    %79 = tpu.matmul %76, %78, %cst_81 {dimension_numbers = #tpu.dot_dimension_numbers<[1], [0], [0], [1], [0, 0, 1, 1], [], []>} : vector<24x64xf32>, vector<64x64xf32>, vector<24x64xf32> -> vector<24x64xf32>
    %c224_82 = arith.constant 224 : index
    %c0_83 = arith.constant 0 : index
    %80 = vector.load %arg32[%c224_82, %c0_83] : memref<248x64xf32, #tpu.memory_space<vmem>>, vector<24x64xf32>
    tpu.vector_store %arg32[%c224_82, %c0_83], %79 {strides = array<i32>} : memref<248x64xf32, #tpu.memory_space<vmem>>, vector<24x64xf32>,
    %c0_84 = arith.constant 0 : index
    %c0_85 = arith.constant 0 : index
    %81 = vector.load %arg32[%c0_84, %c0_85] : memref<248x64xf32, #tpu.memory_space<vmem>>, vector<248x64xf32>
    %c0_86 = arith.constant 0 : index
    %c0_87 = arith.constant 0 : index
    %82 = vector.load %arg8[%c0_86, %c0_87] : memref<248x64xf32, #tpu.memory_space<vmem>>, vector<248x64xf32>
    %83 = arith.mulf %81, %82 : vector<248x64xf32>
    %c0_88 = arith.constant 0 : index
    %c0_89 = arith.constant 0 : index
    %84 = vector.load %arg9[%c0_88, %c0_89] : memref<248x64xf32, #tpu.memory_space<vmem>>, vector<248x64xf32>
    %85 = arith.addf %83, %84 : vector<248x64xf32>
    %86 = math.tanh %85 : vector<248x64xf32>
    %c0_90 = arith.constant 0 : index
    %c0_91 = arith.constant 0 : index
    %87 = vector.load %arg10[%c0_90, %c0_91] : memref<248x248xf32, #tpu.memory_space<vmem>>, vector<248x248xf32>
    %cst_92 = arith.constant dense<0.000000e+00> : vector<248x64xf32>
    %88 = tpu.matmul %87, %86, %cst_92 {dimension_numbers = #tpu.dot_dimension_numbers<[1], [0], [0], [1], [0, 0, 1, 1], [], []>} : vector<248x248xf32>, vector<248x64xf32>, vector<248x64xf32> -> vector<248x64xf32>
    %89 = vector.extract_strided_slice %88 {offsets = [0, 0], sizes = [72, 64], strides = [1, 1]} : vector<248x64xf32> to vector<72x64xf32>
    %c0_93 = arith.constant 0 : index
    %c0_94 = arith.constant 0 : index
    %c0_95 = arith.constant 0 : index
    %90 = vector.load %arg11[%c0_93, %c0_94, %c0_95] : memref<7x64x64xf32, #tpu.memory_space<vmem>>, vector<1x64x64xf32>
    %91 = vector.shape_cast %90 : vector<1x64x64xf32> to vector<64x64xf32>
    %cst_96 = arith.constant dense<0.000000e+00> : vector<72x64xf32>
    %92 = tpu.matmul %89, %91, %cst_96 {dimension_numbers = #tpu.dot_dimension_numbers<[1], [0], [0], [1], [0, 0, 1, 1], [], []>} : vector<72x64xf32>, vector<64x64xf32>, vector<72x64xf32> -> vector<72x64xf32>
    %c0_97 = arith.constant 0 : index
    %c0_98 = arith.constant 0 : index
    %93 = vector.load %arg32[%c0_97, %c0_98] : memref<248x64xf32, #tpu.memory_space<vmem>>, vector<72x64xf32>
    tpu.vector_store %arg32[%c0_97, %c0_98], %92 {strides = array<i32>} : memref<248x64xf32, #tpu.memory_space<vmem>>, vector<72x64xf32>,
    %94 = vector.extract_strided_slice %88 {offsets = [72, 0], sizes = [40, 64], strides = [1, 1]} : vector<248x64xf32> to vector<40x64xf32>
    %c1_99 = arith.constant 1 : index
    %c0_100 = arith.constant 0 : index
    %c0_101 = arith.constant 0 : index
    %95 = vector.load %arg11[%c1_99, %c0_100, %c0_101] : memref<7x64x64xf32, #tpu.memory_space<vmem>>, vector<1x64x64xf32>
    %96 = vector.shape_cast %95 : vector<1x64x64xf32> to vector<64x64xf32>
    %cst_102 = arith.constant dense<0.000000e+00> : vector<40x64xf32>
    %97 = tpu.matmul %94, %96, %cst_102 {dimension_numbers = #tpu.dot_dimension_numbers<[1], [0], [0], [1], [0, 0, 1, 1], [], []>} : vector<40x64xf32>, vector<64x64xf32>, vector<40x64xf32> -> vector<40x64xf32>
    %c72_103 = arith.constant 72 : index
    %c0_104 = arith.constant 0 : index
    %98 = vector.load %arg32[%c72_103, %c0_104] : memref<248x64xf32, #tpu.memory_space<vmem>>, vector<40x64xf32>
    tpu.vector_store %arg32[%c72_103, %c0_104], %97 {strides = array<i32>} : memref<248x64xf32, #tpu.memory_space<vmem>>, vector<40x64xf32>,
    %99 = vector.extract_strided_slice %88 {offsets = [112, 0], sizes = [40, 64], strides = [1, 1]} : vector<248x64xf32> to vector<40x64xf32>
    %c2_105 = arith.constant 2 : index
    %c0_106 = arith.constant 0 : index
    %c0_107 = arith.constant 0 : index
    %100 = vector.load %arg11[%c2_105, %c0_106, %c0_107] : memref<7x64x64xf32, #tpu.memory_space<vmem>>, vector<1x64x64xf32>
    %101 = vector.shape_cast %100 : vector<1x64x64xf32> to vector<64x64xf32>
    %cst_108 = arith.constant dense<0.000000e+00> : vector<40x64xf32>
    %102 = tpu.matmul %99, %101, %cst_108 {dimension_numbers = #tpu.dot_dimension_numbers<[1], [0], [0], [1], [0, 0, 1, 1], [], []>} : vector<40x64xf32>, vector<64x64xf32>, vector<40x64xf32> -> vector<40x64xf32>
    %c112_109 = arith.constant 112 : index
    %c0_110 = arith.constant 0 : index
    %103 = vector.load %arg32[%c112_109, %c0_110] : memref<248x64xf32, #tpu.memory_space<vmem>>, vector<40x64xf32>
    tpu.vector_store %arg32[%c112_109, %c0_110], %102 {strides = array<i32>} : memref<248x64xf32, #tpu.memory_space<vmem>>, vector<40x64xf32>,
    %104 = vector.extract_strided_slice %88 {offsets = [152, 0], sizes = [24, 64], strides = [1, 1]} : vector<248x64xf32> to vector<24x64xf32>
    %c3_111 = arith.constant 3 : index
    %c0_112 = arith.constant 0 : index
    %c0_113 = arith.constant 0 : index
    %105 = vector.load %arg11[%c3_111, %c0_112, %c0_113] : memref<7x64x64xf32, #tpu.memory_space<vmem>>, vector<1x64x64xf32>
    %106 = vector.shape_cast %105 : vector<1x64x64xf32> to vector<64x64xf32>
    %cst_114 = arith.constant dense<0.000000e+00> : vector<24x64xf32>
    %107 = tpu.matmul %104, %106, %cst_114 {dimension_numbers = #tpu.dot_dimension_numbers<[1], [0], [0], [1], [0, 0, 1, 1], [], []>} : vector<24x64xf32>, vector<64x64xf32>, vector<24x64xf32> -> vector<24x64xf32>
    %c152_115 = arith.constant 152 : index
    %c0_116 = arith.constant 0 : index
    %108 = vector.load %arg32[%c152_115, %c0_116] : memref<248x64xf32, #tpu.memory_space<vmem>>, vector<24x64xf32>
    tpu.vector_store %arg32[%c152_115, %c0_116], %107 {strides = array<i32>} : memref<248x64xf32, #tpu.memory_space<vmem>>, vector<24x64xf32>,
    %109 = vector.extract_strided_slice %88 {offsets = [176, 0], sizes = [24, 64], strides = [1, 1]} : vector<248x64xf32> to vector<24x64xf32>
    %c4_117 = arith.constant 4 : index
    %c0_118 = arith.constant 0 : index
    %c0_119 = arith.constant 0 : index
    %110 = vector.load %arg11[%c4_117, %c0_118, %c0_119] : memref<7x64x64xf32, #tpu.memory_space<vmem>>, vector<1x64x64xf32>
    %111 = vector.shape_cast %110 : vector<1x64x64xf32> to vector<64x64xf32>
    %cst_120 = arith.constant dense<0.000000e+00> : vector<24x64xf32>
    %112 = tpu.matmul %109, %111, %cst_120 {dimension_numbers = #tpu.dot_dimension_numbers<[1], [0], [0], [1], [0, 0, 1, 1], [], []>} : vector<24x64xf32>, vector<64x64xf32>, vector<24x64xf32> -> vector<24x64xf32>
    %c176_121 = arith.constant 176 : index
    %c0_122 = arith.constant 0 : index
    %113 = vector.load %arg32[%c176_121, %c0_122] : memref<248x64xf32, #tpu.memory_space<vmem>>, vector<24x64xf32>
    tpu.vector_store %arg32[%c176_121, %c0_122], %112 {strides = array<i32>} : memref<248x64xf32, #tpu.memory_space<vmem>>, vector<24x64xf32>,
    %114 = vector.extract_strided_slice %88 {offsets = [200, 0], sizes = [24, 64], strides = [1, 1]} : vector<248x64xf32> to vector<24x64xf32>
    %c5_123 = arith.constant 5 : index
    %c0_124 = arith.constant 0 : index
    %c0_125 = arith.constant 0 : index
    %115 = vector.load %arg11[%c5_123, %c0_124, %c0_125] : memref<7x64x64xf32, #tpu.memory_space<vmem>>, vector<1x64x64xf32>
    %116 = vector.shape_cast %115 : vector<1x64x64xf32> to vector<64x64xf32>
    %cst_126 = arith.constant dense<0.000000e+00> : vector<24x64xf32>
    %117 = tpu.matmul %114, %116, %cst_126 {dimension_numbers = #tpu.dot_dimension_numbers<[1], [0], [0], [1], [0, 0, 1, 1], [], []>} : vector<24x64xf32>, vector<64x64xf32>, vector<24x64xf32> -> vector<24x64xf32>
    %c200_127 = arith.constant 200 : index
    %c0_128 = arith.constant 0 : index
    %118 = vector.load %arg32[%c200_127, %c0_128] : memref<248x64xf32, #tpu.memory_space<vmem>>, vector<24x64xf32>
    tpu.vector_store %arg32[%c200_127, %c0_128], %117 {strides = array<i32>} : memref<248x64xf32, #tpu.memory_space<vmem>>, vector<24x64xf32>,
    %119 = vector.extract_strided_slice %88 {offsets = [224, 0], sizes = [24, 64], strides = [1, 1]} : vector<248x64xf32> to vector<24x64xf32>
    %c6_129 = arith.constant 6 : index
    %c0_130 = arith.constant 0 : index
    %c0_131 = arith.constant 0 : index
    %120 = vector.load %arg11[%c6_129, %c0_130, %c0_131] : memref<7x64x64xf32, #tpu.memory_space<vmem>>, vector<1x64x64xf32>
    %121 = vector.shape_cast %120 : vector<1x64x64xf32> to vector<64x64xf32>
    %cst_132 = arith.constant dense<0.000000e+00> : vector<24x64xf32>
    %122 = tpu.matmul %119, %121, %cst_132 {dimension_numbers = #tpu.dot_dimension_numbers<[1], [0], [0], [1], [0, 0, 1, 1], [], []>} : vector<24x64xf32>, vector<64x64xf32>, vector<24x64xf32> -> vector<24x64xf32>
    %c224_133 = arith.constant 224 : index
    %c0_134 = arith.constant 0 : index
    %123 = vector.load %arg32[%c224_133, %c0_134] : memref<248x64xf32, #tpu.memory_space<vmem>>, vector<24x64xf32>
    tpu.vector_store %arg32[%c224_133, %c0_134], %122 {strides = array<i32>} : memref<248x64xf32, #tpu.memory_space<vmem>>, vector<24x64xf32>,
    %c0_135 = arith.constant 0 : index
    %c0_136 = arith.constant 0 : index
    %124 = vector.load %arg32[%c0_135, %c0_136] : memref<248x64xf32, #tpu.memory_space<vmem>>, vector<248x64xf32>
    %c0_137 = arith.constant 0 : index
    %c0_138 = arith.constant 0 : index
    %125 = vector.load %arg12[%c0_137, %c0_138] : memref<248x64xf32, #tpu.memory_space<vmem>>, vector<248x64xf32>
    %126 = arith.mulf %124, %125 : vector<248x64xf32>
    %c0_139 = arith.constant 0 : index
    %c0_140 = arith.constant 0 : index
    %127 = vector.load %arg13[%c0_139, %c0_140] : memref<248x64xf32, #tpu.memory_space<vmem>>, vector<248x64xf32>
    %128 = arith.addf %126, %127 : vector<248x64xf32>
    %129 = math.tanh %128 : vector<248x64xf32>
    %130 = arith.addf %43, %129 : vector<248x64xf32>
    %131 = vector.extract_strided_slice %130 {offsets = [0, 0], sizes = [72, 64], strides = [1, 1]} : vector<248x64xf32> to vector<72x64xf32>
    %132 = vector.extract_strided_slice %130 {offsets = [72, 0], sizes = [40, 64], strides = [1, 1]} : vector<248x64xf32> to vector<40x64xf32>
    %133 = vector.extract_strided_slice %130 {offsets = [112, 0], sizes = [40, 64], strides = [1, 1]} : vector<248x64xf32> to vector<40x64xf32>
    %134 = vector.extract_strided_slice %130 {offsets = [72, 0], sizes = [80, 64], strides = [1, 1]} : vector<248x64xf32> to vector<80x64xf32>
    %135 = vector.extract_strided_slice %130 {offsets = [152, 0], sizes = [96, 64], strides = [1, 1]} : vector<248x64xf32> to vector<96x64xf32>
    %c0_141 = arith.constant 0 : index
    %c0_142 = arith.constant 0 : index
    %136 = vector.load %arg16[%c0_141, %c0_142] : memref<40x40xf32, #tpu.memory_space<vmem>>, vector<40x40xf32>
    %c0_143 = arith.constant 0 : index
    %c0_144 = arith.constant 0 : index
    %137 = vector.load %arg15[%c0_143, %c0_144] : memref<64x32xf32, #tpu.memory_space<vmem>>, vector<64x32xf32>
    %cst_145 = arith.constant dense<0.000000e+00> : vector<40x32xf32>
    %138 = tpu.matmul %132, %137, %cst_145 {dimension_numbers = #tpu.dot_dimension_numbers<[1], [0], [0], [1], [0, 0, 1, 1], [], []>} : vector<40x64xf32>, vector<64x32xf32>, vector<40x32xf32> -> vector<40x32xf32>
    %cst_146 = arith.constant dense<0.000000e+00> : vector<40x32xf32>
    %139 = tpu.matmul %136, %138, %cst_146 {dimension_numbers = #tpu.dot_dimension_numbers<[1], [0], [0], [1], [0, 0, 1, 1], [], []>} : vector<40x40xf32>, vector<40x32xf32>, vector<40x32xf32> -> vector<40x32xf32>
    %c0_147 = arith.constant 0 : index
    %c0_148 = arith.constant 0 : index
    %140 = vector.load %arg17[%c0_147, %c0_148] : memref<1x32xf32, #tpu.memory_space<vmem>>, vector<1x32xf32>
    %141 = vector.broadcast %140 : vector<1x32xf32> to vector<40x32xf32>
    %142 = arith.addf %139, %141 : vector<40x32xf32>
    %c0_149 = arith.constant 0 : index
    %c0_150 = arith.constant 0 : index
    %143 = vector.load %arg14[%c0_149, %c0_150] : memref<40x72xf32, #tpu.memory_space<vmem>>, vector<40x72xf32>
    %cst_151 = arith.constant dense<0.000000e+00> : vector<40x32xf32>
    %144 = tpu.matmul %143, %0, %cst_151 {dimension_numbers = #tpu.dot_dimension_numbers<[1], [0], [0], [1], [0, 0, 1, 1], [], []>} : vector<40x72xf32>, vector<72x32xf32>, vector<40x32xf32> -> vector<40x32xf32>
    %145 = arith.addf %142, %144 : vector<40x32xf32>
    %c0_152 = arith.constant 0 : index
    %c0_153 = arith.constant 0 : index
    %146 = vector.load %arg30[%c0_152, %c0_153] : memref<40x32xf32, #tpu.memory_space<vmem>>, vector<40x32xf32>
    tpu.vector_store %arg30[%c0_152, %c0_153], %145 {strides = array<i32>} : memref<40x32xf32, #tpu.memory_space<vmem>>, vector<40x32xf32>,
    %c0_154 = arith.constant 0 : index
    %c0_155 = arith.constant 0 : index
    %147 = vector.load %arg20[%c0_154, %c0_155] : memref<40x40xf32, #tpu.memory_space<vmem>>, vector<40x40xf32>
    %c0_156 = arith.constant 0 : index
    %c0_157 = arith.constant 0 : index
    %148 = vector.load %arg19[%c0_156, %c0_157] : memref<64x32xf32, #tpu.memory_space<vmem>>, vector<64x32xf32>
    %cst_158 = arith.constant dense<0.000000e+00> : vector<40x32xf32>
    %149 = tpu.matmul %133, %148, %cst_158 {dimension_numbers = #tpu.dot_dimension_numbers<[1], [0], [0], [1], [0, 0, 1, 1], [], []>} : vector<40x64xf32>, vector<64x32xf32>, vector<40x32xf32> -> vector<40x32xf32>
    %cst_159 = arith.constant dense<0.000000e+00> : vector<40x32xf32>
    %150 = tpu.matmul %147, %149, %cst_159 {dimension_numbers = #tpu.dot_dimension_numbers<[1], [0], [0], [1], [0, 0, 1, 1], [], []>} : vector<40x40xf32>, vector<40x32xf32>, vector<40x32xf32> -> vector<40x32xf32>
    %c0_160 = arith.constant 0 : index
    %c0_161 = arith.constant 0 : index
    %151 = vector.load %arg21[%c0_160, %c0_161] : memref<1x32xf32, #tpu.memory_space<vmem>>, vector<1x32xf32>
    %152 = vector.broadcast %151 : vector<1x32xf32> to vector<40x32xf32>
    %153 = arith.addf %150, %152 : vector<40x32xf32>
    %c0_162 = arith.constant 0 : index
    %c0_163 = arith.constant 0 : index
    %154 = vector.load %arg18[%c0_162, %c0_163] : memref<40x72xf32, #tpu.memory_space<vmem>>, vector<40x72xf32>
    %cst_164 = arith.constant dense<0.000000e+00> : vector<40x32xf32>
    %155 = tpu.matmul %154, %0, %cst_164 {dimension_numbers = #tpu.dot_dimension_numbers<[1], [0], [0], [1], [0, 0, 1, 1], [], []>} : vector<40x72xf32>, vector<72x32xf32>, vector<40x32xf32> -> vector<40x32xf32>
    %156 = arith.addf %153, %155 : vector<40x32xf32>
    %c0_165 = arith.constant 0 : index
    %c0_166 = arith.constant 0 : index
    %157 = vector.load %arg31[%c0_165, %c0_166] : memref<40x32xf32, #tpu.memory_space<vmem>>, vector<40x32xf32>
    tpu.vector_store %arg31[%c0_165, %c0_166], %156 {strides = array<i32>} : memref<40x32xf32, #tpu.memory_space<vmem>>, vector<40x32xf32>,
    %c0_167 = arith.constant 0 : index
    %c0_168 = arith.constant 0 : index
    %158 = vector.load %arg23[%c0_167, %c0_168] : memref<72x96xf32, #tpu.memory_space<vmem>>, vector<72x96xf32>
    %c0_169 = arith.constant 0 : index
    %c0_170 = arith.constant 0 : index
    %159 = vector.load %arg24[%c0_169, %c0_170] : memref<64x32xf32, #tpu.memory_space<vmem>>, vector<64x32xf32>
    %cst_171 = arith.constant dense<0.000000e+00> : vector<96x32xf32>
    %160 = tpu.matmul %135, %159, %cst_171 {dimension_numbers = #tpu.dot_dimension_numbers<[1], [0], [0], [1], [0, 0, 1, 1], [], []>} : vector<96x64xf32>, vector<64x32xf32>, vector<96x32xf32> -> vector<96x32xf32>
    %cst_172 = arith.constant dense<0.000000e+00> : vector<72x32xf32>
    %161 = tpu.matmul %158, %160, %cst_172 {dimension_numbers = #tpu.dot_dimension_numbers<[1], [0], [0], [1], [0, 0, 1, 1], [], []>} : vector<72x96xf32>, vector<96x32xf32>, vector<72x32xf32> -> vector<72x32xf32>
    %c0_173 = arith.constant 0 : index
    %c0_174 = arith.constant 0 : index
    %162 = vector.load %arg22[%c0_173, %c0_174] : memref<72x80xf32, #tpu.memory_space<vmem>>, vector<72x80xf32>
    %c0_175 = arith.constant 0 : index
    %c0_176 = arith.constant 0 : index
    %163 = vector.load %arg25[%c0_175, %c0_176] : memref<64x32xf32, #tpu.memory_space<vmem>>, vector<64x32xf32>
    %cst_177 = arith.constant dense<0.000000e+00> : vector<80x32xf32>
    %164 = tpu.matmul %134, %163, %cst_177 {dimension_numbers = #tpu.dot_dimension_numbers<[1], [0], [0], [1], [0, 0, 1, 1], [], []>} : vector<80x64xf32>, vector<64x32xf32>, vector<80x32xf32> -> vector<80x32xf32>
    %cst_178 = arith.constant dense<0.000000e+00> : vector<72x32xf32>
    %165 = tpu.matmul %162, %164, %cst_178 {dimension_numbers = #tpu.dot_dimension_numbers<[1], [0], [0], [1], [0, 0, 1, 1], [], []>} : vector<72x80xf32>, vector<80x32xf32>, vector<72x32xf32> -> vector<72x32xf32>
    %166 = arith.addf %161, %165 : vector<72x32xf32>
    %c0_179 = arith.constant 0 : index
    %c0_180 = arith.constant 0 : index
    %167 = vector.load %arg26[%c0_179, %c0_180] : memref<64x32xf32, #tpu.memory_space<vmem>>, vector<64x32xf32>
    %cst_181 = arith.constant dense<0.000000e+00> : vector<72x32xf32>
    %168 = tpu.matmul %131, %167, %cst_181 {dimension_numbers = #tpu.dot_dimension_numbers<[1], [0], [0], [1], [0, 0, 1, 1], [], []>} : vector<72x64xf32>, vector<64x32xf32>, vector<72x32xf32> -> vector<72x32xf32>
    %169 = arith.addf %166, %168 : vector<72x32xf32>
    %c0_182 = arith.constant 0 : index
    %c0_183 = arith.constant 0 : index
    %170 = vector.load %arg27[%c0_182, %c0_183] : memref<72x72xf32, #tpu.memory_space<vmem>>, vector<72x72xf32>
    %cst_184 = arith.constant dense<0.000000e+00> : vector<72x32xf32>
    %171 = tpu.matmul %170, %169, %cst_184 {dimension_numbers = #tpu.dot_dimension_numbers<[1], [0], [0], [1], [0, 0, 1, 1], [], []>} : vector<72x72xf32>, vector<72x32xf32>, vector<72x32xf32> -> vector<72x32xf32>
    %c0_185 = arith.constant 0 : index
    %c0_186 = arith.constant 0 : index
    %172 = vector.load %arg28[%c0_185, %c0_186] : memref<1x32xf32, #tpu.memory_space<vmem>>, vector<1x32xf32>
    %173 = vector.broadcast %172 : vector<1x32xf32> to vector<72x32xf32>
    %174 = arith.addf %171, %173 : vector<72x32xf32>
    %175 = arith.addf %174, %0 : vector<72x32xf32>
    %c0_187 = arith.constant 0 : index
    %c0_188 = arith.constant 0 : index
    %176 = vector.load %arg29[%c0_187, %c0_188] : memref<72x32xf32, #tpu.memory_space<vmem>>, vector<72x32xf32>
    tpu.vector_store %arg29[%c0_187, %c0_188], %175 {strides = array<i32>} : memref<72x32xf32, #tpu.memory_space<vmem>>, vector<72x32xf32>,
    return
  }
  func.func @transform_0(%arg0: i32) -> (i32, i32) {
    %c0_i32 = arith.constant 0 : i32
    %c0_i32_0 = arith.constant 0 : i32
    %c0_i32_1 = arith.constant 0 : i32
    return %c0_i32, %c0_i32_0 : i32, i32
  }
  func.func @transform_1(%arg0: i32) -> (i32, i32) {
    %c0_i32 = arith.constant 0 : i32
    %c0_i32_0 = arith.constant 0 : i32
    %c0_i32_1 = arith.constant 0 : i32
    return %c0_i32, %c0_i32_0 : i32, i32
  }
  func.func @transform_2(%arg0: i32) -> (i32, i32, i32) {
    %c0_i32 = arith.constant 0 : i32
    %c0_i32_0 = arith.constant 0 : i32
    %c0_i32_1 = arith.constant 0 : i32
    %c0_i32_2 = arith.constant 0 : i32
    return %c0_i32, %c0_i32_0, %c0_i32_1 : i32, i32, i32
  }
  func.func @transform_3(%arg0: i32) -> (i32, i32) {
    %c0_i32 = arith.constant 0 : i32
    %c0_i32_0 = arith.constant 0 : i32
    %c0_i32_1 = arith.constant 0 : i32
    return %c0_i32, %c0_i32_0 : i32, i32
  }
  func.func @transform_4(%arg0: i32) -> (i32, i32) {
    %c0_i32 = arith.constant 0 : i32
    %c0_i32_0 = arith.constant 0 : i32
    %c0_i32_1 = arith.constant 0 : i32
    return %c0_i32, %c0_i32_0 : i32, i32
  }
  func.func @transform_5(%arg0: i32) -> (i32, i32) {
    %c0_i32 = arith.constant 0 : i32
    %c0_i32_0 = arith.constant 0 : i32
    %c0_i32_1 = arith.constant 0 : i32
    return %c0_i32, %c0_i32_0 : i32, i32
  }
  func.func @transform_6(%arg0: i32) -> (i32, i32, i32) {
    %c0_i32 = arith.constant 0 : i32
    %c0_i32_0 = arith.constant 0 : i32
    %c0_i32_1 = arith.constant 0 : i32
    %c0_i32_2 = arith.constant 0 : i32
    return %c0_i32, %c0_i32_0, %c0_i32_1 : i32, i32, i32
  }
  func.func @transform_7(%arg0: i32) -> (i32, i32) {
    %c0_i32 = arith.constant 0 : i32
    %c0_i32_0 = arith.constant 0 : i32
    %c0_i32_1 = arith.constant 0 : i32
    return %c0_i32, %c0_i32_0 : i32, i32
  }
  func.func @transform_8(%arg0: i32) -> (i32, i32) {
    %c0_i32 = arith.constant 0 : i32
    %c0_i32_0 = arith.constant 0 : i32
    %c0_i32_1 = arith.constant 0 : i32
    return %c0_i32, %c0_i32_0 : i32, i32
  }
  func.func @transform_9(%arg0: i32) -> (i32, i32) {
    %c0_i32 = arith.constant 0 : i32
    %c0_i32_0 = arith.constant 0 : i32
    %c0_i32_1 = arith.constant 0 : i32
    return %c0_i32, %c0_i32_0 : i32, i32
  }
  func.func @transform_10(%arg0: i32) -> (i32, i32, i32) {
    %c0_i32 = arith.constant 0 : i32
    %c0_i32_0 = arith.constant 0 : i32
    %c0_i32_1 = arith.constant 0 : i32
    %c0_i32_2 = arith.constant 0 : i32
    return %c0_i32, %c0_i32_0, %c0_i32_1 : i32, i32, i32
  }
  func.func @transform_11(%arg0: i32) -> (i32, i32) {
    %c0_i32 = arith.constant 0 : i32
    %c0_i32_0 = arith.constant 0 : i32
    %c0_i32_1 = arith.constant 0 : i32
    return %c0_i32, %c0_i32_0 : i32, i32
  }
  func.func @transform_12(%arg0: i32) -> (i32, i32) {
    %c0_i32 = arith.constant 0 : i32
    %c0_i32_0 = arith.constant 0 : i32
    %c0_i32_1 = arith.constant 0 : i32
    return %c0_i32, %c0_i32_0 : i32, i32
  }
  func.func @transform_13(%arg0: i32) -> (i32, i32) {
    %c0_i32 = arith.constant 0 : i32
    %c0_i32_0 = arith.constant 0 : i32
    %c0_i32_1 = arith.constant 0 : i32
    return %c0_i32, %c0_i32_0 : i32, i32
  }
  func.func @transform_14(%arg0: i32) -> (i32, i32) {
    %c0_i32 = arith.constant 0 : i32
    %c0_i32_0 = arith.constant 0 : i32
    %c0_i32_1 = arith.constant 0 : i32
    return %c0_i32, %c0_i32_0 : i32, i32
  }
  func.func @transform_15(%arg0: i32) -> (i32, i32) {
    %c0_i32 = arith.constant 0 : i32
    %c0_i32_0 = arith.constant 0 : i32
    %c0_i32_1 = arith.constant 0 : i32
    return %c0_i32, %c0_i32_0 : i32, i32
  }
  func.func @transform_16(%arg0: i32) -> (i32, i32) {
    %c0_i32 = arith.constant 0 : i32
    %c0_i32_0 = arith.constant 0 : i32
    %c0_i32_1 = arith.constant 0 : i32
    return %c0_i32, %c0_i32_0 : i32, i32
  }
  func.func @transform_17(%arg0: i32) -> (i32, i32) {
    %c0_i32 = arith.constant 0 : i32
    %c0_i32_0 = arith.constant 0 : i32
    %c0_i32_1 = arith.constant 0 : i32
    return %c0_i32, %c0_i32_0 : i32, i32
  }
  func.func @transform_18(%arg0: i32) -> (i32, i32) {
    %c0_i32 = arith.constant 0 : i32
    %c0_i32_0 = arith.constant 0 : i32
    %c0_i32_1 = arith.constant 0 : i32
    return %c0_i32, %c0_i32_0 : i32, i32
  }
  func.func @transform_19(%arg0: i32) -> (i32, i32) {
    %c0_i32 = arith.constant 0 : i32
    %c0_i32_0 = arith.constant 0 : i32
    %c0_i32_1 = arith.constant 0 : i32
    return %c0_i32, %c0_i32_0 : i32, i32
  }
  func.func @transform_20(%arg0: i32) -> (i32, i32) {
    %c0_i32 = arith.constant 0 : i32
    %c0_i32_0 = arith.constant 0 : i32
    %c0_i32_1 = arith.constant 0 : i32
    return %c0_i32, %c0_i32_0 : i32, i32
  }
  func.func @transform_21(%arg0: i32) -> (i32, i32) {
    %c0_i32 = arith.constant 0 : i32
    %c0_i32_0 = arith.constant 0 : i32
    %c0_i32_1 = arith.constant 0 : i32
    return %c0_i32, %c0_i32_0 : i32, i32
  }
  func.func @transform_22(%arg0: i32) -> (i32, i32) {
    %c0_i32 = arith.constant 0 : i32
    %c0_i32_0 = arith.constant 0 : i32
    %c0_i32_1 = arith.constant 0 : i32
    return %c0_i32, %c0_i32_0 : i32, i32
  }
  func.func @transform_23(%arg0: i32) -> (i32, i32) {
    %c0_i32 = arith.constant 0 : i32
    %c0_i32_0 = arith.constant 0 : i32
    %c0_i32_1 = arith.constant 0 : i32
    return %c0_i32, %c0_i32_0 : i32, i32
  }
  func.func @transform_24(%arg0: i32) -> (i32, i32) {
    %c0_i32 = arith.constant 0 : i32
    %c0_i32_0 = arith.constant 0 : i32
    %c0_i32_1 = arith.constant 0 : i32
    return %c0_i32, %c0_i32_0 : i32, i32
  }
  func.func @transform_25(%arg0: i32) -> (i32, i32) {
    %c0_i32 = arith.constant 0 : i32
    %c0_i32_0 = arith.constant 0 : i32
    %c0_i32_1 = arith.constant 0 : i32
    return %c0_i32, %c0_i32_0 : i32, i32
  }
  func.func @transform_26(%arg0: i32) -> (i32, i32) {
    %c0_i32 = arith.constant 0 : i32
    %c0_i32_0 = arith.constant 0 : i32
    %c0_i32_1 = arith.constant 0 : i32
    return %c0_i32, %c0_i32_0 : i32, i32
  }
  func.func @transform_27(%arg0: i32) -> (i32, i32) {
    %c0_i32 = arith.constant 0 : i32
    %c0_i32_0 = arith.constant 0 : i32
    %c0_i32_1 = arith.constant 0 : i32
    return %c0_i32, %c0_i32_0 : i32, i32
  }
  func.func @transform_28(%arg0: i32) -> (i32, i32) {
    %c0_i32 = arith.constant 0 : i32
    %c0_i32_0 = arith.constant 0 : i32
    %c0_i32_1 = arith.constant 0 : i32
    return %c0_i32, %c0_i32_0 : i32, i32
  }
  func.func @transform_29(%arg0: i32) -> (i32, i32) {
    %c0_i32 = arith.constant 0 : i32
    %c0_i32_0 = arith.constant 0 : i32
    %c0_i32_1 = arith.constant 0 : i32
    return %c0_i32, %c0_i32_0 : i32, i32
  }
  func.func @transform_30(%arg0: i32) -> (i32, i32) {
    %c0_i32 = arith.constant 0 : i32
    %c0_i32_0 = arith.constant 0 : i32
    %c0_i32_1 = arith.constant 0 : i32
    return %c0_i32, %c0_i32_0 : i32, i32
  }
}

</mosaic_0001>

<bundles_post_ra>
// kernel: _lambda_.1
= control target key start
LH: loop header
LB: loop body
LE: loop exit
PB: predicated region body
PF: predicated region fallthrough
CT: control target
= control target key end

     0   :  { %s9303_s6 = smov 1   ;;  %s9304_s10 = smov 2   ;;  %s11002_s0 = inlined_call_operand.smem [shape: u32[31], index: -1, kind: input, shape index: {}] }
   0x1   :  { %s9371_s5 = sld [smem:[%s11002_s0]]   ;;  %s9305_s14 = smov 3  }
   0x2   :  { %s9376_s9 = sld [smem:[%s11002_s0 + %s9303_s6]]   ;;  %s9306_s18 = smov 4  }
   0x3   :  { %s9381_s13 = sld [smem:[%s11002_s0 + %s9304_s10]]   ;;  %s9307_s22 = smov 5  }
   0x4   :  { %s9386_s17 = sld [smem:[%s11002_s0 + %s9305_s14]]   ;;  %s9308_s26 = smov 6  }
   0x5   :  { %s9391_s21 = sld [smem:[%s11002_s0 + %s9306_s18]]   ;;  %s9309_s30 = smov 7  }
   0x6   :  { %s9396_s25 = sld [smem:[%s11002_s0 + %s9307_s22]]   ;;  %s9310_s4 = smov 8  }
   0x7   :  { %11018 = sst [smem:[#allocation50_spill]] %s9371_s5  ;;  %s9311_s10 = smov 9  }
   0x8   :  { %s9401_s29 = sld [smem:[%s11002_s0 + %s9308_s26]]   ;;  %s9312_s15 = smov 10  }
   0x9   :  { %s9406_s3 = sld [smem:[%s11002_s0 + %s9309_s30]]   ;;  %s9313_s20 = smov 11  }
   0xa   :  { %s9411_s8 = sld [smem:[%s11002_s0 + %s9310_s4]]   ;;  %s9314_s26 = smov 12  }
   0xb   :  { %s9416_s14 = sld [smem:[%s11002_s0 + %s9311_s10]]   ;;  %s9315_s1 = smov 13  }
   0xc   :  { %s9421_s19 = sld [smem:[%s11002_s0 + %s9312_s15]]   ;;  %s9316_s7 = smov 14  }
   0xd   :  { %s9426_s24 = sld [smem:[%s11002_s0 + %s9313_s20]]   ;;  %s9317_s15 = smov 15  }
   0xe   :  { %s9431_s30 = sld [smem:[%s11002_s0 + %s9314_s26]]   ;;  %s9318_s22 = smov 16  }
   0xf   :  { %11019 = sst [smem:[#allocation51_spill]] %s9406_s3  ;;  %s9319_s28 = smov 17  }
  0x10   :  { %s9436_s6 = sld [smem:[%s11002_s0 + %s9315_s1]]  }
  0x11   :  { %11020 = sst [smem:[#allocation52_spill]] %s9416_s14 }
  0x12   :  { %s9441_s12 = sld [smem:[%s11002_s0 + %s9316_s7]]   ;;  %s9320_s7 = smov 18  }
  0x13   :  { %11021 = sst [smem:[#allocation53_spill]] %s9426_s24 }
  0x14   :  { %11022 = sst [smem:[#allocation54_spill]] %s9431_s30 }
  0x15   :  { %s9446_s20 = sld [smem:[%s11002_s0 + %s9317_s15]]   ;;  %s9321_s15 = smov 19  }
  0x16   :  { %s9451_s27 = sld [smem:[%s11002_s0 + %s9318_s22]]   ;;  %s9322_s22 = smov 20  }
  0x17   :  { %s9456_s4 = sld [smem:[%s11002_s0 + %s9319_s28]]   ;;  %s9323_s28 = smov 21  }
  0x18   :  { %11023 = sst [smem:[#allocation55_spill]] %s9441_s12 }
  0x19   :  { %s9461_s30 = sld [smem:[%s11002_s0 + %s9320_s7]]   ;;  %s9324_s7 = smov 22  }
  0x1a   :  { %s9466_s5 = sld [smem:[%s11002_s0 + %s9321_s15]]   ;;  %s9325_s15 = smov 23  }
  0x1b   :  { %s9476_s12 = sld [smem:[%s11002_s0 + %s9323_s28]]   ;;  %s9327_s28 = smov 25  }
  0x1c   :  { %11024 = sst [smem:[#allocation56_spill]] %s9451_s27 }
  0x1d   :  { %s9471_s27 = sld [smem:[%s11002_s0 + %s9322_s22]]   ;;  %s9326_s22 = smov 24  }
  0x1e   :  { %s9486_s24 = sld [smem:[%s11002_s0 + %s9325_s15]]   ;;  %s9329_s15 = smov 27  }
  0x1f   :  { %11025 = sst [smem:[#allocation57_spill]] %s9461_s30 }
  0x20   :  { %s9481_s30 = sld [smem:[%s11002_s0 + %s9324_s7]]   ;;  %s9328_s7 = smov 26  }
  0x21   :  { %11027 = sst [smem:[#allocation59_spill]] %s9476_s12 }
  0x22   :  { %s9496_s12 = sld [smem:[%s11002_s0 + %s9327_s28]]   ;;  %s9331_s28 = smov 29  }
  0x23   :  { %11026 = sst [smem:[#allocation58_spill]] %s9471_s27 }
  0x24   :  { %11028 = sst [smem:[#allocation60_spill]] %s9486_s24 }
  0x25   :  { %s9491_s27 = sld [smem:[%s11002_s0 + %s9326_s22]]   ;;  %s9330_s22 = smov 28  }
  0x26   :  { %s9501_s14 = sld [smem:[%s11002_s0 + %s9328_s7]]   ;;  %s9332_s7 = smov 30  }
  0x27   :  { %s9506_s24 = sld [smem:[%s11002_s0 + %s9329_s15]]  }
  0x28   :  { %11029 = sst [smem:[#allocation61_spill]] %s9496_s12 }
  0x29   :  { %s9511_s3 = sld [smem:[%s11002_s0 + %s9330_s22]]  }
  0x2a   :  { %s9516_s12 = sld [smem:[%s11002_s0 + %s9331_s28]]  }
  0x2c   :  { %11030 = sst [smem:[#allocation62_spill]] %s9501_s14 }
  0x2d   :  { %s9521_s14 = sld [smem:[%s11002_s0 + %s9332_s7]]  }
  0x2e   :  { %67 = vsyncpa [#allocation4], 0 }
  0x2f   :  { %68 = vsyncpa [#allocation6], 0 }
  0x30   :  { %69 = vsyncpa [#allocation9], 0 }
  0x31   :  { %70 = vsyncpa [#allocation12], 0 }
  0x32   :  { %71 = vsyncpa [#allocation15], 0 }
  0x33   :  { %72 = vsyncpa [#allocation18], 0 }
  0x34   :  { %73 = vsyncpa [#allocation21], 0 }
  0x35   :  { %74 = vsyncpa [#allocation24], 0 }
  0x36   :  { %75 = vsyncpa [#allocation27], 0 }
  0x37   :  { %76 = vsyncpa [#allocation30], 0 }
  0x38   :  { %77 = vsyncpa [#allocation33], 0 }
  0x39   :  { %78 = vsyncpa [#allocation36], 0  ;;  %s9333_s15 = smov [#allocation5]   ;;  %s9334_s18 = smov [#allocation8]  }
  0x3a   :  { %s98_s16 = sshll.u32 %s9333_s15, 4  ;;  %s122_s0 = sshll.u32 %s9334_s18, 4  ;;  %s99_s16 = int_to_ptr.vmem [resolvable:$true] %s98_s16  ;;  %s9523_s0 = int_to_ptr.vmem [resolvable:$true] %s122_s0 }
  0x3b   :  { %s8773_s22 = scalar_lea.hbm %s9381_s13, 3584 }
  0x3c   :  { %p8774_p0 = scmp.ne.s32.totalorder %s9381_s13, %s8773_s22  ;;  %p8777_p1 = scmp.lt.u32.totalorder %s8773_s22, %s9381_s13 }
  0x3e   :  { %p8779_p2 = pnand %p8777_p1, %p8774_p0 }
  0x40   :  { %8782 = shalt.err (!%p8779_p2)
}
  0x41   :  { %s8783_s23 = scalar_lea.vmem %s99_s16, 3584  ;;  %p8788_p4 = scmp.lt.s32.totalorder %s99_s16, %s99_s16 }
  0x42   :  { %p8784_p3 = scmp.ne.s32.totalorder %s99_s16, %s8783_s23  ;;  %p8789_p5 = scmp.lt.s32.totalorder %s8783_s23, %s8783_s23 }
  0x44   :  { %p8790_p6 = por %p8789_p5, %p8788_p4 }
  0x46   :  { %p8791_p7 = pnand %p8790_p6, %p8784_p3 }
  0x48   :  { %8794 = shalt.err (!%p8791_p7)
}
  0x49   :  { %s9335_s26 = smov 128   ;;  %s9336_s28 = smov 8  }
  0x4a   :  { %104 = dma.hbm_to_vmem [thread:$0]  %s9381_s13, 3584, %s99_s16, [#allocation6], %s9335_s26, %s9335_s26, %s9336_s28  }
  0x4b   :  { %s8795_s1 = scalar_lea.hbm %s9391_s21, 3968 }
  0x4c   :  { %p8796_p8 = scmp.ne.s32.totalorder %s9391_s21, %s8795_s1  ;;  %p8799_p9 = scmp.lt.u32.totalorder %s8795_s1, %s9391_s21 }
  0x4e   :  { %p8801_p10 = pnand %p8799_p9, %p8796_p8 }
  0x50   :  { %8804 = shalt.err (!%p8801_p10)
}
  0x51   :  { %s8805_s2 = scalar_lea.vmem %s9523_s0, 3968  ;;  %p8810_p12 = scmp.lt.s32.totalorder %s9523_s0, %s9523_s0 }
  0x52   :  { %p8806_p11 = scmp.ne.s32.totalorder %s9523_s0, %s8805_s2  ;;  %p8811_p13 = scmp.lt.s32.totalorder %s8805_s2, %s8805_s2 }
  0x54   :  { %p8812_p0 = por %p8811_p13, %p8810_p12 }
  0x56   :  { %p8813_p1 = pnand %p8812_p0, %p8806_p11 }
  0x58   :  { %8816 = shalt.err (!%p8813_p1)
}
  0x59   :  { %128 = dma.hbm_to_vmem [thread:$0]  %s9391_s21, 3968, %s9523_s0, [#allocation9], %s9335_s26, %s9335_s26, %s9336_s28  }
  0x5a   :  { %s9337_s13 = smov [#allocation11]   ;;  %s9338_s10 = smov [#allocation14]  }
  0x5b   :  { %s146_s7 = sshll.u32 %s9337_s13, 4  ;;  %s170_s11 = sshll.u32 %s9338_s10, 4  ;;  %s147_s7 = int_to_ptr.vmem [resolvable:$true] %s146_s7  ;;  %s9544_s11 = int_to_ptr.vmem [resolvable:$true] %s170_s11 }
  0x5c   :  { %s8817_s15 = scalar_lea.hbm %s9401_s29, 7168 }
  0x5d   :  { %p8818_p2 = scmp.ne.s32.totalorder %s9401_s29, %s8817_s15  ;;  %p8821_p3 = scmp.lt.u32.totalorder %s8817_s15, %s9401_s29 }
  0x5f   :  { %p8823_p4 = pnand %p8821_p3, %p8818_p2 }
  0x61   :  { %8826 = shalt.err (!%p8823_p4)
}
  0x62   :  { %s8827_s16 = scalar_lea.vmem %s147_s7, 7168  ;;  %p8832_p6 = scmp.lt.s32.totalorder %s147_s7, %s147_s7 }
  0x63   :  { %p8828_p5 = scmp.ne.s32.totalorder %s147_s7, %s8827_s16  ;;  %p8833_p7 = scmp.lt.s32.totalorder %s8827_s16, %s8827_s16 }
  0x65   :  { %p8834_p8 = por %p8833_p7, %p8832_p6 }
  0x67   :  { %p8835_p9 = pnand %p8834_p8, %p8828_p5 }
  0x69   :  { %8838 = shalt.err (!%p8835_p9)
}
  0x6a   :  { %152 = dma.hbm_to_vmem [thread:$0]  %s9401_s29, 7168, %s147_s7, [#allocation12], %s9335_s26, %s9335_s26, %s9336_s28  }
  0x6b   :  { %s8839_s21 = scalar_lea.hbm %s9411_s8, 3968 }
  0x6c   :  { %p8840_p10 = scmp.ne.s32.totalorder %s9411_s8, %s8839_s21  ;;  %p8843_p11 = scmp.lt.u32.totalorder %s8839_s21, %s9411_s8 }
  0x6e   :  { %p8845_p12 = pnand %p8843_p11, %p8840_p10 }
  0x70   :  { %8848 = shalt.err (!%p8845_p12)
}
  0x71   :  { %s8849_s18 = scalar_lea.vmem %s9544_s11, 3968  ;;  %p8854_p0 = scmp.lt.s32.totalorder %s9544_s11, %s9544_s11 }
  0x72   :  { %p8850_p13 = scmp.ne.s32.totalorder %s9544_s11, %s8849_s18  ;;  %p8855_p1 = scmp.lt.s32.totalorder %s8849_s18, %s8849_s18 }
  0x74   :  { %p8856_p2 = por %p8855_p1, %p8854_p0 }
  0x76   :  { %p8857_p3 = pnand %p8856_p2, %p8850_p13 }
  0x78   :  { %8860 = shalt.err (!%p8857_p3)
}
  0x79   :  { %176 = dma.hbm_to_vmem [thread:$0]  %s9411_s8, 3968, %s9544_s11, [#allocation15], %s9335_s26, %s9335_s26, %s9336_s28  }
  0x7a   :  { %s9339_s29 = smov [#allocation17]   ;;  %s9340_s22 = smov [#allocation20]  }
  0x7b   :  { %s194_s0 = sshll.u32 %s9339_s29, 4  ;;  %s220_s23 = sshll.u32 %s9340_s22, 4  ;;  %s195_s0 = int_to_ptr.vmem [resolvable:$true] %s194_s0  ;;  %s9565_s23 = int_to_ptr.vmem [resolvable:$true] %s220_s23 }
  0x7c   :  { %s8861_s1 = scalar_lea.hbm %s9421_s19, 7168 }
  0x7d   :  { %p8862_p4 = scmp.ne.s32.totalorder %s9421_s19, %s8861_s1  ;;  %p8865_p5 = scmp.lt.u32.totalorder %s8861_s1, %s9421_s19 }
  0x7f   :  { %p8867_p6 = pnand %p8865_p5, %p8862_p4 }
  0x81   :  { %8870 = shalt.err (!%p8867_p6)
}
  0x82   :  { %s8871_s2 = scalar_lea.vmem %s195_s0, 7168  ;;  %p8876_p8 = scmp.lt.s32.totalorder %s195_s0, %s195_s0 }
  0x83   :  { %p8872_p7 = scmp.ne.s32.totalorder %s195_s0, %s8871_s2  ;;  %p8877_p9 = scmp.lt.s32.totalorder %s8871_s2, %s8871_s2 }
  0x85   :  { %p8878_p10 = por %p8877_p9, %p8876_p8 }
  0x87   :  { %p8879_p11 = pnand %p8878_p10, %p8872_p7 }
  0x89   :  { %8882 = shalt.err (!%p8879_p11)
}
  0x8a   :  { %200 = dma.hbm_to_vmem [thread:$0]  %s9421_s19, 7168, %s195_s0, [#allocation18], %s9335_s26, %s9335_s26, %s9336_s28  }
  0x8b   :  { %s8883_s8 = scalar_lea.hbm %s9436_s6, 640 }
  0x8c   :  { %p8884_p12 = scmp.ne.s32.totalorder %s9436_s6, %s8883_s8  ;;  %p8887_p13 = scmp.lt.u32.totalorder %s8883_s8, %s9436_s6 }
  0x8e   :  { %p8889_p0 = pnand %p8887_p13, %p8884_p12 }
  0x90   :  { %8892 = shalt.err (!%p8889_p0)
}
  0x91   :  { %s8893_s13 = scalar_lea.vmem %s9565_s23, 640  ;;  %p8898_p2 = scmp.lt.s32.totalorder %s9565_s23, %s9565_s23 }
  0x92   :  { %p8894_p1 = scmp.ne.s32.totalorder %s9565_s23, %s8893_s13  ;;  %p8899_p3 = scmp.lt.s32.totalorder %s8893_s13, %s8893_s13 }
  0x94   :  { %p8900_p4 = por %p8899_p3, %p8898_p2 }
  0x96   :  { %p8901_p5 = pnand %p8900_p4, %p8894_p1 }
  0x98   :  { %8904 = shalt.err (!%p8901_p5)
}
  0x99   :  { %226 = dma.hbm_to_vmem [thread:$0]  %s9436_s6, 640, %s9565_s23, [#allocation21], %s9335_s26, %s9335_s26, %s9336_s28  }
  0x9a   :  { %s9341_s19 = smov [#allocation23]   ;;  %s9342_s10 = smov [#allocation26]  }
  0x9b   :  { %s244_s7 = sshll.u32 %s9341_s19, 4  ;;  %s266_s11 = sshll.u32 %s9342_s10, 4  ;;  %s245_s7 = int_to_ptr.vmem [resolvable:$true] %s244_s7  ;;  %s9586_s11 = int_to_ptr.vmem [resolvable:$true] %s266_s11 }
  0x9c   :  { %s8905_s15 = scalar_lea.hbm %s9446_s20, 640 }
  0x9d   :  { %p8906_p6 = scmp.ne.s32.totalorder %s9446_s20, %s8905_s15  ;;  %p8909_p7 = scmp.lt.u32.totalorder %s8905_s15, %s9446_s20 }
  0x9f   :  { %p8911_p8 = pnand %p8909_p7, %p8906_p6 }
  0xa1   :  { %8914 = shalt.err (!%p8911_p8)
}
  0xa2   :  { %s8915_s16 = scalar_lea.vmem %s245_s7, 640  ;;  %p8920_p10 = scmp.lt.s32.totalorder %s245_s7, %s245_s7 }
  0xa3   :  { %p8916_p9 = scmp.ne.s32.totalorder %s245_s7, %s8915_s16  ;;  %p8921_p11 = scmp.lt.s32.totalorder %s8915_s16, %s8915_s16 }
  0xa5   :  { %p8922_p12 = por %p8921_p11, %p8920_p10 }
  0xa7   :  { %p8923_p13 = pnand %p8922_p12, %p8916_p9 }
  0xa9   :  { %8926 = shalt.err (!%p8923_p13)
}
  0xaa   :  { %250 = dma.hbm_to_vmem [thread:$0]  %s9446_s20, 640, %s245_s7, [#allocation24], %s9335_s26, %s9335_s26, %s9336_s28  }
  0xab   :  { %s8927_s6 = scalar_lea.hbm %s9456_s4, 640 }
  0xac   :  { %p8928_p0 = scmp.ne.s32.totalorder %s9456_s4, %s8927_s6  ;;  %p8931_p1 = scmp.lt.u32.totalorder %s8927_s6, %s9456_s4 }
  0xae   :  { %p8933_p2 = pnand %p8931_p1, %p8928_p0 }
  0xb0   :  { %8936 = shalt.err (!%p8933_p2)
}
  0xb1   :  { %s8937_s21 = scalar_lea.vmem %s9586_s11, 640  ;;  %p8942_p4 = scmp.lt.s32.totalorder %s9586_s11, %s9586_s11 }
  0xb2   :  { %p8938_p3 = scmp.ne.s32.totalorder %s9586_s11, %s8937_s21  ;;  %p8943_p5 = scmp.lt.s32.totalorder %s8937_s21, %s8937_s21 }
  0xb4   :  { %p8944_p6 = por %p8943_p5, %p8942_p4 }
  0xb6   :  { %p8945_p7 = pnand %p8944_p6, %p8938_p3 }
  0xb8   :  { %8948 = shalt.err (!%p8945_p7)
}
  0xb9   :  { %272 = dma.hbm_to_vmem [thread:$0]  %s9456_s4, 640, %s9586_s11, [#allocation27], %s9335_s26, %s9335_s26, %s9336_s28  }
  0xba   :  { %s9343_s20 = smov [#allocation29]   ;;  %s9344_s29 = smov [#allocation32]  }
  0xbb   :  { %s290_s18 = sshll.u32 %s9343_s20, 4  ;;  %s316_s0 = sshll.u32 %s9344_s29, 4  ;;  %s291_s18 = int_to_ptr.vmem [resolvable:$true] %s290_s18  ;;  %s9607_s0 = int_to_ptr.vmem [resolvable:$true] %s316_s0 }
  0xbc   :  { %s8949_s22 = scalar_lea.hbm %s9466_s5, 640 }
  0xbd   :  { %p8950_p8 = scmp.ne.s32.totalorder %s9466_s5, %s8949_s22  ;;  %p8953_p9 = scmp.lt.u32.totalorder %s8949_s22, %s9466_s5 }
  0xbf   :  { %p8955_p10 = pnand %p8953_p9, %p8950_p8 }
  0xc1   :  { %8958 = shalt.err (!%p8955_p10)
}
  0xc2   :  { %s8959_s23 = scalar_lea.vmem %s291_s18, 640  ;;  %p8964_p12 = scmp.lt.s32.totalorder %s291_s18, %s291_s18 }
  0xc3   :  { %p8960_p11 = scmp.ne.s32.totalorder %s291_s18, %s8959_s23  ;;  %p8965_p13 = scmp.lt.s32.totalorder %s8959_s23, %s8959_s23 }
  0xc5   :  { %p8966_p0 = por %p8965_p13, %p8964_p12 }
  0xc7   :  { %p8967_p1 = pnand %p8966_p0, %p8960_p11 }
  0xc9   :  { %8970 = shalt.err (!%p8967_p1)
}
  0xca   :  { %296 = dma.hbm_to_vmem [thread:$0]  %s9466_s5, 640, %s291_s18, [#allocation30], %s9335_s26, %s9335_s26, %s9336_s28  }
  0xcb   :  { %s8971_s4 = scalar_lea.hbm %s9481_s30, 1152 }
  0xcc   :  { %p8972_p2 = scmp.ne.s32.totalorder %s9481_s30, %s8971_s4  ;;  %p8975_p3 = scmp.lt.u32.totalorder %s8971_s4, %s9481_s30 }
  0xce   :  { %p8977_p4 = pnand %p8975_p3, %p8972_p2 }
  0xd0   :  { %8980 = shalt.err (!%p8977_p4)
}
  0xd1   :  { %s8981_s1 = scalar_lea.vmem %s9607_s0, 1152  ;;  %p8986_p6 = scmp.lt.s32.totalorder %s9607_s0, %s9607_s0 }
  0xd2   :  { %p8982_p5 = scmp.ne.s32.totalorder %s9607_s0, %s8981_s1  ;;  %p8987_p7 = scmp.lt.s32.totalorder %s8981_s1, %s8981_s1 }
  0xd4   :  { %p8988_p8 = por %p8987_p7, %p8986_p6 }
  0xd6   :  { %p8989_p9 = pnand %p8988_p8, %p8982_p5 }
  0xd8   :  { %8992 = shalt.err (!%p8989_p9)
}
  0xd9   :  { %322 = dma.hbm_to_vmem [thread:$0]  %s9481_s30, 1152, %s9607_s0, [#allocation33], %s9335_s26, %s9335_s26, %s9336_s28  }
  0xda   :  { %s9345_s5 = smov [#allocation35]   ;;  %s9346_s8 = smov [#allocation3]  }
  0xdb   :  { %s340_s2 = sshll.u32 %s9345_s5, 4  ;;  %s86_s13 = sshll.u32 %s9346_s8, 4  ;;  %s341_s2 = int_to_ptr.vmem [resolvable:$true] %s340_s2  ;;  %s9628_s13 = int_to_ptr.vmem [resolvable:$true] %s86_s13 }
  0xdc   :  { %s8993_s19 = scalar_lea.hbm %s9491_s27, 1024 }
  0xdd   :  { %p8994_p10 = scmp.ne.s32.totalorder %s9491_s27, %s8993_s19  ;;  %p8997_p11 = scmp.lt.u32.totalorder %s8993_s19, %s9491_s27 }
  0xdf   :  { %p8999_p12 = pnand %p8997_p11, %p8994_p10 }
  0xe1   :  { %9002 = shalt.err (!%p8999_p12)
}
  0xe2   :  { %s9003_s7 = scalar_lea.vmem %s341_s2, 1024  ;;  %p9008_p0 = scmp.lt.s32.totalorder %s341_s2, %s341_s2 }
  0xe3   :  { %p9004_p13 = scmp.ne.s32.totalorder %s341_s2, %s9003_s7  ;;  %p9009_p1 = scmp.lt.s32.totalorder %s9003_s7, %s9003_s7 }
  0xe5   :  { %p9010_p2 = por %p9009_p1, %p9008_p0 }
  0xe7   :  { %p9011_p3 = pnand %p9010_p2, %p9004_p13 }
  0xe9   :  { %9014 = shalt.err (!%p9011_p3)
}
  0xea   :  { %346 = dma.hbm_to_vmem [thread:$0]  %s9491_s27, 1024, %s341_s2, [#allocation36], %s9335_s26, %s9335_s26, %s9336_s28  }
  0xeb   :  { %s9015_s30 = scalar_lea.hbm %s9376_s9, 3968 }
  0xec   :  { %p9016_p4 = scmp.ne.s32.totalorder %s9376_s9, %s9015_s30  ;;  %p9019_p5 = scmp.lt.u32.totalorder %s9015_s30, %s9376_s9 }
  0xee   :  { %p9021_p6 = pnand %p9019_p5, %p9016_p4 }
  0xf0   :  { %9024 = shalt.err (!%p9021_p6)
}
  0xf1   :  { %s9025_s10 = scalar_lea.vmem %s9628_s13, 3968  ;;  %p9030_p8 = scmp.lt.s32.totalorder %s9628_s13, %s9628_s13 }
  0xf2   :  { %p9026_p7 = scmp.ne.s32.totalorder %s9628_s13, %s9025_s10  ;;  %p9031_p9 = scmp.lt.s32.totalorder %s9025_s10, %s9025_s10 }
  0xf4   :  { %p9032_p10 = por %p9031_p9, %p9030_p8 }
  0xf6   :  { %p9033_p11 = pnand %p9032_p10, %p9026_p7 }
  0xf8   :  { %9036 = shalt.err (!%p9033_p11)
}
  0xf9   :  { %92 = dma.hbm_to_vmem [thread:$0]  %s9376_s9, 3968, %s9628_s13, [#allocation4], %s9335_s26, %s9335_s26, %s9336_s28  }
  0xfa   :  { %s9347_s27 = smov [#allocation7]   ;;  %s9348_s15 = smov [#allocation10]  }
  0xfb   :  { %s110_s11 = sshll.u32 %s9347_s27, 4  ;;  %s134_s16 = sshll.u32 %s9348_s15, 4  ;;  %s111_s11 = int_to_ptr.vmem [resolvable:$true] %s110_s11  ;;  %s9649_s16 = int_to_ptr.vmem [resolvable:$true] %s134_s16 }
  0xfc   :  { %s9037_s6 = scalar_lea.hbm %s9386_s17, 3968 }
  0xfd   :  { %p9038_p12 = scmp.ne.s32.totalorder %s9386_s17, %s9037_s6  ;;  %p9041_p13 = scmp.lt.u32.totalorder %s9037_s6, %s9386_s17 }
  0xff   :  { %p9043_p0 = pnand %p9041_p13, %p9038_p12 }
 0x101   :  { %9046 = shalt.err (!%p9043_p0)
}
 0x102   :  { %s9047_s21 = scalar_lea.vmem %s111_s11, 3968  ;;  %p9052_p2 = scmp.lt.s32.totalorder %s111_s11, %s111_s11 }
 0x103   :  { %p9048_p1 = scmp.ne.s32.totalorder %s111_s11, %s9047_s21  ;;  %p9053_p3 = scmp.lt.s32.totalorder %s9047_s21, %s9047_s21 }
 0x105   :  { %p9054_p4 = por %p9053_p3, %p9052_p2 }
 0x107   :  { %p9055_p5 = pnand %p9054_p4, %p9048_p1 }
 0x109   :  { %9058 = shalt.err (!%p9055_p5)
}
 0x10a   :  { %116 = dma.hbm_to_vmem [thread:$0]  %s9386_s17, 3968, %s111_s11, [#allocation6], %s9335_s26, %s9335_s26, %s9336_s28  }
 0x10b   :  { %s9059_s9 = scalar_lea.hbm %s9396_s25, 7936 }
 0x10c   :  { %p9060_p6 = scmp.ne.s32.totalorder %s9396_s25, %s9059_s9  ;;  %p9063_p7 = scmp.lt.u32.totalorder %s9059_s9, %s9396_s25 }
 0x10e   :  { %p9065_p8 = pnand %p9063_p7, %p9060_p6 }
 0x110   :  { %9068 = shalt.err (!%p9065_p8)
}
 0x111   :  { %s9069_s20 = scalar_lea.vmem %s9649_s16, 7936  ;;  %p9074_p10 = scmp.lt.s32.totalorder %s9649_s16, %s9649_s16 }
 0x112   :  { %p9070_p9 = scmp.ne.s32.totalorder %s9649_s16, %s9069_s20  ;;  %p9075_p11 = scmp.lt.s32.totalorder %s9069_s20, %s9069_s20 }
 0x114   :  { %p9076_p12 = por %p9075_p11, %p9074_p10 }
 0x116   :  { %p9077_p13 = pnand %p9076_p12, %p9070_p9 }
 0x118   :  { %9080 = shalt.err (!%p9077_p13)
}
 0x119   :  { %s9349_s18 = smov 256   ;;  %s11031_s17 = sld [smem:[#allocation51_spill]] }
 0x11a   :  { %s9350_s29 = smov 16   ;;  %s9351_s0 = smov [#allocation13]  }
 0x11b   :  { %140 = dma.hbm_to_vmem [thread:$0]  %s9396_s25, 7936, %s9649_s16, [#allocation9], %s9349_s18, %s9349_s18, %s9350_s29  }
 0x11c   :  { %s158_s22 = sshll.u32 %s9351_s0, 4  ;;  %s9352_s23 = smov [#allocation16]   ;;  %s159_s22 = int_to_ptr.vmem [resolvable:$true] %s158_s22 }
 0x11d   :  { %s182_s4 = sshll.u32 %s9352_s23, 4  ;;  %s9670_s4 = int_to_ptr.vmem [resolvable:$true] %s182_s4 }
 0x11f   :  { %s9081_s1 = scalar_lea.hbm %s11031_s17, 3968 }
 0x120   :  { %p9082_p0 = scmp.ne.s32.totalorder %s11031_s17, %s9081_s1  ;;  %p9085_p1 = scmp.lt.u32.totalorder %s9081_s1, %s11031_s17 }
 0x122   :  { %p9087_p2 = pnand %p9085_p1, %p9082_p0 }
 0x124   :  { %9090 = shalt.err (!%p9087_p2)
}
 0x125   :  { %s9091_s5 = scalar_lea.vmem %s159_s22, 3968  ;;  %p9096_p4 = scmp.lt.s32.totalorder %s159_s22, %s159_s22 }
 0x126   :  { %p9092_p3 = scmp.ne.s32.totalorder %s159_s22, %s9091_s5  ;;  %p9097_p5 = scmp.lt.s32.totalorder %s9091_s5, %s9091_s5 }
 0x128   :  { %p9098_p6 = por %p9097_p5, %p9096_p4 }
 0x12a   :  { %p9099_p7 = pnand %p9098_p6, %p9092_p3 }
 0x12c   :  { %9102 = shalt.err (!%p9099_p7)
}
 0x12d   :  { %s11032_s25 = sld [smem:[#allocation52_spill]] }
 0x12e   :  { %164 = dma.hbm_to_vmem [thread:$0]  %s11031_s17, 3968, %s159_s22, [#allocation12], %s9335_s26, %s9335_s26, %s9336_s28  }
 0x133   :  { %s9103_s2 = scalar_lea.hbm %s11032_s25, 7936 }
 0x134   :  { %p9104_p8 = scmp.ne.s32.totalorder %s11032_s25, %s9103_s2  ;;  %p9107_p9 = scmp.lt.u32.totalorder %s9103_s2, %s11032_s25 }
 0x136   :  { %p9109_p10 = pnand %p9107_p9, %p9104_p8 }
 0x138   :  { %9112 = shalt.err (!%p9109_p10)
}
 0x139   :  { %s9113_s8 = scalar_lea.vmem %s9670_s4, 7936  ;;  %p9118_p12 = scmp.lt.s32.totalorder %s9670_s4, %s9670_s4 }
 0x13a   :  { %p9114_p11 = scmp.ne.s32.totalorder %s9670_s4, %s9113_s8  ;;  %p9119_p13 = scmp.lt.s32.totalorder %s9113_s8, %s9113_s8 }
 0x13c   :  { %p9120_p0 = por %p9119_p13, %p9118_p12 }
 0x13e   :  { %p9121_p1 = pnand %p9120_p0, %p9114_p11 }
 0x140   :  { %9124 = shalt.err (!%p9121_p1)
}
 0x141   :  { %s11033_s13 = sld [smem:[#allocation53_spill]]  ;;  %s9353_s19 = smov [#allocation19]  }
 0x142   :  { %188 = dma.hbm_to_vmem [thread:$0]  %s11032_s25, 7936, %s9670_s4, [#allocation15], %s9349_s18, %s9349_s18, %s9350_s29  }
 0x143   :  { %s206_s7 = sshll.u32 %s9353_s19, 4  ;;  %s9354_s30 = smov [#allocation22]   ;;  %s207_s7 = int_to_ptr.vmem [resolvable:$true] %s206_s7 }
 0x144   :  { %s232_s10 = sshll.u32 %s9354_s30, 4  ;;  %s9691_s10 = int_to_ptr.vmem [resolvable:$true] %s232_s10 }
 0x147   :  { %s9125_s27 = scalar_lea.hbm %s11033_s13, 3968 }
 0x148   :  { %p9126_p2 = scmp.ne.s32.totalorder %s11033_s13, %s9125_s27  ;;  %p9129_p3 = scmp.lt.u32.totalorder %s9125_s27, %s11033_s13 }
 0x14a   :  { %p9131_p4 = pnand %p9129_p3, %p9126_p2 }
 0x14c   :  { %9134 = shalt.err (!%p9131_p4)
}
 0x14d   :  { %s9135_s11 = scalar_lea.vmem %s207_s7, 3968  ;;  %p9140_p6 = scmp.lt.s32.totalorder %s207_s7, %s207_s7 }
 0x14e   :  { %p9136_p5 = scmp.ne.s32.totalorder %s207_s7, %s9135_s11  ;;  %p9141_p7 = scmp.lt.s32.totalorder %s9135_s11, %s9135_s11 }
 0x150   :  { %p9142_p8 = por %p9141_p7, %p9140_p6 }
 0x152   :  { %p9143_p9 = pnand %p9142_p8, %p9136_p5 }
 0x154   :  { %9146 = shalt.err (!%p9143_p9)
}
 0x155   :  { %s11034_s15 = sld [smem:[#allocation55_spill]] }
 0x156   :  { %212 = dma.hbm_to_vmem [thread:$0]  %s11033_s13, 3968, %s207_s7, [#allocation18], %s9335_s26, %s9335_s26, %s9336_s28  }
 0x15b   :  { %s9147_s16 = scalar_lea.hbm %s11034_s15, 1024 }
 0x15c   :  { %p9148_p10 = scmp.ne.s32.totalorder %s11034_s15, %s9147_s16  ;;  %p9151_p11 = scmp.lt.u32.totalorder %s9147_s16, %s11034_s15 }
 0x15e   :  { %p9153_p12 = pnand %p9151_p11, %p9148_p10 }
 0x160   :  { %9156 = shalt.err (!%p9153_p12)
}
 0x161   :  { %s9157_s6 = scalar_lea.vmem %s9691_s10, 1024  ;;  %p9162_p0 = scmp.lt.s32.totalorder %s9691_s10, %s9691_s10 }
 0x162   :  { %p9158_p13 = scmp.ne.s32.totalorder %s9691_s10, %s9157_s6  ;;  %p9163_p1 = scmp.lt.s32.totalorder %s9157_s6, %s9157_s6 }
 0x164   :  { %p9164_p2 = por %p9163_p1, %p9162_p0 }
 0x166   :  { %p9165_p3 = pnand %p9164_p2, %p9158_p13 }
 0x168   :  { %9168 = shalt.err (!%p9165_p3)
}
 0x169   :  { %s11035_s21 = sld [smem:[#allocation56_spill]]  ;;  %s9355_s9 = smov [#allocation25]  }
 0x16a   :  { %238 = dma.hbm_to_vmem [thread:$0]  %s11034_s15, 1024, %s9691_s10, [#allocation21], %s9335_s26, %s9335_s26, %s9336_s28  }
 0x16b   :  { %s257_s20 = sshll.u32 %s9355_s9, 4  ;;  %s9356_s18 = smov [#allocation28]   ;;  %s258_s20 = int_to_ptr.vmem [resolvable:$true] %s257_s20 }
 0x16c   :  { %s278_s17 = sshll.u32 %s9356_s18, 4  ;;  %s9712_s17 = int_to_ptr.vmem [resolvable:$true] %s278_s17 }
 0x16f   :  { %s9169_s29 = scalar_lea.hbm %s11035_s21, 16 }
 0x170   :  { %p9170_p4 = scmp.ne.s32.totalorder %s11035_s21, %s9169_s29  ;;  %p9173_p5 = scmp.lt.u32.totalorder %s9169_s29, %s11035_s21 }
 0x172   :  { %p9175_p6 = pnand %p9173_p5, %p9170_p4 }
 0x174   :  { %9178 = shalt.err (!%p9175_p6)
}
 0x175   :  { %s9179_s0 = scalar_lea.vmem %s258_s20, 16  ;;  %s9183_s22 = scalar_lea.vmem %s258_s20, 32 }
 0x176   :  { %p9180_p7 = scmp.ne.s32.totalorder %s258_s20, %s9179_s0  ;;  %p9184_p8 = scmp.lt.s32.totalorder %s258_s20, %s258_s20 }
 0x177   :  { %p9185_p9 = scmp.lt.s32.totalorder %s9183_s22, %s9179_s0 }
 0x179   :  { %p9186_p10 = por %p9185_p9, %p9184_p8 }
 0x17b   :  { %p9187_p11 = pnand %p9186_p10, %p9180_p7 }
 0x17d   :  { %9190 = shalt.err (!%p9187_p11)
}
 0x17e   :  { %s11036_s23 = sld [smem:[#allocation57_spill]] }
 0x17f   :  { %260 = dma.hbm_to_vmem [thread:$0]  %s11035_s21, 16, %s258_s20, [#allocation24]  }
 0x184   :  { %s9191_s4 = scalar_lea.hbm %s11036_s23, 1024 }
 0x185   :  { %p9192_p12 = scmp.ne.s32.totalorder %s11036_s23, %s9191_s4  ;;  %p9195_p13 = scmp.lt.u32.totalorder %s9191_s4, %s11036_s23 }
 0x187   :  { %p9197_p0 = pnand %p9195_p13, %p9192_p12 }
 0x189   :  { %9200 = shalt.err (!%p9197_p0)
}
 0x18a   :  { %s9201_s1 = scalar_lea.vmem %s9712_s17, 1024  ;;  %p9206_p2 = scmp.lt.s32.totalorder %s9712_s17, %s9712_s17 }
 0x18b   :  { %p9202_p1 = scmp.ne.s32.totalorder %s9712_s17, %s9201_s1  ;;  %p9207_p3 = scmp.lt.s32.totalorder %s9201_s1, %s9201_s1 }
 0x18d   :  { %p9208_p4 = por %p9207_p3, %p9206_p2 }
 0x18f   :  { %p9209_p5 = pnand %p9208_p4, %p9202_p1 }
 0x191   :  { %9212 = shalt.err (!%p9209_p5)
}
 0x192   :  { %s11037_s5 = sld [smem:[#allocation59_spill]]  ;;  %s9357_s25 = smov [#allocation31]  }
 0x193   :  { %284 = dma.hbm_to_vmem [thread:$0]  %s11036_s23, 1024, %s9712_s17, [#allocation27], %s9335_s26, %s9335_s26, %s9336_s28  }
 0x194   :  { %s304_s2 = sshll.u32 %s9357_s25, 4  ;;  %s9358_s8 = smov [#allocation34]   ;;  %s305_s2 = int_to_ptr.vmem [resolvable:$true] %s304_s2 }
 0x195   :  { %s328_s13 = sshll.u32 %s9358_s8, 4  ;;  %s9730_s13 = int_to_ptr.vmem [resolvable:$true] %s328_s13 }
 0x198   :  { %s9213_s19 = scalar_lea.hbm %s11037_s5, 1152 }
 0x199   :  { %p9214_p6 = scmp.ne.s32.totalorder %s11037_s5, %s9213_s19  ;;  %p9217_p7 = scmp.lt.u32.totalorder %s9213_s19, %s11037_s5 }
 0x19b   :  { %p9219_p8 = pnand %p9217_p7, %p9214_p6 }
 0x19d   :  { %9222 = shalt.err (!%p9219_p8)
}
 0x19e   :  { %s9223_s7 = scalar_lea.vmem %s305_s2, 1152  ;;  %p9228_p10 = scmp.lt.s32.totalorder %s305_s2, %s305_s2 }
 0x19f   :  { %p9224_p9 = scmp.ne.s32.totalorder %s305_s2, %s9223_s7  ;;  %p9229_p11 = scmp.lt.s32.totalorder %s9223_s7, %s9223_s7 }
 0x1a1   :  { %p9230_p12 = por %p9229_p11, %p9228_p10 }
 0x1a3   :  { %p9231_p13 = pnand %p9230_p12, %p9224_p9 }
 0x1a5   :  { %9234 = shalt.err (!%p9231_p13)
}
 0x1a6   :  { %s11038_s30 = sld [smem:[#allocation60_spill]] }
 0x1a7   :  { %310 = dma.hbm_to_vmem [thread:$0]  %s11037_s5, 1152, %s305_s2, [#allocation30], %s9335_s26, %s9335_s26, %s9336_s28  }
 0x1ac   :  { %s9235_s10 = scalar_lea.hbm %s11038_s30, 1024 }
 0x1ad   :  { %p9236_p0 = scmp.ne.s32.totalorder %s11038_s30, %s9235_s10  ;;  %p9239_p1 = scmp.lt.u32.totalorder %s9235_s10, %s11038_s30 }
 0x1af   :  { %p9241_p2 = pnand %p9239_p1, %p9236_p0 }
 0x1b1   :  { %9244 = shalt.err (!%p9241_p2)
}
 0x1b2   :  { %s9245_s27 = scalar_lea.vmem %s9730_s13, 1024  ;;  %p9250_p4 = scmp.lt.s32.totalorder %s9730_s13, %s9730_s13 }
 0x1b3   :  { %p9246_p3 = scmp.ne.s32.totalorder %s9730_s13, %s9245_s27  ;;  %p9251_p5 = scmp.lt.s32.totalorder %s9245_s27, %s9245_s27 }
 0x1b5   :  { %p9252_p6 = por %p9251_p5, %p9250_p4 }
 0x1b7   :  { %p9253_p7 = pnand %p9252_p6, %p9246_p3 }
 0x1b9   :  { %9256 = shalt.err (!%p9253_p7)
}
 0x1ba   :  { %s11039_s11 = sld [smem:[#allocation61_spill]]  ;;  %s9359_s15 = smov [#allocation37]  }
 0x1bb   :  { %334 = dma.hbm_to_vmem [thread:$0]  %s11038_s30, 1024, %s9730_s13, [#allocation33], %s9335_s26, %s9335_s26, %s9336_s28  }
 0x1bc   :  { %s352_s16 = sshll.u32 %s9359_s15, 4  ;;  %s353_s16 = int_to_ptr.vmem [resolvable:$true] %s352_s16 }
 0x1c0   :  { %s9257_s6 = scalar_lea.hbm %s11039_s11, 1024 }
 0x1c1   :  { %p9258_p8 = scmp.ne.s32.totalorder %s11039_s11, %s9257_s6  ;;  %p9261_p9 = scmp.lt.u32.totalorder %s9257_s6, %s11039_s11 }
 0x1c3   :  { %p9263_p10 = pnand %p9261_p9, %p9258_p8 }
 0x1c5   :  { %9266 = shalt.err (!%p9263_p10)
}
 0x1c6   :  { %s9267_s21 = scalar_lea.vmem %s353_s16, 1024  ;;  %p9272_p12 = scmp.lt.s32.totalorder %s353_s16, %s353_s16 }
 0x1c7   :  { %p9268_p11 = scmp.ne.s32.totalorder %s353_s16, %s9267_s21  ;;  %p9273_p13 = scmp.lt.s32.totalorder %s9267_s21, %s9267_s21 }
 0x1c9   :  { %p9274_p0 = por %p9273_p13, %p9272_p12 }
 0x1cb   :  { %p9275_p1 = pnand %p9274_p0, %p9268_p11 }
 0x1cd   :  { %9278 = shalt.err (!%p9275_p1)
}
 0x1ce   :  { %358 = dma.hbm_to_vmem [thread:$0]  %s11039_s11, 1024, %s353_s16, [#allocation36], %s9335_s26, %s9335_s26, %s9336_s28  }
 0x1cf   :  { %9279 = dma.done.wait [#allocation4], 3968  }
 0x1d0   :  { %9280 = vsyncadd [#allocation4], 4294963328 }
 0x1d1   :  { %9281 = dma.done.wait [#allocation6], 7552  }
 0x1d2   :  { %9282 = vsyncadd [#allocation6], 4294959744 }
 0x1d3   :  { %9283 = dma.done.wait [#allocation9], 11904  }
 0x1d4   :  { %9284 = vsyncadd [#allocation9], 4294955392 }
 0x1d5   :  { %9285 = dma.done.wait [#allocation12], 11136  }
 0x1d6   :  { %9286 = vsyncadd [#allocation12], 4294956160 }
 0x1d7   :  { %9287 = dma.done.wait [#allocation15], 11904  }
 0x1d8   :  { %9288 = vsyncadd [#allocation15], 4294955392 }
 0x1d9   :  { %9289 = dma.done.wait [#allocation18], 11136  }
 0x1da   :  { %9290 = vsyncadd [#allocation18], 4294956160 }
 0x1db   :  { %9291 = dma.done.wait [#allocation21], 1664  }
 0x1dc   :  { %9292 = vsyncadd [#allocation21], 4294965632 }
 0x1dd   :  { %9293 = dma.done.wait [#allocation24], 656  }
 0x1de   :  { %9294 = vsyncadd [#allocation24], 4294966640 }
 0x1df   :  { %9295 = dma.done.wait [#allocation27], 1664  }
 0x1e0   :  { %9296 = vsyncadd [#allocation27], 4294965632 }
 0x1e1   :  { %9297 = dma.done.wait [#allocation30], 1792  }
 0x1e2   :  { %9298 = vsyncadd [#allocation30], 4294965504 }
 0x1e3   :  { %9299 = dma.done.wait [#allocation33], 2176  }
 0x1e4   :  { %9300 = vsyncadd [#allocation33], 4294965120 }
 0x1e5   :  { %9301 = dma.done.wait [#allocation36], 2048  }
 0x1e6   :  { %9302 = vsyncadd [#allocation36], 4294965248  ;;  %s11040_s26 = sld [smem:[#allocation50_spill]]  ;;  %v11015_v0 = vmov 0.0|0.0   ;;  %vm9361_vm0 = vmmov 0   ;;  %v9362_v1 = vmov 0.0  }
 0x1e7   :  { %7990 = vmatprep.subr.bf16.mxu0 %v11015_v0  ;;  %6909 = vmatprep.mubr.msk.f32.mxu0 %vm9361_vm0, %v9362_v1  ;;  %v786_v14 = vld [vmem:[#allocation5] sm:$0xff]  ;;  %v787_v15 = vld [vmem:[#allocation5 + $0x8] sm:$0xff]  ;;  %v788_v17 = vld [vmem:[#allocation5 + $0x10] sm:$0xff]  ;;  %vm472_vm1 = vcmask 588800   ;;  %vm790_vm2 = vcmask 261120   ;;  %vm928_vm3 = vcmask 523264  }
 0x1e8   :  { %8002 = vmatprep.subr.bf16.mxu1 %v11015_v0  ;;  %7010 = vmatprep.mubr.msk.f32.mxu1 %vm9361_vm0, %v9362_v1  ;;  %v8003_v16 = vpack.c.bf16 %v787_v15, %v786_v14  ;;  %v789_v18 = vld [vmem:[#allocation5 + $0x18] sm:$0xff]  ;;  %v441_v21 = vld [vmem:[#allocation3] sm:$0xff]  ;;  %v442_v22 = vld [vmem:[#allocation3 + $0x8] sm:$0xff]  ;;  %vm1804_vm4 = vcmask 982016   ;;  %s11042_s28 = sld [smem:[#allocation54_spill]]  ;;  %vm4613_vm5 = vcmask 326656  }
 0x1e9   :  { %v8006_v20 = vpack.c.bf16 %v789_v18, %v788_v17  ;;  %v443_v23 = vld [vmem:[#allocation3 + $0x10] sm:$0xff]  ;;  %v444_v24 = vld [vmem:[#allocation3 + $0x18] sm:$0xff]  ;;  %v445_v25 = vld [vmem:[#allocation3 + $0x20] sm:$0xff]  ;;  %vm5499_vm6 = vcmask 654336   ;;  %vm5637_vm7 = vcmask 785408  }
 0x1ea   :  { %8004 = vmatpush3.bf16.msra.mxu1 %v8003_v16  ;;  %v446_v26 = vld [vmem:[#allocation3 + $0x28] sm:$0xff]  ;;  %v447_v27 = vld [vmem:[#allocation3 + $0x30] sm:$0xff]  ;;  %v448_v28 = vld [vmem:[#allocation3 + $0x38] sm:$0xff] }
 0x1eb   :  { %8005 = vmatprep.subr.bf16.mxu1 %v11015_v0  ;;  %v449_v29 = vld [vmem:[#allocation3 + $0x40] sm:$0xff]  ;;  %v450_v30 = vld [vmem:[#allocation3 + $0x48] sm:$0xff]  ;;  %v451_v31 = vld [vmem:[#allocation3 + $0x50] sm:$0xff] }
 0x1ec   :  { %v432_v2 = vld [vmem:[%s11040_s26] sm:$0xff]  ;;  %v433_v3 = vld [vmem:[%s11040_s26 + $0x8] sm:$0xff]  ;;  %v434_v4 = vld [vmem:[%s11040_s26 + $0x10] sm:$0xff] }
 0x1ed   :  { %v9767_v5 = vpack.c.bf16 %v433_v3, %v432_v2  ;;  %v435_v6 = vld [vmem:[%s11040_s26 + $0x18] sm:$0xff]  ;;  %v436_v8 = vld [vmem:[%s11040_s26 + $0x20] sm:$0xff]  ;;  %v437_v9 = vld [vmem:[%s11040_s26 + $0x28] sm:$0xff] }
 0x1ee   :  { %v9771_v7 = vpack.c.bf16 %v435_v6, %v434_v4  ;;  %v9777_v10 = vpack.c.bf16 %v437_v9, %v436_v8  ;;  %v438_v11 = vld [vmem:[%s11040_s26 + $0x30] sm:$0xff]  ;;  %v439_v12 = vld [vmem:[%s11040_s26 + $0x38] sm:$0xff]  ;;  %v440_v19 = vld [vmem:[%s11040_s26 + $0x40] sm:$0xff]  ;;  %8007 = vmatpush3.bf16.msra.mxu1 %v8006_v20 }
 0x1ef   :  { %7992 = vmatpush3.bf16.msra.mxu0 %v9767_v5  ;;  %v9783_v13 = vpack.c.bf16 %v439_v12, %v438_v11  ;;  %8008 = vmatprep.subr.bf16.mxu1 %v11015_v0  ;;  %v452_v32 = vld [vmem:[#allocation3 + $0x58] sm:$0xff]  ;;  %v453_v33 = vld [vmem:[#allocation3 + $0x60] sm:$0xff]  ;;  %v454_v34 = vld [vmem:[#allocation3 + $0x68] sm:$0xff] }
 0x1f0   :  { %7993 = vmatprep.subr.bf16.mxu0 %v11015_v0  ;;  %v455_v35 = vld [vmem:[#allocation3 + $0x70] sm:$0xff]  ;;  %v456_v36 = vld [vmem:[#allocation3 + $0x78] sm:$0xff]  ;;  %v457_v37 = vld [vmem:[#allocation3 + $0x80] sm:$0xff] }
 0x1f1   :  { %v458_v38 = vld [vmem:[#allocation3 + $0x88] sm:$0xff]  ;;  %v459_v39 = vld [vmem:[#allocation3 + $0x90] sm:$0xff]  ;;  %v460_v40 = vld [vmem:[#allocation3 + $0x98] sm:$0xff] }
 0x1f2   :  { %v461_v41 = vld [vmem:[#allocation3 + $0xa0] sm:$0xff]  ;;  %v462_v42 = vld [vmem:[#allocation3 + $0xa8] sm:$0xff]  ;;  %v463_v43 = vld [vmem:[#allocation3 + $0xb0] sm:$0xff] }
 0x1f3   :  { %7995 = vmatpush3.bf16.msra.mxu0 %v9771_v7  ;;  %v464_v44 = vld [vmem:[#allocation3 + $0xb8] sm:$0xff]  ;;  %v465_v45 = vld [vmem:[#allocation3 + $0xc0] sm:$0xff]  ;;  %v466_v46 = vld [vmem:[#allocation3 + $0xc8] sm:$0xff] }
 0x1f4   :  { %7996 = vmatprep.subr.bf16.mxu0 %v11015_v0  ;;  %v467_v47 = vld [vmem:[#allocation3 + $0xd0] sm:$0xff]  ;;  %v468_v48 = vld [vmem:[#allocation3 + $0xd8] sm:$0xff]  ;;  %v469_v49 = vld [vmem:[#allocation3 + $0xe0] sm:$0xff] }
 0x1f5   :  { %v470_v50 = vld [vmem:[#allocation3 + $0xe8] sm:$0xff]  ;;  %v471_v51 = vld [vmem:[#allocation3 + $0xf0] sm:$0xff]  ;;  %v939_v52 = vld [vmem:[#allocation5 + $0x20] sm:$0xff] }
 0x1f6   :  { %v940_v53 = vld [vmem:[#allocation5 + $0x28] sm:$0xff]  ;;  %v941_v55 = vld [vmem:[#allocation5 + $0x30] sm:$0xff]  ;;  %v942_v56 = vld [vmem:[#allocation5 + $0x38] sm:$0xff] }
 0x1f7   :  { %7998 = vmatpush3.bf16.msra.mxu0 %v9777_v10  ;;  %v8009_v54 = vpack.c.bf16 %v940_v53, %v939_v52  ;;  %v8012_v59 = vpack.c.bf16 %v942_v56, %v941_v55  ;;  %v1054_v16 = vld [vmem:[#allocation5 + $0x40] sm:$0xff]  ;;  %v1055_v17 = vld [vmem:[#allocation5 + $0x48] sm:$0xff]  ;;  %v1268_v53 = vld [vmem:[#allocation5 + $0x90] sm:$0xff] }
 0x1f8   :  { %7999 = vmatprep.subr.bf16.mxu0 %v11015_v0  ;;  %v8015_v20 = vpack.c.bf16 %v1055_v17, %v1054_v16 }
 0x1fb   :  { %8001 = vmatpush3.bf16.msra.mxu0 %v9783_v13 }
 0x1fc   :  { %6907 = vmatprep.subr.mxu0 %v9362_v1 }
 0x1ff   :  { %6908 = vmatpush3.msra.mxu0 %v440_v19 }
 0x200   :  { %6910 = vmatmul.mubr.msk.f32.vlgmr.msra.gmra.mrb[0].mxu0 %vm472_vm1, %v441_v21  ;;  %8044 = vmatprep.subr.bf16.mxu0 %v11015_v0  ;;  %v1056_v21 = vld [vmem:[#allocation5 + $0x50] sm:$0xff] }
 0x201   :  { %6912 = vmatprep.mubr.msk.f32.mxu0 %vm9361_vm0, %v9362_v1 }
 0x204   :  { %6913 = vmatmul.mubr.msk.f32.gmra.mrb[2].mxu0 %vm472_vm1, %v442_v22  ;;  %v1057_v22 = vld [vmem:[#allocation5 + $0x58] sm:$0xff] }
 0x205   :  { %6915 = vmatprep.mubr.msk.f32.mxu0 %vm9361_vm0, %v9362_v1 }
 0x208   :  { %6916 = vmatmul.mubr.msk.f32.gmra.mrb[4].mxu0 %vm472_vm1, %v443_v23 }
 0x209   :  { %6918 = vmatprep.mubr.msk.f32.mxu0 %vm9361_vm0, %v9362_v1 }
 0x20c   :  { %6919 = vmatmul.mubr.msk.f32.gmra.mrb[6].mxu0 %vm472_vm1, %v444_v24 }
 0x20d   :  { %6921 = vmatprep.mubr.msk.f32.mxu0 %vm9361_vm0, %v9362_v1 }
 0x210   :  { %6922 = vmatmul.mubr.msk.f32.gmra.mrb[8].mxu0 %vm472_vm1, %v445_v25  ;;  %v8018_v25 = vpack.c.bf16 %v1057_v22, %v1056_v21 }
 0x211   :  { %6924 = vmatprep.mubr.msk.f32.mxu0 %vm9361_vm0, %v9362_v1 }
 0x214   :  { %6925 = vmatmul.mubr.msk.f32.gmra.mrb[10].mxu0 %vm472_vm1, %v446_v26 }
 0x215   :  { %6927 = vmatprep.mubr.msk.f32.mxu0 %vm9361_vm0, %v9362_v1 }
 0x218   :  { %6928 = vmatmul.mubr.msk.f32.gmra.mrb[12].mxu0 %vm472_vm1, %v447_v27 }
 0x219   :  { %6930 = vmatprep.mubr.msk.f32.mxu0 %vm9361_vm0, %v9362_v1 }
 0x21c   :  { %6931 = vmatmul.mubr.msk.f32.gmra.mrb[14].mxu0 %vm472_vm1, %v448_v28 }
 0x21d   :  { %6933 = vmatprep.mubr.msk.f32.mxu0 %vm9361_vm0, %v9362_v1 }
 0x220   :  { %6934 = vmatmul.mubr.msk.f32.gmra.mrb[16].mxu0 %vm472_vm1, %v449_v29 }
 0x221   :  { %6936 = vmatprep.mubr.msk.f32.mxu0 %vm9361_vm0, %v9362_v1 }
 0x224   :  { %6937 = vmatmul.mubr.msk.f32.gmra.mrb[18].mxu0 %vm472_vm1, %v450_v30 }
 0x225   :  { %6939 = vmatprep.mubr.msk.f32.mxu0 %vm9361_vm0, %v9362_v1 }
 0x228   :  { %6940 = vmatmul.mubr.msk.f32.gmra.mrb[20].mxu0 %vm472_vm1, %v451_v31 }
 0x229   :  { %6942 = vmatprep.mubr.msk.f32.mxu0 %vm9361_vm0, %v9362_v1 }
 0x22c   :  { %6943 = vmatmul.mubr.msk.f32.gmra.mrb[22].mxu0 %vm472_vm1, %v452_v32  ;;  %v1169_v32 = vld [vmem:[#allocation5 + $0x60] sm:$0xff] }
 0x22d   :  { %6945 = vmatprep.mubr.msk.f32.mxu0 %vm9361_vm0, %v9362_v1 }
 0x230   :  { %6946 = vmatmul.mubr.msk.f32.gmra.mrb[24].mxu0 %vm472_vm1, %v453_v33  ;;  %v1170_v33 = vld [vmem:[#allocation5 + $0x68] sm:$0xff] }
 0x231   :  { %6948 = vmatprep.mubr.msk.f32.mxu0 %vm9361_vm0, %v9362_v1 }
 0x234   :  { %6949 = vmatmul.mubr.msk.f32.gmra.mrb[26].mxu0 %vm472_vm1, %v454_v34 }
 0x235   :  { %6951 = vmatprep.mubr.msk.f32.mxu0 %vm9361_vm0, %v9362_v1 }
 0x238   :  { %6952 = vmatmul.mubr.msk.f32.gmra.mrb[28].mxu0 %vm472_vm1, %v455_v35 }
 0x239   :  { %6954 = vmatprep.mubr.msk.f32.mxu0 %vm9361_vm0, %v9362_v1 }
 0x23c   :  { %6955 = vmatmul.mubr.msk.f32.gmra.mrb[30].mxu0 %vm472_vm1, %v456_v36  ;;  %v8021_v36 = vpack.c.bf16 %v1170_v33, %v1169_v32 }
 0x23d   :  { %6957 = vmatprep.mubr.msk.f32.mxu0 %vm9361_vm0, %v9362_v1 }
 0x240   :  { %6958 = vmatmul.mubr.msk.f32.gmra.mrb[32].mxu0 %vm472_vm1, %v457_v37  ;;  %v1171_v37 = vld [vmem:[#allocation5 + $0x70] sm:$0xff] }
 0x241   :  { %6960 = vmatprep.mubr.msk.f32.mxu0 %vm9361_vm0, %v9362_v1 }
 0x244   :  { %6961 = vmatmul.mubr.msk.f32.gmra.mrb[34].mxu0 %vm472_vm1, %v458_v38  ;;  %v1172_v38 = vld [vmem:[#allocation5 + $0x78] sm:$0xff] }
 0x245   :  { %6963 = vmatprep.mubr.msk.f32.mxu0 %vm9361_vm0, %v9362_v1 }
 0x248   :  { %6964 = vmatmul.mubr.msk.f32.gmra.mrb[36].mxu0 %vm472_vm1, %v459_v39 }
 0x249   :  { %6966 = vmatprep.mubr.msk.f32.mxu0 %vm9361_vm0, %v9362_v1 }
 0x24c   :  { %6967 = vmatmul.mubr.msk.f32.gmra.mrb[38].mxu0 %vm472_vm1, %v460_v40 }
 0x24d   :  { %6969 = vmatprep.mubr.msk.f32.mxu0 %vm9361_vm0, %v9362_v1 }
 0x250   :  { %6970 = vmatmul.mubr.msk.f32.gmra.mrb[40].mxu0 %vm472_vm1, %v461_v41  ;;  %v8024_v41 = vpack.c.bf16 %v1172_v38, %v1171_v37  ;;  %v1587_v38 = vld [vmem:[#allocation7] sm:$0xff] }
 0x251   :  { %6972 = vmatprep.mubr.msk.f32.mxu0 %vm9361_vm0, %v9362_v1 }
 0x254   :  { %6973 = vmatmul.mubr.msk.f32.gmra.mrb[42].mxu0 %vm472_vm1, %v462_v42 }
 0x255   :  { %6975 = vmatprep.mubr.msk.f32.mxu0 %vm9361_vm0, %v9362_v1 }
 0x258   :  { %6976 = vmatmul.mubr.msk.f32.gmra.mrb[44].mxu0 %vm472_vm1, %v463_v43 }
 0x259   :  { %6978 = vmatprep.mubr.msk.f32.mxu0 %vm9361_vm0, %v9362_v1 }
 0x25c   :  { %6979 = vmatmul.mubr.msk.f32.gmra.mrb[46].mxu0 %vm472_vm1, %v464_v44 }
 0x25d   :  { %6981 = vmatprep.mubr.msk.f32.mxu0 %vm9361_vm0, %v9362_v1 }
 0x260   :  { %6982 = vmatmul.mubr.msk.f32.gmra.mrb[48].mxu0 %vm472_vm1, %v465_v45 }
 0x261   :  { %6984 = vmatprep.mubr.msk.f32.mxu0 %vm9361_vm0, %v9362_v1 }
 0x264   :  { %6985 = vmatmul.mubr.msk.f32.gmra.mrb[50].mxu0 %vm472_vm1, %v466_v46 }
 0x265   :  { %6987 = vmatprep.mubr.msk.f32.mxu0 %vm9361_vm0, %v9362_v1 }
 0x268   :  { %6988 = vmatmul.mubr.msk.f32.gmra.mrb[52].mxu0 %vm472_vm1, %v467_v47 }
 0x269   :  { %6990 = vmatprep.mubr.msk.f32.mxu0 %vm9361_vm0, %v9362_v1 }
 0x26c   :  { %6991 = vmatmul.mubr.msk.f32.gmra.mrb[54].mxu0 %vm472_vm1, %v468_v48  ;;  %v1266_v48 = vld [vmem:[#allocation5 + $0x80] sm:$0xff] }
 0x26d   :  { %6993 = vmatprep.mubr.msk.f32.mxu0 %vm9361_vm0, %v9362_v1 }
 0x270   :  { %6994 = vmatmul.mubr.msk.f32.gmra.mrb[56].mxu0 %vm472_vm1, %v469_v49  ;;  %v1267_v49 = vld [vmem:[#allocation5 + $0x88] sm:$0xff] }
 0x271   :  { %6996 = vmatprep.mubr.msk.f32.mxu0 %vm9361_vm0, %v9362_v1  ;;  %v8027_v52 = vpack.c.bf16 %v1267_v49, %v1266_v48 }
 0x274   :  { %6997 = vmatmul.mubr.msk.f32.gmra.mrb[58].mxu0 %vm472_vm1, %v470_v50 }
 0x275   :  { %6999 = vmatprep.mubr.msk.f32.mxu0 %vm9361_vm0, %v9362_v1 }
 0x278   :  { %7000 = vmatmul.mubr.msk.f32.gmra.mrb[60].mxu0 %vm472_vm1, %v471_v51 }
 0x2d3   :  { %v632_v57 = vpop.f32.mrb[0].mxu0 }
 0x2d4   :  { %v6911_v58 = vpop.f32.mrb[1].mxu0  ;;  %7011 = vmatmul.mubr.msk.f32.vlgmr.msra.gmra.mrb[0].mxu1 %vm790_vm2, %v632_v57 }
 0x2d5   :  { %7013 = vmatprep.mubr.msk.f32.mxu1 %vm9361_vm0, %v9362_v1  ;;  %8010 = vmatpush3.bf16.msra.mxu1 %v8009_v54  ;;  %v1269_v54 = vld [vmem:[#allocation5 + $0x98] sm:$0xff] }
 0x2d6   :  { %8011 = vmatprep.subr.bf16.mxu1 %v11015_v0  ;;  %v8030_v57 = vpack.c.bf16 %v1269_v54, %v1268_v53 }
 0x2d7   :  { %v637_v60 = vpop.f32.mrb[2].mxu0 }
 0x2d8   :  { %v6914_v61 = vpop.f32.mrb[3].mxu0  ;;  %7014 = vmatmul.mubr.msk.f32.gmra.mrb[2].mxu1 %vm790_vm2, %v637_v60  ;;  %v1363_v60 = vld [vmem:[#allocation5 + $0xa0] sm:$0xff] }
 0x2d9   :  { %7016 = vmatprep.mubr.msk.f32.mxu1 %vm9361_vm0, %v9362_v1  ;;  %8013 = vmatpush3.bf16.msra.mxu1 %v8012_v59  ;;  %v1364_v61 = vld [vmem:[#allocation5 + $0xa8] sm:$0xff] }
 0x2da   :  { %8014 = vmatprep.subr.bf16.mxu1 %v11015_v0 }
 0x2db   :  { %v642_v62 = vpop.f32.mrb[4].mxu0 }
 0x2dc   :  { %v6917_v63 = vpop.f32.mrb[5].mxu0  ;;  %7017 = vmatmul.mubr.msk.f32.gmra.mrb[4].mxu1 %vm790_vm2, %v642_v62 }
 0x2dd   :  { %7019 = vmatprep.mubr.msk.f32.mxu1 %vm9361_vm0, %v9362_v1 }
 0x2df   :  { %v647_v2 = vpop.f32.mrb[6].mxu0 }
 0x2e0   :  { %v6920_v3 = vpop.f32.mrb[7].mxu0  ;;  %7020 = vmatmul.mubr.msk.f32.gmra.mrb[6].mxu1 %vm790_vm2, %v647_v2  ;;  %v8033_v2 = vpack.c.bf16 %v1364_v61, %v1363_v60 }
 0x2e1   :  { %7022 = vmatprep.mubr.msk.f32.mxu1 %vm9361_vm0, %v9362_v1  ;;  %v1365_v3 = vld [vmem:[#allocation5 + $0xb0] sm:$0xff] }
 0x2e3   :  { %v652_v4 = vpop.f32.mrb[8].mxu0 }
 0x2e4   :  { %v6923_v6 = vpop.f32.mrb[9].mxu0  ;;  %7023 = vmatmul.mubr.msk.f32.gmra.mrb[8].mxu1 %vm790_vm2, %v652_v4  ;;  %v1366_v4 = vld [vmem:[#allocation5 + $0xb8] sm:$0xff] }
 0x2e5   :  { %7025 = vmatprep.mubr.msk.f32.mxu1 %vm9361_vm0, %v9362_v1 }
 0x2e7   :  { %v657_v8 = vpop.f32.mrb[10].mxu0 }
 0x2e8   :  { %v6926_v9 = vpop.f32.mrb[11].mxu0  ;;  %7026 = vmatmul.mubr.msk.f32.gmra.mrb[10].mxu1 %vm790_vm2, %v657_v8 }
 0x2e9   :  { %7028 = vmatprep.mubr.msk.f32.mxu1 %vm9361_vm0, %v9362_v1  ;;  %v8036_v9 = vpack.c.bf16 %v1366_v4, %v1365_v3  ;;  %v1591_v4 = vld [vmem:[#allocation7 + $0x20] sm:$0xff] }
 0x2eb   :  { %v662_v11 = vpop.f32.mrb[12].mxu0 }
 0x2ec   :  { %v6929_v12 = vpop.f32.mrb[13].mxu0  ;;  %7029 = vmatmul.mubr.msk.f32.gmra.mrb[12].mxu1 %vm790_vm2, %v662_v11 }
 0x2ed   :  { %7031 = vmatprep.mubr.msk.f32.mxu1 %vm9361_vm0, %v9362_v1 }
 0x2ef   :  { %v667_v14 = vpop.f32.mrb[14].mxu0 }
 0x2f0   :  { %v6932_v15 = vpop.f32.mrb[15].mxu0  ;;  %7032 = vmatmul.mubr.msk.f32.gmra.mrb[14].mxu1 %vm790_vm2, %v667_v14  ;;  %v1460_v14 = vld [vmem:[#allocation5 + $0xc0] sm:$0xff] }
 0x2f1   :  { %7034 = vmatprep.mubr.msk.f32.mxu1 %vm9361_vm0, %v9362_v1  ;;  %v1461_v15 = vld [vmem:[#allocation5 + $0xc8] sm:$0xff] }
 0x2f3   :  { %v672_v18 = vpop.f32.mrb[16].mxu0 }
 0x2f4   :  { %v6935_v19 = vpop.f32.mrb[17].mxu0  ;;  %7035 = vmatmul.mubr.msk.f32.gmra.mrb[16].mxu1 %vm790_vm2, %v672_v18  ;;  %v8039_v18 = vpack.c.bf16 %v1461_v15, %v1460_v14  ;;  %v1653_v14 = vld [vmem:[#allocation8 + $0x20] sm:$0xff] }
 0x2f5   :  { %7045 = vmatprep.mubr.msk.f32.mxu1 %vm9361_vm0, %v9362_v1  ;;  %v1462_v19 = vld [vmem:[#allocation5 + $0xd0] sm:$0xff] }
 0x2f7   :  { %v677_v23 = vpop.f32.mrb[18].mxu0 }
 0x2f8   :  { %v6938_v24 = vpop.f32.mrb[19].mxu0  ;;  %7046 = vmatmul.mubr.msk.f32.vlgmr.msra.gmra.mrb[18].mxu1 %vm790_vm2, %v677_v23 }
 0x2f9   :  { %7048 = vmatprep.mubr.msk.f32.mxu1 %vm9361_vm0, %v9362_v1  ;;  %8016 = vmatpush3.bf16.msra.mxu1 %v8015_v20  ;;  %v1463_v20 = vld [vmem:[#allocation5 + $0xd8] sm:$0xff] }
 0x2fa   :  { %8017 = vmatprep.subr.bf16.mxu1 %v11015_v0  ;;  %v8042_v23 = vpack.c.bf16 %v1463_v20, %v1462_v19 }
 0x2fb   :  { %v682_v26 = vpop.f32.mrb[20].mxu0 }
 0x2fc   :  { %v6941_v27 = vpop.f32.mrb[21].mxu0  ;;  %7049 = vmatmul.mubr.msk.f32.gmra.mrb[20].mxu1 %vm790_vm2, %v682_v26 }
 0x2fd   :  { %7051 = vmatprep.mubr.msk.f32.mxu1 %vm9361_vm0, %v9362_v1  ;;  %8019 = vmatpush3.bf16.msra.mxu1 %v8018_v25 }
 0x2fe   :  { %8020 = vmatprep.subr.bf16.mxu1 %v11015_v0 }
 0x2ff   :  { %v687_v28 = vpop.f32.mrb[22].mxu0 }
 0x300   :  { %v6944_v29 = vpop.f32.mrb[23].mxu0  ;;  %7052 = vmatmul.mubr.msk.f32.gmra.mrb[22].mxu1 %vm790_vm2, %v687_v28 }
 0x301   :  { %7054 = vmatprep.mubr.msk.f32.mxu1 %vm9361_vm0, %v9362_v1 }
 0x303   :  { %v692_v30 = vpop.f32.mrb[24].mxu0 }
 0x304   :  { %v6947_v31 = vpop.f32.mrb[25].mxu0  ;;  %7055 = vmatmul.mubr.msk.f32.gmra.mrb[24].mxu1 %vm790_vm2, %v692_v30 }
 0x305   :  { %7057 = vmatprep.mubr.msk.f32.mxu1 %vm9361_vm0, %v9362_v1 }
 0x307   :  { %v697_v34 = vpop.f32.mrb[26].mxu0 }
 0x308   :  { %v6950_v35 = vpop.f32.mrb[27].mxu0  ;;  %7058 = vmatmul.mubr.msk.f32.gmra.mrb[26].mxu1 %vm790_vm2, %v697_v34 }
 0x309   :  { %7068 = vmatprep.mubr.msk.f32.mxu1 %vm9361_vm0, %v9362_v1 }
 0x30b   :  { %v702_v39 = vpop.f32.mrb[28].mxu0 }
 0x30c   :  { %v6953_v40 = vpop.f32.mrb[29].mxu0  ;;  %7069 = vmatmul.mubr.msk.f32.vlgmr.msra.gmra.mrb[28].mxu1 %vm790_vm2, %v702_v39 }
 0x30d   :  { %7071 = vmatprep.mubr.msk.f32.mxu1 %vm9361_vm0, %v9362_v1  ;;  %8022 = vmatpush3.bf16.msra.mxu1 %v8021_v36 }
 0x30e   :  { %8023 = vmatprep.subr.bf16.mxu1 %v11015_v0 }
 0x30f   :  { %v707_v42 = vpop.f32.mrb[30].mxu0 }
 0x310   :  { %v6956_v43 = vpop.f32.mrb[31].mxu0  ;;  %7072 = vmatmul.mubr.msk.f32.gmra.mrb[30].mxu1 %vm790_vm2, %v707_v42 }
 0x311   :  { %7074 = vmatprep.mubr.msk.f32.mxu1 %vm9361_vm0, %v9362_v1  ;;  %8025 = vmatpush3.bf16.msra.mxu1 %v8024_v41  ;;  %v1649_v43 = vld [vmem:[#allocation8] sm:$0xff] }
 0x312   :  { %8026 = vmatprep.subr.bf16.mxu1 %v11015_v0 }
 0x313   :  { %v712_v44 = vpop.f32.mrb[32].mxu0 }
 0x314   :  { %v6959_v45 = vpop.f32.mrb[33].mxu0  ;;  %7075 = vmatmul.mubr.msk.f32.gmra.mrb[32].mxu1 %vm790_vm2, %v712_v44  ;;  %v1588_v44 = vld [vmem:[#allocation7 + $0x8] sm:$0xff] }
 0x315   :  { %7077 = vmatprep.mubr.msk.f32.mxu1 %vm9361_vm0, %v9362_v1 }
 0x317   :  { %v717_v46 = vpop.f32.mrb[34].mxu0 }
 0x318   :  { %v6962_v47 = vpop.f32.mrb[35].mxu0  ;;  %7078 = vmatmul.mubr.msk.f32.gmra.mrb[34].mxu1 %vm790_vm2, %v717_v46 }
 0x319   :  { %7080 = vmatprep.mubr.msk.f32.mxu1 %vm9361_vm0, %v9362_v1  ;;  %v1650_v47 = vld [vmem:[#allocation8 + $0x8] sm:$0xff] }
 0x31b   :  { %v722_v50 = vpop.f32.mrb[36].mxu0 }
 0x31c   :  { %v6965_v51 = vpop.f32.mrb[37].mxu0  ;;  %7081 = vmatmul.mubr.msk.f32.gmra.mrb[36].mxu1 %vm790_vm2, %v722_v50 }
 0x31d   :  { %7091 = vmatprep.mubr.msk.f32.mxu1 %vm9361_vm0, %v9362_v1  ;;  %v1589_v51 = vld [vmem:[#allocation7 + $0x10] sm:$0xff] }
 0x31f   :  { %v727_v55 = vpop.f32.mrb[38].mxu0 }
 0x320   :  { %v6968_v56 = vpop.f32.mrb[39].mxu0  ;;  %7092 = vmatmul.mubr.msk.f32.vlgmr.msra.gmra.mrb[38].mxu1 %vm790_vm2, %v727_v55 }
 0x321   :  { %7094 = vmatprep.mubr.msk.f32.mxu1 %vm9361_vm0, %v9362_v1  ;;  %8028 = vmatpush3.bf16.msra.mxu1 %v8027_v52 }
 0x322   :  { %8029 = vmatprep.subr.bf16.mxu1 %v11015_v0 }
 0x323   :  { %v732_v58 = vpop.f32.mrb[40].mxu0 }
 0x324   :  { %v6971_v59 = vpop.f32.mrb[41].mxu0  ;;  %7095 = vmatmul.mubr.msk.f32.gmra.mrb[40].mxu1 %vm790_vm2, %v732_v58  ;;  %v1743_v58 = vld [vmem:[#allocation10 + $0x8] sm:$0xff] }
 0x325   :  { %7097 = vmatprep.mubr.msk.f32.mxu1 %vm9361_vm0, %v9362_v1  ;;  %8031 = vmatpush3.bf16.msra.mxu1 %v8030_v57  ;;  %v1651_v57 = vld [vmem:[#allocation8 + $0x10] sm:$0xff]  ;;  %v1590_v59 = vld [vmem:[#allocation7 + $0x18] sm:$0xff] }
 0x326   :  { %8032 = vmatprep.subr.bf16.mxu1 %v11015_v0  ;;  %6216 = vmatprep.mubr.msk.f32.mxu0 %vm1804_vm4, %v1743_v58 }
 0x327   :  { %v737_v62 = vpop.f32.mrb[42].mxu0 }
 0x328   :  { %v6974_v63 = vpop.f32.mrb[43].mxu0  ;;  %7098 = vmatmul.mubr.msk.f32.gmra.mrb[42].mxu1 %vm790_vm2, %v737_v62  ;;  %v1652_v62 = vld [vmem:[#allocation8 + $0x18] sm:$0xff] }
 0x329   :  { %7108 = vmatprep.mubr.msk.f32.mxu1 %vm9361_vm0, %v9362_v1 }
 0x32b   :  { %v742_v6 = vpop.f32.mrb[44].mxu0 }
 0x32c   :  { %v6977_v8 = vpop.f32.mrb[45].mxu0  ;;  %7109 = vmatmul.mubr.msk.f32.vlgmr.msra.gmra.mrb[44].mxu1 %vm790_vm2, %v742_v6 }
 0x32d   :  { %7111 = vmatprep.mubr.msk.f32.mxu1 %vm9361_vm0, %v9362_v1  ;;  %8034 = vmatpush3.bf16.msra.mxu1 %v8033_v2 }
 0x32e   :  { %8035 = vmatprep.subr.bf16.mxu1 %v11015_v0 }
 0x32f   :  { %v747_v11 = vpop.f32.mrb[46].mxu0 }
 0x330   :  { %v6980_v12 = vpop.f32.mrb[47].mxu0  ;;  %7112 = vmatmul.mubr.msk.f32.gmra.mrb[46].mxu1 %vm790_vm2, %v747_v11 }
 0x331   :  { %7114 = vmatprep.mubr.msk.f32.mxu1 %vm9361_vm0, %v9362_v1  ;;  %8037 = vmatpush3.bf16.msra.mxu1 %v8036_v9 }
 0x332   :  { %8038 = vmatprep.subr.bf16.mxu1 %v11015_v0 }
 0x333   :  { %v752_v16 = vpop.f32.mrb[48].mxu0 }
 0x334   :  { %v6983_v17 = vpop.f32.mrb[49].mxu0  ;;  %7115 = vmatmul.mubr.msk.f32.gmra.mrb[48].mxu1 %vm790_vm2, %v752_v16  ;;  %v1592_v16 = vld [vmem:[#allocation7 + $0x28] sm:$0xff] }
 0x335   :  { %7125 = vmatprep.mubr.msk.f32.mxu1 %vm9361_vm0, %v9362_v1 }
 0x337   :  { %v757_v21 = vpop.f32.mrb[50].mxu0 }
 0x338   :  { %v6986_v22 = vpop.f32.mrb[51].mxu0  ;;  %7126 = vmatmul.mubr.msk.f32.vlgmr.msra.gmra.mrb[50].mxu1 %vm790_vm2, %v757_v21  ;;  %v1654_v21 = vld [vmem:[#allocation8 + $0x28] sm:$0xff] }
 0x339   :  { %7128 = vmatprep.mubr.msk.f32.mxu1 %vm9361_vm0, %v9362_v1  ;;  %8040 = vmatpush3.bf16.msra.mxu1 %v8039_v18 }
 0x33a   :  { %8041 = vmatprep.subr.bf16.mxu1 %v11015_v0 }
 0x33b   :  { %v762_v24 = vpop.f32.mrb[52].mxu0 }
 0x33c   :  { %v6989_v25 = vpop.f32.mrb[53].mxu0  ;;  %7129 = vmatmul.mubr.msk.f32.gmra.mrb[52].mxu1 %vm790_vm2, %v762_v24 }
 0x33d   :  { %7131 = vmatprep.mubr.msk.f32.mxu1 %vm9361_vm0, %v9362_v1  ;;  %8043 = vmatpush3.bf16.msra.mxu1 %v8042_v23  ;;  %v1593_v25 = vld [vmem:[#allocation7 + $0x30] sm:$0xff] }
 0x33e   :  { %8089 = vmatprep.subr.bf16.mxu1 %v11015_v0 }
 0x33f   :  { %v767_v26 = vpop.f32.mrb[54].mxu0 }
 0x340   :  { %v6992_v27 = vpop.f32.mrb[55].mxu0  ;;  %7132 = vmatmul.mubr.msk.f32.gmra.mrb[54].mxu1 %vm790_vm2, %v767_v26 }
 0x341   :  { %7142 = vmatprep.mubr.msk.f32.mxu1 %vm9361_vm0, %v9362_v1 }
 0x343   :  { %v772_v28 = vpop.f32.mrb[56].mxu0 }
 0x344   :  { %v6995_v29 = vpop.f32.mrb[57].mxu0  ;;  %7143 = vmatmul.mubr.msk.f32.vlgmr.msra.gmra.mrb[56].mxu1 %vm790_vm2, %v772_v28 }
 0x345   :  { %7145 = vmatprep.mubr.msk.f32.mxu1 %vm9361_vm0, %v9362_v1 }
 0x347   :  { %v777_v30 = vpop.f32.mrb[58].mxu0 }
 0x348   :  { %v6998_v31 = vpop.f32.mrb[59].mxu0  ;;  %7146 = vmatmul.mubr.msk.f32.gmra.mrb[58].mxu1 %vm790_vm2, %v777_v30 }
 0x349   :  { %7148 = vmatprep.mubr.msk.f32.mxu1 %vm9361_vm0, %v9362_v1  ;;  %v1655_v31 = vld [vmem:[#allocation8 + $0x30] sm:$0xff] }
 0x34b   :  { %v782_v32 = vpop.f32.mrb[60].mxu0 }
 0x34c   :  { %v7001_v33 = vpop.f32.mrb[61].mxu0  ;;  %7149 = vmatmul.mubr.msk.f32.gmra.mrb[60].mxu1 %vm790_vm2, %v782_v32 }
 0x34d   :  { %7167 = vmatprep.mubr.msk.f32.mxu1 %vm9361_vm0, %v9362_v1  ;;  %v1594_v33 = vld [vmem:[#allocation7 + $0x38] sm:$0xff] }
 0x3a7   :  { %v884_v34 = vpop.f32.mrb[0].mxu1 }
 0x3a8   :  { %929 = vst.msk [vmem:[#allocation2] sm:$0xff] %vm928_vm3, %v884_v34  ;;  %v7012_v35 = vpop.f32.mrb[1].mxu1 }
 0x3ab   :  { %v889_v36 = vpop.f32.mrb[2].mxu1 }
 0x3ac   :  { %930 = vst.msk [vmem:[#allocation2 + $0x8] sm:$0xff] %vm928_vm3, %v889_v36  ;;  %v7015_v37 = vpop.f32.mrb[3].mxu1 }
 0x3af   :  { %v894_v39 = vpop.f32.mrb[4].mxu1  ;;  %v1556_v40 = vld [vmem:[#allocation2] sm:$0xff] }
 0x3b0   :  { %931 = vst.msk [vmem:[#allocation2 + $0x10] sm:$0xff] %vm928_vm3, %v894_v39  ;;  %v7018_v41 = vpop.f32.mrb[5].mxu1  ;;  %v1618_v42 = vmul.f32 %v1587_v38, %v1556_v40  ;;  %v1656_v38 = vld [vmem:[#allocation8 + $0x38] sm:$0xff] }
 0x3b2   :  { %v1680_v48 = vadd.f32 %v1649_v43, %v1618_v42  ;;  %v1595_v42 = vld [vmem:[#allocation7 + $0x40] sm:$0xff] }
 0x3b3   :  { %v899_v45 = vpop.f32.mrb[6].mxu1  ;;  %v1557_v46 = vld [vmem:[#allocation2 + $0x8] sm:$0xff] }
 0x3b4   :  { %932 = vst.msk [vmem:[#allocation2 + $0x18] sm:$0xff] %vm928_vm3, %v899_v45  ;;  %v7021_v49 = vpop.f32.mrb[7].mxu1  ;;  %v1619_v50 = vmul.f32 %v1588_v44, %v1557_v46  ;;  %8577 = vtanh.f32 %v1680_v48  ;;  %v1657_v48 = vld [vmem:[#allocation8 + $0x40] sm:$0xff] }
 0x3b6   :  { %v1681_v52 = vadd.f32 %v1650_v47, %v1619_v50  ;;  %v1596_v50 = vld [vmem:[#allocation7 + $0x48] sm:$0xff] }
 0x3b7   :  { %v904_v53 = vpop.f32.mrb[8].mxu1  ;;  %v1558_v54 = vld [vmem:[#allocation2 + $0x10] sm:$0xff] }
 0x3b8   :  { %933 = vst.msk [vmem:[#allocation2 + $0x20] sm:$0xff] %vm928_vm3, %v904_v53  ;;  %v7024_v55 = vpop.f32.mrb[9].mxu1  ;;  %8579 = vtanh.f32 %v1681_v52  ;;  %v1620_v56 = vmul.f32 %v1589_v51, %v1558_v54 }
 0x3b9   :  { %v1658_v55 = vld [vmem:[#allocation8 + $0x48] sm:$0xff] }
 0x3ba   :  { %v1682_v63 = vadd.f32 %v1651_v57, %v1620_v56 }
 0x3bb   :  { %v909_v60 = vpop.f32.mrb[10].mxu1  ;;  %v1559_v61 = vld [vmem:[#allocation2 + $0x18] sm:$0xff] }
 0x3bc   :  { %934 = vst.msk [vmem:[#allocation2 + $0x28] sm:$0xff] %vm928_vm3, %v909_v60  ;;  %v7027_v2 = vpop.f32.mrb[11].mxu1  ;;  %v1621_v3 = vmul.f32 %v1590_v59, %v1559_v61  ;;  %8581 = vtanh.f32 %v1682_v63  ;;  %v1597_v59 = vld [vmem:[#allocation7 + $0x50] sm:$0xff] }
 0x3be   :  { %v1683_v6 = vadd.f32 %v1652_v62, %v1621_v3  ;;  %v9996_v15 = vpop.eup %8577  ;;  %v1659_v3 = vld [vmem:[#allocation8 + $0x50] sm:$0xff] }
 0x3bf   :  { %v914_v8 = vpop.f32.mrb[12].mxu1  ;;  %v1560_v9 = vld [vmem:[#allocation2 + $0x20] sm:$0xff] }
 0x3c0   :  { %935 = vst.msk [vmem:[#allocation2 + $0x30] sm:$0xff] %vm928_vm3, %v914_v8  ;;  %v7030_v11 = vpop.f32.mrb[13].mxu1  ;;  %8583 = vtanh.f32 %v1683_v6  ;;  %v1622_v12 = vmul.f32 %v1591_v4, %v1560_v9  ;;  %v1598_v6 = vld [vmem:[#allocation7 + $0x58] sm:$0xff] }
 0x3c2   :  { %v9998_v17 = vpop.eup %8579  ;;  %v1684_v22 = vadd.f32 %v1653_v14, %v1622_v12  ;;  %v1660_v14 = vld [vmem:[#allocation8 + $0x58] sm:$0xff] }
 0x3c3   :  { %v919_v18 = vpop.f32.mrb[14].mxu1  ;;  %v8045_v19 = vpack.c.bf16 %v9998_v17, %v9996_v15  ;;  %v1561_v20 = vld [vmem:[#allocation2 + $0x28] sm:$0xff] }
 0x3c4   :  { %936 = vst.msk [vmem:[#allocation2 + $0x38] sm:$0xff] %vm928_vm3, %v919_v18  ;;  %v7033_v23 = vpop.f32.mrb[15].mxu1  ;;  %v1623_v24 = vmul.f32 %v1592_v16, %v1561_v20  ;;  %8585 = vtanh.f32 %v1684_v22  ;;  %v1599_v20 = vld [vmem:[#allocation7 + $0x60] sm:$0xff] }
 0x3c5   :  { %8046 = vmatpush1.bf16.msra.mxu0 %v8045_v19 }
 0x3c6   :  { %8047 = vmatprep.subr.bf16.mxu0 %v11015_v0  ;;  %v1685_v26 = vadd.f32 %v1654_v21, %v1623_v24  ;;  %v10005_v32 = vpop.eup %8581 }
 0x3c7   :  { %v924_v27 = vpop.f32.mrb[16].mxu1  ;;  %v1562_v28 = vld [vmem:[#allocation2 + $0x30] sm:$0xff] }
 0x3c8   :  { %937 = vst.msk [vmem:[#allocation2 + $0x40] sm:$0xff] %vm928_vm3, %v924_v27  ;;  %v7036_v29 = vpop.f32.mrb[17].mxu1  ;;  %8587 = vtanh.f32 %v1685_v26  ;;  %v1624_v30 = vmul.f32 %v1593_v25, %v1562_v28  ;;  %v1661_v26 = vld [vmem:[#allocation8 + $0x60] sm:$0xff]  ;;  %v1600_v28 = vld [vmem:[#allocation7 + $0x68] sm:$0xff] }
 0x3ca   :  { %v10007_v34 = vpop.eup %8583  ;;  %v1686_v39 = vadd.f32 %v1655_v31, %v1624_v30 }
 0x3cb   :  { %v1024_v35 = vpop.f32.mrb[18].mxu1  ;;  %v8048_v36 = vpack.c.bf16 %v10007_v34, %v10005_v32  ;;  %v1563_v37 = vld [vmem:[#allocation2 + $0x38] sm:$0xff] }
 0x3cc   :  { %1048 = vst.msk [vmem:[#allocation2 + $0x48] sm:$0xff] %vm928_vm3, %v1024_v35  ;;  %v7047_v40 = vpop.f32.mrb[19].mxu1  ;;  %v1625_v41 = vmul.f32 %v1594_v33, %v1563_v37  ;;  %8589 = vtanh.f32 %v1686_v39  ;;  %v1662_v35 = vld [vmem:[#allocation8 + $0x68] sm:$0xff]  ;;  %v1601_v39 = vld [vmem:[#allocation7 + $0x70] sm:$0xff] }
 0x3cd   :  { %8049 = vmatpush1.bf16.msra.mxu0 %v8048_v36 }
 0x3ce   :  { %8050 = vmatprep.subr.bf16.mxu0 %v11015_v0  ;;  %v1687_v43 = vadd.f32 %v1656_v38, %v1625_v41  ;;  %v10014_v49 = vpop.eup %8585 }
 0x3cf   :  { %v1029_v44 = vpop.f32.mrb[20].mxu1  ;;  %v1564_v45 = vld [vmem:[#allocation2 + $0x40] sm:$0xff] }
 0x3d0   :  { %1049 = vst.msk [vmem:[#allocation2 + $0x50] sm:$0xff] %vm928_vm3, %v1029_v44  ;;  %v7050_v46 = vpop.f32.mrb[21].mxu1  ;;  %8591 = vtanh.f32 %v1687_v43  ;;  %v1626_v47 = vmul.f32 %v1595_v42, %v1564_v45  ;;  %v1663_v45 = vld [vmem:[#allocation8 + $0x70] sm:$0xff] }
 0x3d2   :  { %v10016_v51 = vpop.eup %8587  ;;  %v1688_v56 = vadd.f32 %v1657_v48, %v1626_v47  ;;  %v1602_v47 = vld [vmem:[#allocation7 + $0x78] sm:$0xff] }
 0x3d3   :  { %v1034_v52 = vpop.f32.mrb[22].mxu1  ;;  %v8051_v53 = vpack.c.bf16 %v10016_v51, %v10014_v49  ;;  %v1565_v54 = vld [vmem:[#allocation2 + $0x48] sm:$0xff] }
 0x3d4   :  { %1050 = vst.msk [vmem:[#allocation2 + $0x58] sm:$0xff] %vm928_vm3, %v1034_v52  ;;  %v7053_v57 = vpop.f32.mrb[23].mxu1  ;;  %v1627_v58 = vmul.f32 %v1596_v50, %v1565_v54  ;;  %8593 = vtanh.f32 %v1688_v56  ;;  %v1664_v54 = vld [vmem:[#allocation8 + $0x78] sm:$0xff] }
 0x3d5   :  { %8052 = vmatpush1.bf16.msra.mxu0 %v8051_v53 }
 0x3d6   :  { %8053 = vmatprep.subr.bf16.mxu0 %v11015_v0  ;;  %v1689_v60 = vadd.f32 %v1658_v55, %v1627_v58  ;;  %v10023_v4 = vpop.eup %8589  ;;  %v1603_v58 = vld [vmem:[#allocation7 + $0x80] sm:$0xff] }
 0x3d7   :  { %v1039_v61 = vpop.f32.mrb[24].mxu1  ;;  %v1566_v62 = vld [vmem:[#allocation2 + $0x50] sm:$0xff] }
 0x3d8   :  { %1051 = vst.msk [vmem:[#allocation2 + $0x60] sm:$0xff] %vm928_vm3, %v1039_v61  ;;  %v7056_v63 = vpop.f32.mrb[25].mxu1  ;;  %8595 = vtanh.f32 %v1689_v60  ;;  %v1628_v2 = vmul.f32 %v1597_v59, %v1566_v62 }
 0x3da   :  { %v10025_v8 = vpop.eup %8591  ;;  %v1690_v16 = vadd.f32 %v1659_v3, %v1628_v2  ;;  %v1665_v2 = vld [vmem:[#allocation8 + $0x80] sm:$0xff] }
 0x3db   :  { %v1044_v9 = vpop.f32.mrb[26].mxu1  ;;  %v8054_v11 = vpack.c.bf16 %v10025_v8, %v10023_v4  ;;  %v1567_v12 = vld [vmem:[#allocation2 + $0x58] sm:$0xff] }
 0x3dc   :  { %1052 = vst.msk [vmem:[#allocation2 + $0x68] sm:$0xff] %vm928_vm3, %v1044_v9  ;;  %v7059_v18 = vpop.f32.mrb[27].mxu1  ;;  %v1629_v19 = vmul.f32 %v1598_v6, %v1567_v12  ;;  %8597 = vtanh.f32 %v1690_v16  ;;  %v1604_v6 = vld [vmem:[#allocation7 + $0x88] sm:$0xff]  ;;  %v1666_v16 = vld [vmem:[#allocation8 + $0x88] sm:$0xff] }
 0x3dd   :  { %8055 = vmatpush1.bf16.msra.mxu0 %v8054_v11 }
 0x3de   :  { %8056 = vmatprep.subr.bf16.mxu0 %v11015_v0  ;;  %v1691_v21 = vadd.f32 %v1660_v14, %v1629_v19  ;;  %v10032_v27 = vpop.eup %8593 }
 0x3df   :  { %v1139_v22 = vpop.f32.mrb[28].mxu1  ;;  %v1568_v23 = vld [vmem:[#allocation2 + $0x60] sm:$0xff]  ;;  %11041 = vst [vmem:[#allocation63_spill] sm:$0xff] %v10032_v27 }
 0x3e0   :  { %1163 = vst.msk [vmem:[#allocation2 + $0x70] sm:$0xff] %vm928_vm3, %v1139_v22  ;;  %v7070_v24 = vpop.f32.mrb[29].mxu1  ;;  %8599 = vtanh.f32 %v1691_v21  ;;  %v1630_v25 = vmul.f32 %v1599_v20, %v1568_v23  ;;  %v1605_v21 = vld [vmem:[#allocation7 + $0x90] sm:$0xff] }
 0x3e2   :  { %v10034_v29 = vpop.eup %8595  ;;  %v1692_v36 = vadd.f32 %v1661_v26, %v1630_v25 }
 0x3e3   :  { %v1144_v30 = vpop.f32.mrb[30].mxu1  ;;  %v8057_v31 = vpack.c.bf16 %v10034_v29, %v10032_v27  ;;  %v1569_v33 = vld [vmem:[#allocation2 + $0x68] sm:$0xff] }
 0x3e4   :  { %1164 = vst.msk [vmem:[#allocation2 + $0x78] sm:$0xff] %vm928_vm3, %v1144_v30  ;;  %v7073_v37 = vpop.f32.mrb[31].mxu1  ;;  %v1631_v38 = vmul.f32 %v1600_v28, %v1569_v33  ;;  %8601 = vtanh.f32 %v1692_v36  ;;  %v1667_v28 = vld [vmem:[#allocation8 + $0x90] sm:$0xff] }
 0x3e5   :  { %8058 = vmatpush1.bf16.msra.mxu0 %v8057_v31  ;;  %v1606_v31 = vld [vmem:[#allocation7 + $0x98] sm:$0xff] }
 0x3e6   :  { %8059 = vmatprep.subr.bf16.mxu0 %v11015_v0  ;;  %v1693_v40 = vadd.f32 %v1662_v35, %v1631_v38  ;;  %v10041_v46 = vpop.eup %8597  ;;  %v1668_v38 = vld [vmem:[#allocation8 + $0x98] sm:$0xff] }
 0x3e7   :  { %v1149_v41 = vpop.f32.mrb[32].mxu1  ;;  %v1570_v42 = vld [vmem:[#allocation2 + $0x70] sm:$0xff] }
 0x3e8   :  { %1165 = vst.msk [vmem:[#allocation2 + $0x80] sm:$0xff] %vm928_vm3, %v1149_v41  ;;  %v7076_v43 = vpop.f32.mrb[33].mxu1  ;;  %8603 = vtanh.f32 %v1693_v40  ;;  %v1632_v44 = vmul.f32 %v1601_v39, %v1570_v42  ;;  %v1607_v42 = vld [vmem:[#allocation7 + $0xa0] sm:$0xff] }
 0x3ea   :  { %v10043_v48 = vpop.eup %8599  ;;  %v1694_v55 = vadd.f32 %v1663_v45, %v1632_v44 }
 0x3eb   :  { %v1154_v50 = vpop.f32.mrb[34].mxu1  ;;  %v8060_v52 = vpack.c.bf16 %v10043_v48, %v10041_v46  ;;  %v1571_v53 = vld [vmem:[#allocation2 + $0x78] sm:$0xff] }
 0x3ec   :  { %1166 = vst.msk [vmem:[#allocation2 + $0x88] sm:$0xff] %vm928_vm3, %v1154_v50  ;;  %v7079_v56 = vpop.f32.mrb[35].mxu1  ;;  %v1633_v57 = vmul.f32 %v1602_v47, %v1571_v53  ;;  %8605 = vtanh.f32 %v1694_v55 }
 0x3ed   :  { %8061 = vmatpush1.bf16.msra.mxu0 %v8060_v52  ;;  %v1669_v52 = vld [vmem:[#allocation8 + $0xa0] sm:$0xff] }
 0x3ee   :  { %8062 = vmatprep.subr.bf16.mxu0 %v11015_v0  ;;  %v1695_v59 = vadd.f32 %v1664_v54, %v1633_v57  ;;  %v10050_v3 = vpop.eup %8601  ;;  %v1608_v54 = vld [vmem:[#allocation7 + $0xa8] sm:$0xff] }
 0x3ef   :  { %v1159_v60 = vpop.f32.mrb[36].mxu1  ;;  %v1572_v61 = vld [vmem:[#allocation2 + $0x80] sm:$0xff] }
 0x3f0   :  { %1167 = vst.msk [vmem:[#allocation2 + $0x90] sm:$0xff] %vm928_vm3, %v1159_v60  ;;  %v7082_v62 = vpop.f32.mrb[37].mxu1  ;;  %8607 = vtanh.f32 %v1695_v59  ;;  %v1634_v63 = vmul.f32 %v1603_v58, %v1572_v61  ;;  %v1670_v59 = vld [vmem:[#allocation8 + $0xa8] sm:$0xff] }
 0x3f2   :  { %v10052_v9 = vpop.eup %8603  ;;  %v1696_v18 = vadd.f32 %v1665_v2, %v1634_v63  ;;  %v1609_v63 = vld [vmem:[#allocation7 + $0xb0] sm:$0xff] }
 0x3f3   :  { %v1248_v11 = vpop.f32.mrb[38].mxu1  ;;  %v8063_v12 = vpack.c.bf16 %v10052_v9, %v10050_v3  ;;  %v1573_v14 = vld [vmem:[#allocation2 + $0x88] sm:$0xff] }
 0x3f4   :  { %1262 = vst.msk [vmem:[#allocation2 + $0x98] sm:$0xff] %vm928_vm3, %v1248_v11  ;;  %v7093_v19 = vpop.f32.mrb[39].mxu1  ;;  %v1635_v20 = vmul.f32 %v1604_v6, %v1573_v14  ;;  %8609 = vtanh.f32 %v1696_v18 }
 0x3f5   :  { %8064 = vmatpush1.bf16.msra.mxu0 %v8063_v12  ;;  %v1610_v19 = vld [vmem:[#allocation7 + $0xb8] sm:$0xff] }
 0x3f6   :  { %8065 = vmatprep.subr.bf16.mxu0 %v11015_v0  ;;  %v1697_v22 = vadd.f32 %v1666_v16, %v1635_v20  ;;  %v10059_v30 = vpop.eup %8605  ;;  %v1671_v16 = vld [vmem:[#allocation8 + $0xb0] sm:$0xff] }
 0x3f7   :  { %v1253_v23 = vpop.f32.mrb[40].mxu1  ;;  %v1574_v24 = vld [vmem:[#allocation2 + $0x90] sm:$0xff] }
 0x3f8   :  { %1263 = vst.msk [vmem:[#allocation2 + $0xa0] sm:$0xff] %vm928_vm3, %v1253_v23  ;;  %v7096_v25 = vpop.f32.mrb[41].mxu1  ;;  %8611 = vtanh.f32 %v1697_v22  ;;  %v1636_v26 = vmul.f32 %v1605_v21, %v1574_v24  ;;  %v1672_v24 = vld [vmem:[#allocation8 + $0xb8] sm:$0xff] }
 0x3fa   :  { %v10061_v33 = vpop.eup %8607  ;;  %v1698_v39 = vadd.f32 %v1667_v28, %v1636_v26 }
 0x3fb   :  { %v1258_v35 = vpop.f32.mrb[42].mxu1  ;;  %v8066_v36 = vpack.c.bf16 %v10061_v33, %v10059_v30  ;;  %v1575_v37 = vld [vmem:[#allocation2 + $0x98] sm:$0xff] }
 0x3fc   :  { %1264 = vst.msk [vmem:[#allocation2 + $0xa8] sm:$0xff] %vm928_vm3, %v1258_v35  ;;  %v7099_v40 = vpop.f32.mrb[43].mxu1  ;;  %v1637_v41 = vmul.f32 %v1606_v31, %v1575_v37  ;;  %8613 = vtanh.f32 %v1698_v39  ;;  %v1611_v31 = vld [vmem:[#allocation7 + $0xc0] sm:$0xff] }
 0x3fd   :  { %8067 = vmatpush1.bf16.msra.mxu0 %v8066_v36  ;;  %v1673_v40 = vld [vmem:[#allocation8 + $0xc0] sm:$0xff] }
 0x3fe   :  { %8068 = vmatprep.subr.bf16.mxu0 %v11015_v0  ;;  %v1699_v43 = vadd.f32 %v1668_v38, %v1637_v41  ;;  %v10068_v53 = vpop.eup %8609 }
 0x3ff   :  { %v1345_v44 = vpop.f32.mrb[44].mxu1  ;;  %v1576_v45 = vld [vmem:[#allocation2 + $0xa0] sm:$0xff] }
 0x400   :  { %1359 = vst.msk [vmem:[#allocation2 + $0xb0] sm:$0xff] %vm928_vm3, %v1345_v44  ;;  %v7110_v47 = vpop.f32.mrb[45].mxu1  ;;  %8615 = vtanh.f32 %v1699_v43  ;;  %v1638_v50 = vmul.f32 %v1607_v42, %v1576_v45  ;;  %v1612_v42 = vld [vmem:[#allocation7 + $0xc8] sm:$0xff] }
 0x402   :  { %v10070_v55 = vpop.eup %8611  ;;  %v1700_v60 = vadd.f32 %v1669_v52, %v1638_v50  ;;  %v1674_v50 = vld [vmem:[#allocation8 + $0xc8] sm:$0xff] }
 0x403   :  { %v1350_v56 = vpop.f32.mrb[46].mxu1  ;;  %v8069_v57 = vpack.c.bf16 %v10070_v55, %v10068_v53  ;;  %v1577_v58 = vld [vmem:[#allocation2 + $0xa8] sm:$0xff] }
 0x404   :  { %1360 = vst.msk [vmem:[#allocation2 + $0xb8] sm:$0xff] %vm928_vm3, %v1350_v56  ;;  %v7113_v61 = vpop.f32.mrb[47].mxu1  ;;  %v1639_v62 = vmul.f32 %v1608_v54, %v1577_v58  ;;  %8617 = vtanh.f32 %v1700_v60 }
 0x405   :  { %8070 = vmatpush1.bf16.msra.mxu0 %v8069_v57  ;;  %v1613_v57 = vld [vmem:[#allocation7 + $0xd0] sm:$0xff] }
 0x406   :  { %8071 = vmatprep.subr.bf16.mxu0 %v11015_v0  ;;  %v1701_v2 = vadd.f32 %v1670_v59, %v1639_v62  ;;  %v10077_v18 = vpop.eup %8613 }
 0x407   :  { %v1355_v6 = vpop.f32.mrb[48].mxu1  ;;  %v1578_v11 = vld [vmem:[#allocation2 + $0xb0] sm:$0xff] }
 0x408   :  { %1361 = vst.msk [vmem:[#allocation2 + $0xc0] sm:$0xff] %vm928_vm3, %v1355_v6  ;;  %v7116_v12 = vpop.f32.mrb[49].mxu1  ;;  %8619 = vtanh.f32 %v1701_v2  ;;  %v1640_v14 = vmul.f32 %v1609_v63, %v1578_v11  ;;  %v1675_v63 = vld [vmem:[#allocation8 + $0xd0] sm:$0xff]  ;;  %v1614_v6 = vld [vmem:[#allocation7 + $0xd8] sm:$0xff] }
 0x40a   :  { %v10079_v20 = vpop.eup %8615  ;;  %v1702_v25 = vadd.f32 %v1671_v16, %v1640_v14 }
 0x40b   :  { %v1442_v21 = vpop.f32.mrb[50].mxu1  ;;  %v8072_v22 = vpack.c.bf16 %v10079_v20, %v10077_v18  ;;  %v1579_v23 = vld [vmem:[#allocation2 + $0xb8] sm:$0xff] }
 0x40c   :  { %1456 = vst.msk [vmem:[#allocation2 + $0xc8] sm:$0xff] %vm928_vm3, %v1442_v21  ;;  %v7127_v26 = vpop.f32.mrb[51].mxu1  ;;  %v1641_v28 = vmul.f32 %v1610_v19, %v1579_v23  ;;  %8621 = vtanh.f32 %v1702_v25  ;;  %v1676_v19 = vld [vmem:[#allocation8 + $0xd8] sm:$0xff] }
 0x40d   :  { %8073 = vmatpush1.bf16.msra.mxu0 %v8072_v22 }
 0x40e   :  { %8074 = vmatprep.subr.bf16.mxu0 %v11015_v0  ;;  %v1703_v35 = vadd.f32 %v1672_v24, %v1641_v28  ;;  %v10086_v41 = vpop.eup %8617  ;;  %v1615_v24 = vld [vmem:[#allocation7 + $0xe0] sm:$0xff] }
 0x40f   :  { %v1447_v36 = vpop.f32.mrb[52].mxu1  ;;  %v1580_v37 = vld [vmem:[#allocation2 + $0xc0] sm:$0xff] }
 0x410   :  { %1457 = vst.msk [vmem:[#allocation2 + $0xd0] sm:$0xff] %vm928_vm3, %v1447_v36  ;;  %v7130_v38 = vpop.f32.mrb[53].mxu1  ;;  %8623 = vtanh.f32 %v1703_v35  ;;  %v1642_v39 = vmul.f32 %v1611_v31, %v1580_v37  ;;  %v1677_v36 = vld [vmem:[#allocation8 + $0xe0] sm:$0xff] }
 0x411   :  { %v1616_v38 = vld [vmem:[#allocation7 + $0xe8] sm:$0xff] }
 0x412   :  { %v10088_v43 = vpop.eup %8619  ;;  %v1704_v52 = vadd.f32 %v1673_v40, %v1642_v39 }
 0x413   :  { %v1452_v44 = vpop.f32.mrb[54].mxu1  ;;  %v8075_v45 = vpack.c.bf16 %v10088_v43, %v10086_v41  ;;  %v1581_v47 = vld [vmem:[#allocation2 + $0xc8] sm:$0xff] }
 0x414   :  { %1458 = vst.msk [vmem:[#allocation2 + $0xd8] sm:$0xff] %vm928_vm3, %v1452_v44  ;;  %v7133_v54 = vpop.f32.mrb[55].mxu1  ;;  %v1643_v56 = vmul.f32 %v1612_v42, %v1581_v47  ;;  %8625 = vtanh.f32 %v1704_v52  ;;  %v1678_v44 = vld [vmem:[#allocation8 + $0xe8] sm:$0xff] }
 0x415   :  { %8076 = vmatpush1.bf16.msra.mxu0 %v8075_v45 }
 0x416   :  { %8077 = vmatprep.subr.bf16.mxu0 %v11015_v0  ;;  %v1705_v58 = vadd.f32 %v1674_v50, %v1643_v56  ;;  %v10095_v2 = vpop.eup %8621  ;;  %v1617_v50 = vld [vmem:[#allocation7 + $0xf0] sm:$0xff]  ;;  %v1679_v56 = vld [vmem:[#allocation8 + $0xf0] sm:$0xff] }
 0x417   :  { %v1539_v59 = vpop.f32.mrb[56].mxu1  ;;  %v1582_v60 = vld [vmem:[#allocation2 + $0xd0] sm:$0xff] }
 0x418   :  { %1553 = vst.msk [vmem:[#allocation2 + $0xe0] sm:$0xff] %vm928_vm3, %v1539_v59  ;;  %v7144_v61 = vpop.f32.mrb[57].mxu1  ;;  %8627 = vtanh.f32 %v1705_v58  ;;  %v1644_v62 = vmul.f32 %v1613_v57, %v1582_v60 }
 0x41a   :  { %v10097_v11 = vpop.eup %8623  ;;  %v1706_v21 = vadd.f32 %v1675_v63, %v1644_v62 }
 0x41b   :  { %v1544_v12 = vpop.f32.mrb[58].mxu1  ;;  %v8078_v14 = vpack.c.bf16 %v10097_v11, %v10095_v2  ;;  %v1583_v16 = vld [vmem:[#allocation2 + $0xd8] sm:$0xff] }
 0x41c   :  { %1554 = vst.msk [vmem:[#allocation2 + $0xe8] sm:$0xff] %vm928_vm3, %v1544_v12  ;;  %v7147_v22 = vpop.f32.mrb[59].mxu1  ;;  %v1645_v23 = vmul.f32 %v1614_v6, %v1583_v16  ;;  %8629 = vtanh.f32 %v1706_v21  ;;  %v2118_v6 = vld [vmem:[#allocation11] sm:$0xff]  ;;  %v2119_v12 = vld [vmem:[#allocation11 + $0x8] sm:$0xff]  ;;  %v2121_v21 = vld [vmem:[#allocation11 + $0x18] sm:$0xff] }
 0x41d   :  { %8079 = vmatpush1.bf16.msra.mxu0 %v8078_v14  ;;  %v2120_v14 = vld [vmem:[#allocation11 + $0x10] sm:$0xff] }
 0x41e   :  { %8080 = vmatprep.subr.bf16.mxu0 %v11015_v0  ;;  %v1707_v25 = vadd.f32 %v1676_v19, %v1645_v23  ;;  %v10104_v37 = vpop.eup %8625  ;;  %v8090_v19 = vpack.c.bf16 %v2119_v12, %v2118_v6  ;;  %v8093_v22 = vpack.c.bf16 %v2121_v21, %v2120_v14  ;;  %v1756_v6 = vld [vmem:[#allocation10 + $0x70] sm:$0xff]  ;;  %v1759_v12 = vld [vmem:[#allocation10 + $0x88] sm:$0xff]  ;;  %v1758_v14 = vld [vmem:[#allocation10 + $0x80] sm:$0xff] }
 0x41f   :  { %v1549_v26 = vpop.f32.mrb[60].mxu1  ;;  %v1584_v28 = vld [vmem:[#allocation2 + $0xe0] sm:$0xff]  ;;  %v1763_v21 = vld [vmem:[#allocation10 + $0xa8] sm:$0xff] }
 0x420   :  { %1555 = vst.msk [vmem:[#allocation2 + $0xf0] sm:$0xff] %vm928_vm3, %v1549_v26  ;;  %v7150_v31 = vpop.f32.mrb[61].mxu1  ;;  %8631 = vtanh.f32 %v1707_v25  ;;  %v1646_v35 = vmul.f32 %v1615_v24, %v1584_v28  ;;  %8091 = vmatpush3.bf16.msra.mxu1 %v8090_v19  ;;  %v2122_v24 = vld [vmem:[#allocation11 + $0x20] sm:$0xff]  ;;  %v2123_v25 = vld [vmem:[#allocation11 + $0x28] sm:$0xff]  ;;  %v1742_v26 = vld [vmem:[#allocation10] sm:$0xff] }
 0x421   :  { %8092 = vmatprep.subr.bf16.mxu1 %v11015_v0  ;;  %v1745_v28 = vld [vmem:[#allocation10 + $0x18] sm:$0xff]  ;;  %v8096_v31 = vpack.c.bf16 %v2123_v25, %v2122_v24  ;;  %v1760_v19 = vld [vmem:[#allocation10 + $0x90] sm:$0xff] }
 0x422   :  { %v10106_v39 = vpop.eup %8627  ;;  %v1708_v45 = vadd.f32 %v1677_v36, %v1646_v35  ;;  %v2124_v35 = vld [vmem:[#allocation11 + $0x30] sm:$0xff]  ;;  %v2125_v36 = vld [vmem:[#allocation11 + $0x38] sm:$0xff]  ;;  %v1765_v24 = vld [vmem:[#allocation10 + $0xb8] sm:$0xff] }
 0x423   :  { %v8081_v40 = vpack.c.bf16 %v10106_v39, %v10104_v37  ;;  %v1585_v42 = vld [vmem:[#allocation2 + $0xe8] sm:$0xff]  ;;  %v1764_v25 = vld [vmem:[#allocation10 + $0xb0] sm:$0xff] }
 0x424   :  { %v1647_v47 = vmul.f32 %v1616_v38, %v1585_v42  ;;  %8633 = vtanh.f32 %v1708_v45  ;;  %8094 = vmatpush3.bf16.msra.mxu1 %v8093_v22  ;;  %v1744_v38 = vld [vmem:[#allocation10 + $0x10] sm:$0xff]  ;;  %v8099_v42 = vpack.c.bf16 %v2125_v36, %v2124_v35  ;;  %v1749_v45 = vld [vmem:[#allocation10 + $0x38] sm:$0xff]  ;;  %v1762_v22 = vld [vmem:[#allocation10 + $0xa0] sm:$0xff] }
 0x425   :  { %8082 = vmatpush1.bf16.msra.mxu0 %v8081_v40  ;;  %8095 = vmatprep.subr.bf16.mxu1 %v11015_v0  ;;  %v1747_v40 = vld [vmem:[#allocation10 + $0x28] sm:$0xff]  ;;  %v1768_v35 = vld [vmem:[#allocation10 + $0xd0] sm:$0xff] }
 0x426   :  { %8083 = vmatprep.subr.bf16.mxu0 %v11015_v0  ;;  %v1709_v52 = vadd.f32 %v1678_v44, %v1647_v47  ;;  %v10111_v58 = vpop.eup %8629  ;;  %v1746_v44 = vld [vmem:[#allocation10 + $0x20] sm:$0xff]  ;;  %v1748_v47 = vld [vmem:[#allocation10 + $0x30] sm:$0xff]  ;;  %v1771_v36 = vld [vmem:[#allocation10 + $0xe8] sm:$0xff] }
 0x427   :  { %v1586_v54 = vld [vmem:[#allocation2 + $0xf0] sm:$0xff] }
 0x428   :  { %v1648_v57 = vmul.f32 %v1617_v50, %v1586_v54  ;;  %8635 = vtanh.f32 %v1709_v52  ;;  %8097 = vmatpush3.bf16.msra.mxu1 %v8096_v31  ;;  %v1751_v50 = vld [vmem:[#allocation10 + $0x48] sm:$0xff]  ;;  %v1750_v52 = vld [vmem:[#allocation10 + $0x40] sm:$0xff]  ;;  %v1753_v54 = vld [vmem:[#allocation10 + $0x58] sm:$0xff] }
 0x429   :  { %8098 = vmatprep.subr.bf16.mxu1 %v11015_v0  ;;  %v1769_v31 = vld [vmem:[#allocation10 + $0xd8] sm:$0xff] }
 0x42a   :  { %v10113_v59 = vpop.eup %8631  ;;  %v1710_v60 = vadd.f32 %v1679_v56, %v1648_v57  ;;  %v1752_v56 = vld [vmem:[#allocation10 + $0x50] sm:$0xff]  ;;  %v1755_v57 = vld [vmem:[#allocation10 + $0x68] sm:$0xff] }
 0x42b   :  { %v8084_v61 = vpack.c.bf16 %v10113_v59, %v10111_v58 }
 0x42c   :  { %8637 = vtanh.f32 %v1710_v60  ;;  %8100 = vmatpush3.bf16.msra.mxu1 %v8099_v42  ;;  %v1754_v60 = vld [vmem:[#allocation10 + $0x60] sm:$0xff]  ;;  %v1772_v42 = vld [vmem:[#allocation10 + $0xf0] sm:$0xff] }
 0x42d   :  { %8085 = vmatpush1.bf16.msra.mxu0 %v8084_v61  ;;  %8101 = vmatprep.subr.bf16.mxu1 %v11015_v0  ;;  %v1757_v61 = vld [vmem:[#allocation10 + $0x78] sm:$0xff] }
 0x42e   :  { %8086 = vmatprep.subr.bf16.mxu0 %v11015_v0  ;;  %v10118_v62 = vpop.eup %8633 }
 0x432   :  { %v10120_v63 = vpop.eup %8635 }
 0x433   :  { %v8087_v16 = vpack.c.bf16 %v10120_v63, %v10118_v62 }
 0x435   :  { %8088 = vmatpush1.bf16.msra.mxu0 %v8087_v16  ;;  %v1761_v16 = vld [vmem:[#allocation10 + $0x98] sm:$0xff] }
 0x436   :  { %v10124_v23 = vpop.eup %8637  ;;  %1958 = vmatprep.subr.mxu0 %v9362_v1 }
 0x439   :  { %1959 = vmatpush1.msra.mxu0 %v10124_v23 }
 0x43a   :  { %1963 = vmatmul.mubr.f32.vlgmr.msra.gmra.mrb[62].mxu0 %v1742_v26  ;;  %8173 = vmatprep.subr.bf16.mxu0 %v11015_v0  ;;  %v1767_v26 = vld [vmem:[#allocation10 + $0xc8] sm:$0xff] }
 0x43b   :  { %6217 = vmatprep.mubr.msk.f32.mxu0 %vm1804_vm4, %v1745_v28  ;;  %v1766_v28 = vld [vmem:[#allocation10 + $0xc0] sm:$0xff] }
 0x43e   :  { %1968 = vmatmul.mubr.f32.gmra.mrb[64].mxu0 %v1744_v38  ;;  %v1770_v38 = vld [vmem:[#allocation10 + $0xe0] sm:$0xff] }
 0x43f   :  { %6218 = vmatprep.mubr.msk.f32.mxu0 %vm1804_vm4, %v1747_v40  ;;  %v1773_v40 = vld [vmem:[#allocation10 + $0xf8] sm:$0xff] }
 0x442   :  { %1973 = vmatmul.mubr.f32.gmra.mrb[66].mxu0 %v1746_v44  ;;  %v1775_v44 = vld [vmem:[#allocation10 + $0x108] sm:$0xff] }
 0x443   :  { %6219 = vmatprep.mubr.msk.f32.mxu0 %vm1804_vm4, %v1749_v45  ;;  %v1774_v45 = vld [vmem:[#allocation10 + $0x100] sm:$0xff] }
 0x446   :  { %1978 = vmatmul.mubr.f32.gmra.mrb[68].mxu0 %v1748_v47  ;;  %v1777_v47 = vld [vmem:[#allocation10 + $0x118] sm:$0xff] }
 0x447   :  { %6220 = vmatprep.mubr.msk.f32.mxu0 %vm1804_vm4, %v1751_v50  ;;  %v1776_v50 = vld [vmem:[#allocation10 + $0x110] sm:$0xff] }
 0x44a   :  { %1983 = vmatmul.mubr.f32.gmra.mrb[70].mxu0 %v1750_v52  ;;  %v1779_v52 = vld [vmem:[#allocation10 + $0x128] sm:$0xff] }
 0x44b   :  { %6221 = vmatprep.mubr.msk.f32.mxu0 %vm1804_vm4, %v1753_v54  ;;  %v1778_v54 = vld [vmem:[#allocation10 + $0x120] sm:$0xff] }
 0x44e   :  { %1988 = vmatmul.mubr.f32.gmra.mrb[72].mxu0 %v1752_v56  ;;  %v1781_v56 = vld [vmem:[#allocation10 + $0x138] sm:$0xff] }
 0x44f   :  { %6222 = vmatprep.mubr.msk.f32.mxu0 %vm1804_vm4, %v1755_v57  ;;  %v1780_v57 = vld [vmem:[#allocation10 + $0x130] sm:$0xff] }
 0x452   :  { %1993 = vmatmul.mubr.f32.gmra.mrb[74].mxu0 %v1754_v60  ;;  %v1783_v60 = vld [vmem:[#allocation10 + $0x148] sm:$0xff] }
 0x453   :  { %6223 = vmatprep.mubr.msk.f32.mxu0 %vm1804_vm4, %v1757_v61  ;;  %v1782_v61 = vld [vmem:[#allocation10 + $0x140] sm:$0xff] }
 0x456   :  { %1998 = vmatmul.mubr.f32.gmra.mrb[76].mxu0 %v1756_v6  ;;  %v1785_v6 = vld [vmem:[#allocation10 + $0x158] sm:$0xff] }
 0x457   :  { %6224 = vmatprep.mubr.msk.f32.mxu0 %vm1804_vm4, %v1759_v12  ;;  %v1784_v12 = vld [vmem:[#allocation10 + $0x150] sm:$0xff] }
 0x45a   :  { %2003 = vmatmul.mubr.f32.gmra.mrb[78].mxu0 %v1758_v14  ;;  %v1787_v14 = vld [vmem:[#allocation10 + $0x168] sm:$0xff] }
 0x45b   :  { %6225 = vmatprep.mubr.msk.f32.mxu0 %vm1804_vm4, %v1761_v16  ;;  %v1786_v16 = vld [vmem:[#allocation10 + $0x160] sm:$0xff] }
 0x45e   :  { %2008 = vmatmul.mubr.f32.gmra.mrb[80].mxu0 %v1760_v19  ;;  %v1789_v19 = vld [vmem:[#allocation10 + $0x178] sm:$0xff] }
 0x45f   :  { %6226 = vmatprep.mubr.msk.f32.mxu0 %vm1804_vm4, %v1763_v21  ;;  %v1788_v21 = vld [vmem:[#allocation10 + $0x170] sm:$0xff] }
 0x462   :  { %2013 = vmatmul.mubr.f32.gmra.mrb[82].mxu0 %v1762_v22  ;;  %v1791_v22 = vld [vmem:[#allocation10 + $0x188] sm:$0xff] }
 0x463   :  { %6227 = vmatprep.mubr.msk.f32.mxu0 %vm1804_vm4, %v1765_v24  ;;  %v1790_v24 = vld [vmem:[#allocation10 + $0x180] sm:$0xff] }
 0x466   :  { %2018 = vmatmul.mubr.f32.gmra.mrb[84].mxu0 %v1764_v25  ;;  %v1793_v25 = vld [vmem:[#allocation10 + $0x198] sm:$0xff] }
 0x467   :  { %6228 = vmatprep.mubr.msk.f32.mxu0 %vm1804_vm4, %v1767_v26  ;;  %v1792_v26 = vld [vmem:[#allocation10 + $0x190] sm:$0xff] }
 0x46a   :  { %2023 = vmatmul.mubr.f32.gmra.mrb[86].mxu0 %v1766_v28  ;;  %v1795_v28 = vld [vmem:[#allocation10 + $0x1a8] sm:$0xff] }
 0x46b   :  { %6229 = vmatprep.mubr.msk.f32.mxu0 %vm1804_vm4, %v1769_v31  ;;  %v1794_v31 = vld [vmem:[#allocation10 + $0x1a0] sm:$0xff] }
 0x46e   :  { %2028 = vmatmul.mubr.f32.gmra.mrb[88].mxu0 %v1768_v35  ;;  %v1797_v35 = vld [vmem:[#allocation10 + $0x1b8] sm:$0xff] }
 0x46f   :  { %6230 = vmatprep.mubr.msk.f32.mxu0 %vm1804_vm4, %v1771_v36  ;;  %v1796_v36 = vld [vmem:[#allocation10 + $0x1b0] sm:$0xff] }
 0x472   :  { %2033 = vmatmul.mubr.f32.gmra.mrb[90].mxu0 %v1770_v38  ;;  %v1799_v38 = vld [vmem:[#allocation10 + $0x1c8] sm:$0xff] }
 0x473   :  { %6231 = vmatprep.mubr.msk.f32.mxu0 %vm1804_vm4, %v1773_v40  ;;  %v1798_v40 = vld [vmem:[#allocation10 + $0x1c0] sm:$0xff] }
 0x476   :  { %2038 = vmatmul.mubr.f32.gmra.mrb[92].mxu0 %v1772_v42  ;;  %v1801_v42 = vld [vmem:[#allocation10 + $0x1d8] sm:$0xff] }
 0x477   :  { %6232 = vmatprep.mubr.msk.f32.mxu0 %vm1804_vm4, %v1775_v44  ;;  %v1800_v44 = vld [vmem:[#allocation10 + $0x1d0] sm:$0xff] }
 0x47a   :  { %2043 = vmatmul.mubr.f32.gmra.mrb[94].mxu0 %v1774_v45  ;;  %v1803_v45 = vld [vmem:[#allocation10 + $0x1e8] sm:$0xff] }
 0x47b   :  { %6233 = vmatprep.mubr.msk.f32.mxu0 %vm1804_vm4, %v1777_v47  ;;  %v1802_v47 = vld [vmem:[#allocation10 + $0x1e0] sm:$0xff] }
 0x47e   :  { %2048 = vmatmul.mubr.f32.gmra.mrb[96].mxu0 %v1776_v50  ;;  %v2273_v50 = vld [vmem:[#allocation11 + $0x40] sm:$0xff] }
 0x47f   :  { %6234 = vmatprep.mubr.msk.f32.mxu0 %vm1804_vm4, %v1779_v52  ;;  %v2274_v52 = vld [vmem:[#allocation11 + $0x48] sm:$0xff] }
 0x482   :  { %2053 = vmatmul.mubr.f32.gmra.mrb[98].mxu0 %v1778_v54  ;;  %v8102_v54 = vpack.c.bf16 %v2274_v52, %v2273_v50  ;;  %v2392_v52 = vld [vmem:[#allocation11 + $0x80] sm:$0xff] }
 0x483   :  { %6235 = vmatprep.mubr.msk.f32.mxu0 %vm1804_vm4, %v1781_v56  ;;  %v2275_v56 = vld [vmem:[#allocation11 + $0x50] sm:$0xff] }
 0x486   :  { %2058 = vmatmul.mubr.f32.gmra.mrb[100].mxu0 %v1780_v57  ;;  %v2276_v57 = vld [vmem:[#allocation11 + $0x58] sm:$0xff] }
 0x487   :  { %6236 = vmatprep.mubr.msk.f32.mxu0 %vm1804_vm4, %v1783_v60 }
 0x48a   :  { %2063 = vmatmul.mubr.f32.gmra.mrb[102].mxu0 %v1782_v61 }
 0x48b   :  { %6237 = vmatprep.mubr.msk.f32.mxu0 %vm1804_vm4, %v1785_v6  ;;  %v8105_v6 = vpack.c.bf16 %v2276_v57, %v2275_v56 }
 0x48e   :  { %2068 = vmatmul.mubr.f32.gmra.mrb[104].mxu0 %v1784_v12  ;;  %v2277_v12 = vld [vmem:[#allocation11 + $0x60] sm:$0xff] }
 0x48f   :  { %6238 = vmatprep.mubr.msk.f32.mxu0 %vm1804_vm4, %v1787_v14  ;;  %v2278_v14 = vld [vmem:[#allocation11 + $0x68] sm:$0xff] }
 0x492   :  { %2073 = vmatmul.mubr.f32.gmra.mrb[106].mxu0 %v1786_v16 }
 0x493   :  { %6239 = vmatprep.mubr.msk.f32.mxu0 %vm1804_vm4, %v1789_v19 }
 0x496   :  { %2078 = vmatmul.mubr.f32.gmra.mrb[108].mxu0 %v1788_v21  ;;  %v8108_v21 = vpack.c.bf16 %v2278_v14, %v2277_v12 }
 0x497   :  { %6240 = vmatprep.mubr.msk.f32.mxu0 %vm1804_vm4, %v1791_v22  ;;  %v2279_v22 = vld [vmem:[#allocation11 + $0x70] sm:$0xff] }
 0x49a   :  { %2083 = vmatmul.mubr.f32.gmra.mrb[110].mxu0 %v1790_v24  ;;  %v2280_v24 = vld [vmem:[#allocation11 + $0x78] sm:$0xff] }
 0x49b   :  { %6241 = vmatprep.mubr.msk.f32.mxu0 %vm1804_vm4, %v1793_v25 }
 0x49e   :  { %2088 = vmatmul.mubr.f32.gmra.mrb[112].mxu0 %v1792_v26 }
 0x49f   :  { %6242 = vmatprep.mubr.msk.f32.mxu0 %vm1804_vm4, %v1795_v28  ;;  %v8111_v28 = vpack.c.bf16 %v2280_v24, %v2279_v22 }
 0x4a2   :  { %2093 = vmatmul.mubr.f32.gmra.mrb[114].mxu0 %v1794_v31 }
 0x4a3   :  { %6243 = vmatprep.mubr.msk.f32.mxu0 %vm1804_vm4, %v1797_v35 }
 0x4a6   :  { %2098 = vmatmul.mubr.f32.gmra.mrb[116].mxu0 %v1796_v36 }
 0x4a7   :  { %6244 = vmatprep.mubr.msk.f32.mxu0 %vm1804_vm4, %v1799_v38 }
 0x4aa   :  { %2103 = vmatmul.mubr.f32.gmra.mrb[118].mxu0 %v1798_v40 }
 0x4ab   :  { %6245 = vmatprep.mubr.msk.f32.mxu0 %vm1804_vm4, %v1801_v42 }
 0x4ae   :  { %2108 = vmatmul.mubr.f32.gmra.mrb[120].mxu0 %v1800_v44 }
 0x4af   :  { %6246 = vmatprep.mubr.msk.f32.mxu0 %vm1804_vm4, %v1803_v45 }
 0x4b2   :  { %2113 = vmatmul.mubr.f32.gmra.mrb[122].mxu0 %v1802_v47 }
 0x50d   :  { %v1964_v60 = vpop.f32.mrb[62].mxu0 }
 0x50e   :  { %v1966_v61 = vpop.f32.mrb[63].mxu0  ;;  %7168 = vmatmul.mubr.msk.f32.vlgmr.msra.gmra.mrb[62].mxu1 %vm928_vm3, %v1964_v60 }
 0x50f   :  { %7170 = vmatprep.mubr.msk.f32.mxu1 %vm9361_vm0, %v9362_v1  ;;  %8103 = vmatpush3.bf16.msra.mxu1 %v8102_v54  ;;  %v2393_v54 = vld [vmem:[#allocation11 + $0x88] sm:$0xff]  ;;  %v2394_v61 = vld [vmem:[#allocation11 + $0x90] sm:$0xff] }
 0x510   :  { %8104 = vmatprep.subr.bf16.mxu1 %v11015_v0  ;;  %v8114_v60 = vpack.c.bf16 %v2393_v54, %v2392_v52  ;;  %v2513_v52 = vld [vmem:[#allocation11 + $0xd0] sm:$0xff]  ;;  %v2514_v54 = vld [vmem:[#allocation11 + $0xd8] sm:$0xff] }
 0x511   :  { %v1969_v16 = vpop.f32.mrb[64].mxu0 }
 0x512   :  { %v1971_v19 = vpop.f32.mrb[65].mxu0  ;;  %7171 = vmatmul.mubr.msk.f32.gmra.mrb[64].mxu1 %vm928_vm3, %v1969_v16 }
 0x513   :  { %7173 = vmatprep.mubr.msk.f32.mxu1 %vm9361_vm0, %v9362_v1  ;;  %8106 = vmatpush3.bf16.msra.mxu1 %v8105_v6  ;;  %v2395_v6 = vld [vmem:[#allocation11 + $0x98] sm:$0xff]  ;;  %v2396_v19 = vld [vmem:[#allocation11 + $0xa0] sm:$0xff] }
 0x514   :  { %8107 = vmatprep.subr.bf16.mxu1 %v11015_v0  ;;  %v8117_v16 = vpack.c.bf16 %v2395_v6, %v2394_v61  ;;  %v2515_v61 = vld [vmem:[#allocation11 + $0xe0] sm:$0xff]  ;;  %v2516_v6 = vld [vmem:[#allocation11 + $0xe8] sm:$0xff] }
 0x515   :  { %v1974_v25 = vpop.f32.mrb[66].mxu0 }
 0x516   :  { %v1976_v26 = vpop.f32.mrb[67].mxu0  ;;  %7174 = vmatmul.mubr.msk.f32.gmra.mrb[66].mxu1 %vm928_vm3, %v1974_v25 }
 0x517   :  { %7176 = vmatprep.mubr.msk.f32.mxu1 %vm9361_vm0, %v9362_v1  ;;  %8109 = vmatpush3.bf16.msra.mxu1 %v8108_v21  ;;  %v2397_v21 = vld [vmem:[#allocation11 + $0xa8] sm:$0xff]  ;;  %v2398_v26 = vld [vmem:[#allocation11 + $0xb0] sm:$0xff] }
 0x518   :  { %8110 = vmatprep.subr.bf16.mxu1 %v11015_v0  ;;  %v8120_v25 = vpack.c.bf16 %v2397_v21, %v2396_v19  ;;  %v2517_v19 = vld [vmem:[#allocation11 + $0xf0] sm:$0xff]  ;;  %v2518_v21 = vld [vmem:[#allocation11 + $0xf8] sm:$0xff] }
 0x519   :  { %v1979_v31 = vpop.f32.mrb[68].mxu0 }
 0x51a   :  { %v1981_v35 = vpop.f32.mrb[69].mxu0  ;;  %7177 = vmatmul.mubr.msk.f32.gmra.mrb[68].mxu1 %vm928_vm3, %v1979_v31 }
 0x51b   :  { %7179 = vmatprep.mubr.msk.f32.mxu1 %vm9361_vm0, %v9362_v1  ;;  %8112 = vmatpush3.bf16.msra.mxu1 %v8111_v28  ;;  %v2399_v28 = vld [vmem:[#allocation11 + $0xb8] sm:$0xff] }
 0x51c   :  { %8113 = vmatprep.subr.bf16.mxu1 %v11015_v0 }
 0x51d   :  { %v1984_v36 = vpop.f32.mrb[70].mxu0 }
 0x51e   :  { %v1986_v38 = vpop.f32.mrb[71].mxu0  ;;  %7180 = vmatmul.mubr.msk.f32.gmra.mrb[70].mxu1 %vm928_vm3, %v1984_v36  ;;  %v8123_v36 = vpack.c.bf16 %v2399_v28, %v2398_v26 }
 0x51f   :  { %7182 = vmatprep.mubr.msk.f32.mxu1 %vm9361_vm0, %v9362_v1 }
 0x521   :  { %v1989_v40 = vpop.f32.mrb[72].mxu0 }
 0x522   :  { %v1991_v42 = vpop.f32.mrb[73].mxu0  ;;  %7183 = vmatmul.mubr.msk.f32.gmra.mrb[72].mxu1 %vm928_vm3, %v1989_v40 }
 0x523   :  { %7185 = vmatprep.mubr.msk.f32.mxu1 %vm9361_vm0, %v9362_v1  ;;  %v2511_v42 = vld [vmem:[#allocation11 + $0xc0] sm:$0xff] }
 0x525   :  { %v1994_v44 = vpop.f32.mrb[74].mxu0 }
 0x526   :  { %v1996_v45 = vpop.f32.mrb[75].mxu0  ;;  %7186 = vmatmul.mubr.msk.f32.gmra.mrb[74].mxu1 %vm928_vm3, %v1994_v44  ;;  %v2512_v44 = vld [vmem:[#allocation11 + $0xc8] sm:$0xff] }
 0x527   :  { %7188 = vmatprep.mubr.msk.f32.mxu1 %vm9361_vm0, %v9362_v1 }
 0x529   :  { %v1999_v47 = vpop.f32.mrb[76].mxu0 }
 0x52a   :  { %v2001_v50 = vpop.f32.mrb[77].mxu0  ;;  %7189 = vmatmul.mubr.msk.f32.gmra.mrb[76].mxu1 %vm928_vm3, %v1999_v47 }
 0x52b   :  { %7191 = vmatprep.mubr.msk.f32.mxu1 %vm9361_vm0, %v9362_v1  ;;  %v8126_v50 = vpack.c.bf16 %v2512_v44, %v2511_v42  ;;  %v2614_v42 = vld [vmem:[#allocation11 + $0x110] sm:$0xff]  ;;  %v2615_v44 = vld [vmem:[#allocation11 + $0x118] sm:$0xff] }
 0x52d   :  { %v2004_v56 = vpop.f32.mrb[78].mxu0 }
 0x52e   :  { %v2006_v57 = vpop.f32.mrb[79].mxu0  ;;  %7192 = vmatmul.mubr.msk.f32.gmra.mrb[78].mxu1 %vm928_vm3, %v2004_v56 }
 0x52f   :  { %7210 = vmatprep.mubr.msk.f32.mxu1 %vm9361_vm0, %v9362_v1 }
 0x531   :  { %v2009_v12 = vpop.f32.mrb[80].mxu0 }
 0x532   :  { %v2011_v14 = vpop.f32.mrb[81].mxu0  ;;  %7211 = vmatmul.mubr.msk.f32.vlgmr.msra.gmra.mrb[80].mxu1 %vm928_vm3, %v2009_v12 }
 0x533   :  { %7213 = vmatprep.mubr.msk.f32.mxu1 %vm9361_vm0, %v9362_v1  ;;  %8115 = vmatpush3.bf16.msra.mxu1 %v8114_v60  ;;  %v8129_v60 = vpack.c.bf16 %v2514_v54, %v2513_v52  ;;  %v2616_v52 = vld [vmem:[#allocation11 + $0x120] sm:$0xff]  ;;  %v2617_v54 = vld [vmem:[#allocation11 + $0x128] sm:$0xff] }
 0x534   :  { %8116 = vmatprep.subr.bf16.mxu1 %v11015_v0 }
 0x535   :  { %v2014_v22 = vpop.f32.mrb[82].mxu0 }
 0x536   :  { %v2016_v24 = vpop.f32.mrb[83].mxu0  ;;  %7214 = vmatmul.mubr.msk.f32.gmra.mrb[82].mxu1 %vm928_vm3, %v2014_v22 }
 0x537   :  { %7216 = vmatprep.mubr.msk.f32.mxu1 %vm9361_vm0, %v9362_v1  ;;  %8118 = vmatpush3.bf16.msra.mxu1 %v8117_v16  ;;  %v8132_v16 = vpack.c.bf16 %v2516_v6, %v2515_v61  ;;  %v2618_v61 = vld [vmem:[#allocation11 + $0x130] sm:$0xff]  ;;  %v2619_v6 = vld [vmem:[#allocation11 + $0x138] sm:$0xff] }
 0x538   :  { %8119 = vmatprep.subr.bf16.mxu1 %v11015_v0 }
 0x539   :  { %v2019_v31 = vpop.f32.mrb[84].mxu0 }
 0x53a   :  { %v2021_v35 = vpop.f32.mrb[85].mxu0  ;;  %7217 = vmatmul.mubr.msk.f32.gmra.mrb[84].mxu1 %vm928_vm3, %v2019_v31  ;;  %v2612_v31 = vld [vmem:[#allocation11 + $0x100] sm:$0xff] }
 0x53b   :  { %7219 = vmatprep.mubr.msk.f32.mxu1 %vm9361_vm0, %v9362_v1  ;;  %8121 = vmatpush3.bf16.msra.mxu1 %v8120_v25  ;;  %v8135_v25 = vpack.c.bf16 %v2518_v21, %v2517_v19  ;;  %v2613_v35 = vld [vmem:[#allocation11 + $0x108] sm:$0xff]  ;;  %v2713_v19 = vld [vmem:[#allocation11 + $0x140] sm:$0xff] }
 0x53c   :  { %8122 = vmatprep.subr.bf16.mxu1 %v11015_v0  ;;  %v2714_v21 = vld [vmem:[#allocation11 + $0x148] sm:$0xff] }
 0x53d   :  { %v2024_v38 = vpop.f32.mrb[86].mxu0 }
 0x53e   :  { %v2026_v40 = vpop.f32.mrb[87].mxu0  ;;  %7220 = vmatmul.mubr.msk.f32.gmra.mrb[86].mxu1 %vm928_vm3, %v2024_v38 }
 0x53f   :  { %7222 = vmatprep.mubr.msk.f32.mxu1 %vm9361_vm0, %v9362_v1  ;;  %8124 = vmatpush3.bf16.msra.mxu1 %v8123_v36  ;;  %v8138_v40 = vpack.c.bf16 %v2613_v35, %v2612_v31 }
 0x540   :  { %8125 = vmatprep.subr.bf16.mxu1 %v11015_v0 }
 0x541   :  { %v2029_v45 = vpop.f32.mrb[88].mxu0 }
 0x542   :  { %v2031_v47 = vpop.f32.mrb[89].mxu0  ;;  %7223 = vmatmul.mubr.msk.f32.gmra.mrb[88].mxu1 %vm928_vm3, %v2029_v45 }
 0x543   :  { %7241 = vmatprep.mubr.msk.f32.mxu1 %vm9361_vm0, %v9362_v1 }
 0x545   :  { %v2034_v56 = vpop.f32.mrb[90].mxu0 }
 0x546   :  { %v2036_v57 = vpop.f32.mrb[91].mxu0  ;;  %7242 = vmatmul.mubr.msk.f32.vlgmr.msra.gmra.mrb[90].mxu1 %vm928_vm3, %v2034_v56 }
 0x547   :  { %7244 = vmatprep.mubr.msk.f32.mxu1 %vm9361_vm0, %v9362_v1  ;;  %8127 = vmatpush3.bf16.msra.mxu1 %v8126_v50  ;;  %v8141_v50 = vpack.c.bf16 %v2615_v44, %v2614_v42 }
 0x548   :  { %8128 = vmatprep.subr.bf16.mxu1 %v11015_v0 }
 0x549   :  { %v2039_v12 = vpop.f32.mrb[92].mxu0 }
 0x54a   :  { %v2041_v14 = vpop.f32.mrb[93].mxu0  ;;  %7245 = vmatmul.mubr.msk.f32.gmra.mrb[92].mxu1 %vm928_vm3, %v2039_v12 }
 0x54b   :  { %7247 = vmatprep.mubr.msk.f32.mxu1 %vm9361_vm0, %v9362_v1  ;;  %8130 = vmatpush3.bf16.msra.mxu1 %v8129_v60  ;;  %v8144_v60 = vpack.c.bf16 %v2617_v54, %v2616_v52 }
 0x54c   :  { %8131 = vmatprep.subr.bf16.mxu1 %v11015_v0 }
 0x54d   :  { %v2044_v22 = vpop.f32.mrb[94].mxu0 }
 0x54e   :  { %v2046_v24 = vpop.f32.mrb[95].mxu0  ;;  %7248 = vmatmul.mubr.msk.f32.gmra.mrb[94].mxu1 %vm928_vm3, %v2044_v22 }
 0x54f   :  { %7250 = vmatprep.mubr.msk.f32.mxu1 %vm9361_vm0, %v9362_v1  ;;  %8133 = vmatpush3.bf16.msra.mxu1 %v8132_v16  ;;  %v8147_v16 = vpack.c.bf16 %v2619_v6, %v2618_v61 }
 0x550   :  { %8134 = vmatprep.subr.bf16.mxu1 %v11015_v0 }
 0x551   :  { %v2049_v26 = vpop.f32.mrb[96].mxu0 }
 0x552   :  { %v2051_v28 = vpop.f32.mrb[97].mxu0  ;;  %7251 = vmatmul.mubr.msk.f32.gmra.mrb[96].mxu1 %vm928_vm3, %v2049_v26  ;;  %v2715_v26 = vld [vmem:[#allocation11 + $0x150] sm:$0xff] }
 0x553   :  { %7253 = vmatprep.mubr.msk.f32.mxu1 %vm9361_vm0, %v9362_v1  ;;  %8136 = vmatpush3.bf16.msra.mxu1 %v8135_v25  ;;  %v8150_v25 = vpack.c.bf16 %v2714_v21, %v2713_v19  ;;  %v2716_v28 = vld [vmem:[#allocation11 + $0x158] sm:$0xff] }
 0x554   :  { %8137 = vmatprep.subr.bf16.mxu1 %v11015_v0 }
 0x555   :  { %v2054_v36 = vpop.f32.mrb[98].mxu0 }
 0x556   :  { %v2056_v38 = vpop.f32.mrb[99].mxu0  ;;  %7254 = vmatmul.mubr.msk.f32.gmra.mrb[98].mxu1 %vm928_vm3, %v2054_v36  ;;  %v8153_v36 = vpack.c.bf16 %v2716_v28, %v2715_v26 }
 0x557   :  { %7272 = vmatprep.mubr.msk.f32.mxu1 %vm9361_vm0, %v9362_v1  ;;  %v2717_v38 = vld [vmem:[#allocation11 + $0x160] sm:$0xff] }
 0x559   :  { %v2059_v45 = vpop.f32.mrb[100].mxu0 }
 0x55a   :  { %v2061_v47 = vpop.f32.mrb[101].mxu0  ;;  %7273 = vmatmul.mubr.msk.f32.vlgmr.msra.gmra.mrb[100].mxu1 %vm928_vm3, %v2059_v45 }
 0x55b   :  { %8139 = vmatpush3.bf16.msra.mxu1 %v8138_v40  ;;  %7275 = vmatprep.mubr.msk.f32.mxu1 %vm9361_vm0, %v9362_v1  ;;  %v2718_v40 = vld [vmem:[#allocation11 + $0x168] sm:$0xff]  ;;  %v2719_v47 = vld [vmem:[#allocation11 + $0x170] sm:$0xff] }
 0x55c   :  { %8140 = vmatprep.subr.bf16.mxu1 %v11015_v0  ;;  %v8156_v45 = vpack.c.bf16 %v2718_v40, %v2717_v38 }
 0x55d   :  { %v2064_v56 = vpop.f32.mrb[102].mxu0 }
 0x55e   :  { %7276 = vmatmul.mubr.msk.f32.gmra.mrb[102].mxu1 %vm928_vm3, %v2064_v56  ;;  %v2066_v57 = vpop.f32.mrb[103].mxu0 }
 0x55f   :  { %8142 = vmatpush3.bf16.msra.mxu1 %v8141_v50  ;;  %7278 = vmatprep.mubr.msk.f32.mxu1 %vm9361_vm0, %v9362_v1  ;;  %v2720_v50 = vld [vmem:[#allocation11 + $0x178] sm:$0xff]  ;;  %v2814_v57 = vld [vmem:[#allocation11 + $0x180] sm:$0xff] }
 0x560   :  { %8143 = vmatprep.subr.bf16.mxu1 %v11015_v0  ;;  %v8159_v56 = vpack.c.bf16 %v2720_v50, %v2719_v47 }
 0x561   :  { %v2069_v12 = vpop.f32.mrb[104].mxu0 }
 0x562   :  { %7279 = vmatmul.mubr.msk.f32.gmra.mrb[104].mxu1 %vm928_vm3, %v2069_v12  ;;  %v2071_v14 = vpop.f32.mrb[105].mxu0 }
 0x563   :  { %8145 = vmatpush3.bf16.msra.mxu1 %v8144_v60  ;;  %7297 = vmatprep.mubr.msk.f32.mxu1 %vm9361_vm0, %v9362_v1  ;;  %v2815_v60 = vld [vmem:[#allocation11 + $0x188] sm:$0xff]  ;;  %v2816_v14 = vld [vmem:[#allocation11 + $0x190] sm:$0xff] }
 0x564   :  { %8146 = vmatprep.subr.bf16.mxu1 %v11015_v0  ;;  %v8162_v12 = vpack.c.bf16 %v2815_v60, %v2814_v57 }
 0x565   :  { %v2074_v22 = vpop.f32.mrb[106].mxu0 }
 0x566   :  { %v2076_v24 = vpop.f32.mrb[107].mxu0 }
 0x567   :  { %8148 = vmatpush3.bf16.msra.mxu1 %v8147_v16  ;;  %v2817_v16 = vld [vmem:[#allocation11 + $0x198] sm:$0xff]  ;;  %v2818_v24 = vld [vmem:[#allocation11 + $0x1a0] sm:$0xff] }
 0x568   :  { %8149 = vmatprep.subr.bf16.mxu1 %v11015_v0 }
 0x569   :  { %v2079_v31 = vpop.f32.mrb[108].mxu0 }
 0x56a   :  { %7298 = vmatmul.mubr.msk.f32.vlgmr.msra.gmra.mrb[106].mxu1 %vm928_vm3, %v2074_v22  ;;  %v2081_v35 = vpop.f32.mrb[109].mxu0  ;;  %v8165_v22 = vpack.c.bf16 %v2817_v16, %v2816_v14  ;;  %v2946_v14 = vld [vmem:[#allocation13 + $0x8] sm:$0xff] }
 0x56b   :  { %8151 = vmatpush3.bf16.msra.mxu1 %v8150_v25  ;;  %7300 = vmatprep.mubr.msk.f32.mxu1 %vm9361_vm0, %v9362_v1  ;;  %v2819_v25 = vld [vmem:[#allocation11 + $0x1a8] sm:$0xff]  ;;  %v2820_v35 = vld [vmem:[#allocation11 + $0x1b0] sm:$0xff] }
 0x56c   :  { %8152 = vmatprep.subr.bf16.mxu1 %v11015_v0 }
 0x56d   :  { %v2084_v42 = vpop.f32.mrb[110].mxu0 }
 0x56e   :  { %7301 = vmatmul.mubr.msk.f32.gmra.mrb[108].mxu1 %vm928_vm3, %v2079_v31  ;;  %v2086_v44 = vpop.f32.mrb[111].mxu0  ;;  %v8168_v31 = vpack.c.bf16 %v2819_v25, %v2818_v24 }
 0x56f   :  { %8154 = vmatpush3.bf16.msra.mxu1 %v8153_v36  ;;  %7303 = vmatprep.mubr.msk.f32.mxu1 %vm9361_vm0, %v9362_v1  ;;  %v2821_v36 = vld [vmem:[#allocation11 + $0x1b8] sm:$0xff] }
 0x570   :  { %8155 = vmatprep.subr.bf16.mxu1 %v11015_v0 }
 0x571   :  { %v2089_v52 = vpop.f32.mrb[112].mxu0 }
 0x572   :  { %7304 = vmatmul.mubr.msk.f32.gmra.mrb[110].mxu1 %vm928_vm3, %v2084_v42  ;;  %v2091_v54 = vpop.f32.mrb[113].mxu0  ;;  %v8171_v42 = vpack.c.bf16 %v2821_v36, %v2820_v35 }
 0x573   :  { %8157 = vmatpush3.bf16.msra.mxu1 %v8156_v45  ;;  %7322 = vmatprep.mubr.msk.f32.mxu1 %vm9361_vm0, %v9362_v1 }
 0x574   :  { %8158 = vmatprep.subr.bf16.mxu1 %v11015_v0 }
 0x575   :  { %v2094_v61 = vpop.f32.mrb[114].mxu0 }
 0x576   :  { %v2096_v6 = vpop.f32.mrb[115].mxu0 }
 0x577   :  { %8160 = vmatpush3.bf16.msra.mxu1 %v8159_v56  ;;  %v2945_v56 = vld [vmem:[#allocation13] sm:$0xff] }
 0x578   :  { %8161 = vmatprep.subr.bf16.mxu1 %v11015_v0 }
 0x579   :  { %v2099_v19 = vpop.f32.mrb[116].mxu0 }
 0x57a   :  { %7323 = vmatmul.mubr.msk.f32.vlgmr.msra.gmra.mrb[112].mxu1 %vm928_vm3, %v2089_v52  ;;  %v2101_v21 = vpop.f32.mrb[117].mxu0 }
 0x57b   :  { %8163 = vmatpush3.bf16.msra.mxu1 %v8162_v12  ;;  %7325 = vmatprep.mubr.msk.f32.mxu1 %vm9361_vm0, %v9362_v1  ;;  %v3007_v12 = vld [vmem:[#allocation14] sm:$0xff]  ;;  %v3008_v21 = vld [vmem:[#allocation14 + $0x8] sm:$0xff] }
 0x57c   :  { %8164 = vmatprep.subr.bf16.mxu1 %v11015_v0 }
 0x57d   :  { %v2104_v26 = vpop.f32.mrb[118].mxu0 }
 0x57e   :  { %7326 = vmatmul.mubr.msk.f32.gmra.mrb[114].mxu1 %vm928_vm3, %v2094_v61  ;;  %v2106_v28 = vpop.f32.mrb[119].mxu0 }
 0x57f   :  { %8166 = vmatpush3.bf16.msra.mxu1 %v8165_v22  ;;  %7328 = vmatprep.mubr.msk.f32.mxu1 %vm9361_vm0, %v9362_v1 }
 0x580   :  { %8167 = vmatprep.subr.bf16.mxu1 %v11015_v0 }
 0x581   :  { %v2109_v38 = vpop.f32.mrb[120].mxu0 }
 0x582   :  { %7329 = vmatmul.mubr.msk.f32.gmra.mrb[116].mxu1 %vm928_vm3, %v2099_v19  ;;  %v2111_v40 = vpop.f32.mrb[121].mxu0 }
 0x583   :  { %8169 = vmatpush3.bf16.msra.mxu1 %v8168_v31  ;;  %7347 = vmatprep.mubr.msk.f32.mxu1 %vm9361_vm0, %v9362_v1  ;;  %v3009_v40 = vld [vmem:[#allocation14 + $0x10] sm:$0xff] }
 0x584   :  { %8170 = vmatprep.subr.bf16.mxu1 %v11015_v0 }
 0x585   :  { %v2114_v44 = vpop.f32.mrb[122].mxu0 }
 0x586   :  { %v2116_v45 = vpop.f32.mrb[123].mxu0 }
 0x587   :  { %8172 = vmatpush3.bf16.msra.mxu1 %v8171_v42  ;;  %v2948_v42 = vld [vmem:[#allocation13 + $0x18] sm:$0xff] }
 0x588   :  { %8218 = vmatprep.subr.bf16.mxu1 %v11015_v0 }
 0x58a   :  { %7348 = vmatmul.mubr.msk.f32.vlgmr.msra.gmra.mrb[118].mxu1 %vm928_vm3, %v2104_v26  ;;  %v2947_v26 = vld [vmem:[#allocation13 + $0x10] sm:$0xff] }
 0x58b   :  { %7350 = vmatprep.mubr.msk.f32.mxu1 %vm9361_vm0, %v9362_v1 }
 0x58e   :  { %7351 = vmatmul.mubr.msk.f32.gmra.mrb[120].mxu1 %vm928_vm3, %v2109_v38 }
 0x58f   :  { %7353 = vmatprep.mubr.msk.f32.mxu1 %vm9361_vm0, %v9362_v1 }
 0x592   :  { %7354 = vmatmul.mubr.msk.f32.gmra.mrb[122].mxu1 %vm928_vm3, %v2114_v44 }
 0x593   :  { %7372 = vmatprep.mubr.msk.f32.mxu1 %vm9361_vm0, %v9362_v1 }
 0x5e1   :  { %v2219_v47 = vpop.f32.mrb[62].mxu1 }
 0x5e2   :  { %2263 = vst.msk [vmem:[#allocation2] sm:$0xff] %vm928_vm3, %v2219_v47  ;;  %v7169_v50 = vpop.f32.mrb[63].mxu1  ;;  %v3010_v47 = vld [vmem:[#allocation14 + $0x18] sm:$0xff] }
 0x5e5   :  { %v2224_v52 = vpop.f32.mrb[64].mxu1 }
 0x5e6   :  { %2264 = vst.msk [vmem:[#allocation2 + $0x8] sm:$0xff] %vm928_vm3, %v2224_v52  ;;  %v7172_v54 = vpop.f32.mrb[65].mxu1 }
 0x5e9   :  { %v2229_v57 = vpop.f32.mrb[66].mxu1  ;;  %v2914_v60 = vld [vmem:[#allocation2] sm:$0xff] }
 0x5ea   :  { %2265 = vst.msk [vmem:[#allocation2 + $0x10] sm:$0xff] %vm928_vm3, %v2229_v57  ;;  %v7175_v61 = vpop.f32.mrb[67].mxu1  ;;  %v2976_v6 = vmul.f32 %v2945_v56, %v2914_v60  ;;  %v2949_v56 = vld [vmem:[#allocation13 + $0x20] sm:$0xff] }
 0x5ec   :  { %v3038_v22 = vadd.f32 %v3007_v12, %v2976_v6 }
 0x5ed   :  { %v2234_v16 = vpop.f32.mrb[68].mxu1  ;;  %v2915_v19 = vld [vmem:[#allocation2 + $0x8] sm:$0xff] }
 0x5ee   :  { %2266 = vst.msk [vmem:[#allocation2 + $0x18] sm:$0xff] %vm928_vm3, %v2234_v16  ;;  %v7178_v24 = vpop.f32.mrb[69].mxu1  ;;  %v2977_v25 = vmul.f32 %v2946_v14, %v2915_v19  ;;  %8639 = vtanh.f32 %v3038_v22  ;;  %v3011_v14 = vld [vmem:[#allocation14 + $0x20] sm:$0xff]  ;;  %v2950_v19 = vld [vmem:[#allocation13 + $0x28] sm:$0xff] }
 0x5f0   :  { %v3039_v28 = vadd.f32 %v3008_v21, %v2977_v25 }
 0x5f1   :  { %v2239_v31 = vpop.f32.mrb[70].mxu1  ;;  %v2916_v35 = vld [vmem:[#allocation2 + $0x10] sm:$0xff] }
 0x5f2   :  { %2267 = vst.msk [vmem:[#allocation2 + $0x20] sm:$0xff] %vm928_vm3, %v2239_v31  ;;  %v7181_v36 = vpop.f32.mrb[71].mxu1  ;;  %8641 = vtanh.f32 %v3039_v28  ;;  %v2978_v38 = vmul.f32 %v2947_v26, %v2916_v35  ;;  %v3012_v26 = vld [vmem:[#allocation14 + $0x28] sm:$0xff] }
 0x5f3   :  { %v3101_v36 = vld [vmem:[#allocation16 + $0x8] sm:$0xff] }
 0x5f4   :  { %v3040_v50 = vadd.f32 %v3009_v40, %v2978_v38  ;;  %v2951_v38 = vld [vmem:[#allocation13 + $0x30] sm:$0xff]  ;;  %6278 = vmatprep.mubr.msk.f32.mxu0 %vm1804_vm4, %v3101_v36 }
 0x5f5   :  { %v2244_v44 = vpop.f32.mrb[72].mxu1  ;;  %v2917_v45 = vld [vmem:[#allocation2 + $0x18] sm:$0xff] }
 0x5f6   :  { %2268 = vst.msk [vmem:[#allocation2 + $0x28] sm:$0xff] %vm928_vm3, %v2244_v44  ;;  %v7184_v52 = vpop.f32.mrb[73].mxu1  ;;  %v2979_v54 = vmul.f32 %v2948_v42, %v2917_v45  ;;  %8643 = vtanh.f32 %v3040_v50  ;;  %v3013_v50 = vld [vmem:[#allocation14 + $0x30] sm:$0xff] }
 0x5f8   :  { %v3041_v57 = vadd.f32 %v3010_v47, %v2979_v54  ;;  %v8640_v16 = vpop.eup %8639  ;;  %v2952_v54 = vld [vmem:[#allocation13 + $0x38] sm:$0xff] }
 0x5f9   :  { %v2249_v60 = vpop.f32.mrb[74].mxu1  ;;  %v2918_v61 = vld [vmem:[#allocation2 + $0x20] sm:$0xff] }
 0x5fa   :  { %2269 = vst.msk [vmem:[#allocation2 + $0x30] sm:$0xff] %vm928_vm3, %v2249_v60  ;;  %v7187_v6 = vpop.f32.mrb[75].mxu1  ;;  %8645 = vtanh.f32 %v3041_v57  ;;  %v2980_v12 = vmul.f32 %v2949_v56, %v2918_v61 }
 0x5fb   :  { %v3014_v6 = vld [vmem:[#allocation14 + $0x38] sm:$0xff] }
 0x5fc   :  { %v8642_v21 = vpop.eup %8641  ;;  %v3042_v28 = vadd.f32 %v3011_v14, %v2980_v12 }
 0x5fd   :  { %v2254_v22 = vpop.f32.mrb[76].mxu1  ;;  %v8174_v24 = vpack.c.bf16 %v8642_v21, %v8640_v16  ;;  %v2919_v25 = vld [vmem:[#allocation2 + $0x28] sm:$0xff] }
 0x5fe   :  { %2270 = vst.msk [vmem:[#allocation2 + $0x38] sm:$0xff] %vm928_vm3, %v2254_v22  ;;  %v7190_v31 = vpop.f32.mrb[77].mxu1  ;;  %v2981_v35 = vmul.f32 %v2950_v19, %v2919_v25  ;;  %8647 = vtanh.f32 %v3042_v28  ;;  %v2953_v19 = vld [vmem:[#allocation13 + $0x40] sm:$0xff]  ;;  %v3015_v28 = vld [vmem:[#allocation14 + $0x40] sm:$0xff] }
 0x5ff   :  { %8175 = vmatpush1.bf16.msra.mxu0 %v8174_v24 }
 0x600   :  { %8176 = vmatprep.subr.bf16.mxu0 %v11015_v0  ;;  %v3043_v40 = vadd.f32 %v3012_v26, %v2981_v35  ;;  %v8644_v52 = vpop.eup %8643  ;;  %v2954_v35 = vld [vmem:[#allocation13 + $0x48] sm:$0xff] }
 0x601   :  { %v2259_v42 = vpop.f32.mrb[78].mxu1  ;;  %v2920_v44 = vld [vmem:[#allocation2 + $0x30] sm:$0xff] }
 0x602   :  { %2271 = vst.msk [vmem:[#allocation2 + $0x40] sm:$0xff] %vm928_vm3, %v2259_v42  ;;  %v7193_v45 = vpop.f32.mrb[79].mxu1  ;;  %8649 = vtanh.f32 %v3043_v40  ;;  %v2982_v47 = vmul.f32 %v2951_v38, %v2920_v44  ;;  %v3016_v44 = vld [vmem:[#allocation14 + $0x48] sm:$0xff] }
 0x604   :  { %v8646_v56 = vpop.eup %8645  ;;  %v3044_v12 = vadd.f32 %v3013_v50, %v2982_v47 }
 0x605   :  { %v2362_v57 = vpop.f32.mrb[80].mxu1  ;;  %v8177_v60 = vpack.c.bf16 %v8646_v56, %v8644_v52  ;;  %v2921_v61 = vld [vmem:[#allocation2 + $0x38] sm:$0xff]  ;;  %v2955_v52 = vld [vmem:[#allocation13 + $0x50] sm:$0xff] }
 0x606   :  { %2386 = vst.msk [vmem:[#allocation2 + $0x48] sm:$0xff] %vm928_vm3, %v2362_v57  ;;  %v7212_v14 = vpop.f32.mrb[81].mxu1  ;;  %v2983_v16 = vmul.f32 %v2952_v54, %v2921_v61  ;;  %8651 = vtanh.f32 %v3044_v12 }
 0x607   :  { %8178 = vmatpush1.bf16.msra.mxu0 %v8177_v60  ;;  %v2956_v14 = vld [vmem:[#allocation13 + $0x58] sm:$0xff] }
 0x608   :  { %8179 = vmatprep.subr.bf16.mxu0 %v11015_v0  ;;  %v3045_v21 = vadd.f32 %v3014_v6, %v2983_v16  ;;  %v8648_v31 = vpop.eup %8647  ;;  %v3017_v6 = vld [vmem:[#allocation14 + $0x50] sm:$0xff] }
 0x609   :  { %v2367_v22 = vpop.f32.mrb[82].mxu1  ;;  %v2922_v24 = vld [vmem:[#allocation2 + $0x40] sm:$0xff] }
 0x60a   :  { %2387 = vst.msk [vmem:[#allocation2 + $0x50] sm:$0xff] %vm928_vm3, %v2367_v22  ;;  %v7215_v25 = vpop.f32.mrb[83].mxu1  ;;  %8653 = vtanh.f32 %v3045_v21  ;;  %v2984_v26 = vmul.f32 %v2953_v19, %v2922_v24  ;;  %v3018_v24 = vld [vmem:[#allocation14 + $0x58] sm:$0xff] }
 0x60c   :  { %v8650_v36 = vpop.eup %8649  ;;  %v3046_v45 = vadd.f32 %v3015_v28, %v2984_v26 }
 0x60d   :  { %v2372_v38 = vpop.f32.mrb[84].mxu1  ;;  %v8180_v40 = vpack.c.bf16 %v8650_v36, %v8648_v31  ;;  %v2923_v42 = vld [vmem:[#allocation2 + $0x48] sm:$0xff]  ;;  %v2957_v31 = vld [vmem:[#allocation13 + $0x60] sm:$0xff] }
 0x60e   :  { %2388 = vst.msk [vmem:[#allocation2 + $0x58] sm:$0xff] %vm928_vm3, %v2372_v38  ;;  %v7218_v47 = vpop.f32.mrb[85].mxu1  ;;  %v2985_v50 = vmul.f32 %v2954_v35, %v2923_v42  ;;  %8655 = vtanh.f32 %v3046_v45 }
 0x60f   :  { %8181 = vmatpush1.bf16.msra.mxu0 %v8180_v40  ;;  %v2958_v47 = vld [vmem:[#allocation13 + $0x68] sm:$0xff] }
 0x610   :  { %8182 = vmatprep.subr.bf16.mxu0 %v11015_v0  ;;  %v3047_v54 = vadd.f32 %v3016_v44, %v2985_v50  ;;  %v8652_v12 = vpop.eup %8651  ;;  %v3019_v44 = vld [vmem:[#allocation14 + $0x60] sm:$0xff] }
 0x611   :  { %v2377_v56 = vpop.f32.mrb[86].mxu1  ;;  %v2924_v57 = vld [vmem:[#allocation2 + $0x50] sm:$0xff] }
 0x612   :  { %2389 = vst.msk [vmem:[#allocation2 + $0x60] sm:$0xff] %vm928_vm3, %v2377_v56  ;;  %v7221_v60 = vpop.f32.mrb[87].mxu1  ;;  %8657 = vtanh.f32 %v3047_v54  ;;  %v2986_v61 = vmul.f32 %v2955_v52, %v2924_v57  ;;  %v3020_v57 = vld [vmem:[#allocation14 + $0x68] sm:$0xff] }
 0x614   :  { %v8654_v16 = vpop.eup %8653  ;;  %v3048_v25 = vadd.f32 %v3017_v6, %v2986_v61 }
 0x615   :  { %v2382_v19 = vpop.f32.mrb[88].mxu1  ;;  %v8183_v21 = vpack.c.bf16 %v8654_v16, %v8652_v12  ;;  %v2925_v22 = vld [vmem:[#allocation2 + $0x58] sm:$0xff]  ;;  %v2959_v12 = vld [vmem:[#allocation13 + $0x70] sm:$0xff] }
 0x616   :  { %2390 = vst.msk [vmem:[#allocation2 + $0x68] sm:$0xff] %vm928_vm3, %v2382_v19  ;;  %v7224_v26 = vpop.f32.mrb[89].mxu1  ;;  %v2987_v28 = vmul.f32 %v2956_v14, %v2925_v22  ;;  %8659 = vtanh.f32 %v3048_v25 }
 0x617   :  { %8184 = vmatpush1.bf16.msra.mxu0 %v8183_v21  ;;  %v2960_v26 = vld [vmem:[#allocation13 + $0x78] sm:$0xff] }
 0x618   :  { %8185 = vmatprep.subr.bf16.mxu0 %v11015_v0  ;;  %v3049_v35 = vadd.f32 %v3018_v24, %v2987_v28  ;;  %v8656_v45 = vpop.eup %8655  ;;  %v3021_v24 = vld [vmem:[#allocation14 + $0x70] sm:$0xff] }
 0x619   :  { %v2481_v36 = vpop.f32.mrb[90].mxu1  ;;  %v2926_v38 = vld [vmem:[#allocation2 + $0x60] sm:$0xff] }
 0x61a   :  { %2505 = vst.msk [vmem:[#allocation2 + $0x70] sm:$0xff] %vm928_vm3, %v2481_v36  ;;  %v7243_v40 = vpop.f32.mrb[91].mxu1  ;;  %8661 = vtanh.f32 %v3049_v35  ;;  %v2988_v42 = vmul.f32 %v2957_v31, %v2926_v38  ;;  %v3022_v38 = vld [vmem:[#allocation14 + $0x78] sm:$0xff] }
 0x61c   :  { %v8658_v50 = vpop.eup %8657  ;;  %v3050_v60 = vadd.f32 %v3019_v44, %v2988_v42 }
 0x61d   :  { %v2486_v52 = vpop.f32.mrb[92].mxu1  ;;  %v8186_v54 = vpack.c.bf16 %v8658_v50, %v8656_v45  ;;  %v2927_v56 = vld [vmem:[#allocation2 + $0x68] sm:$0xff]  ;;  %v2961_v45 = vld [vmem:[#allocation13 + $0x80] sm:$0xff] }
 0x61e   :  { %2506 = vst.msk [vmem:[#allocation2 + $0x78] sm:$0xff] %vm928_vm3, %v2486_v52  ;;  %v7246_v61 = vpop.f32.mrb[93].mxu1  ;;  %v2989_v6 = vmul.f32 %v2958_v47, %v2927_v56  ;;  %8663 = vtanh.f32 %v3050_v60 }
 0x61f   :  { %8187 = vmatpush1.bf16.msra.mxu0 %v8186_v54  ;;  %v2962_v61 = vld [vmem:[#allocation13 + $0x88] sm:$0xff] }
 0x620   :  { %8188 = vmatprep.subr.bf16.mxu0 %v11015_v0  ;;  %v3051_v14 = vadd.f32 %v3020_v57, %v2989_v6  ;;  %v8660_v25 = vpop.eup %8659  ;;  %v3023_v57 = vld [vmem:[#allocation14 + $0x80] sm:$0xff] }
 0x621   :  { %v2491_v16 = vpop.f32.mrb[94].mxu1  ;;  %v2928_v19 = vld [vmem:[#allocation2 + $0x70] sm:$0xff] }
 0x622   :  { %2507 = vst.msk [vmem:[#allocation2 + $0x80] sm:$0xff] %vm928_vm3, %v2491_v16  ;;  %v7249_v21 = vpop.f32.mrb[95].mxu1  ;;  %8665 = vtanh.f32 %v3051_v14  ;;  %v2990_v22 = vmul.f32 %v2959_v12, %v2928_v19  ;;  %v3024_v19 = vld [vmem:[#allocation14 + $0x88] sm:$0xff] }
 0x624   :  { %v8662_v28 = vpop.eup %8661  ;;  %v3052_v40 = vadd.f32 %v3021_v24, %v2990_v22 }
 0x625   :  { %v2496_v31 = vpop.f32.mrb[96].mxu1  ;;  %v8189_v35 = vpack.c.bf16 %v8662_v28, %v8660_v25  ;;  %v2929_v36 = vld [vmem:[#allocation2 + $0x78] sm:$0xff]  ;;  %v2963_v25 = vld [vmem:[#allocation13 + $0x90] sm:$0xff] }
 0x626   :  { %2508 = vst.msk [vmem:[#allocation2 + $0x88] sm:$0xff] %vm928_vm3, %v2496_v31  ;;  %v7252_v42 = vpop.f32.mrb[97].mxu1  ;;  %v2991_v44 = vmul.f32 %v2960_v26, %v2929_v36  ;;  %8667 = vtanh.f32 %v3052_v40 }
 0x627   :  { %8190 = vmatpush1.bf16.msra.mxu0 %v8189_v35  ;;  %v2964_v42 = vld [vmem:[#allocation13 + $0x98] sm:$0xff] }
 0x628   :  { %8191 = vmatprep.subr.bf16.mxu0 %v11015_v0  ;;  %v3053_v47 = vadd.f32 %v3022_v38, %v2991_v44  ;;  %v8664_v60 = vpop.eup %8663  ;;  %v3025_v38 = vld [vmem:[#allocation14 + $0x90] sm:$0xff] }
 0x629   :  { %v2501_v50 = vpop.f32.mrb[98].mxu1  ;;  %v2930_v52 = vld [vmem:[#allocation2 + $0x80] sm:$0xff] }
 0x62a   :  { %2509 = vst.msk [vmem:[#allocation2 + $0x90] sm:$0xff] %vm928_vm3, %v2501_v50  ;;  %v7255_v54 = vpop.f32.mrb[99].mxu1  ;;  %8669 = vtanh.f32 %v3053_v47  ;;  %v2992_v56 = vmul.f32 %v2961_v45, %v2930_v52  ;;  %v3026_v52 = vld [vmem:[#allocation14 + $0x98] sm:$0xff] }
 0x62c   :  { %v8666_v6 = vpop.eup %8665  ;;  %v3054_v21 = vadd.f32 %v3023_v57, %v2992_v56 }
 0x62d   :  { %v2594_v12 = vpop.f32.mrb[100].mxu1  ;;  %v8192_v14 = vpack.c.bf16 %v8666_v6, %v8664_v60  ;;  %v2931_v16 = vld [vmem:[#allocation2 + $0x88] sm:$0xff]  ;;  %v2965_v60 = vld [vmem:[#allocation13 + $0xa0] sm:$0xff] }
 0x62e   :  { %2608 = vst.msk [vmem:[#allocation2 + $0x98] sm:$0xff] %vm928_vm3, %v2594_v12  ;;  %v7274_v22 = vpop.f32.mrb[101].mxu1  ;;  %v2993_v24 = vmul.f32 %v2962_v61, %v2931_v16  ;;  %8671 = vtanh.f32 %v3054_v21  ;;  %v3027_v12 = vld [vmem:[#allocation14 + $0xa0] sm:$0xff] }
 0x62f   :  { %8193 = vmatpush1.bf16.msra.mxu0 %v8192_v14 }
 0x630   :  { %8194 = vmatprep.subr.bf16.mxu0 %v11015_v0  ;;  %v3055_v26 = vadd.f32 %v3024_v19, %v2993_v24  ;;  %v8668_v40 = vpop.eup %8667  ;;  %v2966_v19 = vld [vmem:[#allocation13 + $0xa8] sm:$0xff] }
 0x631   :  { %v2599_v28 = vpop.f32.mrb[102].mxu1  ;;  %v2932_v31 = vld [vmem:[#allocation2 + $0x90] sm:$0xff] }
 0x632   :  { %2609 = vst.msk [vmem:[#allocation2 + $0xa0] sm:$0xff] %vm928_vm3, %v2599_v28  ;;  %v7277_v35 = vpop.f32.mrb[103].mxu1  ;;  %8673 = vtanh.f32 %v3055_v26  ;;  %v2994_v36 = vmul.f32 %v2963_v25, %v2932_v31  ;;  %v3028_v28 = vld [vmem:[#allocation14 + $0xa8] sm:$0xff] }
 0x634   :  { %v8670_v44 = vpop.eup %8669  ;;  %v3056_v54 = vadd.f32 %v3025_v38, %v2994_v36 }
 0x635   :  { %v2604_v45 = vpop.f32.mrb[104].mxu1  ;;  %v8195_v47 = vpack.c.bf16 %v8670_v44, %v8668_v40  ;;  %v2933_v50 = vld [vmem:[#allocation2 + $0x98] sm:$0xff]  ;;  %v2967_v44 = vld [vmem:[#allocation13 + $0xb0] sm:$0xff] }
 0x636   :  { %2610 = vst.msk [vmem:[#allocation2 + $0xa8] sm:$0xff] %vm928_vm3, %v2604_v45  ;;  %v7280_v56 = vpop.f32.mrb[105].mxu1  ;;  %v2995_v57 = vmul.f32 %v2964_v42, %v2933_v50  ;;  %8675 = vtanh.f32 %v3056_v54 }
 0x637   :  { %8196 = vmatpush1.bf16.msra.mxu0 %v8195_v47 }
 0x638   :  { %8197 = vmatprep.subr.bf16.mxu0 %v11015_v0  ;;  %v3057_v61 = vadd.f32 %v3026_v52, %v2995_v57  ;;  %v8672_v16 = vpop.eup %8671  ;;  %v3029_v57 = vld [vmem:[#allocation14 + $0xb0] sm:$0xff] }
 0x639   :  { %v2934_v6 = vld [vmem:[#allocation2 + $0xa0] sm:$0xff] }
 0x63a   :  { %8677 = vtanh.f32 %v3057_v61  ;;  %v2996_v14 = vmul.f32 %v2965_v60, %v2934_v6  ;;  %v2968_v60 = vld [vmem:[#allocation13 + $0xb8] sm:$0xff]  ;;  %v3030_v6 = vld [vmem:[#allocation14 + $0xb8] sm:$0xff] }
 0x63c   :  { %v8674_v21 = vpop.eup %8673  ;;  %v3058_v22 = vadd.f32 %v3027_v12, %v2996_v14 }
 0x63d   :  { %v2695_v24 = vpop.f32.mrb[106].mxu1  ;;  %v8198_v25 = vpack.c.bf16 %v8674_v21, %v8672_v16  ;;  %v2935_v26 = vld [vmem:[#allocation2 + $0xa8] sm:$0xff] }
 0x63e   :  { %2709 = vst.msk [vmem:[#allocation2 + $0xb0] sm:$0xff] %vm928_vm3, %v2695_v24  ;;  %v7299_v31 = vpop.f32.mrb[107].mxu1  ;;  %v2997_v35 = vmul.f32 %v2966_v19, %v2935_v26  ;;  %8679 = vtanh.f32 %v3058_v22 }
 0x63f   :  { %8199 = vmatpush1.bf16.msra.mxu0 %v8198_v25 }
 0x640   :  { %8200 = vmatprep.subr.bf16.mxu0 %v11015_v0  ;;  %v3059_v36 = vadd.f32 %v3028_v28, %v2997_v35  ;;  %v8676_v42 = vpop.eup %8675  ;;  %v2969_v28 = vld [vmem:[#allocation13 + $0xc0] sm:$0xff] }
 0x641   :  { %v2700_v38 = vpop.f32.mrb[108].mxu1 }
 0x642   :  { %2710 = vst.msk [vmem:[#allocation2 + $0xb8] sm:$0xff] %vm928_vm3, %v2700_v38  ;;  %v7302_v40 = vpop.f32.mrb[109].mxu1  ;;  %8681 = vtanh.f32 %v3059_v36  ;;  %v3031_v38 = vld [vmem:[#allocation14 + $0xc0] sm:$0xff] }
 0x643   :  { %v2970_v40 = vld [vmem:[#allocation13 + $0xc8] sm:$0xff] }
 0x644   :  { %v8678_v45 = vpop.eup %8677 }
 0x645   :  { %v8201_v47 = vpack.c.bf16 %v8678_v45, %v8676_v42  ;;  %v2705_v50 = vpop.f32.mrb[110].mxu1  ;;  %v2936_v52 = vld [vmem:[#allocation2 + $0xb0] sm:$0xff] }
 0x646   :  { %2711 = vst.msk [vmem:[#allocation2 + $0xc0] sm:$0xff] %vm928_vm3, %v2705_v50  ;;  %v7305_v54 = vpop.f32.mrb[111].mxu1  ;;  %v2998_v56 = vmul.f32 %v2967_v44, %v2936_v52  ;;  %v3032_v45 = vld [vmem:[#allocation14 + $0xc8] sm:$0xff] }
 0x647   :  { %8202 = vmatpush1.bf16.msra.mxu0 %v8201_v47 }
 0x648   :  { %8203 = vmatprep.subr.bf16.mxu0 %v11015_v0  ;;  %v3060_v12 = vadd.f32 %v3029_v57, %v2998_v56  ;;  %v8680_v14 = vpop.eup %8679  ;;  %v2971_v56 = vld [vmem:[#allocation13 + $0xd0] sm:$0xff] }
 0x649   :  { %v2937_v61 = vld [vmem:[#allocation2 + $0xb8] sm:$0xff] }
 0x64a   :  { %v2999_v16 = vmul.f32 %v2968_v60, %v2937_v61  ;;  %8683 = vtanh.f32 %v3060_v12  ;;  %v3033_v12 = vld [vmem:[#allocation14 + $0xd0] sm:$0xff] }
 0x64c   :  { %v8682_v19 = vpop.eup %8681  ;;  %v3061_v21 = vadd.f32 %v3030_v6, %v2999_v16  ;;  %v2972_v16 = vld [vmem:[#allocation13 + $0xd8] sm:$0xff] }
 0x64d   :  { %v2796_v22 = vpop.f32.mrb[112].mxu1  ;;  %v8204_v24 = vpack.c.bf16 %v8682_v19, %v8680_v14  ;;  %v2938_v26 = vld [vmem:[#allocation2 + $0xc0] sm:$0xff] }
 0x64e   :  { %2810 = vst.msk [vmem:[#allocation2 + $0xc8] sm:$0xff] %vm928_vm3, %v2796_v22  ;;  %v7324_v25 = vpop.f32.mrb[113].mxu1  ;;  %8685 = vtanh.f32 %v3061_v21  ;;  %v3000_v35 = vmul.f32 %v2969_v28, %v2938_v26 }
 0x64f   :  { %8205 = vmatpush1.bf16.msra.mxu0 %v8204_v24  ;;  %v3034_v24 = vld [vmem:[#allocation14 + $0xd8] sm:$0xff] }
 0x650   :  { %8206 = vmatprep.subr.bf16.mxu0 %v11015_v0  ;;  %v3062_v47 = vadd.f32 %v3031_v38, %v3000_v35  ;;  %v2973_v38 = vld [vmem:[#allocation13 + $0xe0] sm:$0xff] }
 0x651   :  { %v2801_v31 = vpop.f32.mrb[114].mxu1 }
 0x652   :  { %2811 = vst.msk [vmem:[#allocation2 + $0xd0] sm:$0xff] %vm928_vm3, %v2801_v31  ;;  %v7327_v36 = vpop.f32.mrb[115].mxu1  ;;  %8687 = vtanh.f32 %v3062_v47 }
 0x654   :  { %v8684_v54 = vpop.eup %8683 }
 0x655   :  { %v2806_v42 = vpop.f32.mrb[116].mxu1  ;;  %v2939_v44 = vld [vmem:[#allocation2 + $0xc8] sm:$0xff] }
 0x656   :  { %2812 = vst.msk [vmem:[#allocation2 + $0xd8] sm:$0xff] %vm928_vm3, %v2806_v42  ;;  %v7330_v50 = vpop.f32.mrb[117].mxu1  ;;  %v3001_v52 = vmul.f32 %v2970_v40, %v2939_v44 }
 0x658   :  { %v8686_v57 = vpop.eup %8685  ;;  %v3063_v60 = vadd.f32 %v3032_v45, %v3001_v52  ;;  %v3035_v52 = vld [vmem:[#allocation14 + $0xe0] sm:$0xff] }
 0x659   :  { %v8207_v61 = vpack.c.bf16 %v8686_v57, %v8684_v54  ;;  %v2940_v6 = vld [vmem:[#allocation2 + $0xd0] sm:$0xff]  ;;  %v2974_v54 = vld [vmem:[#allocation13 + $0xe8] sm:$0xff] }
 0x65a   :  { %8689 = vtanh.f32 %v3063_v60  ;;  %v3002_v14 = vmul.f32 %v2971_v56, %v2940_v6  ;;  %v3036_v57 = vld [vmem:[#allocation14 + $0xe8] sm:$0xff] }
 0x65b   :  { %8208 = vmatpush1.bf16.msra.mxu0 %v8207_v61 }
 0x65c   :  { %8209 = vmatprep.subr.bf16.mxu0 %v11015_v0  ;;  %v3064_v19 = vadd.f32 %v3033_v12, %v3002_v14  ;;  %v8688_v36 = vpop.eup %8687  ;;  %v2975_v12 = vld [vmem:[#allocation13 + $0xf0] sm:$0xff] }
 0x65d   :  { %v2897_v21 = vpop.f32.mrb[118].mxu1  ;;  %v2941_v22 = vld [vmem:[#allocation2 + $0xd8] sm:$0xff] }
 0x65e   :  { %2911 = vst.msk [vmem:[#allocation2 + $0xe0] sm:$0xff] %vm928_vm3, %v2897_v21  ;;  %v7349_v25 = vpop.f32.mrb[119].mxu1  ;;  %v3003_v26 = vmul.f32 %v2972_v16, %v2941_v22  ;;  %8691 = vtanh.f32 %v3064_v19  ;;  %v3037_v21 = vld [vmem:[#allocation14 + $0xf0] sm:$0xff] }
 0x660   :  { %v3065_v28 = vadd.f32 %v3034_v24, %v3003_v26 }
 0x661   :  { %v2902_v31 = vpop.f32.mrb[120].mxu1 }
 0x662   :  { %2912 = vst.msk [vmem:[#allocation2 + $0xe8] sm:$0xff] %vm928_vm3, %v2902_v31  ;;  %v7352_v35 = vpop.f32.mrb[121].mxu1  ;;  %8693 = vtanh.f32 %v3065_v28  ;;  %v3475_v31 = vld [vmem:[#allocation17] sm:$0xff] }
 0x663   :  { %v3476_v35 = vld [vmem:[#allocation17 + $0x8] sm:$0xff] }
 0x664   :  { %v8690_v40 = vpop.eup %8689 }
 0x665   :  { %v2907_v42 = vpop.f32.mrb[122].mxu1  ;;  %v8210_v44 = vpack.c.bf16 %v8690_v40, %v8688_v36  ;;  %v2942_v45 = vld [vmem:[#allocation2 + $0xe0] sm:$0xff]  ;;  %v8219_v40 = vpack.c.bf16 %v3476_v35, %v3475_v31  ;;  %v3115_v31 = vld [vmem:[#allocation16 + $0x78] sm:$0xff]  ;;  %v3114_v35 = vld [vmem:[#allocation16 + $0x70] sm:$0xff] }
 0x666   :  { %2913 = vst.msk [vmem:[#allocation2 + $0xf0] sm:$0xff] %vm928_vm3, %v2907_v42  ;;  %v7355_v47 = vpop.f32.mrb[123].mxu1  ;;  %v3004_v50 = vmul.f32 %v2973_v38, %v2942_v45  ;;  %v3477_v36 = vld [vmem:[#allocation17 + $0x10] sm:$0xff]  ;;  %v3478_v42 = vld [vmem:[#allocation17 + $0x18] sm:$0xff] }
 0x667   :  { %8211 = vmatpush1.bf16.msra.mxu0 %v8210_v44  ;;  %8220 = vmatpush3.bf16.msra.mxu1 %v8219_v40  ;;  %v8222_v44 = vpack.c.bf16 %v3478_v42, %v3477_v36  ;;  %v3479_v47 = vld [vmem:[#allocation17 + $0x20] sm:$0xff]  ;;  %v3117_v36 = vld [vmem:[#allocation16 + $0x88] sm:$0xff]  ;;  %v3119_v40 = vld [vmem:[#allocation16 + $0x98] sm:$0xff] }
 0x668   :  { %8212 = vmatprep.subr.bf16.mxu0 %v11015_v0  ;;  %v3066_v60 = vadd.f32 %v3035_v52, %v3004_v50  ;;  %v8692_v61 = vpop.eup %8691  ;;  %8221 = vmatprep.subr.bf16.mxu1 %v11015_v0  ;;  %v3480_v50 = vld [vmem:[#allocation17 + $0x28] sm:$0xff]  ;;  %v3100_v52 = vld [vmem:[#allocation16] sm:$0xff]  ;;  %v3118_v42 = vld [vmem:[#allocation16 + $0x90] sm:$0xff] }
 0x669   :  { %v2943_v56 = vld [vmem:[#allocation2 + $0xe8] sm:$0xff] }
 0x66a   :  { %v3005_v6 = vmul.f32 %v2974_v54, %v2943_v56  ;;  %8695 = vtanh.f32 %v3066_v60  ;;  %v3103_v54 = vld [vmem:[#allocation16 + $0x18] sm:$0xff]  ;;  %v8225_v56 = vpack.c.bf16 %v3480_v50, %v3479_v47  ;;  %v3482_v60 = vld [vmem:[#allocation17 + $0x38] sm:$0xff]  ;;  %v3122_v50 = vld [vmem:[#allocation16 + $0xb0] sm:$0xff] }
 0x66b   :  { %8223 = vmatpush3.bf16.msra.mxu1 %v8222_v44  ;;  %v3121_v44 = vld [vmem:[#allocation16 + $0xa8] sm:$0xff]  ;;  %v3123_v47 = vld [vmem:[#allocation16 + $0xb8] sm:$0xff] }
 0x66c   :  { %v8694_v14 = vpop.eup %8693  ;;  %v3067_v16 = vadd.f32 %v3036_v57, %v3005_v6  ;;  %8224 = vmatprep.subr.bf16.mxu1 %v11015_v0  ;;  %v3481_v57 = vld [vmem:[#allocation17 + $0x30] sm:$0xff]  ;;  %v3105_v6 = vld [vmem:[#allocation16 + $0x28] sm:$0xff] }
 0x66d   :  { %v2944_v19 = vld [vmem:[#allocation2 + $0xf0] sm:$0xff]  ;;  %v8213_v22 = vpack.c.bf16 %v8694_v14, %v8692_v61  ;;  %v3104_v14 = vld [vmem:[#allocation16 + $0x20] sm:$0xff] }
 0x66e   :  { %v3006_v24 = vmul.f32 %v2975_v12, %v2944_v19  ;;  %8697 = vtanh.f32 %v3067_v16  ;;  %v3102_v61 = vld [vmem:[#allocation16 + $0x10] sm:$0xff]  ;;  %v8228_v12 = vpack.c.bf16 %v3482_v60, %v3481_v57  ;;  %v3107_v16 = vld [vmem:[#allocation16 + $0x38] sm:$0xff]  ;;  %v3129_v60 = vld [vmem:[#allocation16 + $0xe8] sm:$0xff] }
 0x66f   :  { %8214 = vmatpush1.bf16.msra.mxu0 %v8213_v22  ;;  %8226 = vmatpush3.bf16.msra.mxu1 %v8225_v56  ;;  %v3106_v19 = vld [vmem:[#allocation16 + $0x30] sm:$0xff]  ;;  %v3108_v22 = vld [vmem:[#allocation16 + $0x40] sm:$0xff]  ;;  %v3127_v56 = vld [vmem:[#allocation16 + $0xd8] sm:$0xff] }
 0x670   :  { %v3068_v25 = vadd.f32 %v3037_v21, %v3006_v24  ;;  %8215 = vmatprep.subr.bf16.mxu0 %v11015_v0  ;;  %8227 = vmatprep.subr.bf16.mxu1 %v11015_v0  ;;  %v3109_v21 = vld [vmem:[#allocation16 + $0x48] sm:$0xff]  ;;  %v3111_v24 = vld [vmem:[#allocation16 + $0x58] sm:$0xff]  ;;  %v3126_v57 = vld [vmem:[#allocation16 + $0xd0] sm:$0xff] }
 0x672   :  { %8699 = vtanh.f32 %v3068_v25  ;;  %v3110_v25 = vld [vmem:[#allocation16 + $0x50] sm:$0xff] }
 0x673   :  { %8229 = vmatpush3.bf16.msra.mxu1 %v8228_v12  ;;  %v3130_v12 = vld [vmem:[#allocation16 + $0xf0] sm:$0xff] }
 0x674   :  { %v8696_v26 = vpop.eup %8695  ;;  %8230 = vmatprep.subr.bf16.mxu1 %v11015_v0 }
 0x678   :  { %v8698_v28 = vpop.eup %8697 }
 0x679   :  { %v8216_v38 = vpack.c.bf16 %v8698_v28, %v8696_v26  ;;  %v3113_v26 = vld [vmem:[#allocation16 + $0x68] sm:$0xff]  ;;  %v3112_v28 = vld [vmem:[#allocation16 + $0x60] sm:$0xff] }
 0x67b   :  { %8217 = vmatpush1.bf16.msra.mxu0 %v8216_v38  ;;  %v3116_v38 = vld [vmem:[#allocation16 + $0x80] sm:$0xff] }
 0x67c   :  { %v8700_v45 = vpop.eup %8699  ;;  %3315 = vmatprep.subr.mxu0 %v9362_v1 }
 0x67f   :  { %3316 = vmatpush1.msra.mxu0 %v8700_v45  ;;  %v3120_v45 = vld [vmem:[#allocation16 + $0xa0] sm:$0xff] }
 0x680   :  { %3320 = vmatmul.mubr.f32.vlgmr.msra.gmra.mrb[124].mxu0 %v3100_v52  ;;  %8290 = vmatprep.subr.bf16.mxu0 %v11015_v0  ;;  %v3125_v52 = vld [vmem:[#allocation16 + $0xc8] sm:$0xff] }
 0x681   :  { %6279 = vmatprep.mubr.msk.f32.mxu0 %vm1804_vm4, %v3103_v54  ;;  %v3124_v54 = vld [vmem:[#allocation16 + $0xc0] sm:$0xff] }
 0x684   :  { %3325 = vmatmul.mubr.f32.gmra.mrb[126].mxu0 %v3102_v61  ;;  %v3128_v61 = vld [vmem:[#allocation16 + $0xe0] sm:$0xff] }
 0x685   :  { %6280 = vmatprep.mubr.msk.f32.mxu0 %vm1804_vm4, %v3105_v6  ;;  %v3131_v6 = vld [vmem:[#allocation16 + $0xf8] sm:$0xff] }
 0x688   :  { %3330 = vmatmul.mubr.f32.gmra.mrb[128].mxu0 %v3104_v14  ;;  %v3133_v14 = vld [vmem:[#allocation16 + $0x108] sm:$0xff] }
 0x689   :  { %6281 = vmatprep.mubr.msk.f32.mxu0 %vm1804_vm4, %v3107_v16  ;;  %v3132_v16 = vld [vmem:[#allocation16 + $0x100] sm:$0xff] }
 0x68c   :  { %3335 = vmatmul.mubr.f32.gmra.mrb[130].mxu0 %v3106_v19  ;;  %v3135_v19 = vld [vmem:[#allocation16 + $0x118] sm:$0xff] }
 0x68d   :  { %6282 = vmatprep.mubr.msk.f32.mxu0 %vm1804_vm4, %v3109_v21  ;;  %v3134_v21 = vld [vmem:[#allocation16 + $0x110] sm:$0xff] }
 0x690   :  { %3340 = vmatmul.mubr.f32.gmra.mrb[132].mxu0 %v3108_v22  ;;  %v3137_v22 = vld [vmem:[#allocation16 + $0x128] sm:$0xff] }
 0x691   :  { %6283 = vmatprep.mubr.msk.f32.mxu0 %vm1804_vm4, %v3111_v24  ;;  %v3136_v24 = vld [vmem:[#allocation16 + $0x120] sm:$0xff] }
 0x694   :  { %3345 = vmatmul.mubr.f32.gmra.mrb[134].mxu0 %v3110_v25  ;;  %v3139_v25 = vld [vmem:[#allocation16 + $0x138] sm:$0xff] }
 0x695   :  { %6284 = vmatprep.mubr.msk.f32.mxu0 %vm1804_vm4, %v3113_v26  ;;  %v3138_v26 = vld [vmem:[#allocation16 + $0x130] sm:$0xff] }
 0x698   :  { %3350 = vmatmul.mubr.f32.gmra.mrb[136].mxu0 %v3112_v28  ;;  %v3141_v28 = vld [vmem:[#allocation16 + $0x148] sm:$0xff] }
 0x699   :  { %6285 = vmatprep.mubr.msk.f32.mxu0 %vm1804_vm4, %v3115_v31  ;;  %v3140_v31 = vld [vmem:[#allocation16 + $0x140] sm:$0xff] }
 0x69c   :  { %3355 = vmatmul.mubr.f32.gmra.mrb[138].mxu0 %v3114_v35  ;;  %v3143_v35 = vld [vmem:[#allocation16 + $0x158] sm:$0xff] }
 0x69d   :  { %6286 = vmatprep.mubr.msk.f32.mxu0 %vm1804_vm4, %v3117_v36  ;;  %v3142_v36 = vld [vmem:[#allocation16 + $0x150] sm:$0xff] }
 0x6a0   :  { %3360 = vmatmul.mubr.f32.gmra.mrb[140].mxu0 %v3116_v38  ;;  %v3145_v38 = vld [vmem:[#allocation16 + $0x168] sm:$0xff] }
 0x6a1   :  { %6287 = vmatprep.mubr.msk.f32.mxu0 %vm1804_vm4, %v3119_v40  ;;  %v3144_v40 = vld [vmem:[#allocation16 + $0x160] sm:$0xff] }
 0x6a4   :  { %3365 = vmatmul.mubr.f32.gmra.mrb[142].mxu0 %v3118_v42  ;;  %v3147_v42 = vld [vmem:[#allocation16 + $0x178] sm:$0xff] }
 0x6a5   :  { %6288 = vmatprep.mubr.msk.f32.mxu0 %vm1804_vm4, %v3121_v44  ;;  %v3146_v44 = vld [vmem:[#allocation16 + $0x170] sm:$0xff] }
 0x6a8   :  { %3370 = vmatmul.mubr.f32.gmra.mrb[144].mxu0 %v3120_v45  ;;  %v3149_v45 = vld [vmem:[#allocation16 + $0x188] sm:$0xff] }
 0x6a9   :  { %6289 = vmatprep.mubr.msk.f32.mxu0 %vm1804_vm4, %v3123_v47  ;;  %v3148_v47 = vld [vmem:[#allocation16 + $0x180] sm:$0xff] }
 0x6ac   :  { %3375 = vmatmul.mubr.f32.gmra.mrb[146].mxu0 %v3122_v50  ;;  %v3151_v50 = vld [vmem:[#allocation16 + $0x198] sm:$0xff] }
 0x6ad   :  { %6290 = vmatprep.mubr.msk.f32.mxu0 %vm1804_vm4, %v3125_v52  ;;  %v3150_v52 = vld [vmem:[#allocation16 + $0x190] sm:$0xff] }
 0x6b0   :  { %3380 = vmatmul.mubr.f32.gmra.mrb[148].mxu0 %v3124_v54  ;;  %v3153_v54 = vld [vmem:[#allocation16 + $0x1a8] sm:$0xff] }
 0x6b1   :  { %6291 = vmatprep.mubr.msk.f32.mxu0 %vm1804_vm4, %v3127_v56  ;;  %v3152_v56 = vld [vmem:[#allocation16 + $0x1a0] sm:$0xff] }
 0x6b4   :  { %3385 = vmatmul.mubr.f32.gmra.mrb[150].mxu0 %v3126_v57  ;;  %v3155_v57 = vld [vmem:[#allocation16 + $0x1b8] sm:$0xff] }
 0x6b5   :  { %6292 = vmatprep.mubr.msk.f32.mxu0 %vm1804_vm4, %v3129_v60  ;;  %v3154_v60 = vld [vmem:[#allocation16 + $0x1b0] sm:$0xff] }
 0x6b8   :  { %3390 = vmatmul.mubr.f32.gmra.mrb[152].mxu0 %v3128_v61  ;;  %v3157_v61 = vld [vmem:[#allocation16 + $0x1c8] sm:$0xff] }
 0x6b9   :  { %6293 = vmatprep.mubr.msk.f32.mxu0 %vm1804_vm4, %v3131_v6  ;;  %v3156_v6 = vld [vmem:[#allocation16 + $0x1c0] sm:$0xff] }
 0x6bc   :  { %3395 = vmatmul.mubr.f32.gmra.mrb[154].mxu0 %v3130_v12  ;;  %v3159_v12 = vld [vmem:[#allocation16 + $0x1d8] sm:$0xff] }
 0x6bd   :  { %6294 = vmatprep.mubr.msk.f32.mxu0 %vm1804_vm4, %v3133_v14  ;;  %v3158_v14 = vld [vmem:[#allocation16 + $0x1d0] sm:$0xff] }
 0x6c0   :  { %3400 = vmatmul.mubr.f32.gmra.mrb[156].mxu0 %v3132_v16  ;;  %v3161_v16 = vld [vmem:[#allocation16 + $0x1e8] sm:$0xff] }
 0x6c1   :  { %6295 = vmatprep.mubr.msk.f32.mxu0 %vm1804_vm4, %v3135_v19  ;;  %v3160_v19 = vld [vmem:[#allocation16 + $0x1e0] sm:$0xff] }
 0x6c4   :  { %3405 = vmatmul.mubr.f32.gmra.mrb[158].mxu0 %v3134_v21  ;;  %v4171_v21 = vld [vmem:[#allocation17 + $0x180] sm:$0xff] }
 0x6c5   :  { %6296 = vmatprep.mubr.msk.f32.mxu0 %vm1804_vm4, %v3137_v22  ;;  %v4172_v22 = vld [vmem:[#allocation17 + $0x188] sm:$0xff] }
 0x6c8   :  { %3410 = vmatmul.mubr.f32.gmra.mrb[160].mxu0 %v3136_v24  ;;  %v8291_v24 = vpack.c.bf16 %v4172_v22, %v4171_v21 }
 0x6c9   :  { %6297 = vmatprep.mubr.msk.f32.mxu0 %vm1804_vm4, %v3139_v25  ;;  %v4173_v25 = vld [vmem:[#allocation17 + $0x190] sm:$0xff] }
 0x6ca   :  { %8292 = vmatpush3.bf16.msra.mxu0 %v8291_v24 }
 0x6cb   :  { %8293 = vmatprep.subr.bf16.mxu0 %v11015_v0 }
 0x6cc   :  { %3415 = vmatmul.mubr.f32.gmra.mrb[162].mxu0 %v3138_v26  ;;  %v4174_v26 = vld [vmem:[#allocation17 + $0x198] sm:$0xff] }
 0x6cd   :  { %6298 = vmatprep.mubr.msk.f32.mxu0 %vm1804_vm4, %v3141_v28  ;;  %v8294_v28 = vpack.c.bf16 %v4174_v26, %v4173_v25 }
 0x6cf   :  { %8295 = vmatpush3.bf16.msra.mxu0 %v8294_v28 }
 0x6d0   :  { %3420 = vmatmul.mubr.f32.gmra.mrb[164].mxu0 %v3140_v31  ;;  %8296 = vmatprep.subr.bf16.mxu0 %v11015_v0  ;;  %v4175_v31 = vld [vmem:[#allocation17 + $0x1a0] sm:$0xff] }
 0x6d1   :  { %6299 = vmatprep.mubr.msk.f32.mxu0 %vm1804_vm4, %v3143_v35  ;;  %v4176_v35 = vld [vmem:[#allocation17 + $0x1a8] sm:$0xff] }
 0x6d4   :  { %3425 = vmatmul.mubr.f32.gmra.mrb[166].mxu0 %v3142_v36  ;;  %v8297_v36 = vpack.c.bf16 %v4176_v35, %v4175_v31 }
 0x6d5   :  { %6300 = vmatprep.mubr.msk.f32.mxu0 %vm1804_vm4, %v3145_v38  ;;  %v4177_v38 = vld [vmem:[#allocation17 + $0x1b0] sm:$0xff] }
 0x6d6   :  { %8298 = vmatpush3.bf16.msra.mxu0 %v8297_v36 }
 0x6d7   :  { %8299 = vmatprep.subr.bf16.mxu0 %v11015_v0 }
 0x6d8   :  { %3430 = vmatmul.mubr.f32.gmra.mrb[168].mxu0 %v3144_v40  ;;  %v4178_v40 = vld [vmem:[#allocation17 + $0x1b8] sm:$0xff] }
 0x6d9   :  { %6301 = vmatprep.mubr.msk.f32.mxu0 %vm1804_vm4, %v3147_v42  ;;  %v8300_v42 = vpack.c.bf16 %v4178_v40, %v4177_v38 }
 0x6db   :  { %8301 = vmatpush3.bf16.msra.mxu0 %v8300_v42 }
 0x6dc   :  { %3435 = vmatmul.mubr.f32.gmra.mrb[170].mxu0 %v3146_v44  ;;  %8314 = vmatprep.subr.bf16.mxu0 %v11015_v0  ;;  %v3630_v44 = vld [vmem:[#allocation17 + $0x40] sm:$0xff] }
 0x6dd   :  { %6302 = vmatprep.mubr.msk.f32.mxu0 %vm1804_vm4, %v3149_v45  ;;  %v3631_v45 = vld [vmem:[#allocation17 + $0x48] sm:$0xff] }
 0x6e0   :  { %3440 = vmatmul.mubr.f32.gmra.mrb[172].mxu0 %v3148_v47  ;;  %v8231_v47 = vpack.c.bf16 %v3631_v45, %v3630_v44  ;;  %v3749_v45 = vld [vmem:[#allocation17 + $0x80] sm:$0xff] }
 0x6e1   :  { %6303 = vmatprep.mubr.msk.f32.mxu0 %vm1804_vm4, %v3151_v50  ;;  %v3632_v50 = vld [vmem:[#allocation17 + $0x50] sm:$0xff] }
 0x6e4   :  { %3445 = vmatmul.mubr.f32.gmra.mrb[174].mxu0 %v3150_v52  ;;  %v3633_v52 = vld [vmem:[#allocation17 + $0x58] sm:$0xff] }
 0x6e5   :  { %6304 = vmatprep.mubr.msk.f32.mxu0 %vm1804_vm4, %v3153_v54 }
 0x6e8   :  { %3450 = vmatmul.mubr.f32.gmra.mrb[176].mxu0 %v3152_v56 }
 0x6e9   :  { %6305 = vmatprep.mubr.msk.f32.mxu0 %vm1804_vm4, %v3155_v57  ;;  %v8234_v57 = vpack.c.bf16 %v3633_v52, %v3632_v50 }
 0x6ec   :  { %3455 = vmatmul.mubr.f32.gmra.mrb[178].mxu0 %v3154_v60  ;;  %v3634_v60 = vld [vmem:[#allocation17 + $0x60] sm:$0xff] }
 0x6ed   :  { %6306 = vmatprep.mubr.msk.f32.mxu0 %vm1804_vm4, %v3157_v61  ;;  %v3635_v61 = vld [vmem:[#allocation17 + $0x68] sm:$0xff] }
 0x6f0   :  { %3460 = vmatmul.mubr.f32.gmra.mrb[180].mxu0 %v3156_v6 }
 0x6f1   :  { %6307 = vmatprep.mubr.msk.f32.mxu0 %vm1804_vm4, %v3159_v12 }
 0x6f4   :  { %3465 = vmatmul.mubr.f32.gmra.mrb[182].mxu0 %v3158_v14  ;;  %v8237_v14 = vpack.c.bf16 %v3635_v61, %v3634_v60 }
 0x6f5   :  { %6308 = vmatprep.mubr.msk.f32.mxu0 %vm1804_vm4, %v3161_v16  ;;  %v3636_v16 = vld [vmem:[#allocation17 + $0x70] sm:$0xff] }
 0x6f8   :  { %3470 = vmatmul.mubr.f32.gmra.mrb[184].mxu0 %v3160_v19  ;;  %v3637_v19 = vld [vmem:[#allocation17 + $0x78] sm:$0xff] }
 0x6f9   :  { %7552 = vmatprep.mubr.msk.f32.mxu0 %vm9361_vm0, %v9362_v1  ;;  %v8240_v24 = vpack.c.bf16 %v3637_v19, %v3636_v16 }
 0x753   :  { %v3321_v54 = vpop.f32.mrb[124].mxu0 }
 0x754   :  { %7373 = vmatmul.mubr.msk.f32.vlgmr.msra.gmra.mrb[124].mxu1 %vm928_vm3, %v3321_v54  ;;  %v3323_v56 = vpop.f32.mrb[125].mxu0 }
 0x755   :  { %7375 = vmatprep.mubr.msk.f32.mxu1 %vm9361_vm0, %v9362_v1  ;;  %8232 = vmatpush3.bf16.msra.mxu1 %v8231_v47  ;;  %v3750_v47 = vld [vmem:[#allocation17 + $0x88] sm:$0xff]  ;;  %v3751_v56 = vld [vmem:[#allocation17 + $0x90] sm:$0xff] }
 0x756   :  { %8233 = vmatprep.subr.bf16.mxu1 %v11015_v0  ;;  %v8243_v54 = vpack.c.bf16 %v3750_v47, %v3749_v45  ;;  %v3870_v45 = vld [vmem:[#allocation17 + $0xd0] sm:$0xff]  ;;  %v3871_v47 = vld [vmem:[#allocation17 + $0xd8] sm:$0xff] }
 0x757   :  { %v3326_v6 = vpop.f32.mrb[126].mxu0 }
 0x758   :  { %7376 = vmatmul.mubr.msk.f32.gmra.mrb[126].mxu1 %vm928_vm3, %v3326_v6  ;;  %v3328_v12 = vpop.f32.mrb[127].mxu0 }
 0x759   :  { %7378 = vmatprep.mubr.msk.f32.mxu1 %vm9361_vm0, %v9362_v1  ;;  %8235 = vmatpush3.bf16.msra.mxu1 %v8234_v57  ;;  %v3752_v57 = vld [vmem:[#allocation17 + $0x98] sm:$0xff]  ;;  %v3753_v12 = vld [vmem:[#allocation17 + $0xa0] sm:$0xff] }
 0x75a   :  { %8236 = vmatprep.subr.bf16.mxu1 %v11015_v0  ;;  %v8246_v6 = vpack.c.bf16 %v3752_v57, %v3751_v56  ;;  %v3872_v56 = vld [vmem:[#allocation17 + $0xe0] sm:$0xff]  ;;  %v3873_v57 = vld [vmem:[#allocation17 + $0xe8] sm:$0xff] }
 0x75b   :  { %v3331_v21 = vpop.f32.mrb[128].mxu0 }
 0x75c   :  { %7379 = vmatmul.mubr.msk.f32.gmra.mrb[128].mxu1 %vm928_vm3, %v3331_v21  ;;  %v3333_v22 = vpop.f32.mrb[129].mxu0 }
 0x75d   :  { %7381 = vmatprep.mubr.msk.f32.mxu1 %vm9361_vm0, %v9362_v1  ;;  %8238 = vmatpush3.bf16.msra.mxu1 %v8237_v14  ;;  %v3754_v14 = vld [vmem:[#allocation17 + $0xa8] sm:$0xff]  ;;  %v3755_v22 = vld [vmem:[#allocation17 + $0xb0] sm:$0xff] }
 0x75e   :  { %8239 = vmatprep.subr.bf16.mxu1 %v11015_v0  ;;  %v8249_v21 = vpack.c.bf16 %v3754_v14, %v3753_v12  ;;  %v3874_v12 = vld [vmem:[#allocation17 + $0xf0] sm:$0xff]  ;;  %v3875_v14 = vld [vmem:[#allocation17 + $0xf8] sm:$0xff] }
 0x75f   :  { %v3336_v25 = vpop.f32.mrb[130].mxu0 }
 0x760   :  { %7382 = vmatmul.mubr.msk.f32.gmra.mrb[130].mxu1 %vm928_vm3, %v3336_v25  ;;  %v3338_v26 = vpop.f32.mrb[131].mxu0 }
 0x761   :  { %7384 = vmatprep.mubr.msk.f32.mxu1 %vm9361_vm0, %v9362_v1  ;;  %8241 = vmatpush3.bf16.msra.mxu1 %v8240_v24  ;;  %v3756_v24 = vld [vmem:[#allocation17 + $0xb8] sm:$0xff] }
 0x762   :  { %8242 = vmatprep.subr.bf16.mxu1 %v11015_v0 }
 0x763   :  { %v3341_v28 = vpop.f32.mrb[132].mxu0 }
 0x764   :  { %7385 = vmatmul.mubr.msk.f32.gmra.mrb[132].mxu1 %vm928_vm3, %v3341_v28  ;;  %v3343_v31 = vpop.f32.mrb[133].mxu0  ;;  %v8252_v28 = vpack.c.bf16 %v3756_v24, %v3755_v22 }
 0x765   :  { %7387 = vmatprep.mubr.msk.f32.mxu1 %vm9361_vm0, %v9362_v1 }
 0x767   :  { %v3346_v35 = vpop.f32.mrb[134].mxu0 }
 0x768   :  { %7388 = vmatmul.mubr.msk.f32.gmra.mrb[134].mxu1 %vm928_vm3, %v3346_v35  ;;  %v3348_v36 = vpop.f32.mrb[135].mxu0 }
 0x769   :  { %7390 = vmatprep.mubr.msk.f32.mxu1 %vm9361_vm0, %v9362_v1  ;;  %v3868_v36 = vld [vmem:[#allocation17 + $0xc0] sm:$0xff] }
 0x76b   :  { %v3351_v38 = vpop.f32.mrb[136].mxu0 }
 0x76c   :  { %7391 = vmatmul.mubr.msk.f32.gmra.mrb[136].mxu1 %vm928_vm3, %v3351_v38  ;;  %v3353_v40 = vpop.f32.mrb[137].mxu0  ;;  %v3869_v38 = vld [vmem:[#allocation17 + $0xc8] sm:$0xff] }
 0x76d   :  { %7393 = vmatprep.mubr.msk.f32.mxu1 %vm9361_vm0, %v9362_v1 }
 0x76f   :  { %v3356_v42 = vpop.f32.mrb[138].mxu0 }
 0x770   :  { %7394 = vmatmul.mubr.msk.f32.gmra.mrb[138].mxu1 %vm928_vm3, %v3356_v42  ;;  %v3358_v44 = vpop.f32.mrb[139].mxu0 }
 0x771   :  { %7396 = vmatprep.mubr.msk.f32.mxu1 %vm9361_vm0, %v9362_v1  ;;  %v8255_v44 = vpack.c.bf16 %v3869_v38, %v3868_v36  ;;  %v3971_v36 = vld [vmem:[#allocation17 + $0x110] sm:$0xff]  ;;  %v3972_v38 = vld [vmem:[#allocation17 + $0x118] sm:$0xff] }
 0x773   :  { %v3361_v50 = vpop.f32.mrb[140].mxu0 }
 0x774   :  { %7397 = vmatmul.mubr.msk.f32.gmra.mrb[140].mxu1 %vm928_vm3, %v3361_v50  ;;  %v3363_v52 = vpop.f32.mrb[141].mxu0 }
 0x775   :  { %7415 = vmatprep.mubr.msk.f32.mxu1 %vm9361_vm0, %v9362_v1 }
 0x777   :  { %v3366_v60 = vpop.f32.mrb[142].mxu0 }
 0x778   :  { %7416 = vmatmul.mubr.msk.f32.vlgmr.msra.gmra.mrb[142].mxu1 %vm928_vm3, %v3366_v60  ;;  %v3368_v61 = vpop.f32.mrb[143].mxu0 }
 0x779   :  { %7418 = vmatprep.mubr.msk.f32.mxu1 %vm9361_vm0, %v9362_v1  ;;  %8244 = vmatpush3.bf16.msra.mxu1 %v8243_v54  ;;  %v8258_v54 = vpack.c.bf16 %v3871_v47, %v3870_v45  ;;  %v3973_v45 = vld [vmem:[#allocation17 + $0x120] sm:$0xff]  ;;  %v3974_v47 = vld [vmem:[#allocation17 + $0x128] sm:$0xff] }
 0x77a   :  { %8245 = vmatprep.subr.bf16.mxu1 %v11015_v0 }
 0x77b   :  { %v3371_v16 = vpop.f32.mrb[144].mxu0 }
 0x77c   :  { %7419 = vmatmul.mubr.msk.f32.gmra.mrb[144].mxu1 %vm928_vm3, %v3371_v16  ;;  %v3373_v19 = vpop.f32.mrb[145].mxu0 }
 0x77d   :  { %7421 = vmatprep.mubr.msk.f32.mxu1 %vm9361_vm0, %v9362_v1  ;;  %8247 = vmatpush3.bf16.msra.mxu1 %v8246_v6  ;;  %v8261_v6 = vpack.c.bf16 %v3873_v57, %v3872_v56  ;;  %v3975_v56 = vld [vmem:[#allocation17 + $0x130] sm:$0xff]  ;;  %v3976_v57 = vld [vmem:[#allocation17 + $0x138] sm:$0xff] }
 0x77e   :  { %8248 = vmatprep.subr.bf16.mxu1 %v11015_v0 }
 0x77f   :  { %v3376_v25 = vpop.f32.mrb[146].mxu0 }
 0x780   :  { %7422 = vmatmul.mubr.msk.f32.gmra.mrb[146].mxu1 %vm928_vm3, %v3376_v25  ;;  %v3378_v26 = vpop.f32.mrb[147].mxu0  ;;  %v3969_v25 = vld [vmem:[#allocation17 + $0x100] sm:$0xff] }
 0x781   :  { %7424 = vmatprep.mubr.msk.f32.mxu1 %vm9361_vm0, %v9362_v1  ;;  %8250 = vmatpush3.bf16.msra.mxu1 %v8249_v21  ;;  %v8264_v21 = vpack.c.bf16 %v3875_v14, %v3874_v12  ;;  %v3970_v26 = vld [vmem:[#allocation17 + $0x108] sm:$0xff]  ;;  %v4070_v12 = vld [vmem:[#allocation17 + $0x140] sm:$0xff] }
 0x782   :  { %8251 = vmatprep.subr.bf16.mxu1 %v11015_v0  ;;  %v4071_v14 = vld [vmem:[#allocation17 + $0x148] sm:$0xff] }
 0x783   :  { %v3381_v31 = vpop.f32.mrb[148].mxu0 }
 0x784   :  { %7425 = vmatmul.mubr.msk.f32.gmra.mrb[148].mxu1 %vm928_vm3, %v3381_v31  ;;  %v3383_v35 = vpop.f32.mrb[149].mxu0 }
 0x785   :  { %7427 = vmatprep.mubr.msk.f32.mxu1 %vm9361_vm0, %v9362_v1  ;;  %8253 = vmatpush3.bf16.msra.mxu1 %v8252_v28  ;;  %v8267_v35 = vpack.c.bf16 %v3970_v26, %v3969_v25 }
 0x786   :  { %8254 = vmatprep.subr.bf16.mxu1 %v11015_v0 }
 0x787   :  { %v3386_v40 = vpop.f32.mrb[150].mxu0 }
 0x788   :  { %7428 = vmatmul.mubr.msk.f32.gmra.mrb[150].mxu1 %vm928_vm3, %v3386_v40  ;;  %v3388_v42 = vpop.f32.mrb[151].mxu0 }
 0x789   :  { %7446 = vmatprep.mubr.msk.f32.mxu1 %vm9361_vm0, %v9362_v1 }
 0x78b   :  { %v3391_v50 = vpop.f32.mrb[152].mxu0 }
 0x78c   :  { %7447 = vmatmul.mubr.msk.f32.vlgmr.msra.gmra.mrb[152].mxu1 %vm928_vm3, %v3391_v50  ;;  %v3393_v52 = vpop.f32.mrb[153].mxu0 }
 0x78d   :  { %7449 = vmatprep.mubr.msk.f32.mxu1 %vm9361_vm0, %v9362_v1  ;;  %8256 = vmatpush3.bf16.msra.mxu1 %v8255_v44  ;;  %v8270_v44 = vpack.c.bf16 %v3972_v38, %v3971_v36 }
 0x78e   :  { %8257 = vmatprep.subr.bf16.mxu1 %v11015_v0 }
 0x78f   :  { %v3396_v60 = vpop.f32.mrb[154].mxu0 }
 0x790   :  { %7450 = vmatmul.mubr.msk.f32.gmra.mrb[154].mxu1 %vm928_vm3, %v3396_v60  ;;  %v3398_v61 = vpop.f32.mrb[155].mxu0 }
 0x791   :  { %7452 = vmatprep.mubr.msk.f32.mxu1 %vm9361_vm0, %v9362_v1  ;;  %8259 = vmatpush3.bf16.msra.mxu1 %v8258_v54  ;;  %v8273_v54 = vpack.c.bf16 %v3974_v47, %v3973_v45 }
 0x792   :  { %8260 = vmatprep.subr.bf16.mxu1 %v11015_v0 }
 0x793   :  { %v3401_v16 = vpop.f32.mrb[156].mxu0 }
 0x794   :  { %7453 = vmatmul.mubr.msk.f32.gmra.mrb[156].mxu1 %vm928_vm3, %v3401_v16  ;;  %v3403_v19 = vpop.f32.mrb[157].mxu0 }
 0x795   :  { %7455 = vmatprep.mubr.msk.f32.mxu1 %vm9361_vm0, %v9362_v1  ;;  %8262 = vmatpush3.bf16.msra.mxu1 %v8261_v6  ;;  %v8276_v6 = vpack.c.bf16 %v3976_v57, %v3975_v56 }
 0x796   :  { %8263 = vmatprep.subr.bf16.mxu1 %v11015_v0 }
 0x797   :  { %v3406_v22 = vpop.f32.mrb[158].mxu0 }
 0x798   :  { %7456 = vmatmul.mubr.msk.f32.gmra.mrb[158].mxu1 %vm928_vm3, %v3406_v22  ;;  %v3408_v24 = vpop.f32.mrb[159].mxu0  ;;  %v4072_v22 = vld [vmem:[#allocation17 + $0x150] sm:$0xff] }
 0x799   :  { %7458 = vmatprep.mubr.msk.f32.mxu1 %vm9361_vm0, %v9362_v1  ;;  %8265 = vmatpush3.bf16.msra.mxu1 %v8264_v21  ;;  %v8279_v21 = vpack.c.bf16 %v4071_v14, %v4070_v12  ;;  %v4073_v24 = vld [vmem:[#allocation17 + $0x158] sm:$0xff] }
 0x79a   :  { %8266 = vmatprep.subr.bf16.mxu1 %v11015_v0 }
 0x79b   :  { %v3411_v28 = vpop.f32.mrb[160].mxu0 }
 0x79c   :  { %7459 = vmatmul.mubr.msk.f32.gmra.mrb[160].mxu1 %vm928_vm3, %v3411_v28  ;;  %v3413_v31 = vpop.f32.mrb[161].mxu0  ;;  %v8282_v28 = vpack.c.bf16 %v4073_v24, %v4072_v22  ;;  %v4495_v24 = vld [vmem:[#allocation22 + $0x10] sm:$0xff] }
 0x79d   :  { %7477 = vmatprep.mubr.msk.f32.mxu1 %vm9361_vm0, %v9362_v1  ;;  %v4074_v31 = vld [vmem:[#allocation17 + $0x160] sm:$0xff] }
 0x79f   :  { %v3416_v40 = vpop.f32.mrb[162].mxu0 }
 0x7a0   :  { %7478 = vmatmul.mubr.msk.f32.vlgmr.msra.gmra.mrb[162].mxu1 %vm928_vm3, %v3416_v40  ;;  %v3418_v42 = vpop.f32.mrb[163].mxu0 }
 0x7a1   :  { %8268 = vmatpush3.bf16.msra.mxu1 %v8267_v35  ;;  %7480 = vmatprep.mubr.msk.f32.mxu1 %vm9361_vm0, %v9362_v1  ;;  %v4075_v35 = vld [vmem:[#allocation17 + $0x168] sm:$0xff]  ;;  %v4076_v42 = vld [vmem:[#allocation17 + $0x170] sm:$0xff] }
 0x7a2   :  { %8269 = vmatprep.subr.bf16.mxu1 %v11015_v0  ;;  %v8285_v40 = vpack.c.bf16 %v4075_v35, %v4074_v31  ;;  %v4498_v31 = vld [vmem:[#allocation22 + $0x28] sm:$0xff] }
 0x7a3   :  { %v3421_v50 = vpop.f32.mrb[164].mxu0 }
 0x7a4   :  { %7481 = vmatmul.mubr.msk.f32.gmra.mrb[164].mxu1 %vm928_vm3, %v3421_v50  ;;  %v3423_v52 = vpop.f32.mrb[165].mxu0 }
 0x7a5   :  { %8271 = vmatpush3.bf16.msra.mxu1 %v8270_v44  ;;  %7483 = vmatprep.mubr.msk.f32.mxu1 %vm9361_vm0, %v9362_v1  ;;  %v4077_v44 = vld [vmem:[#allocation17 + $0x178] sm:$0xff] }
 0x7a6   :  { %8272 = vmatprep.subr.bf16.mxu1 %v11015_v0  ;;  %v8288_v50 = vpack.c.bf16 %v4077_v44, %v4076_v42 }
 0x7a7   :  { %v3426_v60 = vpop.f32.mrb[166].mxu0 }
 0x7a8   :  { %7484 = vmatmul.mubr.msk.f32.gmra.mrb[166].mxu1 %vm928_vm3, %v3426_v60  ;;  %v3428_v61 = vpop.f32.mrb[167].mxu0 }
 0x7a9   :  { %8274 = vmatpush3.bf16.msra.mxu1 %v8273_v54  ;;  %7502 = vmatprep.mubr.msk.f32.mxu1 %vm9361_vm0, %v9362_v1 }
 0x7aa   :  { %8275 = vmatprep.subr.bf16.mxu1 %v11015_v0 }
 0x7ab   :  { %v3431_v16 = vpop.f32.mrb[168].mxu0 }
 0x7ac   :  { %v3433_v19 = vpop.f32.mrb[169].mxu0 }
 0x7ad   :  { %8277 = vmatpush3.bf16.msra.mxu1 %v8276_v6  ;;  %v4493_v19 = vld [vmem:[#allocation22] sm:$0xff] }
 0x7ae   :  { %8278 = vmatprep.subr.bf16.mxu1 %v11015_v0 }
 0x7af   :  { %v3436_v25 = vpop.f32.mrb[170].mxu0 }
 0x7b0   :  { %7503 = vmatmul.mubr.msk.f32.vlgmr.msra.gmra.mrb[168].mxu1 %vm928_vm3, %v3431_v16  ;;  %v3438_v26 = vpop.f32.mrb[171].mxu0 }
 0x7b1   :  { %8280 = vmatpush3.bf16.msra.mxu1 %v8279_v21  ;;  %7505 = vmatprep.mubr.msk.f32.mxu1 %vm9361_vm0, %v9362_v1  ;;  %v4494_v21 = vld [vmem:[#allocation22 + $0x8] sm:$0xff] }
 0x7b2   :  { %8281 = vmatprep.subr.bf16.mxu1 %v11015_v0  ;;  %v8303_v22 = vpack.c.bf16 %v4494_v21, %v4493_v19 }
 0x7b3   :  { %v3441_v36 = vpop.f32.mrb[172].mxu0 }
 0x7b4   :  { %7506 = vmatmul.mubr.msk.f32.gmra.mrb[170].mxu1 %vm928_vm3, %v3436_v25  ;;  %v3443_v38 = vpop.f32.mrb[173].mxu0  ;;  %v4496_v25 = vld [vmem:[#allocation22 + $0x18] sm:$0xff] }
 0x7b5   :  { %8283 = vmatpush3.bf16.msra.mxu1 %v8282_v28  ;;  %7508 = vmatprep.mubr.msk.f32.mxu1 %vm9361_vm0, %v9362_v1  ;;  %v8306_v26 = vpack.c.bf16 %v4496_v25, %v4495_v24  ;;  %v4497_v28 = vld [vmem:[#allocation22 + $0x20] sm:$0xff]  ;;  %v4500_v38 = vld [vmem:[#allocation22 + $0x38] sm:$0xff] }
 0x7b6   :  { %8284 = vmatprep.subr.bf16.mxu1 %v11015_v0  ;;  %v8309_v35 = vpack.c.bf16 %v4498_v31, %v4497_v28  ;;  %v4311_v31 = vld [vmem:[#allocation19 + $0x48] sm:$0xff] }
 0x7b7   :  { %v3446_v45 = vpop.f32.mrb[174].mxu0 }
 0x7b8   :  { %7509 = vmatmul.mubr.msk.f32.gmra.mrb[172].mxu1 %vm928_vm3, %v3441_v36  ;;  %v3448_v47 = vpop.f32.mrb[175].mxu0  ;;  %v4499_v36 = vld [vmem:[#allocation22 + $0x30] sm:$0xff] }
 0x7b9   :  { %8286 = vmatpush3.bf16.msra.mxu1 %v8285_v40  ;;  %7527 = vmatprep.mubr.msk.f32.mxu1 %vm9361_vm0, %v9362_v1  ;;  %v8312_v40 = vpack.c.bf16 %v4500_v38, %v4499_v36  ;;  %v4373_v38 = vld [vmem:[%s11042_s28 + $0x48] sm:$0xff] }
 0x7ba   :  { %8287 = vmatprep.subr.bf16.mxu1 %v11015_v0 }
 0x7bb   :  { %v3451_v52 = vpop.f32.mrb[176].mxu0 }
 0x7bc   :  { %v3453_v54 = vpop.f32.mrb[177].mxu0 }
 0x7bd   :  { %8289 = vmatpush3.bf16.msra.mxu1 %v8288_v50 }
 0x7be   :  { %8302 = vmatprep.subr.bf16.mxu1 %v11015_v0 }
 0x7bf   :  { %v3456_v56 = vpop.f32.mrb[178].mxu0 }
 0x7c0   :  { %7528 = vmatmul.mubr.msk.f32.vlgmr.msra.gmra.mrb[174].mxu1 %vm928_vm3, %v3446_v45  ;;  %v3458_v57 = vpop.f32.mrb[179].mxu0 }
 0x7c1   :  { %7530 = vmatprep.mubr.msk.f32.mxu1 %vm9361_vm0, %v9362_v1  ;;  %8304 = vmatpush3.bf16.msra.mxu1 %v8303_v22 }
 0x7c2   :  { %8305 = vmatprep.subr.bf16.mxu1 %v11015_v0 }
 0x7c3   :  { %v3461_v60 = vpop.f32.mrb[180].mxu0 }
 0x7c4   :  { %7531 = vmatmul.mubr.msk.f32.gmra.mrb[176].mxu1 %vm928_vm3, %v3451_v52  ;;  %7553 = vmatmul.mubr.msk.f32.vlgmr.msra.gmra.mrb[186].mxu0 %vm928_vm3, %v3461_v60  ;;  %v3463_v61 = vpop.f32.mrb[181].mxu0 }
 0x7c5   :  { %7533 = vmatprep.mubr.msk.f32.mxu1 %vm9361_vm0, %v9362_v1  ;;  %7555 = vmatprep.mubr.msk.f32.mxu0 %vm9361_vm0, %v9362_v1 }
 0x7c6   :  { %8307 = vmatpush3.bf16.msra.mxu1 %v8306_v26 }
 0x7c7   :  { %v3466_v6 = vpop.f32.mrb[182].mxu0  ;;  %8308 = vmatprep.subr.bf16.mxu1 %v11015_v0 }
 0x7c8   :  { %7534 = vmatmul.mubr.msk.f32.gmra.mrb[178].mxu1 %vm928_vm3, %v3456_v56  ;;  %7556 = vmatmul.mubr.msk.f32.gmra.mrb[188].mxu0 %vm928_vm3, %v3466_v6  ;;  %v3468_v12 = vpop.f32.mrb[183].mxu0 }
 0x7c9   :  { %7558 = vmatprep.mubr.msk.f32.mxu0 %vm9361_vm0, %v9362_v1  ;;  %7577 = vmatprep.mubr.msk.f32.mxu1 %vm9361_vm0, %v9362_v1 }
 0x7ca   :  { %8310 = vmatpush3.bf16.msra.mxu1 %v8309_v35 }
 0x7cb   :  { %v3471_v14 = vpop.f32.mrb[184].mxu0  ;;  %8311 = vmatprep.subr.bf16.mxu1 %v11015_v0 }
 0x7cc   :  { %7559 = vmatmul.mubr.msk.f32.gmra.mrb[190].mxu0 %vm928_vm3, %v3471_v14  ;;  %v3473_v16 = vpop.f32.mrb[185].mxu0 }
 0x7cd   :  { %7602 = vmatprep.mubr.msk.f32.mxu0 %vm9361_vm0, %v9362_v1 }
 0x7ce   :  { %8313 = vmatpush3.bf16.msra.mxu1 %v8312_v40 }
 0x7cf   :  { %8332 = vmatprep.subr.bf16.mxu1 %v11015_v0 }
 0x827   :  { %v3576_v42 = vpop.f32.mrb[124].mxu1 }
 0x828   :  { %3620 = vst.msk [vmem:[#allocation2] sm:$0xff] %vm928_vm3, %v3576_v42  ;;  %v7374_v44 = vpop.f32.mrb[125].mxu1 }
 0x829   :  { %v4312_v44 = vld [vmem:[#allocation19 + $0x50] sm:$0xff] }
 0x82b   :  { %v3581_v45 = vpop.f32.mrb[126].mxu1 }
 0x82c   :  { %3621 = vst.msk [vmem:[#allocation2 + $0x8] sm:$0xff] %vm928_vm3, %v3581_v45  ;;  %v7377_v47 = vpop.f32.mrb[127].mxu1 }
 0x82f   :  { %v3586_v50 = vpop.f32.mrb[128].mxu1 }
 0x830   :  { %3622 = vst.msk [vmem:[#allocation2 + $0x10] sm:$0xff] %vm928_vm3, %v3586_v50  ;;  %v7380_v52 = vpop.f32.mrb[129].mxu1 }
 0x831   :  { %v4374_v52 = vld [vmem:[%s11042_s28 + $0x50] sm:$0xff] }
 0x833   :  { %v3591_v54 = vpop.f32.mrb[130].mxu1 }
 0x834   :  { %3623 = vst.msk [vmem:[#allocation2 + $0x18] sm:$0xff] %vm928_vm3, %v3591_v54  ;;  %v7383_v56 = vpop.f32.mrb[131].mxu1 }
 0x837   :  { %v3596_v57 = vpop.f32.mrb[132].mxu1 }
 0x838   :  { %3624 = vst.msk [vmem:[#allocation2 + $0x20] sm:$0xff] %vm928_vm3, %v3596_v57  ;;  %v7386_v60 = vpop.f32.mrb[133].mxu1  ;;  %v4313_v57 = vld [vmem:[#allocation19 + $0x58] sm:$0xff] }
 0x83b   :  { %v3601_v61 = vpop.f32.mrb[134].mxu1 }
 0x83c   :  { %3625 = vst.msk [vmem:[#allocation2 + $0x28] sm:$0xff] %vm928_vm3, %v3601_v61  ;;  %v7389_v6 = vpop.f32.mrb[135].mxu1 }
 0x83f   :  { %v3606_v12 = vpop.f32.mrb[136].mxu1 }
 0x840   :  { %3626 = vst.msk [vmem:[#allocation2 + $0x30] sm:$0xff] %vm928_vm3, %v3606_v12  ;;  %v7392_v14 = vpop.f32.mrb[137].mxu1  ;;  %v4375_v12 = vld [vmem:[%s11042_s28 + $0x58] sm:$0xff] }
 0x843   :  { %v3611_v16 = vpop.f32.mrb[138].mxu1 }
 0x844   :  { %3627 = vst.msk [vmem:[#allocation2 + $0x38] sm:$0xff] %vm928_vm3, %v3611_v16  ;;  %v7395_v19 = vpop.f32.mrb[139].mxu1 }
 0x845   :  { %v4314_v19 = vld [vmem:[#allocation19 + $0x60] sm:$0xff] }
 0x847   :  { %v3616_v21 = vpop.f32.mrb[140].mxu1 }
 0x848   :  { %3628 = vst.msk [vmem:[#allocation2 + $0x40] sm:$0xff] %vm928_vm3, %v3616_v21  ;;  %v7398_v22 = vpop.f32.mrb[141].mxu1 }
 0x849   :  { %v4376_v22 = vld [vmem:[%s11042_s28 + $0x60] sm:$0xff] }
 0x84b   :  { %v3719_v24 = vpop.f32.mrb[142].mxu1 }
 0x84c   :  { %3743 = vst.msk [vmem:[#allocation2 + $0x48] sm:$0xff] %vm928_vm3, %v3719_v24  ;;  %v7417_v25 = vpop.f32.mrb[143].mxu1 }
 0x84d   :  { %v4844_v25 = vld [vmem:[#allocation28] sm:$0xff] }
 0x84f   :  { %v3724_v26 = vpop.f32.mrb[144].mxu1 }
 0x850   :  { %3744 = vst.msk [vmem:[#allocation2 + $0x50] sm:$0xff] %vm928_vm3, %v3724_v26  ;;  %v7420_v28 = vpop.f32.mrb[145].mxu1  ;;  %v4845_v26 = vld [vmem:[#allocation28 + $0x8] sm:$0xff] }
 0x853   :  { %v3729_v35 = vpop.f32.mrb[146].mxu1  ;;  %v4280_v36 = vld [vmem:[#allocation2 + $0x48] sm:$0xff] }
 0x854   :  { %3745 = vst.msk [vmem:[#allocation2 + $0x58] sm:$0xff] %vm928_vm3, %v3729_v35  ;;  %v7423_v40 = vpop.f32.mrb[147].mxu1  ;;  %v4342_v42 = vmul.f32 %v4311_v31, %v4280_v36  ;;  %v4315_v36 = vld [vmem:[#allocation19 + $0x68] sm:$0xff] }
 0x855   :  { %v8333_v40 = vpack.c.bf16 %v4845_v26, %v4844_v25  ;;  %v4317_v26 = vld [vmem:[#allocation19 + $0x78] sm:$0xff] }
 0x856   :  { %v4404_v45 = vadd.f32 %v4373_v38, %v4342_v42 }
 0x857   :  { %v3734_v47 = vpop.f32.mrb[148].mxu1  ;;  %v4281_v50 = vld [vmem:[#allocation2 + $0x50] sm:$0xff] }
 0x858   :  { %3746 = vst.msk [vmem:[#allocation2 + $0x60] sm:$0xff] %vm928_vm3, %v3734_v47  ;;  %v7426_v54 = vpop.f32.mrb[149].mxu1  ;;  %8701 = vtanh.f32 %v4404_v45  ;;  %v4343_v56 = vmul.f32 %v4312_v44, %v4281_v50  ;;  %v4377_v44 = vld [vmem:[%s11042_s28 + $0x68] sm:$0xff]  ;;  %v4846_v50 = vld [vmem:[#allocation28 + $0x10] sm:$0xff] }
 0x85a   :  { %v4405_v60 = vadd.f32 %v4374_v52, %v4343_v56  ;;  %v4847_v52 = vld [vmem:[#allocation28 + $0x18] sm:$0xff] }
 0x85b   :  { %v3739_v61 = vpop.f32.mrb[150].mxu1  ;;  %v4282_v6 = vld [vmem:[#allocation2 + $0x58] sm:$0xff] }
 0x85c   :  { %3747 = vst.msk [vmem:[#allocation2 + $0x68] sm:$0xff] %vm928_vm3, %v3739_v61  ;;  %v7429_v14 = vpop.f32.mrb[151].mxu1  ;;  %8703 = vtanh.f32 %v4405_v60  ;;  %v4344_v16 = vmul.f32 %v4313_v57, %v4282_v6  ;;  %v4316_v60 = vld [vmem:[#allocation19 + $0x70] sm:$0xff]  ;;  %v8336_v6 = vpack.c.bf16 %v4847_v52, %v4846_v50  ;;  %v4318_v52 = vld [vmem:[#allocation19 + $0x80] sm:$0xff] }
 0x85e   :  { %v4406_v21 = vadd.f32 %v4375_v12, %v4344_v16  ;;  %v4378_v12 = vld [vmem:[%s11042_s28 + $0x70] sm:$0xff] }
 0x85f   :  { %v3838_v24 = vpop.f32.mrb[152].mxu1  ;;  %v4283_v28 = vld [vmem:[#allocation2 + $0x60] sm:$0xff] }
 0x860   :  { %3862 = vst.msk [vmem:[#allocation2 + $0x70] sm:$0xff] %vm928_vm3, %v3838_v24  ;;  %v7448_v31 = vpop.f32.mrb[153].mxu1  ;;  %8705 = vtanh.f32 %v4406_v21  ;;  %v4345_v35 = vmul.f32 %v4314_v19, %v4283_v28  ;;  %v4848_v19 = vld [vmem:[#allocation28 + $0x20] sm:$0xff]  ;;  %v4849_v21 = vld [vmem:[#allocation28 + $0x28] sm:$0xff] }
 0x862   :  { %v8702_v38 = vpop.eup %8701  ;;  %v4407_v42 = vadd.f32 %v4376_v22, %v4345_v35  ;;  %v4379_v35 = vld [vmem:[%s11042_s28 + $0x78] sm:$0xff] }
 0x863   :  { %v3843_v45 = vpop.f32.mrb[154].mxu1  ;;  %v10506_v47 = vadd.f32 %v8702_v38, %v10034_v29  ;;  %v4284_v54 = vld [vmem:[#allocation2 + $0x68] sm:$0xff] }
 0x864   :  { %3863 = vst.msk [vmem:[#allocation2 + $0x78] sm:$0xff] %vm928_vm3, %v3843_v45  ;;  %v7451_v56 = vpop.f32.mrb[155].mxu1  ;;  %8707 = vtanh.f32 %v4407_v42  ;;  %v4346_v57 = vmul.f32 %v4315_v36, %v4284_v54  ;;  %v4851_v42 = vld [vmem:[#allocation28 + $0x38] sm:$0xff] }
 0x865   :  { %7578 = vmatmul.mubr.msk.f32.vlgmr.msra.gmra.mrb[180].mxu1 %vm928_vm3, %v10506_v47 }
 0x866   :  { %v8704_v61 = vpop.eup %8703  ;;  %7580 = vmatprep.mubr.msk.f32.mxu1 %vm9361_vm0, %v9362_v1  ;;  %8334 = vmatpush3.bf16.msra.mxu1 %v8333_v40  ;;  %v4408_v29 = vadd.f32 %v4377_v44, %v4346_v57  ;;  %v4850_v40 = vld [vmem:[#allocation28 + $0x30] sm:$0xff] }
 0x867   :  { %v3848_v14 = vpop.f32.mrb[156].mxu1  ;;  %v10515_v16 = vadd.f32 %v8704_v61, %v10041_v46  ;;  %8335 = vmatprep.subr.bf16.mxu1 %v11015_v0  ;;  %v4285_v22 = vld [vmem:[#allocation2 + $0x70] sm:$0xff]  ;;  %v8339_v46 = vpack.c.bf16 %v4849_v21, %v4848_v19 }
 0x868   :  { %3864 = vst.msk [vmem:[#allocation2 + $0x80] sm:$0xff] %vm928_vm3, %v3848_v14  ;;  %v7454_v24 = vpop.f32.mrb[157].mxu1  ;;  %8709 = vtanh.f32 %v4408_v29  ;;  %v4347_v25 = vmul.f32 %v4316_v60, %v4285_v22  ;;  %v4319_v14 = vld [vmem:[#allocation19 + $0x88] sm:$0xff] }
 0x869   :  { %7581 = vmatmul.mubr.msk.f32.gmra.mrb[182].mxu1 %vm928_vm3, %v10515_v16 }
 0x86a   :  { %v8706_v28 = vpop.eup %8705  ;;  %7583 = vmatprep.mubr.msk.f32.mxu1 %vm9361_vm0, %v9362_v1  ;;  %8337 = vmatpush3.bf16.msra.mxu1 %v8336_v6  ;;  %v4409_v31 = vadd.f32 %v4378_v12, %v4347_v25  ;;  %v4380_v6 = vld [vmem:[%s11042_s28 + $0x80] sm:$0xff]  ;;  %v4381_v25 = vld [vmem:[%s11042_s28 + $0x88] sm:$0xff] }
 0x86b   :  { %v3853_v36 = vpop.f32.mrb[158].mxu1  ;;  %v10525_v38 = vadd.f32 %v8706_v28, %v10043_v48  ;;  %8338 = vmatprep.subr.bf16.mxu1 %v11015_v0  ;;  %v4286_v44 = vld [vmem:[#allocation2 + $0x78] sm:$0xff]  ;;  %v8342_v48 = vpack.c.bf16 %v4851_v42, %v4850_v40  ;;  %v4382_v42 = vld [vmem:[%s11042_s28 + $0x90] sm:$0xff] }
 0x86c   :  { %3865 = vst.msk [vmem:[#allocation2 + $0x88] sm:$0xff] %vm928_vm3, %v3853_v36  ;;  %v7457_v45 = vpop.f32.mrb[159].mxu1  ;;  %8711 = vtanh.f32 %v4409_v31  ;;  %v4348_v50 = vmul.f32 %v4317_v26, %v4286_v44 }
 0x86d   :  { %7584 = vmatmul.mubr.msk.f32.gmra.mrb[184].mxu1 %vm928_vm3, %v10525_v38 }
 0x86e   :  { %v8708_v54 = vpop.eup %8707  ;;  %7586 = vmatprep.mubr.msk.f32.mxu1 %vm9361_vm0, %v9362_v1  ;;  %8340 = vmatpush3.bf16.msra.mxu1 %v8339_v46  ;;  %v4410_v56 = vadd.f32 %v4379_v35, %v4348_v50  ;;  %v4320_v46 = vld [vmem:[#allocation19 + $0x90] sm:$0xff] }
 0x86f   :  { %v3858_v57 = vpop.f32.mrb[160].mxu1  ;;  %v10534_v60 = vadd.f32 %v8708_v54, %v10050_v3  ;;  %8341 = vmatprep.subr.bf16.mxu1 %v11015_v0  ;;  %v4287_v61 = vld [vmem:[#allocation2 + $0x80] sm:$0xff] }
 0x870   :  { %3866 = vst.msk [vmem:[#allocation2 + $0x90] sm:$0xff] %vm928_vm3, %v3858_v57  ;;  %v7460_v29 = vpop.f32.mrb[161].mxu1  ;;  %8713 = vtanh.f32 %v4410_v56  ;;  %v4349_v12 = vmul.f32 %v4318_v52, %v4287_v61 }
 0x871   :  { %7587 = vmatmul.mubr.msk.f32.gmra.mrb[186].mxu1 %vm928_vm3, %v10534_v60 }
 0x872   :  { %v8710_v19 = vpop.eup %8709  ;;  %7589 = vmatprep.mubr.msk.f32.mxu1 %vm9361_vm0, %v9362_v1  ;;  %8343 = vmatpush3.bf16.msra.mxu1 %v8342_v48  ;;  %v4411_v3 = vadd.f32 %v4380_v6, %v4349_v12 }
 0x873   :  { %v3951_v21 = vpop.f32.mrb[162].mxu1  ;;  %v10544_v22 = vadd.f32 %v8710_v19, %v10052_v9  ;;  %v4288_v24 = vld [vmem:[#allocation2 + $0x88] sm:$0xff]  ;;  %8344 = vmatprep.subr.bf16.mxu1 %v11015_v0 }
 0x874   :  { %3965 = vst.msk [vmem:[#allocation2 + $0x98] sm:$0xff] %vm928_vm3, %v3951_v21  ;;  %v7479_v26 = vpop.f32.mrb[163].mxu1  ;;  %8715 = vtanh.f32 %v4411_v3  ;;  %v4350_v28 = vmul.f32 %v4319_v14, %v4288_v24 }
 0x875   :  { %7590 = vmatmul.mubr.msk.f32.gmra.mrb[188].mxu1 %vm928_vm3, %v10544_v22 }
 0x876   :  { %v8712_v31 = vpop.eup %8711  ;;  %7666 = vmatprep.mubr.msk.f32.mxu1 %vm9361_vm0, %v9362_v1  ;;  %v4412_v9 = vadd.f32 %v4381_v25, %v4350_v28 }
 0x877   :  { %v3956_v35 = vpop.f32.mrb[164].mxu1  ;;  %v10554_v36 = vadd.f32 %v8712_v31, %v10059_v30  ;;  %v4289_v40 = vld [vmem:[#allocation2 + $0x90] sm:$0xff] }
 0x878   :  { %3966 = vst.msk [vmem:[#allocation2 + $0xa0] sm:$0xff] %vm928_vm3, %v3956_v35  ;;  %v7482_v44 = vpop.f32.mrb[165].mxu1  ;;  %8717 = vtanh.f32 %v4412_v9  ;;  %v4351_v45 = vmul.f32 %v4320_v46, %v4289_v40 }
 0x879   :  { %7667 = vmatmul.mubr.msk.f32.vlgmr.msra.gmra.mrb[190].mxu1 %vm928_vm3, %v10554_v36 }
 0x87a   :  { %v8714_v50 = vpop.eup %8713  ;;  %7669 = vmatprep.mubr.msk.f32.mxu1 %vm9361_vm0, %v9362_v1  ;;  %v4413_v52 = vadd.f32 %v4382_v42, %v4351_v45 }
 0x87b   :  { %v3961_v54 = vpop.f32.mrb[166].mxu1  ;;  %v10563_v48 = vadd.f32 %v8714_v50, %v10061_v33 }
 0x87c   :  { %3967 = vst.msk [vmem:[#allocation2 + $0xa8] sm:$0xff] %vm928_vm3, %v3961_v54  ;;  %v7485_v30 = vpop.f32.mrb[167].mxu1  ;;  %8719 = vtanh.f32 %v4413_v52 }
 0x87d   :  { %7670 = vmatmul.mubr.msk.f32.gmra.mrb[192].mxu1 %vm928_vm3, %v10563_v48 }
 0x87e   :  { %v8716_v56 = vpop.eup %8715  ;;  %7672 = vmatprep.mubr.msk.f32.mxu1 %vm9361_vm0, %v9362_v1 }
 0x87f   :  { %v10571_v57 = vadd.f32 %v8716_v56, %v10068_v53 }
 0x881   :  { %7673 = vmatmul.mubr.msk.f32.gmra.mrb[194].mxu1 %vm928_vm3, %v10571_v57 }
 0x882   :  { %v8718_v61 = vpop.eup %8717  ;;  %7675 = vmatprep.mubr.msk.f32.mxu1 %vm9361_vm0, %v9362_v1 }
 0x883   :  { %v4052_v33 = vpop.f32.mrb[168].mxu1  ;;  %v10578_v6 = vadd.f32 %v8718_v61, %v10070_v55 }
 0x884   :  { %4066 = vst.msk [vmem:[#allocation2 + $0xb0] sm:$0xff] %vm928_vm3, %v4052_v33  ;;  %v7504_v29 = vpop.f32.mrb[169].mxu1 }
 0x885   :  { %7676 = vmatmul.mubr.msk.f32.gmra.mrb[196].mxu1 %vm928_vm3, %v10578_v6 }
 0x886   :  { %v8720_v12 = vpop.eup %8719  ;;  %7678 = vmatprep.mubr.msk.f32.mxu1 %vm9361_vm0, %v9362_v1 }
 0x887   :  { %v4057_v53 = vpop.f32.mrb[170].mxu1  ;;  %v10586_v14 = vadd.f32 %v8720_v12, %v10077_v18 }
 0x888   :  { %4067 = vst.msk [vmem:[#allocation2 + $0xb8] sm:$0xff] %vm928_vm3, %v4057_v53  ;;  %v7507_v19 = vpop.f32.mrb[171].mxu1 }
 0x889   :  { %7679 = vmatmul.mubr.msk.f32.gmra.mrb[198].mxu1 %vm928_vm3, %v10586_v14  ;;  %v4488_v19 = vld [vmem:[#allocation23] sm:$0xff] }
 0x88a   :  { %7691 = vmatprep.mubr.msk.f32.mxu1 %vm9361_vm0, %v9362_v1 }
 0x88b   :  { %v4062_v55 = vpop.f32.mrb[172].mxu1 }
 0x88c   :  { %4068 = vst.msk [vmem:[#allocation2 + $0xc0] sm:$0xff] %vm928_vm3, %v4062_v55  ;;  %v7510_v3 = vpop.f32.mrb[173].mxu1 }
 0x893   :  { %v4153_v21 = vpop.f32.mrb[174].mxu1 }
 0x894   :  { %4167 = vst.msk [vmem:[#allocation2 + $0xc8] sm:$0xff] %vm928_vm3, %v4153_v21  ;;  %v7529_v24 = vpop.f32.mrb[175].mxu1  ;;  %v4489_v21 = vld [vmem:[#allocation23 + $0x8] sm:$0xff] }
 0x897   :  { %v4158_v25 = vpop.f32.mrb[176].mxu1  ;;  %v4254_v18 = vpop.f32.mrb[186].mxu0 }
 0x898   :  { %4168 = vst.msk [vmem:[#allocation2 + $0xd0] sm:$0xff] %vm928_vm3, %v4158_v25  ;;  %4268 = vst.msk [vmem:[#allocation2 + $0xe0] sm:$0xff] %vm928_vm3, %v4254_v18  ;;  %v7532_v26 = vpop.f32.mrb[177].mxu1  ;;  %v7554_v28 = vpop.f32.mrb[187].mxu0 }
 0x899   :  { %v4490_v26 = vld [vmem:[#allocation23 + $0x10] sm:$0xff] }
 0x89b   :  { %v4163_v46 = vpop.f32.mrb[178].mxu1  ;;  %v4259_v31 = vpop.f32.mrb[188].mxu0 }
 0x89c   :  { %4169 = vst.msk [vmem:[#allocation2 + $0xd8] sm:$0xff] %vm928_vm3, %v4163_v46  ;;  %4269 = vst.msk [vmem:[#allocation2 + $0xe8] sm:$0xff] %vm928_vm3, %v4259_v31  ;;  %v7557_v9 = vpop.f32.mrb[189].mxu0  ;;  %v7535_v35 = vpop.f32.mrb[179].mxu1  ;;  %v4491_v31 = vld [vmem:[#allocation23 + $0x18] sm:$0xff] }
 0x89d   :  { %v4321_v9 = vld [vmem:[#allocation19 + $0x98] sm:$0xff]  ;;  %v5198_v35 = vld [vmem:[#allocation34] sm:$0xff] }
 0x89f   :  { %v4264_v40 = vpop.f32.mrb[190].mxu0 }
 0x8a0   :  { %4270 = vst.msk [vmem:[#allocation2 + $0xf0] sm:$0xff] %vm928_vm3, %v4264_v40  ;;  %v7560_v42 = vpop.f32.mrb[191].mxu0  ;;  %v5199_v40 = vld [vmem:[#allocation34 + $0x8] sm:$0xff] }
 0x8a1   :  { %v4290_v42 = vld [vmem:[#allocation2 + $0x98] sm:$0xff] }
 0x8a3   :  { %v4298_v27 = vld [vmem:[#allocation2 + $0xd8] sm:$0xff] }
 0x938   :  { %v4582_v44 = vpop.f32.mrb[180].mxu1 }
 0x939   :  { %v7579_v45 = vpop.f32.mrb[181].mxu1 }
 0x93c   :  { %v4587_v50 = vpop.f32.mrb[182].mxu1 }
 0x93d   :  { %v8315_v52 = vpack.c.bf16 %v4587_v50, %v4582_v44  ;;  %v7582_v54 = vpop.f32.mrb[183].mxu1 }
 0x93e   :  { %v4383_v54 = vld [vmem:[%s11042_s28 + $0x98] sm:$0xff] }
 0x93f   :  { %8316 = vmatpush3.bf16.msra.mxu0 %v8315_v52  ;;  %v4492_v52 = vld [vmem:[#allocation23 + $0x20] sm:$0xff] }
 0x940   :  { %v4592_v30 = vpop.f32.mrb[184].mxu1  ;;  %8317 = vmatprep.subr.bf16.mxu0 %v11015_v0 }
 0x941   :  { %v7585_v56 = vpop.f32.mrb[185].mxu1 }
 0x942   :  { %v4352_v56 = vmul.f32 %v4321_v9, %v4290_v42  ;;  %v4293_v9 = vld [vmem:[#allocation2 + $0xb0] sm:$0xff]  ;;  %v5202_v42 = vld [vmem:[#allocation34 + $0x20] sm:$0xff] }
 0x944   :  { %v4597_v61 = vpop.f32.mrb[186].mxu1 }
 0x945   :  { %v8318_v33 = vpack.c.bf16 %v4597_v61, %v4592_v30  ;;  %v7588_v29 = vpop.f32.mrb[187].mxu1  ;;  %v8362_v30 = vpack.c.bf16 %v5199_v40, %v5198_v35  ;;  %v4291_v61 = vld [vmem:[#allocation2 + $0xa0] sm:$0xff]  ;;  %v4325_v40 = vld [vmem:[#allocation19 + $0xb8] sm:$0xff] }
 0x946   :  { %v4323_v29 = vld [vmem:[#allocation19 + $0xa8] sm:$0xff]  ;;  %v4324_v35 = vld [vmem:[#allocation19 + $0xb0] sm:$0xff] }
 0x947   :  { %8319 = vmatpush3.bf16.msra.mxu0 %v8318_v33  ;;  %v4322_v33 = vld [vmem:[#allocation19 + $0xa0] sm:$0xff] }
 0x948   :  { %v4602_v12 = vpop.f32.mrb[188].mxu1  ;;  %7600 = vmatprep.subr.mxu0 %v9362_v1 }
 0x949   :  { %v7591_v53 = vpop.f32.mrb[189].mxu1 }
 0x94a   :  { %v5201_v53 = vld [vmem:[#allocation34 + $0x18] sm:$0xff] }
 0x94b   :  { %7601 = vmatpush3.msra.mxu0 %v4602_v12  ;;  %v5200_v12 = vld [vmem:[#allocation34 + $0x10] sm:$0xff] }
 0x94c   :  { %7603 = vmatmul.mubr.msk.f32.vlgmr.msra.gmra.mrb[192].mxu0 %vm4613_vm5, %v4488_v19  ;;  %v4933_v55 = vpop.f32.mrb[190].mxu1  ;;  %8320 = vmatprep.subr.bf16.mxu0 %v11015_v0  ;;  %v4292_v19 = vld [vmem:[#allocation2 + $0xa8] sm:$0xff] }
 0x94d   :  { %v7668_v3 = vpop.f32.mrb[191].mxu1  ;;  %7605 = vmatprep.mubr.msk.f32.mxu0 %vm9361_vm0, %v9362_v1  ;;  %8322 = vmatpush3.bf16.msra.mxu0 %v9767_v5 }
 0x94e   :  { %8323 = vmatprep.subr.bf16.mxu0 %v11015_v0 }
 0x950   :  { %7606 = vmatmul.mubr.msk.f32.gmra.mrb[194].mxu0 %vm4613_vm5, %v4489_v21  ;;  %v4938_v24 = vpop.f32.mrb[192].mxu1  ;;  %v10628_v21 = vld [vmem:[%s11040_s26 + $0x40] sm:$0xff] }
 0x951   :  { %v8345_v25 = vpack.c.bf16 %v4938_v24, %v4933_v55  ;;  %v7671_v18 = vpop.f32.mrb[193].mxu1  ;;  %7608 = vmatprep.mubr.msk.f32.mxu0 %vm9361_vm0, %v9362_v1  ;;  %8325 = vmatpush3.bf16.msra.mxu0 %v9771_v7  ;;  %v4719_v24 = vld [vmem:[#allocation20] sm:$0xff] }
 0x952   :  { %8326 = vmatprep.subr.bf16.mxu0 %v11015_v0  ;;  %v4384_v18 = vld [vmem:[%s11042_s28 + $0xa0] sm:$0xff] }
 0x953   :  { %8346 = vmatpush3.bf16.msra.mxu1 %v8345_v25  ;;  %v4353_v25 = vmul.f32 %v4322_v33, %v4291_v61  ;;  %v4387_v61 = vld [vmem:[%s11042_s28 + $0xb8] sm:$0xff] }
 0x954   :  { %7609 = vmatmul.mubr.msk.f32.gmra.mrb[196].mxu0 %vm4613_vm5, %v4490_v26  ;;  %v4943_v28 = vpop.f32.mrb[194].mxu1  ;;  %8347 = vmatprep.subr.bf16.mxu1 %v11015_v0  ;;  %v4385_v26 = vld [vmem:[%s11042_s28 + $0xa8] sm:$0xff] }
 0x955   :  { %v7674_v46 = vpop.f32.mrb[195].mxu1  ;;  %7611 = vmatprep.mubr.msk.f32.mxu0 %vm9361_vm0, %v9362_v1  ;;  %8328 = vmatpush3.bf16.msra.mxu0 %v9777_v10 }
 0x956   :  { %8329 = vmatprep.subr.bf16.mxu0 %v11015_v0  ;;  %v4414_v46 = vadd.f32 %v4383_v54, %v4352_v56  ;;  %v4355_v54 = vmul.f32 %v4324_v35, %v4293_v9  ;;  %v4386_v56 = vld [vmem:[%s11042_s28 + $0xb0] sm:$0xff] }
 0x958   :  { %7612 = vmatmul.mubr.msk.f32.gmra.mrb[198].mxu0 %vm4613_vm5, %v4491_v31  ;;  %v4948_v44 = vpop.f32.mrb[196].mxu1  ;;  %v4354_v31 = vmul.f32 %v4323_v29, %v4292_v19  ;;  %8721 = vtanh.f32 %v4414_v46  ;;  %v4326_v19 = vld [vmem:[#allocation19 + $0xc0] sm:$0xff]  ;;  %v4388_v46 = vld [vmem:[%s11042_s28 + $0xc0] sm:$0xff] }
 0x959   :  { %v8348_v45 = vpack.c.bf16 %v4948_v44, %v4943_v28  ;;  %v7677_v50 = vpop.f32.mrb[197].mxu1  ;;  %7614 = vmatprep.mubr.msk.f32.mxu0 %vm9361_vm0, %v9362_v1  ;;  %8331 = vmatpush3.bf16.msra.mxu0 %v9783_v13  ;;  %v8366_v28 = vpack.c.bf16 %v5201_v53, %v5200_v12  ;;  %v5203_v44 = vld [vmem:[#allocation34 + $0x28] sm:$0xff] }
 0x95a   :  { %7633 = vmatprep.subr.mxu0 %v9362_v1  ;;  %v4720_v50 = vld [vmem:[#allocation20 + $0x8] sm:$0xff]  ;;  %v8370_v33 = vpack.c.bf16 %v5203_v44, %v5202_v42  ;;  %v4416_v29 = vadd.f32 %v4385_v26, %v4354_v31  ;;  %v4295_v53 = vld [vmem:[#allocation2 + $0xc0] sm:$0xff]  ;;  %v4389_v26 = vld [vmem:[%s11042_s28 + $0xc8] sm:$0xff] }
 0x95b   :  { %8349 = vmatpush3.bf16.msra.mxu1 %v8348_v45  ;;  %v4294_v45 = vld [vmem:[#allocation2 + $0xb8] sm:$0xff]  ;;  %v4328_v42 = vld [vmem:[#allocation19 + $0xd0] sm:$0xff]  ;;  %v4329_v44 = vld [vmem:[#allocation19 + $0xd8] sm:$0xff] }
 0x95c   :  { %7615 = vmatmul.mubr.msk.f32.gmra.mrb[200].mxu0 %vm4613_vm5, %v4492_v52  ;;  %v4953_v55 = vpop.f32.mrb[198].mxu1  ;;  %7689 = vmatprep.subr.mxu1 %v9362_v1  ;;  %v4415_v52 = vadd.f32 %v4384_v18, %v4353_v25  ;;  %v4356_v12 = vmul.f32 %v4325_v40, %v4294_v45  ;;  %v4417_v25 = vadd.f32 %v4386_v56, %v4355_v54  ;;  %v4297_v40 = vld [vmem:[#allocation2 + $0xd0] sm:$0xff]  ;;  %v5376_v45 = vld [vmem:[#allocation35] sm:$0xff] }
 0x95d   :  { %v7680_v3 = vpop.f32.mrb[199].mxu1  ;;  %7634 = vmatpush3.msra.mxu0 %v10628_v21  ;;  %7635 = vmatprep.mubr.msk.f32.mxu0 %vm9361_vm0, %v9362_v1  ;;  %v4357_v18 = vmul.f32 %v4326_v19, %v4295_v53  ;;  %v4359_v54 = vmul.f32 %v4328_v42, %v4297_v40  ;;  %v4330_v53 = vld [vmem:[#allocation19 + $0xe0] sm:$0xff]  ;;  %v4391_v19 = vld [vmem:[%s11042_s28 + $0xd8] sm:$0xff] }
 0x95e   :  { %8363 = vmatprep.subr.bf16.mxu0 %v8362_v30  ;;  %v5204_v3 = vld [vmem:[#allocation34 + $0x30] sm:$0xff]  ;;  %8723 = vtanh.f32 %v4415_v52  ;;  %v4418_v9 = vadd.f32 %v4387_v61, %v4356_v12  ;;  %v4299_v12 = vld [vmem:[#allocation2 + $0xe0] sm:$0xff] }
 0x95f   :  { %7690 = vmatpush3.msra.mxu1 %v4953_v55  ;;  %v4327_v55 = vld [vmem:[#allocation19 + $0xc8] sm:$0xff]  ;;  %8725 = vtanh.f32 %v4416_v29  ;;  %v4419_v52 = vadd.f32 %v4388_v46, %v4357_v18  ;;  %v4390_v61 = vld [vmem:[%s11042_s28 + $0xd0] sm:$0xff]  ;;  %v4360_v29 = vmul.f32 %v4329_v44, %v4298_v27  ;;  %v4392_v18 = vld [vmem:[%s11042_s28 + $0xe0] sm:$0xff] }
 0x960   :  { %7636 = vmatmul.mubr.msk.f32.vlgmr.msra.gmra.mrb[192].mxu0 %vm472_vm1, %v4719_v24  ;;  %8350 = vmatprep.subr.bf16.mxu1 %v11015_v0  ;;  %v5205_v24 = vld [vmem:[#allocation34 + $0x38] sm:$0xff]  ;;  %v4296_v0 = vld [vmem:[#allocation2 + $0xc8] sm:$0xff]  ;;  %8727 = vtanh.f32 %v4417_v25  ;;  %v4361_v25 = vmul.f32 %v4330_v53, %v4299_v12  ;;  %v5380_v12 = vld [vmem:[#allocation35 + $0x20] sm:$0xff] }
 0x961   :  { %7638 = vmatprep.mubr.msk.f32.mxu0 %vm9361_vm0, %v9362_v1  ;;  %8365 = vmatpush3.bf16.msra.mxu0 %v8362_v30  ;;  %v4721_v30 = vld [vmem:[#allocation20 + $0x10] sm:$0xff]  ;;  %v8374_v31 = vpack.c.bf16 %v5205_v24, %v5204_v3  ;;  %v4358_v35 = vmul.f32 %v4327_v55, %v4296_v0  ;;  %8729 = vtanh.f32 %v4418_v9  ;;  %v4300_v55 = vld [vmem:[#allocation2 + $0xe8] sm:$0xff]  ;;  %v4422_v27 = vadd.f32 %v4391_v19, %v4360_v29  ;;  %v4332_v9 = vld [vmem:[#allocation19 + $0xf0] sm:$0xff] }
 0x962   :  { %8367 = vmatprep.subr.bf16.mxu0 %v8366_v28  ;;  %v4331_v3 = vld [vmem:[#allocation19 + $0xe8] sm:$0xff]  ;;  %v8722_v24 = vpop.eup %8721  ;;  %8731 = vtanh.f32 %v4419_v52  ;;  %v5378_v42 = vld [vmem:[#allocation35 + $0x10] sm:$0xff]  ;;  %v5381_v53 = vld [vmem:[#allocation35 + $0x28] sm:$0xff] }
 0x963   :  { %v4420_v56 = vadd.f32 %v4389_v26, %v4358_v35  ;;  %v4362_v46 = vmul.f32 %v4331_v3, %v4300_v55  ;;  %v4301_v26 = vld [vmem:[#allocation2 + $0xf0] sm:$0xff]  ;;  %v4476_v40 = vadd.f32 %v8722_v24, %v10079_v20 }
 0x964   :  { %7639 = vmatmul.mubr.msk.f32.gmra.mrb[194].mxu0 %vm472_vm1, %v4720_v50  ;;  %v5377_v50 = vld [vmem:[#allocation35 + $0x8] sm:$0xff]  ;;  %v5379_v44 = vld [vmem:[#allocation35 + $0x18] sm:$0xff] }
 0x965   :  { %7641 = vmatprep.mubr.msk.f32.mxu0 %vm9361_vm0, %v9362_v1  ;;  %8369 = vmatpush3.bf16.msra.mxu0 %v8366_v28  ;;  %v4722_v28 = vld [vmem:[#allocation20 + $0x18] sm:$0xff]  ;;  %v8378_v0 = vpack.c.bf16 %v5377_v50, %v5376_v45  ;;  %8733 = vtanh.f32 %v4420_v56  ;;  %v4393_v45 = vld [vmem:[%s11042_s28 + $0xe8] sm:$0xff] }
 0x966   :  { %8371 = vmatprep.subr.bf16.mxu0 %v8370_v33  ;;  %v4424_v56 = vadd.f32 %v4393_v45, %v4362_v46  ;;  %v5776_v45 = vld [vmem:[#allocation37 + $0x8] sm:$0xff] }
 0x968   :  { %7642 = vmatmul.mubr.msk.f32.gmra.mrb[196].mxu0 %vm472_vm1, %v4721_v30  ;;  %v4421_v30 = vadd.f32 %v4390_v61, %v4359_v54  ;;  %v8724_v35 = vpop.eup %8723  ;;  %v8382_v54 = vpack.c.bf16 %v5379_v44, %v5378_v42  ;;  %v4394_v61 = vld [vmem:[%s11042_s28 + $0xf0] sm:$0xff]  ;;  %v5775_v44 = vld [vmem:[#allocation37] sm:$0xff] }
 0x969   :  { %7644 = vmatprep.mubr.msk.f32.mxu0 %vm9361_vm0, %v9362_v1  ;;  %8373 = vmatpush3.bf16.msra.mxu0 %v8370_v33  ;;  %v4723_v33 = vld [vmem:[#allocation20 + $0x20] sm:$0xff]  ;;  %v8726_v50 = vpop.eup %8725  ;;  %v4477_v52 = vadd.f32 %v8724_v35, %v10086_v41  ;;  %v8386_v41 = vpack.c.bf16 %v5381_v53, %v5380_v12  ;;  %v5779_v12 = vld [vmem:[#allocation37 + $0x20] sm:$0xff] }
 0x96a   :  { %8375 = vmatprep.subr.bf16.mxu0 %v8374_v31  ;;  %8735 = vtanh.f32 %v4421_v30  ;;  %v8728_v29 = vpop.eup %8727  ;;  %v4478_v20 = vadd.f32 %v8726_v50, %v10088_v43  ;;  %v5382_v30 = vld [vmem:[#allocation35 + $0x30] sm:$0xff]  ;;  %v5383_v43 = vld [vmem:[#allocation35 + $0x38] sm:$0xff]  ;;  %v4271_v50 = vld [vmem:[#allocation2] sm:$0xff] }
 0x96b   :  { %8737 = vtanh.f32 %v4422_v27  ;;  %v8730_v19 = vpop.eup %8729  ;;  %v4479_v3 = vadd.f32 %v8728_v29, %v10095_v2  ;;  %v8390_v27 = vpack.c.bf16 %v5383_v43, %v5382_v30  ;;  %v4365_v29 = vld [vmem:[%s11042_s28 + $0x8] sm:$0xff]  ;;  %v4274_v30 = vld [vmem:[#allocation2 + $0x18] sm:$0xff] }
 0x96c   :  { %7645 = vmatmul.mubr.msk.f32.gmra.mrb[198].mxu0 %vm472_vm1, %v4722_v28  ;;  %v4363_v28 = vmul.f32 %v4332_v9, %v4301_v26  ;;  %v8732_v24 = vpop.eup %8731  ;;  %v5780_v53 = vld [vmem:[#allocation37 + $0x28] sm:$0xff] }
 0x96d   :  { %7647 = vmatprep.mubr.msk.f32.mxu0 %vm9361_vm0, %v9362_v1  ;;  %8377 = vmatpush3.bf16.msra.mxu0 %v8374_v31  ;;  %v4423_v31 = vadd.f32 %v4392_v18, %v4361_v25 }
 0x96e   :  { %8379 = vmatprep.subr.bf16.mxu0 %v8378_v0  ;;  %v4425_v55 = vadd.f32 %v4394_v61, %v4363_v28  ;;  %v4303_v28 = vld [vmem:[#allocation19 + $0x8] sm:$0xff] }
 0x96f   :  { %8739 = vtanh.f32 %v4423_v31  ;;  %v8734_v25 = vpop.eup %8733 }
 0x970   :  { %7648 = vmatmul.mubr.msk.f32.gmra.mrb[200].mxu0 %vm472_vm1, %v4723_v33  ;;  %8741 = vtanh.f32 %v4424_v56  ;;  %v4480_v33 = vadd.f32 %v8730_v19, %v10097_v11  ;;  %v4482_v18 = vadd.f32 %v8734_v25, %v10106_v39  ;;  %v11043_v39 = vmov 0.0|0.0   ;;  %v4272_v56 = vld [vmem:[#allocation2 + $0x8] sm:$0xff]  ;;  %v4273_v19 = vld [vmem:[#allocation2 + $0x10] sm:$0xff]  ;;  %v4367_v25 = vld [vmem:[%s11042_s28 + $0x18] sm:$0xff] }
 0x971   :  { %7755 = vmatprep.mubr.msk.f32.mxu0 %vm928_vm3, %v4476_v40  ;;  %8743 = vtanh.f32 %v4425_v55  ;;  %v4334_v61 = vmul.f32 %v4303_v28, %v4272_v56  ;;  %v4371_v28 = vld [vmem:[%s11042_s28 + $0x38] sm:$0xff] }
 0x974   :  { %7756 = vmatmul.mubr.msk.f32.vlgmr.msra.gmra.mrb[202].mxu0 %vm928_vm3, %v4477_v52  ;;  %v8736_v2 = vpop.eup %8735  ;;  %v5777_v52 = vld [vmem:[#allocation37 + $0x10] sm:$0xff] }
 0x975   :  { %7758 = vmatprep.mubr.msk.f32.mxu0 %vm928_vm3, %v4478_v20  ;;  %8381 = vmatpush3.bf16.msra.mxu0 %v8378_v0  ;;  %v4481_v0 = vadd.f32 %v8732_v24, %v10104_v37  ;;  %v8738_v46 = vpop.eup %8737  ;;  %v4483_v11 = vadd.f32 %v8736_v2, %v10111_v58  ;;  %v4302_v58 = vld [vmem:[#allocation19] sm:$0xff]  ;;  %v4304_v20 = vld [vmem:[#allocation19 + $0x10] sm:$0xff] }
 0x976   :  { %8383 = vmatprep.subr.bf16.mxu0 %v8382_v54  ;;  %v4484_v9 = vadd.f32 %v8738_v46, %v10113_v59  ;;  %v4333_v31 = vmul.f32 %v4302_v58, %v4271_v50  ;;  %v4335_v55 = vmul.f32 %v4304_v20, %v4273_v19  ;;  %v5781_v24 = vld [vmem:[#allocation37 + $0x30] sm:$0xff]  ;;  %v4368_v2 = vld [vmem:[%s11042_s28 + $0x20] sm:$0xff]  ;;  %v4307_v46 = vld [vmem:[#allocation19 + $0x28] sm:$0xff] }
 0x977   :  { %v6345_v19 = vld [vmem:[#allocation25] ss:$0 sm:$0xff] }
 0x978   :  { %7759 = vmatmul.mubr.msk.f32.gmra.mrb[204].mxu0 %vm928_vm3, %v4479_v3  ;;  %v4366_v3 = vld [vmem:[%s11042_s28 + $0x10] sm:$0xff] }
 0x979   :  { %7761 = vmatprep.mubr.msk.f32.mxu0 %vm928_vm3, %v4480_v33  ;;  %8385 = vmatpush3.bf16.msra.mxu0 %v8382_v54  ;;  %v8740_v26 = vpop.eup %8739  ;;  %v5778_v54 = vld [vmem:[#allocation37 + $0x18] sm:$0xff] }
 0x97a   :  { %8387 = vmatprep.subr.bf16.mxu0 %v8386_v41  ;;  %v8742_v35 = vpop.eup %8741  ;;  %v4485_v37 = vadd.f32 %v8740_v26, %v10118_v62  ;;  %v10685_v62 = vpack.c.bf16 %v5776_v45, %v5775_v44  ;;  %v5782_v33 = vld [vmem:[#allocation37 + $0x38] sm:$0xff]  ;;  %v4309_v45 = vld [vmem:[#allocation19 + $0x38] sm:$0xff] }
 0x97b   :  { %v8744_v40 = vpop.eup %8743  ;;  %v4486_v42 = vadd.f32 %v8742_v35, %v10120_v63  ;;  %v4364_v63 = vld [vmem:[%s11042_s28] sm:$0xff]  ;;  %v4277_v35 = vld [vmem:[#allocation2 + $0x30] sm:$0xff]  ;;  %v4278_v44 = vld [vmem:[#allocation2 + $0x38] sm:$0xff] }
 0x97c   :  { %7762 = vmatmul.mubr.msk.f32.gmra.mrb[206].mxu0 %vm928_vm3, %v4481_v0  ;;  %v4487_v59 = vadd.f32 %v8744_v40, %v10124_v23  ;;  %v10693_v23 = vpack.c.bf16 %v5778_v54, %v5777_v52  ;;  %v4275_v0 = vld [vmem:[#allocation2 + $0x20] sm:$0xff] }
 0x97d   :  { %7764 = vmatprep.mubr.msk.f32.mxu0 %vm928_vm3, %v4482_v18  ;;  %8389 = vmatpush3.bf16.msra.mxu0 %v8386_v41  ;;  %v4305_v41 = vld [vmem:[#allocation19 + $0x18] sm:$0xff] }
 0x97e   :  { %8391 = vmatprep.subr.bf16.mxu0 %v8390_v27  ;;  %v4336_v43 = vmul.f32 %v4305_v41, %v4274_v30  ;;  %v4276_v18 = vld [vmem:[#allocation2 + $0x28] sm:$0xff] }
 0x980   :  { %7765 = vmatmul.mubr.msk.f32.gmra.mrb[208].mxu0 %vm928_vm3, %v4483_v11 }
 0x981   :  { %7767 = vmatprep.mubr.msk.f32.mxu0 %vm928_vm3, %v4484_v9  ;;  %8393 = vmatpush3.bf16.msra.mxu0 %v8390_v27  ;;  %v4306_v27 = vld [vmem:[#allocation19 + $0x20] sm:$0xff]  ;;  %v4369_v9 = vld [vmem:[%s11042_s28 + $0x28] sm:$0xff] }
 0x982   :  { %8427 = vmatprep.subr.bf16.mxu0 %v11043_v39 }
 0x984   :  { %7768 = vmatmul.mubr.msk.f32.gmra.mrb[210].mxu0 %vm928_vm3, %v4485_v37  ;;  %v4308_v37 = vld [vmem:[#allocation19 + $0x30] sm:$0xff] }
 0x985   :  { %7770 = vmatprep.mubr.msk.f32.mxu0 %vm928_vm3, %v4486_v42  ;;  %v4339_v42 = vmul.f32 %v4308_v37, %v4277_v35 }
 0x988   :  { %7771 = vmatmul.mubr.msk.f32.gmra.mrb[212].mxu0 %vm928_vm3, %v4487_v59  ;;  %v4370_v59 = vld [vmem:[%s11042_s28 + $0x30] sm:$0xff] }
 0x989   :  { %7789 = vmatprep.mubr.msk.f32.mxu0 %vm928_vm3, %v10506_v47  ;;  %v4395_v47 = vadd.f32 %v4364_v63, %v4333_v31  ;;  %v4340_v31 = vmul.f32 %v4309_v45, %v4278_v44 }
 0x98b   :  { %8745 = vtanh.f32 %v4395_v47 }
 0x98c   :  { %7790 = vmatmul.mubr.msk.f32.vlgmr.msra.gmra.mrb[214].mxu0 %vm928_vm3, %v10515_v16  ;;  %v10702_v16 = vpack.c.bf16 %v5780_v53, %v5779_v12  ;;  %v5073_v53 = vld [vmem:[#allocation26 + $0x20] sm:$0xff] }
 0x98d   :  { %7792 = vmatprep.mubr.msk.f32.mxu0 %vm928_vm3, %v10525_v38  ;;  %8429 = vmatpush3.bf16.msra.mxu0 %v10685_v62  ;;  %v4396_v38 = vadd.f32 %v4365_v29, %v4334_v61 }
 0x98e   :  { %8430 = vmatprep.subr.bf16.mxu0 %v11043_v39 }
 0x98f   :  { %8747 = vtanh.f32 %v4396_v38 }
 0x990   :  { %7793 = vmatmul.mubr.msk.f32.gmra.mrb[216].mxu0 %vm928_vm3, %v10534_v60  ;;  %v10711_v60 = vpack.c.bf16 %v5782_v33, %v5781_v24 }
 0x991   :  { %7795 = vmatprep.mubr.msk.f32.mxu0 %vm928_vm3, %v10544_v22  ;;  %8432 = vmatpush3.bf16.msra.mxu0 %v10693_v23  ;;  %v4397_v22 = vadd.f32 %v4366_v3, %v4335_v55 }
 0x992   :  { %8433 = vmatprep.subr.bf16.mxu0 %v11043_v39 }
 0x993   :  { %8749 = vtanh.f32 %v4397_v22 }
 0x994   :  { %7796 = vmatmul.mubr.msk.f32.gmra.mrb[218].mxu0 %vm928_vm3, %v10554_v36  ;;  %v4398_v36 = vadd.f32 %v4367_v25, %v4336_v43 }
 0x995   :  { %7798 = vmatprep.mubr.msk.f32.mxu0 %vm928_vm3, %v10563_v48  ;;  %8435 = vmatpush3.bf16.msra.mxu0 %v10702_v16  ;;  %v4337_v48 = vmul.f32 %v4306_v27, %v4275_v0  ;;  %v8746_v11 = vpop.eup %8745 }
 0x996   :  { %8436 = vmatprep.subr.bf16.mxu0 %v11043_v39  ;;  %8751 = vtanh.f32 %v4398_v36  ;;  %v4457_v26 = vadd.f32 %v8746_v11, %v9996_v15  ;;  %v4401_v15 = vadd.f32 %v4370_v59, %v4339_v42 }
 0x998   :  { %7799 = vmatmul.mubr.msk.f32.gmra.mrb[220].mxu0 %vm928_vm3, %v10571_v57  ;;  %v4399_v57 = vadd.f32 %v4368_v2, %v4337_v48 }
 0x999   :  { %7801 = vmatprep.mubr.msk.f32.mxu0 %vm928_vm3, %v10578_v6  ;;  %8438 = vmatpush3.bf16.msra.mxu0 %v10711_v60  ;;  %v4338_v6 = vmul.f32 %v4307_v46, %v4276_v18  ;;  %v8748_v40 = vpop.eup %8747 }
 0x99a   :  { %8439 = vmatprep.subr.bf16.mxu0 %v11043_v39  ;;  %8753 = vtanh.f32 %v4399_v57  ;;  %v4458_v58 = vadd.f32 %v8748_v40, %v9998_v17  ;;  %v4402_v17 = vadd.f32 %v4371_v28, %v4340_v31 }
 0x99c   :  { %7802 = vmatmul.mubr.msk.f32.gmra.mrb[222].mxu0 %vm928_vm3, %v10586_v14  ;;  %v4400_v14 = vadd.f32 %v4369_v9, %v4338_v6 }
 0x99d   :  { %7918 = vmatprep.mubr.msk.f32.mxu0 %vm9361_vm0, %v9362_v1  ;;  %v8750_v50 = vpop.eup %8749 }
 0x99e   :  { %8755 = vtanh.f32 %v4400_v14  ;;  %v4459_v63 = vadd.f32 %v8750_v50, %v10005_v32 }
 0x99f   :  { %8757 = vtanh.f32 %v4401_v15 }
 0x9a0   :  { %7919 = vmatmul.mubr.msk.f32.vlgmr.msra.gmra.mrb[224].mxu0 %vm928_vm3, %v4457_v26  ;;  %v8752_v52 = vpop.eup %8751  ;;  %8759 = vtanh.f32 %v4402_v17 }
 0x9a1   :  { %7921 = vmatprep.mubr.msk.f32.mxu0 %vm9361_vm0, %v9362_v1  ;;  %v4460_v54 = vadd.f32 %v8752_v52, %v10007_v34 }
 0x9a4   :  { %7922 = vmatmul.mubr.msk.f32.gmra.mrb[226].mxu0 %vm928_vm3, %v4458_v58  ;;  %v8754_v56 = vpop.eup %8753 }
 0x9a5   :  { %7924 = vmatprep.mubr.msk.f32.mxu0 %vm9361_vm0, %v9362_v1  ;;  %v4461_v32 = vadd.f32 %v8754_v56, %v10014_v49  ;;  %v4839_v49 = vld [vmem:[#allocation29] sm:$0xff] }
 0x9a6   :  { %7692 = vmatmul.mubr.msk.f32.vlgmr.msra.gmra.mrb[200].mxu1 %vm4613_vm5, %v4839_v49 }
 0x9a7   :  { %7694 = vmatprep.mubr.msk.f32.mxu1 %vm9361_vm0, %v9362_v1  ;;  %8352 = vmatpush3.bf16.msra.mxu1 %v9767_v5  ;;  %v4842_v5 = vld [vmem:[#allocation29 + $0x18] sm:$0xff] }
 0x9a8   :  { %7925 = vmatmul.mubr.msk.f32.gmra.mrb[228].mxu0 %vm928_vm3, %v4459_v63  ;;  %v8756_v47 = vpop.eup %8755  ;;  %8353 = vmatprep.subr.bf16.mxu1 %v11043_v39 }
 0x9a9   :  { %7927 = vmatprep.mubr.msk.f32.mxu0 %vm9361_vm0, %v9362_v1  ;;  %v4462_v61 = vadd.f32 %v8756_v47, %v10016_v51  ;;  %v8758_v29 = vpop.eup %8757  ;;  %v4840_v51 = vld [vmem:[#allocation29 + $0x8] sm:$0xff] }
 0x9aa   :  { %v4463_v34 = vadd.f32 %v8758_v29, %v10023_v4  ;;  %v8760_v20 = vpop.eup %8759  ;;  %7695 = vmatmul.mubr.msk.f32.gmra.mrb[202].mxu1 %vm4613_vm5, %v4840_v51  ;;  %v4841_v4 = vld [vmem:[#allocation29 + $0x10] sm:$0xff] }
 0x9ab   :  { %v4464_v12 = vadd.f32 %v8760_v20, %v10025_v8  ;;  %7697 = vmatprep.mubr.msk.f32.mxu1 %vm9361_vm0, %v9362_v1  ;;  %8355 = vmatpush3.bf16.msra.mxu1 %v9771_v7  ;;  %v4843_v7 = vld [vmem:[#allocation29 + $0x20] sm:$0xff] }
 0x9ac   :  { %7928 = vmatmul.mubr.msk.f32.gmra.mrb[230].mxu0 %vm928_vm3, %v4460_v54  ;;  %8356 = vmatprep.subr.bf16.mxu1 %v11043_v39  ;;  %v5070_v8 = vld [vmem:[#allocation26 + $0x8] sm:$0xff] }
 0x9ad   :  { %7930 = vmatprep.mubr.msk.f32.mxu0 %vm9361_vm0, %v9362_v1 }
 0x9ae   :  { %7698 = vmatmul.mubr.msk.f32.gmra.mrb[204].mxu1 %vm4613_vm5, %v4841_v4  ;;  %v5367_v4 = vld [vmem:[#allocation31] sm:$0xff] }
 0x9af   :  { %7700 = vmatprep.mubr.msk.f32.mxu1 %vm9361_vm0, %v9362_v1  ;;  %8358 = vmatpush3.bf16.msra.mxu1 %v9777_v10  ;;  %v5069_v10 = vld [vmem:[#allocation26] sm:$0xff] }
 0x9b0   :  { %7931 = vmatmul.mubr.msk.f32.gmra.mrb[232].mxu0 %vm928_vm3, %v4461_v32  ;;  %8359 = vmatprep.subr.bf16.mxu1 %v11043_v39 }
 0x9b1   :  { %7933 = vmatprep.mubr.msk.f32.mxu0 %vm9361_vm0, %v9362_v1 }
 0x9b2   :  { %7701 = vmatmul.mubr.msk.f32.gmra.mrb[206].mxu1 %vm4613_vm5, %v4842_v5 }
 0x9b3   :  { %7703 = vmatprep.mubr.msk.f32.mxu1 %vm9361_vm0, %v9362_v1  ;;  %8361 = vmatpush3.bf16.msra.mxu1 %v9783_v13  ;;  %v5071_v13 = vld [vmem:[#allocation26 + $0x10] sm:$0xff] }
 0x9b4   :  { %7934 = vmatmul.mubr.msk.f32.gmra.mrb[234].mxu0 %vm928_vm3, %v4462_v61  ;;  %7722 = vmatprep.subr.mxu1 %v9362_v1 }
 0x9b5   :  { %7936 = vmatprep.mubr.msk.f32.mxu0 %vm9361_vm0, %v9362_v1 }
 0x9b6   :  { %7704 = vmatmul.mubr.msk.f32.gmra.mrb[208].mxu1 %vm4613_vm5, %v4843_v7 }
 0x9b7   :  { %7723 = vmatpush3.msra.mxu1 %v10628_v21  ;;  %7724 = vmatprep.mubr.msk.f32.mxu1 %vm9361_vm0, %v9362_v1  ;;  %v5072_v21 = vld [vmem:[#allocation26 + $0x18] sm:$0xff] }
 0x9b8   :  { %7937 = vmatmul.mubr.msk.f32.gmra.mrb[236].mxu0 %vm928_vm3, %v4463_v34  ;;  %8394 = vmatprep.subr.bf16.mxu1 %v11043_v39 }
 0x9b9   :  { %7939 = vmatprep.mubr.msk.f32.mxu0 %vm9361_vm0, %v9362_v1 }
 0x9ba   :  { %7725 = vmatmul.mubr.msk.f32.vlgmr.msra.gmra.mrb[200].mxu1 %vm472_vm1, %v5069_v10  ;;  %v5368_v10 = vld [vmem:[#allocation31 + $0x8] sm:$0xff] }
 0x9bb   :  { %7727 = vmatprep.mubr.msk.f32.mxu1 %vm9361_vm0, %v9362_v1 }
 0x9bc   :  { %7940 = vmatmul.mubr.msk.f32.gmra.mrb[238].mxu0 %vm928_vm3, %v4464_v12 }
 0x9bd   :  { %7963 = vmatprep.mubr.msk.f32.mxu0 %vm9361_vm0, %v9362_v1 }
 0x9be   :  { %7728 = vmatmul.mubr.msk.f32.gmra.mrb[202].mxu1 %vm472_vm1, %v5070_v8 }
 0x9bf   :  { %7730 = vmatprep.mubr.msk.f32.mxu1 %vm9361_vm0, %v9362_v1 }
 0x9c2   :  { %7731 = vmatmul.mubr.msk.f32.gmra.mrb[204].mxu1 %vm472_vm1, %v5071_v13 }
 0x9c3   :  { %7733 = vmatprep.mubr.msk.f32.mxu1 %vm9361_vm0, %v9362_v1 }
 0x9c6   :  { %7734 = vmatmul.mubr.msk.f32.gmra.mrb[206].mxu1 %vm472_vm1, %v5072_v21  ;;  %v5369_v21 = vld [vmem:[#allocation31 + $0x10] sm:$0xff] }
 0x9c7   :  { %7736 = vmatprep.mubr.msk.f32.mxu1 %vm9361_vm0, %v9362_v1 }
 0x9ca   :  { %7737 = vmatmul.mubr.msk.f32.gmra.mrb[208].mxu1 %vm472_vm1, %v5073_v53 }
 0x9cb   :  { %7824 = vmatprep.mubr.msk.f32.mxu1 %vm9361_vm0, %v9362_v1 }
 0xa33   :  { %v4805_v38 = vpop.f32.mrb[192].mxu0 }
 0xa34   :  { %v8459_v55 = vadd.f32 %v6345_v19, %v4805_v38  ;;  %v7637_v3 = vpop.f32.mrb[193].mxu0  ;;  %v5370_v38 = vld [vmem:[#allocation31 + $0x18] sm:$0xff] }
 0xa36   :  { %4834 = vst.msk [vmem:[%s9516_s12] sm:$0xff] %vm790_vm2, %v8459_v55 }
 0xa37   :  { %v4810_v41 = vpop.f32.mrb[194].mxu0 }
 0xa38   :  { %v8460_v24 = vadd.f32 %v6345_v19, %v4810_v41  ;;  %v7640_v33 = vpop.f32.mrb[195].mxu0  ;;  %v5371_v41 = vld [vmem:[#allocation31 + $0x20] sm:$0xff] }
 0xa3a   :  { %4835 = vst.msk [vmem:[%s9516_s12 + $0x8] sm:$0xff] %vm790_vm2, %v8460_v24 }
 0xa3b   :  { %v4815_v30 = vpop.f32.mrb[196].mxu0 }
 0xa3c   :  { %v8461_v22 = vadd.f32 %v6345_v19, %v4815_v30  ;;  %v7643_v43 = vpop.f32.mrb[197].mxu0  ;;  %v5372_v30 = vld [vmem:[#allocation31 + $0x28] sm:$0xff] }
 0xa3e   :  { %4836 = vst.msk [vmem:[%s9516_s12 + $0x10] sm:$0xff] %vm790_vm2, %v8461_v22 }
 0xa3f   :  { %v4820_v25 = vpop.f32.mrb[198].mxu0 }
 0xa40   :  { %v8462_v0 = vadd.f32 %v6345_v19, %v4820_v25  ;;  %v7646_v27 = vpop.f32.mrb[199].mxu0  ;;  %v5373_v25 = vld [vmem:[#allocation31 + $0x30] sm:$0xff] }
 0xa42   :  { %4837 = vst.msk [vmem:[%s9516_s12 + $0x18] sm:$0xff] %vm790_vm2, %v8462_v0 }
 0xa43   :  { %v4825_v36 = vpop.f32.mrb[200].mxu0 }
 0xa44   :  { %v8463_v48 = vadd.f32 %v6345_v19, %v4825_v36  ;;  %v7649_v2 = vpop.f32.mrb[201].mxu0  ;;  %v5374_v36 = vld [vmem:[#allocation31 + $0x38] sm:$0xff] }
 0xa45   :  { %v5375_v2 = vld [vmem:[#allocation31 + $0x40] sm:$0xff] }
 0xa46   :  { %4838 = vst.msk [vmem:[%s9516_s12 + $0x20] sm:$0xff] %vm790_vm2, %v8463_v48  ;;  %s11044_s12 = sld [smem:[#allocation58_spill]] }
 0xa47   :  { %v7757_v18 = vpop.f32.mrb[202].mxu0 }
 0xa48   :  { %v5308_v46 = vpop.f32.mrb[203].mxu0 }
 0xa49   :  { %v8410_v11 = vpack.c.bf16 %v7757_v18, %v5308_v46  ;;  %v5189_v18 = vld [vmem:[#allocation32] sm:$0xff]  ;;  %v5190_v46 = vld [vmem:[#allocation32 + $0x8] sm:$0xff] }
 0xa4b   :  { %v7760_v57 = vpop.f32.mrb[204].mxu0 }
 0xa4c   :  { %v5318_v6 = vpop.f32.mrb[205].mxu0 }
 0xa4d   :  { %v8413_v26 = vpack.c.bf16 %v7760_v57, %v5318_v6  ;;  %v6361_v57 = vld [vmem:[%s11044_s12] ss:$0 sm:$0xff] }
 0xa4f   :  { %v7763_v9 = vpop.f32.mrb[206].mxu0 }
 0xa50   :  { %v5328_v35 = vpop.f32.mrb[207].mxu0 }
 0xa51   :  { %v8416_v37 = vpack.c.bf16 %v7763_v9, %v5328_v35  ;;  %v5192_v9 = vld [vmem:[#allocation32 + $0x18] sm:$0xff] }
 0xa53   :  { %v7766_v40 = vpop.f32.mrb[208].mxu0 }
 0xa54   :  { %v5338_v14 = vpop.f32.mrb[209].mxu0 }
 0xa55   :  { %v8419_v42 = vpack.c.bf16 %v7766_v40, %v5338_v14  ;;  %v5193_v40 = vld [vmem:[#allocation32 + $0x20] sm:$0xff]  ;;  %v4279_v14 = vld [vmem:[#allocation2 + $0x40] sm:$0xff] }
 0xa57   :  { %v10811_v58 = vpop.f32.mrb[210].mxu0 }
 0xa58   :  { %v10813_v59 = vpop.f32.mrb[211].mxu0 }
 0xa59   :  { %v8422_v44 = vpack.c.bf16 %v10811_v58, %v10813_v59 }
 0xa5b   :  { %v10817_v45 = vpop.f32.mrb[212].mxu0 }
 0xa5c   :  { %v10819_v50 = vpop.f32.mrb[213].mxu0 }
 0xa5d   :  { %v8425_v15 = vpack.c.bf16 %v10817_v45, %v10819_v50  ;;  %v4372_v50 = vld [vmem:[%s11042_s28 + $0x40] sm:$0xff] }
 0xa5f   :  { %v7791_v31 = vpop.f32.mrb[214].mxu0 }
 0xa60   :  { %v5450_v63 = vpop.f32.mrb[215].mxu0 }
 0xa61   :  { %v8395_v28 = vpack.c.bf16 %v7791_v31, %v5450_v63  ;;  %v5195_v63 = vld [vmem:[#allocation32 + $0x30] sm:$0xff] }
 0xa63   :  { %v7794_v52 = vpop.f32.mrb[216].mxu0  ;;  %8396 = vmatpush3.bf16.msra.mxu1 %v8395_v28 }
 0xa64   :  { %v5460_v17 = vpop.f32.mrb[217].mxu0  ;;  %8397 = vmatprep.subr.bf16.mxu1 %v11043_v39 }
 0xa65   :  { %v8398_v54 = vpack.c.bf16 %v7794_v52, %v5460_v17 }
 0xa67   :  { %v7797_v56 = vpop.f32.mrb[218].mxu0  ;;  %8399 = vmatpush3.bf16.msra.mxu1 %v8398_v54 }
 0xa68   :  { %v5470_v32 = vpop.f32.mrb[219].mxu0  ;;  %8400 = vmatprep.subr.bf16.mxu1 %v11043_v39 }
 0xa69   :  { %v8401_v47 = vpack.c.bf16 %v7797_v56, %v5470_v32  ;;  %v5196_v56 = vld [vmem:[#allocation32 + $0x38] sm:$0xff]  ;;  %v5197_v32 = vld [vmem:[#allocation32 + $0x40] sm:$0xff] }
 0xa6b   :  { %v7800_v61 = vpop.f32.mrb[220].mxu0  ;;  %8402 = vmatpush3.bf16.msra.mxu1 %v8401_v47 }
 0xa6c   :  { %v5480_v29 = vpop.f32.mrb[221].mxu0  ;;  %8403 = vmatprep.subr.bf16.mxu1 %v11043_v39 }
 0xa6d   :  { %v8404_v34 = vpack.c.bf16 %v7800_v61, %v5480_v29  ;;  %v11045_v61 = vld [vmem:[#allocation63_spill] sm:$0xff] }
 0xa6f   :  { %v7803_v20 = vpop.f32.mrb[222].mxu0  ;;  %8405 = vmatpush3.bf16.msra.mxu1 %v8404_v34 }
 0xa70   :  { %v5490_v49 = vpop.f32.mrb[223].mxu0  ;;  %8406 = vmatprep.subr.bf16.mxu1 %v11043_v39 }
 0xa71   :  { %v8407_v12 = vpack.c.bf16 %v7803_v20, %v5490_v49 }
 0xa73   :  { %8408 = vmatpush3.bf16.msra.mxu1 %v8407_v12  ;;  %v10827_v51 = vpop.f32.mrb[224].mxu0 }
 0xa74   :  { %v7920_v5 = vpop.f32.mrb[225].mxu0  ;;  %8409 = vmatprep.subr.bf16.mxu1 %v11043_v39 }
 0xa76   :  { %7825 = vmatmul.mubr.msk.f32.vlgmr.msra.gmra.mrb[210].mxu1 %vm5499_vm6, %v5367_v4 }
 0xa77   :  { %8411 = vmatpush3.bf16.msra.mxu1 %v8410_v11  ;;  %v10831_v7 = vpop.f32.mrb[226].mxu0  ;;  %7827 = vmatprep.mubr.msk.f32.mxu1 %vm9361_vm0, %v9362_v1  ;;  %v5191_v11 = vld [vmem:[#allocation32 + $0x10] sm:$0xff] }
 0xa78   :  { %v7923_v8 = vpop.f32.mrb[227].mxu0  ;;  %8412 = vmatprep.subr.bf16.mxu1 %v11043_v39 }
 0xa7a   :  { %7828 = vmatmul.mubr.msk.f32.gmra.mrb[212].mxu1 %vm5499_vm6, %v5368_v10 }
 0xa7b   :  { %8414 = vmatpush3.bf16.msra.mxu1 %v8413_v26  ;;  %v10837_v13 = vpop.f32.mrb[228].mxu0  ;;  %7830 = vmatprep.mubr.msk.f32.mxu1 %vm9361_vm0, %v9362_v1 }
 0xa7c   :  { %v7926_v53 = vpop.f32.mrb[229].mxu0  ;;  %8415 = vmatprep.subr.bf16.mxu1 %v11043_v39 }
 0xa7e   :  { %7831 = vmatmul.mubr.msk.f32.gmra.mrb[214].mxu1 %vm5499_vm6, %v5369_v21 }
 0xa7f   :  { %8417 = vmatpush3.bf16.msra.mxu1 %v8416_v37  ;;  %v10843_v19 = vpop.f32.mrb[230].mxu0  ;;  %7833 = vmatprep.mubr.msk.f32.mxu1 %vm9361_vm0, %v9362_v1 }
 0xa80   :  { %v7929_v55 = vpop.f32.mrb[231].mxu0  ;;  %8418 = vmatprep.subr.bf16.mxu1 %v11043_v39 }
 0xa82   :  { %7834 = vmatmul.mubr.msk.f32.gmra.mrb[216].mxu1 %vm5499_vm6, %v5370_v38 }
 0xa83   :  { %8420 = vmatpush3.bf16.msra.mxu1 %v8419_v42  ;;  %v10849_v3 = vpop.f32.mrb[232].mxu0  ;;  %7836 = vmatprep.mubr.msk.f32.mxu1 %vm9361_vm0, %v9362_v1  ;;  %v4310_v42 = vld [vmem:[#allocation19 + $0x40] sm:$0xff] }
 0xa84   :  { %v7932_v24 = vpop.f32.mrb[233].mxu0  ;;  %8421 = vmatprep.subr.bf16.mxu1 %v11043_v39  ;;  %v4341_v45 = vmul.f32 %v4310_v42, %v4279_v14  ;;  %v8764_v42 = vld [vmem:[%s11040_s26] sm:$0xff] }
 0xa86   :  { %7837 = vmatmul.mubr.msk.f32.gmra.mrb[218].mxu1 %vm5499_vm6, %v5371_v41  ;;  %v4403_v28 = vadd.f32 %v4372_v50, %v4341_v45 }
 0xa87   :  { %8423 = vmatpush3.bf16.msra.mxu1 %v8422_v44  ;;  %v10855_v33 = vpop.f32.mrb[234].mxu0  ;;  %7839 = vmatprep.mubr.msk.f32.mxu1 %vm9361_vm0, %v9362_v1  ;;  %v5194_v44 = vld [vmem:[#allocation32 + $0x28] sm:$0xff] }
 0xa88   :  { %v7935_v22 = vpop.f32.mrb[235].mxu0  ;;  %8424 = vmatprep.subr.bf16.mxu1 %v11043_v39  ;;  %8761 = vtanh.f32 %v4403_v28 }
 0xa8a   :  { %7840 = vmatmul.mubr.msk.f32.gmra.mrb[220].mxu1 %vm5499_vm6, %v5372_v30 }
 0xa8b   :  { %8426 = vmatpush3.bf16.msra.mxu1 %v8425_v15  ;;  %v10864_v43 = vpop.f32.mrb[236].mxu0  ;;  %7842 = vmatprep.mubr.msk.f32.mxu1 %vm9361_vm0, %v9362_v1 }
 0xa8c   :  { %v7938_v0 = vpop.f32.mrb[237].mxu0  ;;  %8451 = vmatprep.subr.bf16.mxu1 %v11043_v39 }
 0xa8d   :  { %v5155_v6 = vpop.f32.mrb[200].mxu1 }
 0xa8e   :  { %7843 = vmatmul.mubr.msk.f32.gmra.mrb[222].mxu1 %vm5499_vm6, %v5373_v25  ;;  %v8464_v26 = vadd.f32 %v6361_v57, %v5155_v6 }
 0xa8f   :  { %v10870_v27 = vpop.f32.mrb[238].mxu0  ;;  %7845 = vmatprep.mubr.msk.f32.mxu1 %vm9361_vm0, %v9362_v1 }
 0xa90   :  { %v7941_v48 = vpop.f32.mrb[239].mxu0  ;;  %5184 = vst.msk [vmem:[%s9521_s14] sm:$0xff] %vm790_vm2, %v8464_v26 }
 0xa92   :  { %7846 = vmatmul.mubr.msk.f32.gmra.mrb[224].mxu1 %vm5499_vm6, %v5374_v36  ;;  %v8762_v47 = vpop.eup %8761 }
 0xa93   :  { %7848 = vmatprep.mubr.msk.f32.mxu1 %vm9361_vm0, %v9362_v1  ;;  %v4465_v29 = vadd.f32 %v8762_v47, %v11045_v61 }
 0xa96   :  { %7849 = vmatmul.mubr.msk.f32.gmra.mrb[226].mxu1 %vm5499_vm6, %v5375_v2 }
 0xa97   :  { %7875 = vmatprep.mubr.msk.f32.mxu1 %vm9361_vm0, %v9362_v1 }
 0xa9a   :  { %7876 = vmatmul.mubr.msk.f32.vlgmr.msra.gmra.mrb[210].mxu1 %vm5637_vm7, %v5189_v18 }
 0xa9b   :  { %7878 = vmatprep.mubr.msk.f32.mxu1 %vm9361_vm0, %v9362_v1  ;;  %8455 = vmatpush3.bf16.msra.mxu1 %v10685_v62  ;;  %v7726_v62 = vpop.f32.mrb[201].mxu1 }
 0xa9c   :  { %8452 = vmatprep.subr.bf16.mxu1 %v11043_v39 }
 0xa9e   :  { %7879 = vmatmul.mubr.msk.f32.gmra.mrb[212].mxu1 %vm5637_vm7, %v5190_v46 }
 0xa9f   :  { %7881 = vmatprep.mubr.msk.f32.mxu1 %vm9361_vm0, %v9362_v1  ;;  %8456 = vmatpush3.bf16.msra.mxu1 %v10693_v23  ;;  %v5160_v23 = vpop.f32.mrb[202].mxu1 }
 0xaa0   :  { %8453 = vmatprep.subr.bf16.mxu1 %v11043_v39  ;;  %v8465_v35 = vadd.f32 %v6361_v57, %v5160_v23  ;;  %v7729_v37 = vpop.f32.mrb[203].mxu1 }
 0xaa2   :  { %7882 = vmatmul.mubr.msk.f32.gmra.mrb[214].mxu1 %vm5637_vm7, %v5191_v11  ;;  %5185 = vst.msk [vmem:[%s9521_s14 + $0x8] sm:$0xff] %vm790_vm2, %v8465_v35  ;;  %v6421_v35 = vld [vmem:[%s9506_s24] ss:$0 sm:$0xff] }
 0xaa3   :  { %7884 = vmatprep.mubr.msk.f32.mxu1 %vm9361_vm0, %v9362_v1  ;;  %8457 = vmatpush3.bf16.msra.mxu1 %v10702_v16  ;;  %v5165_v16 = vpop.f32.mrb[204].mxu1 }
 0xaa4   :  { %8454 = vmatprep.subr.bf16.mxu1 %v11043_v39  ;;  %v8466_v58 = vadd.f32 %v6361_v57, %v5165_v16  ;;  %v7732_v59 = vpop.f32.mrb[205].mxu1 }
 0xaa6   :  { %7885 = vmatmul.mubr.msk.f32.gmra.mrb[216].mxu1 %vm5637_vm7, %v5192_v9  ;;  %5186 = vst.msk [vmem:[%s9521_s14 + $0x10] sm:$0xff] %vm790_vm2, %v8466_v58 }
 0xaa7   :  { %7887 = vmatprep.mubr.msk.f32.mxu1 %vm9361_vm0, %v9362_v1  ;;  %8458 = vmatpush3.bf16.msra.mxu1 %v10711_v60  ;;  %v5170_v60 = vpop.f32.mrb[206].mxu1 }
 0xaa8   :  { %v8467_v15 = vadd.f32 %v6361_v57, %v5170_v60  ;;  %v7735_v31 = vpop.f32.mrb[207].mxu1 }
 0xaa9   :  { %v5175_v52 = vpop.f32.mrb[208].mxu1  ;;  %v8766_v31 = vld [vmem:[%s11040_s26 + $0x10] sm:$0xff] }
 0xaaa   :  { %7888 = vmatmul.mubr.msk.f32.gmra.mrb[218].mxu1 %vm5637_vm7, %v5193_v40  ;;  %5187 = vst.msk [vmem:[%s9521_s14 + $0x18] sm:$0xff] %vm790_vm2, %v8467_v15  ;;  %v8468_v17 = vadd.f32 %v6361_v57, %v5175_v52  ;;  %v7738_v54 = vpop.f32.mrb[209].mxu1 }
 0xaab   :  { %7890 = vmatprep.mubr.msk.f32.mxu1 %vm9361_vm0, %v9362_v1  ;;  %v8767_v54 = vld [vmem:[%s11040_s26 + $0x18] sm:$0xff] }
 0xaac   :  { %5188 = vst.msk [vmem:[%s9521_s14 + $0x20] sm:$0xff] %vm790_vm2, %v8468_v17  ;;  %s11046_s14 = sld [smem:[#allocation62_spill]] }
 0xaae   :  { %7891 = vmatmul.mubr.msk.f32.gmra.mrb[220].mxu1 %vm5637_vm7, %v5194_v44 }
 0xaaf   :  { %7893 = vmatprep.mubr.msk.f32.mxu1 %vm9361_vm0, %v9362_v1 }
 0xab2   :  { %7894 = vmatmul.mubr.msk.f32.gmra.mrb[222].mxu1 %vm5637_vm7, %v5195_v63  ;;  %v5933_v6 = vld [vmem:[%s11046_s14 + $0x20] sm:$0xff]  ;;  %v5934_v26 = vld [vmem:[%s11046_s14 + $0x28] sm:$0xff]  ;;  %v5935_v62 = vld [vmem:[%s11046_s14 + $0x30] sm:$0xff] }
 0xab3   :  { %7896 = vmatprep.mubr.msk.f32.mxu1 %vm9361_vm0, %v9362_v1  ;;  %v5936_v9 = vld [vmem:[%s11046_s14 + $0x38] sm:$0xff]  ;;  %v5937_v23 = vld [vmem:[%s11046_s14 + $0x40] sm:$0xff] }
 0xab6   :  { %7897 = vmatmul.mubr.msk.f32.gmra.mrb[224].mxu1 %vm5637_vm7, %v5196_v56 }
 0xab7   :  { %7899 = vmatprep.mubr.msk.f32.mxu1 %vm9361_vm0, %v9362_v1 }
 0xaba   :  { %7900 = vmatmul.mubr.msk.f32.gmra.mrb[226].mxu1 %vm5637_vm7, %v5197_v32 }
 0xabb   :  { %7942 = vmatprep.mubr.msk.f32.mxu1 %vm9361_vm0, %v9362_v1 }
 0xac2   :  { %7943 = vmatmul.mubr.msk.f32.vlgmr.msra.gmra.mrb[226].mxu1 %vm928_vm3, %v4465_v29  ;;  %v8768_v29 = vld [vmem:[%s11040_s26 + $0x20] sm:$0xff] }
 0xb6d   :  { %v5731_v34 = vpop.f32.mrb[210].mxu1 }
 0xb6e   :  { %v8469_v20 = vadd.f32 %v10827_v51, %v5731_v34  ;;  %v7877_v49 = vpop.f32.mrb[211].mxu1 }
 0xb71   :  { %v5736_v12 = vpop.f32.mrb[212].mxu1 }
 0xb72   :  { %v8470_v4 = vadd.f32 %v10831_v7, %v5736_v12  ;;  %v7880_v5 = vpop.f32.mrb[213].mxu1 }
 0xb74   :  { %v8440_v10 = vpack.c.bf16 %v8470_v4, %v8469_v20  ;;  %v8769_v4 = vld [vmem:[%s11040_s26 + $0x28] sm:$0xff] }
 0xb75   :  { %v5741_v8 = vpop.f32.mrb[214].mxu1 }
 0xb76   :  { %v8471_v21 = vadd.f32 %v10837_v13, %v5741_v8  ;;  %v7883_v53 = vpop.f32.mrb[215].mxu1  ;;  %8441 = vmatpush3.bf16.msra.mxu0 %v8440_v10 }
 0xb77   :  { %8442 = vmatprep.subr.bf16.mxu0 %v11043_v39  ;;  %v8770_v53 = vld [vmem:[%s11040_s26 + $0x30] sm:$0xff] }
 0xb79   :  { %v5746_v38 = vpop.f32.mrb[216].mxu1 }
 0xb7a   :  { %v8472_v55 = vadd.f32 %v10843_v19, %v5746_v38  ;;  %v7886_v41 = vpop.f32.mrb[217].mxu1 }
 0xb7c   :  { %v8443_v24 = vpack.c.bf16 %v8472_v55, %v8471_v21 }
 0xb7d   :  { %v5751_v30 = vpop.f32.mrb[218].mxu1 }
 0xb7e   :  { %v8473_v51 = vadd.f32 %v10849_v3, %v5751_v30  ;;  %v7889_v22 = vpop.f32.mrb[219].mxu1  ;;  %8444 = vmatpush3.bf16.msra.mxu0 %v8443_v24  ;;  %v8771_v30 = vld [vmem:[%s11040_s26 + $0x38] sm:$0xff] }
 0xb7f   :  { %8445 = vmatprep.subr.bf16.mxu0 %v11043_v39 }
 0xb81   :  { %v5756_v7 = vpop.f32.mrb[220].mxu1 }
 0xb82   :  { %v8474_v13 = vadd.f32 %v10855_v33, %v5756_v7  ;;  %v7892_v25 = vpop.f32.mrb[221].mxu1  ;;  %v5929_v33 = vld [vmem:[%s11046_s14] sm:$0xff] }
 0xb83   :  { %v8772_v25 = vld [vmem:[%s11040_s26 + $0x40] sm:$0xff] }
 0xb84   :  { %v8446_v0 = vpack.c.bf16 %v8474_v13, %v8473_v51 }
 0xb85   :  { %v5761_v36 = vpop.f32.mrb[222].mxu1 }
 0xb86   :  { %v8475_v48 = vadd.f32 %v10864_v43, %v5761_v36  ;;  %v7895_v19 = vpop.f32.mrb[223].mxu1  ;;  %8447 = vmatpush3.bf16.msra.mxu0 %v8446_v0  ;;  %v5931_v43 = vld [vmem:[%s11046_s14 + $0x10] sm:$0xff] }
 0xb87   :  { %8448 = vmatprep.subr.bf16.mxu0 %v11043_v39  ;;  %v5930_v39 = vld [vmem:[%s11046_s14 + $0x8] sm:$0xff] }
 0xb89   :  { %v5766_v3 = vpop.f32.mrb[224].mxu1 }
 0xb8a   :  { %v8476_v2 = vadd.f32 %v10870_v27, %v5766_v3  ;;  %v7898_v18 = vpop.f32.mrb[225].mxu1  ;;  %v5932_v27 = vld [vmem:[%s11046_s14 + $0x18] sm:$0xff] }
 0xb8c   :  { %v8449_v46 = vpack.c.bf16 %v8476_v2, %v8475_v48 }
 0xb8e   :  { %8450 = vmatpush3.bf16.msra.mxu0 %v8449_v46 }
 0xb8f   :  { %7961 = vmatprep.subr.mxu0 %v9362_v1 }
 0xb95   :  { %v5916_v11 = vpop.f32.mrb[226].mxu1 }
 0xb96   :  { %v7944_v57 = vpop.f32.mrb[227].mxu1  ;;  %7962 = vmatpush3.msra.mxu0 %v5916_v11 }
 0xb97   :  { %7964 = vmatmul.mubr.msk.f32.vlgmr.msra.gmra.mrb[240].mxu0 %vm472_vm1, %v5929_v33 }
 0xb98   :  { %7966 = vmatprep.mubr.msk.f32.mxu0 %vm9361_vm0, %v9362_v1 }
 0xb9b   :  { %7967 = vmatmul.mubr.msk.f32.gmra.mrb[242].mxu0 %vm472_vm1, %v5930_v39 }
 0xb9c   :  { %7969 = vmatprep.mubr.msk.f32.mxu0 %vm9361_vm0, %v9362_v1 }
 0xb9f   :  { %7970 = vmatmul.mubr.msk.f32.gmra.mrb[244].mxu0 %vm472_vm1, %v5931_v43 }
 0xba0   :  { %7972 = vmatprep.mubr.msk.f32.mxu0 %vm9361_vm0, %v9362_v1 }
 0xba3   :  { %7973 = vmatmul.mubr.msk.f32.gmra.mrb[246].mxu0 %vm472_vm1, %v5932_v27 }
 0xba4   :  { %7975 = vmatprep.mubr.msk.f32.mxu0 %vm9361_vm0, %v9362_v1 }
 0xba7   :  { %7976 = vmatmul.mubr.msk.f32.gmra.mrb[248].mxu0 %vm472_vm1, %v5933_v6 }
 0xba8   :  { %7978 = vmatprep.mubr.msk.f32.mxu0 %vm9361_vm0, %v9362_v1 }
 0xbab   :  { %7979 = vmatmul.mubr.msk.f32.gmra.mrb[250].mxu0 %vm472_vm1, %v5934_v26 }
 0xbac   :  { %7981 = vmatprep.mubr.msk.f32.mxu0 %vm9361_vm0, %v9362_v1 }
 0xbaf   :  { %7982 = vmatmul.mubr.msk.f32.gmra.mrb[252].mxu0 %vm472_vm1, %v5935_v62 }
 0xbb0   :  { %7984 = vmatprep.mubr.msk.f32.mxu0 %vm9361_vm0, %v9362_v1 }
 0xbb3   :  { %7985 = vmatmul.mubr.msk.f32.gmra.mrb[254].mxu0 %vm472_vm1, %v5936_v9 }
 0xbb4   :  { %7987 = vmatprep.mubr.msk.f32.mxu0 %vm9361_vm0, %v9362_v1  ;;  %v8765_v1 = vld [vmem:[%s11040_s26 + $0x8] sm:$0xff] }
 0xbb7   :  { %7988 = vmatmul.mubr.msk.f32.gmra.mrb[0].mxu0 %vm472_vm1, %v5937_v23 }
 0xc6a   :  { %v6038_v37 = vpop.f32.mrb[240].mxu0 }
 0xc6b   :  { %v6039_v40 = vadd.f32 %v6421_v35, %v6038_v37  ;;  %v7965_v14 = vpop.f32.mrb[241].mxu0 }
 0xc6d   :  { %v6082_v16 = vadd.f32 %v8764_v42, %v6039_v40 }
 0xc6e   :  { %v6043_v58 = vpop.f32.mrb[242].mxu0 }
 0xc6f   :  { %6091 = vst.msk [vmem:[%s9511_s3] sm:$0xff] %vm790_vm2, %v6082_v16  ;;  %v6044_v59 = vadd.f32 %v6421_v35, %v6043_v58  ;;  %v7968_v44 = vpop.f32.mrb[243].mxu0 }
 0xc71   :  { %v6083_v45 = vadd.f32 %v8765_v1, %v6044_v59 }
 0xc72   :  { %v6048_v50 = vpop.f32.mrb[244].mxu0 }
 0xc73   :  { %6092 = vst.msk [vmem:[%s9511_s3 + $0x8] sm:$0xff] %vm790_vm2, %v6083_v45  ;;  %v6049_v60 = vadd.f32 %v6421_v35, %v6048_v50  ;;  %v7971_v15 = vpop.f32.mrb[245].mxu0 }
 0xc75   :  { %v6084_v63 = vadd.f32 %v8766_v31, %v6049_v60 }
 0xc76   :  { %v6053_v28 = vpop.f32.mrb[246].mxu0 }
 0xc77   :  { %6093 = vst.msk [vmem:[%s9511_s3 + $0x10] sm:$0xff] %vm790_vm2, %v6084_v63  ;;  %v6054_v52 = vadd.f32 %v6421_v35, %v6053_v28  ;;  %v7974_v17 = vpop.f32.mrb[247].mxu0 }
 0xc79   :  { %v6085_v56 = vadd.f32 %v8767_v54, %v6054_v52 }
 0xc7a   :  { %v6058_v32 = vpop.f32.mrb[248].mxu0 }
 0xc7b   :  { %6094 = vst.msk [vmem:[%s9511_s3 + $0x18] sm:$0xff] %vm790_vm2, %v6085_v56  ;;  %v6059_v47 = vadd.f32 %v6421_v35, %v6058_v32  ;;  %v7977_v61 = vpop.f32.mrb[249].mxu0 }
 0xc7d   :  { %v6086_v34 = vadd.f32 %v8768_v29, %v6059_v47 }
 0xc7e   :  { %v6063_v20 = vpop.f32.mrb[250].mxu0 }
 0xc7f   :  { %6095 = vst.msk [vmem:[%s9511_s3 + $0x20] sm:$0xff] %vm790_vm2, %v6086_v34  ;;  %v6064_v49 = vadd.f32 %v6421_v35, %v6063_v20  ;;  %v7980_v12 = vpop.f32.mrb[251].mxu0 }
 0xc81   :  { %v6087_v5 = vadd.f32 %v8769_v4, %v6064_v49 }
 0xc82   :  { %v6068_v10 = vpop.f32.mrb[252].mxu0 }
 0xc83   :  { %6096 = vst.msk [vmem:[%s9511_s3 + $0x28] sm:$0xff] %vm790_vm2, %v6087_v5  ;;  %v6069_v8 = vadd.f32 %v6421_v35, %v6068_v10  ;;  %v7983_v21 = vpop.f32.mrb[253].mxu0 }
 0xc85   :  { %v6088_v38 = vadd.f32 %v8770_v53, %v6069_v8 }
 0xc86   :  { %v6073_v55 = vpop.f32.mrb[254].mxu0 }
 0xc87   :  { %6097 = vst.msk [vmem:[%s9511_s3 + $0x30] sm:$0xff] %vm790_vm2, %v6088_v38  ;;  %v6074_v41 = vadd.f32 %v6421_v35, %v6073_v55  ;;  %v7986_v24 = vpop.f32.mrb[255].mxu0 }
 0xc89   :  { %v6089_v51 = vadd.f32 %v8771_v30, %v6074_v41 }
 0xc8a   :  { %v6078_v22 = vpop.f32.mrb[0].mxu0 }
 0xc8b   :  { %6098 = vst.msk [vmem:[%s9511_s3 + $0x38] sm:$0xff] %vm790_vm2, %v6089_v51  ;;  %v6079_v7 = vadd.f32 %v6421_v35, %v6078_v22  ;;  %v7989_v13 = vpop.f32.mrb[1].mxu0 }
 0xc8d   :  { %v6090_v0 = vadd.f32 %v8772_v25, %v6079_v7 }
 0xc8f   :  { %6099 = vst.msk [vmem:[%s9511_s3 + $0x40] sm:$0xff] %vm790_vm2, %v6090_v0 }
 0xc90   :  { %6112 = vsyncpa [#allocation4], 1 }
 0xc91   :  { %6113 = vsyncpa [#allocation6], 1 }
 0xc92   :  { %6114 = vsyncpa [#allocation9], 1 }
 0xc93   :  { %6115 = vsyncpa [#allocation12], 1 }
 0xc94   :  { %6116 = vsyncpa [#allocation15], 1 }
 0xc95   :  { %6117 = vsyncpa [#allocation18], 1 }
 0xc96   :  { %6118 = vsyncpa [#allocation21], 1 }
 0xc97   :  { %6119 = vsyncpa [#allocation24], 1 }
 0xc98   :  { %6120 = vsyncpa [#allocation27], 1 }
 0xc99   :  { %6121 = vsyncpa [#allocation30], 1 }
 0xc9a   :  { %6122 = vsyncpa [#allocation33], 1 }
 0xc9b   :  { %6123 = vsyncpa [#allocation36], 1 }

</bundles_post_ra>
